<compile_context>
chip_gen: v6e
topology: v6e:2x2x1
jax: 0.10.0
libtpu: 0.0.40
codegen_flags: <defaults>
</compile_context>

<pallas_src>
import jax
import jax.numpy as jnp
from jax import lax
from jax.experimental import pallas as pl
from jax.experimental.pallas import tpu as pltpu

# ---- model dims (TransAE(frames=9, n_mels=128, n_fft=256, n_head=4, cfp=True)) ----
B = 2
FRAMES = 8                 # frames - 1 because cfp=True -> sequence length
N_MELS = 128               # model_dim
N_FFT = 256
N_HEAD = 4
D_HEAD = N_MELS // N_HEAD
FFN_DIM = FRAMES * N_MELS  # frames * n_mels
BOTTLE = 32
N_CLS = 4
LN_EPS = 1e-5
BN_EPS = 1e-5

BF = B * FRAMES            # 16  batch-folded rows
HBF = N_HEAD * BF          # 64  (head, batch, frame) folded rows
NEG_INF = -1e30


# ----------------------------- in-kernel helpers -----------------------------
def _mm(a, w):
    """(M, K) @ (K, N) on the MXU, bf16 operands, f32 accumulation."""
    return jnp.dot(a.astype(jnp.bfloat16), w.astype(jnp.bfloat16),
                   preferred_element_type=jnp.float32)


def _mm_t(a, b):
    """(M, K) @ (N, K)^T (attention scores), bf16 operands, f32 accumulation."""
    return lax.dot_general(a.astype(jnp.bfloat16), b.astype(jnp.bfloat16),
                           (((1,), (1,)), ((), ())),
                           preferred_element_type=jnp.float32)


def _layer_norm(x, gamma, beta):
    mu = jnp.mean(x, axis=-1, keepdims=True)
    xc = x - mu
    var = jnp.mean(xc * xc, axis=-1, keepdims=True)
    return xc * lax.rsqrt(var + LN_EPS) * gamma + beta


def _fold_heads(t):
    """(B*F, H*dh) -> (H*B*F, dh): lane slices + sublane concat."""
    return jnp.concatenate(
        [t[:, h * D_HEAD:(h + 1) * D_HEAD] for h in range(N_HEAD)], axis=0)


def _unfold_heads(t):
    """(H*B*F, dh) -> (B*F, H*dh): sublane slices + lane concat."""
    return jnp.concatenate(
        [t[h * BF:(h + 1) * BF, :] for h in range(N_HEAD)], axis=1)


# ------------------------------ fused forward kernel --------------------------
def transae_kernel(phase_ref, emb_ref, bias_ref,
                   pe_w1_ref, pe_b1_ref, pe_s1_ref, pe_t1_ref,
                   pe_w2_ref, pe_b2_ref, pe_s2_ref, pe_t2_ref,
                   wqkv_ref, bqkv_ref, wo_ref, bo_ref, ln1g_ref, ln1b_ref,
                   wf1_ref, bf1_ref, wf2_ref, bf2_ref, ln2g_ref, ln2b_ref,
                   bot_w_ref, bot_b_ref, exp_w_ref, exp_b_ref,
                   fco_w_ref, fco_b_ref,
                   fc1_w_ref, fc1_b_ref, fcln_g_ref, fcln_b_ref,
                   fc2_w_ref, fc2_b_ref,
                   out_ref, pre_ref):
    # ---- learnable phase encoding (lpe=True) + embedding add ----
    h = _mm(phase_ref[...], pe_w1_ref[...]) + pe_b1_ref[...]     # Linear(n_fft, n_mels)
    h = h * pe_s1_ref[...] + pe_t1_ref[...]                      # BatchNorm1d(frames), eval (folded)
    h = _mm(h, pe_w2_ref[...]) + pe_b2_ref[...]                  # Linear(n_mels, n_mels)
    h = h * pe_s2_ref[...] + pe_t2_ref[...]
    x = emb_ref[...] + h                                         # (B*F, D) f32

    bias = bias_ref[...]                                         # (HBF, HBF) additive mask

    def encoder_layer(x, l):
        # fused QKV projection; 1/sqrt(d_head) already folded into the Q third
        qkv = _mm(x, wqkv_ref[l]) + bqkv_ref[l]                  # (B*F, 3D)
        q = qkv[:, :N_MELS]
        k = qkv[:, N_MELS:2 * N_MELS]
        v = qkv[:, 2 * N_MELS:]
        qh, kh, vh = _fold_heads(q), _fold_heads(k), _fold_heads(v)   # (HBF, dh)
        # single block-diagonal score matmul over all (head, batch) pairs
        s = _mm_t(qh, kh) + bias                                 # (HBF, HBF)
        s = s - jnp.max(s, axis=-1, keepdims=True)
        e = jnp.exp(s)
        a = e * pl.reciprocal(jnp.sum(e, axis=-1, keepdims=True), approx=True)
        ctx = _unfold_heads(_mm(a, vh))                          # (B*F, D)
        attn = _mm(ctx, wo_ref[l]) + bo_ref[l]
        h1 = _layer_norm(x + attn, ln1g_ref[l], ln1b_ref[l])     # residual + LN
        # PositionalWiseFeedForward: Conv1d(k=1) -> ReLU -> Conv1d(k=1), residual, LN
        f = jnp.maximum(_mm(h1, wf1_ref[l]) + bf1_ref[l], 0.0)
        f = _mm(f, wf2_ref[l]) + bf2_ref[l]
        return _layer_norm(h1 + f, ln2g_ref[l], ln2b_ref[l])

    x = encoder_layer(x, 0)                                      # encoder
    x = encoder_layer(x, 1)

    feats = _mm(x, bot_w_ref[...]) + bot_b_ref[...]              # bottleneck (B*F, 32)
    x = _mm(feats, exp_w_ref[...]) + exp_b_ref[...]              # expand back (B*F, D)

    x = encoder_layer(x, 2)                                      # decoder
    x = encoder_layer(x, 3)

    # cfp head: mean over frames -> fc_out
    xm = jnp.mean(x.reshape(B, FRAMES, N_MELS), axis=1)          # (B, D)
    out_ref[...] = _mm(xm, fco_w_ref[...]) + fco_b_ref[...]

    # classification head: max over frames of bottleneck feats -> MLP
    fmax = jnp.max(feats.reshape(B, FRAMES, BOTTLE), axis=1)     # (B, 32)
    hh = _mm(fmax, fc1_w_ref[...]) + fc1_b_ref[...]
    hh = jnp.maximum(_layer_norm(hh, fcln_g_ref[...], fcln_b_ref[...]), 0.0)
    pre_ref[...] = _mm(hh, fc2_w_ref[...]) + fc2_b_ref[...]      # (B, n_cls)


# --------------------------------- wrappers ----------------------------------
def build_attn_bias(inputs):
    """Additive attention bias for the folded block-diagonal layout.

    Rows/cols are ordered (head, batch, frame); entry is 0 where query (h,b,l)
    may attend key (h',b',m) (same head, same batch, key not PAD), else -1e30.
    (A fully-PAD batch row would degenerate to a uniform softmax, same caveat
    as the reference.)"""
    key_pad = (inputs == 0)                                      # (B, F)
    hh = jnp.broadcast_to(jnp.arange(N_HEAD)[:, None, None], (N_HEAD, B, FRAMES)).reshape(-1)
    bb = jnp.broadcast_to(jnp.arange(B)[None, :, None], (N_HEAD, B, FRAMES)).reshape(-1)
    pad = jnp.broadcast_to(key_pad[None, :, :], (N_HEAD, B, FRAMES)).reshape(-1)
    allowed = ((hh[:, None] == hh[None, :]) & (bb[:, None] == bb[None, :])
               & jnp.logical_not(pad)[None, :])
    return jnp.where(allowed, 0.0, NEG_INF).astype(jnp.float32)  # (HBF, HBF)


@jax.jit
def transae_forward(inputs, inputs_embedding, phase, kp):
    attn_bias = build_attn_bias(inputs)
    phase2d = phase.reshape(BF, N_FFT)
    emb2d = inputs_embedding.reshape(BF, N_MELS)
    out2d, pre = pl.pallas_call(
        transae_kernel,
        out_shape=(jax.ShapeDtypeStruct((B, N_MELS), jnp.float32),
                   jax.ShapeDtypeStruct((B, N_CLS), jnp.float32)),
        compiler_params=pltpu.CompilerParams(vmem_limit_bytes=32 * 1024 * 1024),
    )(phase2d, emb2d, attn_bias, *kp)
    return out2d[:, None, :], pre                                # (B,1,D), (B,n_cls)


def prepare_params(P):
    """Host-side param prep: transpose weights to (in, out), fuse Wq/Wk/Wv with
    the 1/sqrt(d_head) scale folded into the Q third, cast weights to bf16,
    stack the 4 encoder layers along a leading dim, tile BN scale/shift to the
    batch-folded row layout."""
    def w_t(w):
        return w.T.astype(jnp.bfloat16)

    scale = jnp.float32(D_HEAD) ** -0.5
    layers = [P[n] for n in ('enc1', 'enc2', 'dec1', 'dec2')]

    kp = [
        # phase encode
        w_t(P['pe_w1']), P['pe_b1'],
        jnp.tile(P['pe_s1'], (B, 1)), jnp.tile(P['pe_t1'], (B, 1)),
        w_t(P['pe_w2']), P['pe_b2'],
        jnp.tile(P['pe_s2'], (B, 1)), jnp.tile(P['pe_t2'], (B, 1)),
        # stacked encoder/decoder layers (leading dim = 4)
        jnp.stack([jnp.concatenate(
            [w_t(p['wq'] * scale), w_t(p['wk']), w_t(p['wv'])], axis=1)
            for p in layers]),                                       # (4, D, 3D)
        jnp.stack([jnp.concatenate(
            [p['bq'] * scale, p['bk'], p['bv']], axis=1) for p in layers]),
        jnp.stack([w_t(p['wo']) for p in layers]),
        jnp.stack([p['bo'] for p in layers]),
        jnp.stack([p['ln1_g'] for p in layers]),
        jnp.stack([p['ln1_b'] for p in layers]),
        jnp.stack([w_t(p['w1']) for p in layers]),                   # (4, D, ffn)
        jnp.stack([p['b1'] for p in layers]),
        jnp.stack([w_t(p['w2']) for p in layers]),                   # (4, ffn, D)
        jnp.stack([p['b2'] for p in layers]),
        jnp.stack([p['ln2_g'] for p in layers]),
        jnp.stack([p['ln2_b'] for p in layers]),
        # bottleneck / expand / output heads
        w_t(P['bot_w']), P['bot_b'],
        w_t(P['exp_w']), P['exp_b'],
        w_t(P['fcout_w']), P['fcout_b'],
        w_t(P['fc1_w']), P['fc1_b'], P['fc_ln_g'], P['fc_ln_b'],
        w_t(P['fc2_w']), P['fc2_b'],
    ]
    return kp


# ------------------------- parameters (deterministic) ------------------------
def init_params(key):
    keys = iter(jax.random.split(key, 160))

    def linear(out_d, in_d):
        w = jax.random.normal(next(keys), (out_d, in_d), jnp.float32) / jnp.sqrt(in_d)
        b = jax.random.normal(next(keys), (1, out_d), jnp.float32) * 0.02
        return w, b

    def bn_fold(frames):
        g = 1.0 + 0.1 * jax.random.normal(next(keys), (frames,), jnp.float32)
        beta = 0.05 * jax.random.normal(next(keys), (frames,), jnp.float32)
        rm = jnp.zeros((frames,), jnp.float32)               # running stats, eval mode
        rv = jnp.ones((frames,), jnp.float32)
        scale = g / jnp.sqrt(rv + BN_EPS)
        shift = beta - rm * scale
        return scale.reshape(frames, 1), shift.reshape(frames, 1)

    def enc_layer():
        p = {}
        p['wq'], p['bq'] = linear(N_MELS, N_MELS)
        p['wk'], p['bk'] = linear(N_MELS, N_MELS)
        p['wv'], p['bv'] = linear(N_MELS, N_MELS)
        p['wo'], p['bo'] = linear(N_MELS, N_MELS)
        p['ln1_g'] = jnp.ones((1, N_MELS), jnp.float32)
        p['ln1_b'] = jnp.zeros((1, N_MELS), jnp.float32)
        p['w1'], p['b1'] = linear(FFN_DIM, N_MELS)           # Conv1d(model, ffn, 1)
        p['w2'], p['b2'] = linear(N_MELS, FFN_DIM)           # Conv1d(ffn, model, 1)
        p['ln2_g'] = jnp.ones((1, N_MELS), jnp.float32)
        p['ln2_b'] = jnp.zeros((1, N_MELS), jnp.float32)
        return p

    P = {}
    P['pe_w1'], P['pe_b1'] = linear(N_MELS, N_FFT)
    P['pe_s1'], P['pe_t1'] = bn_fold(FRAMES)
    P['pe_w2'], P['pe_b2'] = linear(N_MELS, N_MELS)
    P['pe_s2'], P['pe_t2'] = bn_fold(FRAMES)
    for name in ('enc1', 'enc2', 'dec1', 'dec2'):
        P[name] = enc_layer()
    P['bot_w'], P['bot_b'] = linear(BOTTLE, N_MELS)
    P['exp_w'], P['exp_b'] = linear(N_MELS, BOTTLE)
    P['fcout_w'], P['fcout_b'] = linear(N_MELS, N_MELS)
    P['fc1_w'], P['fc1_b'] = linear(BOTTLE, BOTTLE)
    P['fc_ln_g'] = jnp.ones((1, BOTTLE), jnp.float32)
    P['fc_ln_b'] = jnp.zeros((1, BOTTLE), jnp.float32)
    P['fc2_w'], P['fc2_b'] = linear(N_CLS, BOTTLE)
    return P


# ------------------------ pure-JAX reference (checking) -----------------------
def ref_layer_norm(x, g, b):
    mu = jnp.mean(x, axis=-1, keepdims=True)
    var = jnp.mean((x - mu) ** 2, axis=-1, keepdims=True)
    return (x - mu) * jax.lax.rsqrt(var + LN_EPS) * g + b


def ref_encoder_layer(x, mask_bool, p):
    q = jnp.einsum('bld,od->blo', x, p['wq']) + p['bq']
    k = jnp.einsum('bld,od->blo', x, p['wk']) + p['bk']
    v = jnp.einsum('bld,od->blo', x, p['wv']) + p['bv']

    def split(t):
        return t.reshape(B, FRAMES, N_HEAD, D_HEAD).transpose(0, 2, 1, 3)

    qh, kh, vh = split(q), split(k), split(v)
    s = jnp.einsum('bhld,bhmd->bhlm', qh, kh) * (D_HEAD ** -0.5)
    s = jnp.where(mask_bool[:, None, :, :], -1e30, s)
    a = jax.nn.softmax(s, axis=-1)
    ctx = jnp.einsum('bhlm,bhmd->bhld', a, vh)
    ctx = ctx.transpose(0, 2, 1, 3).reshape(B, FRAMES, N_MELS)
    o = jnp.einsum('bld,od->blo', ctx, p['wo']) + p['bo']
    h1 = ref_layer_norm(x + o, p['ln1_g'], p['ln1_b'])
    f = jnp.maximum(jnp.einsum('bld,fd->blf', h1, p['w1']) + p['b1'], 0.0)
    f = jnp.einsum('blf,df->bld', f, p['w2']) + p['b2']
    return ref_layer_norm(h1 + f, p['ln2_g'], p['ln2_b'])


def ref_forward(inputs, emb, phase, P):
    mask_bool = jnp.broadcast_to((inputs == 0)[:, None, :], (B, FRAMES, FRAMES))
    h = jnp.einsum('bfn,mn->bfm', phase, P['pe_w1']) + P['pe_b1']
    h = h * P['pe_s1'][None] + P['pe_t1'][None]
    h = jnp.einsum('bfm,km->bfk', h, P['pe_w2']) + P['pe_b2']
    h = h * P['pe_s2'][None] + P['pe_t2'][None]
    x = emb + h
    x = ref_encoder_layer(x, mask_bool, P['enc1'])
    x = ref_encoder_layer(x, mask_bool, P['enc2'])
    feats = jnp.einsum('bld,od->blo', x, P['bot_w']) + P['bot_b']
    x = jnp.einsum('blo,do->bld', feats, P['exp_w']) + P['exp_b']
    x = ref_encoder_layer(x, mask_bool, P['dec1'])
    x = ref_encoder_layer(x, mask_bool, P['dec2'])
    xm = jnp.mean(x, axis=1)
    out = (jnp.einsum('bd,od->bo', xm, P['fcout_w']) + P['fcout_b'])[:, None, :]
    fmax = jnp.max(feats, axis=1)
    h = jnp.einsum('bo,po->bp', fmax, P['fc1_w']) + P['fc1_b']
    h = jnp.maximum(ref_layer_norm(h, P['fc_ln_g'], P['fc_ln_b']), 0.0)
    pre = jnp.einsum('bp,cp->bc', h, P['fc2_w']) + P['fc2_b']
    return out, pre


# ----------------------------------- main -------------------------------------
if __name__ == "__main__":
    key = jax.random.PRNGKey(0)
    k1, k2, k3 = jax.random.split(key, 3)

    # inputs: integer id sequence (0 == PAD) used only to build the padding mask
    inputs = jnp.array([[3, 1, 4, 1, 5, 9, 0, 0],
                        [2, 7, 1, 8, 2, 8, 1, 0]], dtype=jnp.int32)
    inputs_embedding = jax.random.normal(k1, (B, FRAMES, N_MELS), jnp.float32)
    phase = jax.random.normal(k2, (B, FRAMES, N_FFT), jnp.float32)

    P = init_params(k3)           # logical f32 parameters (reference)
    KP = prepare_params(P)        # fused / transposed / bf16 kernel parameters

    out, pre_ids = transae_forward(inputs, inputs_embedding, phase, KP)
    jax.block_until_ready((out, pre_ids))

    ref_out, ref_pre = ref_forward(inputs, inputs_embedding, phase, P)
    assert out.shape == (B, 1, N_MELS) and pre_ids.shape == (B, N_CLS)
    # kernel uses bf16 MXU operands with f32 accumulation vs f32 reference
    assert jnp.allclose(out, ref_out, atol=3e-2, rtol=3e-2), "output mismatch"
    assert jnp.allclose(pre_ids, ref_pre, atol=3e-2, rtol=3e-2), "pre_ids mismatch"
    print("KERNEL_OK")
</pallas_src>

<mosaic_0001>
module attributes {stable_mosaic.version = 11 : i64} {
  func.func @transae_kernel(%arg0: memref<16x256xf32, #tpu.memory_space<vmem>>, %arg1: memref<16x128xf32, #tpu.memory_space<vmem>>, %arg2: memref<64x64xf32, #tpu.memory_space<vmem>>, %arg3: memref<256x128xbf16, #tpu.memory_space<vmem>>, %arg4: memref<1x128xf32, #tpu.memory_space<vmem>>, %arg5: memref<16x1xf32, #tpu.memory_space<vmem>>, %arg6: memref<16x1xf32, #tpu.memory_space<vmem>>, %arg7: memref<128x128xbf16, #tpu.memory_space<vmem>>, %arg8: memref<1x128xf32, #tpu.memory_space<vmem>>, %arg9: memref<16x1xf32, #tpu.memory_space<vmem>>, %arg10: memref<16x1xf32, #tpu.memory_space<vmem>>, %arg11: memref<4x128x384xbf16, #tpu.memory_space<vmem>>, %arg12: memref<4x1x384xf32, #tpu.memory_space<vmem>>, %arg13: memref<4x128x128xbf16, #tpu.memory_space<vmem>>, %arg14: memref<4x1x128xf32, #tpu.memory_space<vmem>>, %arg15: memref<4x1x128xf32, #tpu.memory_space<vmem>>, %arg16: memref<4x1x128xf32, #tpu.memory_space<vmem>>, %arg17: memref<4x128x1024xbf16, #tpu.memory_space<vmem>>, %arg18: memref<4x1x1024xf32, #tpu.memory_space<vmem>>, %arg19: memref<4x1024x128xbf16, #tpu.memory_space<vmem>>, %arg20: memref<4x1x128xf32, #tpu.memory_space<vmem>>, %arg21: memref<4x1x128xf32, #tpu.memory_space<vmem>>, %arg22: memref<4x1x128xf32, #tpu.memory_space<vmem>>, %arg23: memref<128x32xbf16, #tpu.memory_space<vmem>>, %arg24: memref<1x32xf32, #tpu.memory_space<vmem>>, %arg25: memref<32x128xbf16, #tpu.memory_space<vmem>>, %arg26: memref<1x128xf32, #tpu.memory_space<vmem>>, %arg27: memref<128x128xbf16, #tpu.memory_space<vmem>>, %arg28: memref<1x128xf32, #tpu.memory_space<vmem>>, %arg29: memref<32x32xbf16, #tpu.memory_space<vmem>>, %arg30: memref<1x32xf32, #tpu.memory_space<vmem>>, %arg31: memref<1x32xf32, #tpu.memory_space<vmem>>, %arg32: memref<1x32xf32, #tpu.memory_space<vmem>>, %arg33: memref<32x4xbf16, #tpu.memory_space<vmem>>, %arg34: memref<1x4xf32, #tpu.memory_space<vmem>>, %arg35: memref<2x128xf32, #tpu.memory_space<vmem>>, %arg36: memref<2x4xf32, #tpu.memory_space<vmem>>) attributes {dimension_semantics = [], scalar_prefetch = 0 : i64, scratch_operands = 0 : i64, tpu.core_type = #tpu.core_type<tc>} {
    %c0 = arith.constant 0 : index
    %c0_0 = arith.constant 0 : index
    %0 = vector.load %arg0[%c0, %c0_0] : memref<16x256xf32, #tpu.memory_space<vmem>>, vector<16x256xf32>
    %c0_1 = arith.constant 0 : index
    %c0_2 = arith.constant 0 : index
    %1 = vector.load %arg3[%c0_1, %c0_2] : memref<256x128xbf16, #tpu.memory_space<vmem>>, vector<256x128xbf16>
    %2 = arith.truncf %0 : vector<16x256xf32> to vector<16x256xbf16>
    %cst = arith.constant dense<0.000000e+00> : vector<16x128xf32>
    %3 = tpu.matmul %2, %1, %cst {dimension_numbers = #tpu.dot_dimension_numbers<[1], [0], [0], [1], [0, 0, 1, 1], [], []>} : vector<16x256xbf16>, vector<256x128xbf16>, vector<16x128xf32> -> vector<16x128xf32>
    %c0_3 = arith.constant 0 : index
    %c0_4 = arith.constant 0 : index
    %4 = vector.load %arg4[%c0_3, %c0_4] : memref<1x128xf32, #tpu.memory_space<vmem>>, vector<1x128xf32>
    %5 = vector.broadcast %4 : vector<1x128xf32> to vector<16x128xf32>
    %6 = arith.addf %3, %5 : vector<16x128xf32>
    %c0_5 = arith.constant 0 : index
    %c0_6 = arith.constant 0 : index
    %7 = vector.load %arg5[%c0_5, %c0_6] : memref<16x1xf32, #tpu.memory_space<vmem>>, vector<16x1xf32>
    %8 = vector.broadcast %7 : vector<16x1xf32> to vector<16x128xf32>
    %9 = arith.mulf %6, %8 : vector<16x128xf32>
    %c0_7 = arith.constant 0 : index
    %c0_8 = arith.constant 0 : index
    %10 = vector.load %arg6[%c0_7, %c0_8] : memref<16x1xf32, #tpu.memory_space<vmem>>, vector<16x1xf32>
    %11 = vector.broadcast %10 : vector<16x1xf32> to vector<16x128xf32>
    %12 = arith.addf %9, %11 : vector<16x128xf32>
    %c0_9 = arith.constant 0 : index
    %c0_10 = arith.constant 0 : index
    %13 = vector.load %arg7[%c0_9, %c0_10] : memref<128x128xbf16, #tpu.memory_space<vmem>>, vector<128x128xbf16>
    %14 = arith.truncf %12 : vector<16x128xf32> to vector<16x128xbf16>
    %cst_11 = arith.constant dense<0.000000e+00> : vector<16x128xf32>
    %15 = tpu.matmul %14, %13, %cst_11 {dimension_numbers = #tpu.dot_dimension_numbers<[1], [0], [0], [1], [0, 0, 1, 1], [], []>} : vector<16x128xbf16>, vector<128x128xbf16>, vector<16x128xf32> -> vector<16x128xf32>
    %c0_12 = arith.constant 0 : index
    %c0_13 = arith.constant 0 : index
    %16 = vector.load %arg8[%c0_12, %c0_13] : memref<1x128xf32, #tpu.memory_space<vmem>>, vector<1x128xf32>
    %17 = vector.broadcast %16 : vector<1x128xf32> to vector<16x128xf32>
    %18 = arith.addf %15, %17 : vector<16x128xf32>
    %c0_14 = arith.constant 0 : index
    %c0_15 = arith.constant 0 : index
    %19 = vector.load %arg9[%c0_14, %c0_15] : memref<16x1xf32, #tpu.memory_space<vmem>>, vector<16x1xf32>
    %20 = vector.broadcast %19 : vector<16x1xf32> to vector<16x128xf32>
    %21 = arith.mulf %18, %20 : vector<16x128xf32>
    %c0_16 = arith.constant 0 : index
    %c0_17 = arith.constant 0 : index
    %22 = vector.load %arg10[%c0_16, %c0_17] : memref<16x1xf32, #tpu.memory_space<vmem>>, vector<16x1xf32>
    %23 = vector.broadcast %22 : vector<16x1xf32> to vector<16x128xf32>
    %24 = arith.addf %21, %23 : vector<16x128xf32>
    %c0_18 = arith.constant 0 : index
    %c0_19 = arith.constant 0 : index
    %25 = vector.load %arg1[%c0_18, %c0_19] : memref<16x128xf32, #tpu.memory_space<vmem>>, vector<16x128xf32>
    %26 = arith.addf %25, %24 : vector<16x128xf32>
    %c0_20 = arith.constant 0 : index
    %c0_21 = arith.constant 0 : index
    %27 = vector.load %arg2[%c0_20, %c0_21] : memref<64x64xf32, #tpu.memory_space<vmem>>, vector<64x64xf32>
    %c0_22 = arith.constant 0 : index
    %c0_23 = arith.constant 0 : index
    %c0_24 = arith.constant 0 : index
    %28 = vector.load %arg11[%c0_22, %c0_23, %c0_24] : memref<4x128x384xbf16, #tpu.memory_space<vmem>>, vector<1x128x384xbf16>
    %29 = vector.shape_cast %28 : vector<1x128x384xbf16> to vector<128x384xbf16>
    %30 = arith.truncf %26 : vector<16x128xf32> to vector<16x128xbf16>
    %cst_25 = arith.constant dense<0.000000e+00> : vector<16x384xf32>
    %31 = tpu.matmul %30, %29, %cst_25 {dimension_numbers = #tpu.dot_dimension_numbers<[1], [0], [0], [1], [0, 0, 1, 1], [], []>} : vector<16x128xbf16>, vector<128x384xbf16>, vector<16x384xf32> -> vector<16x384xf32>
    %c0_26 = arith.constant 0 : index
    %c0_27 = arith.constant 0 : index
    %c0_28 = arith.constant 0 : index
    %32 = vector.load %arg12[%c0_26, %c0_27, %c0_28] : memref<4x1x384xf32, #tpu.memory_space<vmem>>, vector<1x1x384xf32>
    %33 = vector.shape_cast %32 : vector<1x1x384xf32> to vector<1x384xf32>
    %34 = vector.broadcast %33 : vector<1x384xf32> to vector<16x384xf32>
    %35 = arith.addf %31, %34 : vector<16x384xf32>
    %36 = vector.extract_strided_slice %35 {offsets = [0, 0], sizes = [16, 128], strides = [1, 1]} : vector<16x384xf32> to vector<16x128xf32>
    %37 = vector.extract_strided_slice %35 {offsets = [0, 128], sizes = [16, 128], strides = [1, 1]} : vector<16x384xf32> to vector<16x128xf32>
    %38 = vector.extract_strided_slice %35 {offsets = [0, 256], sizes = [16, 128], strides = [1, 1]} : vector<16x384xf32> to vector<16x128xf32>
    %39 = vector.extract_strided_slice %36 {offsets = [0, 0], sizes = [16, 32], strides = [1, 1]} : vector<16x128xf32> to vector<16x32xf32>
    %40 = vector.extract_strided_slice %36 {offsets = [0, 32], sizes = [16, 32], strides = [1, 1]} : vector<16x128xf32> to vector<16x32xf32>
    %41 = vector.extract_strided_slice %36 {offsets = [0, 64], sizes = [16, 32], strides = [1, 1]} : vector<16x128xf32> to vector<16x32xf32>
    %42 = vector.extract_strided_slice %36 {offsets = [0, 96], sizes = [16, 32], strides = [1, 1]} : vector<16x128xf32> to vector<16x32xf32>
    %43 = tpu.concatenate %39, %40, %41, %42 in 0 : vector<16x32xf32>, vector<16x32xf32>, vector<16x32xf32>, vector<16x32xf32> -> vector<64x32xf32>
    %44 = vector.extract_strided_slice %37 {offsets = [0, 0], sizes = [16, 32], strides = [1, 1]} : vector<16x128xf32> to vector<16x32xf32>
    %45 = vector.extract_strided_slice %37 {offsets = [0, 32], sizes = [16, 32], strides = [1, 1]} : vector<16x128xf32> to vector<16x32xf32>
    %46 = vector.extract_strided_slice %37 {offsets = [0, 64], sizes = [16, 32], strides = [1, 1]} : vector<16x128xf32> to vector<16x32xf32>
    %47 = vector.extract_strided_slice %37 {offsets = [0, 96], sizes = [16, 32], strides = [1, 1]} : vector<16x128xf32> to vector<16x32xf32>
    %48 = tpu.concatenate %44, %45, %46, %47 in 0 : vector<16x32xf32>, vector<16x32xf32>, vector<16x32xf32>, vector<16x32xf32> -> vector<64x32xf32>
    %49 = vector.extract_strided_slice %38 {offsets = [0, 0], sizes = [16, 32], strides = [1, 1]} : vector<16x128xf32> to vector<16x32xf32>
    %50 = vector.extract_strided_slice %38 {offsets = [0, 32], sizes = [16, 32], strides = [1, 1]} : vector<16x128xf32> to vector<16x32xf32>
    %51 = vector.extract_strided_slice %38 {offsets = [0, 64], sizes = [16, 32], strides = [1, 1]} : vector<16x128xf32> to vector<16x32xf32>
    %52 = vector.extract_strided_slice %38 {offsets = [0, 96], sizes = [16, 32], strides = [1, 1]} : vector<16x128xf32> to vector<16x32xf32>
    %53 = tpu.concatenate %49, %50, %51, %52 in 0 : vector<16x32xf32>, vector<16x32xf32>, vector<16x32xf32>, vector<16x32xf32> -> vector<64x32xf32>
    %54 = arith.truncf %43 : vector<64x32xf32> to vector<64x32xbf16>
    %55 = arith.truncf %48 : vector<64x32xf32> to vector<64x32xbf16>
    %cst_29 = arith.constant dense<0.000000e+00> : vector<64x64xf32>
    %56 = tpu.matmul %54, %55, %cst_29 {dimension_numbers = #tpu.dot_dimension_numbers<[1], [1], [0], [0], [0, 0, 1, 0], [], []>} : vector<64x32xbf16>, vector<64x32xbf16>, vector<64x64xf32> -> vector<64x64xf32>
    %57 = arith.addf %56, %27 : vector<64x64xf32>
    %cst_30 = arith.constant dense<0xFF800000> : vector<64xf32>
    %58 = vector.multi_reduction <maximumf>, %57, %cst_30 [1] : vector<64x64xf32> to vector<64xf32>
    %59 = vector.shape_cast %58 : vector<64xf32> to vector<64x1xf32>
    %60 = vector.broadcast %59 : vector<64x1xf32> to vector<64x64xf32>
    %61 = arith.subf %57, %60 : vector<64x64xf32>
    %62 = math.exp %61 : vector<64x64xf32>
    %cst_31 = arith.constant dense<0.000000e+00> : vector<64xf32>
    %63 = vector.multi_reduction <add>, %62, %cst_31 [1] : vector<64x64xf32> to vector<64xf32>
    %64 = vector.shape_cast %63 : vector<64xf32> to vector<64x1xf32>
    %65 = tpu.reciprocal %64 {approx = true} : vector<64x1xf32> -> vector<64x1xf32>
    %66 = vector.broadcast %65 : vector<64x1xf32> to vector<64x64xf32>
    %67 = arith.mulf %62, %66 : vector<64x64xf32>
    %68 = arith.truncf %67 : vector<64x64xf32> to vector<64x64xbf16>
    %69 = arith.truncf %53 : vector<64x32xf32> to vector<64x32xbf16>
    %cst_32 = arith.constant dense<0.000000e+00> : vector<64x32xf32>
    %70 = tpu.matmul %68, %69, %cst_32 {dimension_numbers = #tpu.dot_dimension_numbers<[1], [0], [0], [1], [0, 0, 1, 1], [], []>} : vector<64x64xbf16>, vector<64x32xbf16>, vector<64x32xf32> -> vector<64x32xf32>
    %71 = vector.extract_strided_slice %70 {offsets = [0, 0], sizes = [16, 32], strides = [1, 1]} : vector<64x32xf32> to vector<16x32xf32>
    %72 = vector.extract_strided_slice %70 {offsets = [16, 0], sizes = [16, 32], strides = [1, 1]} : vector<64x32xf32> to vector<16x32xf32>
    %73 = vector.extract_strided_slice %70 {offsets = [32, 0], sizes = [16, 32], strides = [1, 1]} : vector<64x32xf32> to vector<16x32xf32>
    %74 = vector.extract_strided_slice %70 {offsets = [48, 0], sizes = [16, 32], strides = [1, 1]} : vector<64x32xf32> to vector<16x32xf32>
    %75 = tpu.concatenate %71, %72, %73, %74 in 1 : vector<16x32xf32>, vector<16x32xf32>, vector<16x32xf32>, vector<16x32xf32> -> vector<16x128xf32>
    %c0_33 = arith.constant 0 : index
    %c0_34 = arith.constant 0 : index
    %c0_35 = arith.constant 0 : index
    %76 = vector.load %arg13[%c0_33, %c0_34, %c0_35] : memref<4x128x128xbf16, #tpu.memory_space<vmem>>, vector<1x128x128xbf16>
    %77 = vector.shape_cast %76 : vector<1x128x128xbf16> to vector<128x128xbf16>
    %78 = arith.truncf %75 : vector<16x128xf32> to vector<16x128xbf16>
    %cst_36 = arith.constant dense<0.000000e+00> : vector<16x128xf32>
    %79 = tpu.matmul %78, %77, %cst_36 {dimension_numbers = #tpu.dot_dimension_numbers<[1], [0], [0], [1], [0, 0, 1, 1], [], []>} : vector<16x128xbf16>, vector<128x128xbf16>, vector<16x128xf32> -> vector<16x128xf32>
    %c0_37 = arith.constant 0 : index
    %c0_38 = arith.constant 0 : index
    %c0_39 = arith.constant 0 : index
    %80 = vector.load %arg14[%c0_37, %c0_38, %c0_39] : memref<4x1x128xf32, #tpu.memory_space<vmem>>, vector<1x1x128xf32>
    %81 = vector.shape_cast %80 : vector<1x1x128xf32> to vector<1x128xf32>
    %82 = vector.broadcast %81 : vector<1x128xf32> to vector<16x128xf32>
    %83 = arith.addf %79, %82 : vector<16x128xf32>
    %84 = arith.addf %26, %83 : vector<16x128xf32>
    %c0_40 = arith.constant 0 : index
    %c0_41 = arith.constant 0 : index
    %c0_42 = arith.constant 0 : index
    %85 = vector.load %arg15[%c0_40, %c0_41, %c0_42] : memref<4x1x128xf32, #tpu.memory_space<vmem>>, vector<1x1x128xf32>
    %86 = vector.shape_cast %85 : vector<1x1x128xf32> to vector<1x128xf32>
    %c0_43 = arith.constant 0 : index
    %c0_44 = arith.constant 0 : index
    %c0_45 = arith.constant 0 : index
    %87 = vector.load %arg16[%c0_43, %c0_44, %c0_45] : memref<4x1x128xf32, #tpu.memory_space<vmem>>, vector<1x1x128xf32>
    %88 = vector.shape_cast %87 : vector<1x1x128xf32> to vector<1x128xf32>
    %cst_46 = arith.constant dense<0.000000e+00> : vector<16xf32>
    %89 = vector.multi_reduction <add>, %84, %cst_46 [1] : vector<16x128xf32> to vector<16xf32>
    %90 = vector.shape_cast %89 : vector<16xf32> to vector<16x1xf32>
    %cst_47 = arith.constant 1.280000e+02 : f32
    %91 = vector.broadcast %cst_47 : f32 to vector<16x1xf32>
    %92 = arith.divf %90, %91 : vector<16x1xf32>
    %93 = vector.broadcast %92 : vector<16x1xf32> to vector<16x128xf32>
    %94 = arith.subf %84, %93 : vector<16x128xf32>
    %95 = arith.mulf %94, %94 : vector<16x128xf32>
    %cst_48 = arith.constant dense<0.000000e+00> : vector<16xf32>
    %96 = vector.multi_reduction <add>, %95, %cst_48 [1] : vector<16x128xf32> to vector<16xf32>
    %97 = vector.shape_cast %96 : vector<16xf32> to vector<16x1xf32>
    %cst_49 = arith.constant 1.280000e+02 : f32
    %98 = vector.broadcast %cst_49 : f32 to vector<16x1xf32>
    %99 = arith.divf %97, %98 : vector<16x1xf32>
    %cst_50 = arith.constant 9.99999974E-6 : f32
    %100 = vector.broadcast %cst_50 : f32 to vector<16x1xf32>
    %101 = arith.addf %99, %100 : vector<16x1xf32>
    %102 = math.rsqrt %101 : vector<16x1xf32>
    %103 = vector.broadcast %102 : vector<16x1xf32> to vector<16x128xf32>
    %104 = arith.mulf %94, %103 : vector<16x128xf32>
    %105 = vector.broadcast %86 : vector<1x128xf32> to vector<16x128xf32>
    %106 = arith.mulf %104, %105 : vector<16x128xf32>
    %107 = vector.broadcast %88 : vector<1x128xf32> to vector<16x128xf32>
    %108 = arith.addf %106, %107 : vector<16x128xf32>
    %c0_51 = arith.constant 0 : index
    %c0_52 = arith.constant 0 : index
    %c0_53 = arith.constant 0 : index
    %109 = vector.load %arg17[%c0_51, %c0_52, %c0_53] : memref<4x128x1024xbf16, #tpu.memory_space<vmem>>, vector<1x128x1024xbf16>
    %110 = vector.shape_cast %109 : vector<1x128x1024xbf16> to vector<128x1024xbf16>
    %111 = arith.truncf %108 : vector<16x128xf32> to vector<16x128xbf16>
    %cst_54 = arith.constant dense<0.000000e+00> : vector<16x1024xf32>
    %112 = tpu.matmul %111, %110, %cst_54 {dimension_numbers = #tpu.dot_dimension_numbers<[1], [0], [0], [1], [0, 0, 1, 1], [], []>} : vector<16x128xbf16>, vector<128x1024xbf16>, vector<16x1024xf32> -> vector<16x1024xf32>
    %c0_55 = arith.constant 0 : index
    %c0_56 = arith.constant 0 : index
    %c0_57 = arith.constant 0 : index
    %113 = vector.load %arg18[%c0_55, %c0_56, %c0_57] : memref<4x1x1024xf32, #tpu.memory_space<vmem>>, vector<1x1x1024xf32>
    %114 = vector.shape_cast %113 : vector<1x1x1024xf32> to vector<1x1024xf32>
    %115 = vector.broadcast %114 : vector<1x1024xf32> to vector<16x1024xf32>
    %116 = arith.addf %112, %115 : vector<16x1024xf32>
    %cst_58 = arith.constant 0.000000e+00 : f32
    %117 = vector.broadcast %cst_58 : f32 to vector<16x1024xf32>
    %118 = arith.maximumf %116, %117 : vector<16x1024xf32>
    %c0_59 = arith.constant 0 : index
    %c0_60 = arith.constant 0 : index
    %c0_61 = arith.constant 0 : index
    %119 = vector.load %arg19[%c0_59, %c0_60, %c0_61] : memref<4x1024x128xbf16, #tpu.memory_space<vmem>>, vector<1x1024x128xbf16>
    %120 = vector.shape_cast %119 : vector<1x1024x128xbf16> to vector<1024x128xbf16>
    %121 = arith.truncf %118 : vector<16x1024xf32> to vector<16x1024xbf16>
    %cst_62 = arith.constant dense<0.000000e+00> : vector<16x128xf32>
    %122 = tpu.matmul %121, %120, %cst_62 {dimension_numbers = #tpu.dot_dimension_numbers<[1], [0], [0], [1], [0, 0, 1, 1], [], []>} : vector<16x1024xbf16>, vector<1024x128xbf16>, vector<16x128xf32> -> vector<16x128xf32>
    %c0_63 = arith.constant 0 : index
    %c0_64 = arith.constant 0 : index
    %c0_65 = arith.constant 0 : index
    %123 = vector.load %arg20[%c0_63, %c0_64, %c0_65] : memref<4x1x128xf32, #tpu.memory_space<vmem>>, vector<1x1x128xf32>
    %124 = vector.shape_cast %123 : vector<1x1x128xf32> to vector<1x128xf32>
    %125 = vector.broadcast %124 : vector<1x128xf32> to vector<16x128xf32>
    %126 = arith.addf %122, %125 : vector<16x128xf32>
    %127 = arith.addf %108, %126 : vector<16x128xf32>
    %c0_66 = arith.constant 0 : index
    %c0_67 = arith.constant 0 : index
    %c0_68 = arith.constant 0 : index
    %128 = vector.load %arg21[%c0_66, %c0_67, %c0_68] : memref<4x1x128xf32, #tpu.memory_space<vmem>>, vector<1x1x128xf32>
    %129 = vector.shape_cast %128 : vector<1x1x128xf32> to vector<1x128xf32>
    %c0_69 = arith.constant 0 : index
    %c0_70 = arith.constant 0 : index
    %c0_71 = arith.constant 0 : index
    %130 = vector.load %arg22[%c0_69, %c0_70, %c0_71] : memref<4x1x128xf32, #tpu.memory_space<vmem>>, vector<1x1x128xf32>
    %131 = vector.shape_cast %130 : vector<1x1x128xf32> to vector<1x128xf32>
    %cst_72 = arith.constant dense<0.000000e+00> : vector<16xf32>
    %132 = vector.multi_reduction <add>, %127, %cst_72 [1] : vector<16x128xf32> to vector<16xf32>
    %133 = vector.shape_cast %132 : vector<16xf32> to vector<16x1xf32>
    %cst_73 = arith.constant 1.280000e+02 : f32
    %134 = vector.broadcast %cst_73 : f32 to vector<16x1xf32>
    %135 = arith.divf %133, %134 : vector<16x1xf32>
    %136 = vector.broadcast %135 : vector<16x1xf32> to vector<16x128xf32>
    %137 = arith.subf %127, %136 : vector<16x128xf32>
    %138 = arith.mulf %137, %137 : vector<16x128xf32>
    %cst_74 = arith.constant dense<0.000000e+00> : vector<16xf32>
    %139 = vector.multi_reduction <add>, %138, %cst_74 [1] : vector<16x128xf32> to vector<16xf32>
    %140 = vector.shape_cast %139 : vector<16xf32> to vector<16x1xf32>
    %cst_75 = arith.constant 1.280000e+02 : f32
    %141 = vector.broadcast %cst_75 : f32 to vector<16x1xf32>
    %142 = arith.divf %140, %141 : vector<16x1xf32>
    %cst_76 = arith.constant 9.99999974E-6 : f32
    %143 = vector.broadcast %cst_76 : f32 to vector<16x1xf32>
    %144 = arith.addf %142, %143 : vector<16x1xf32>
    %145 = math.rsqrt %144 : vector<16x1xf32>
    %146 = vector.broadcast %145 : vector<16x1xf32> to vector<16x128xf32>
    %147 = arith.mulf %137, %146 : vector<16x128xf32>
    %148 = vector.broadcast %129 : vector<1x128xf32> to vector<16x128xf32>
    %149 = arith.mulf %147, %148 : vector<16x128xf32>
    %150 = vector.broadcast %131 : vector<1x128xf32> to vector<16x128xf32>
    %151 = arith.addf %149, %150 : vector<16x128xf32>
    %c1 = arith.constant 1 : index
    %c0_77 = arith.constant 0 : index
    %c0_78 = arith.constant 0 : index
    %152 = vector.load %arg11[%c1, %c0_77, %c0_78] : memref<4x128x384xbf16, #tpu.memory_space<vmem>>, vector<1x128x384xbf16>
    %153 = vector.shape_cast %152 : vector<1x128x384xbf16> to vector<128x384xbf16>
    %154 = arith.truncf %151 : vector<16x128xf32> to vector<16x128xbf16>
    %cst_79 = arith.constant dense<0.000000e+00> : vector<16x384xf32>
    %155 = tpu.matmul %154, %153, %cst_79 {dimension_numbers = #tpu.dot_dimension_numbers<[1], [0], [0], [1], [0, 0, 1, 1], [], []>} : vector<16x128xbf16>, vector<128x384xbf16>, vector<16x384xf32> -> vector<16x384xf32>
    %c1_80 = arith.constant 1 : index
    %c0_81 = arith.constant 0 : index
    %c0_82 = arith.constant 0 : index
    %156 = vector.load %arg12[%c1_80, %c0_81, %c0_82] : memref<4x1x384xf32, #tpu.memory_space<vmem>>, vector<1x1x384xf32>
    %157 = vector.shape_cast %156 : vector<1x1x384xf32> to vector<1x384xf32>
    %158 = vector.broadcast %157 : vector<1x384xf32> to vector<16x384xf32>
    %159 = arith.addf %155, %158 : vector<16x384xf32>
    %160 = vector.extract_strided_slice %159 {offsets = [0, 0], sizes = [16, 128], strides = [1, 1]} : vector<16x384xf32> to vector<16x128xf32>
    %161 = vector.extract_strided_slice %159 {offsets = [0, 128], sizes = [16, 128], strides = [1, 1]} : vector<16x384xf32> to vector<16x128xf32>
    %162 = vector.extract_strided_slice %159 {offsets = [0, 256], sizes = [16, 128], strides = [1, 1]} : vector<16x384xf32> to vector<16x128xf32>
    %163 = vector.extract_strided_slice %160 {offsets = [0, 0], sizes = [16, 32], strides = [1, 1]} : vector<16x128xf32> to vector<16x32xf32>
    %164 = vector.extract_strided_slice %160 {offsets = [0, 32], sizes = [16, 32], strides = [1, 1]} : vector<16x128xf32> to vector<16x32xf32>
    %165 = vector.extract_strided_slice %160 {offsets = [0, 64], sizes = [16, 32], strides = [1, 1]} : vector<16x128xf32> to vector<16x32xf32>
    %166 = vector.extract_strided_slice %160 {offsets = [0, 96], sizes = [16, 32], strides = [1, 1]} : vector<16x128xf32> to vector<16x32xf32>
    %167 = tpu.concatenate %163, %164, %165, %166 in 0 : vector<16x32xf32>, vector<16x32xf32>, vector<16x32xf32>, vector<16x32xf32> -> vector<64x32xf32>
    %168 = vector.extract_strided_slice %161 {offsets = [0, 0], sizes = [16, 32], strides = [1, 1]} : vector<16x128xf32> to vector<16x32xf32>
    %169 = vector.extract_strided_slice %161 {offsets = [0, 32], sizes = [16, 32], strides = [1, 1]} : vector<16x128xf32> to vector<16x32xf32>
    %170 = vector.extract_strided_slice %161 {offsets = [0, 64], sizes = [16, 32], strides = [1, 1]} : vector<16x128xf32> to vector<16x32xf32>
    %171 = vector.extract_strided_slice %161 {offsets = [0, 96], sizes = [16, 32], strides = [1, 1]} : vector<16x128xf32> to vector<16x32xf32>
    %172 = tpu.concatenate %168, %169, %170, %171 in 0 : vector<16x32xf32>, vector<16x32xf32>, vector<16x32xf32>, vector<16x32xf32> -> vector<64x32xf32>
    %173 = vector.extract_strided_slice %162 {offsets = [0, 0], sizes = [16, 32], strides = [1, 1]} : vector<16x128xf32> to vector<16x32xf32>
    %174 = vector.extract_strided_slice %162 {offsets = [0, 32], sizes = [16, 32], strides = [1, 1]} : vector<16x128xf32> to vector<16x32xf32>
    %175 = vector.extract_strided_slice %162 {offsets = [0, 64], sizes = [16, 32], strides = [1, 1]} : vector<16x128xf32> to vector<16x32xf32>
    %176 = vector.extract_strided_slice %162 {offsets = [0, 96], sizes = [16, 32], strides = [1, 1]} : vector<16x128xf32> to vector<16x32xf32>
    %177 = tpu.concatenate %173, %174, %175, %176 in 0 : vector<16x32xf32>, vector<16x32xf32>, vector<16x32xf32>, vector<16x32xf32> -> vector<64x32xf32>
    %178 = arith.truncf %167 : vector<64x32xf32> to vector<64x32xbf16>
    %179 = arith.truncf %172 : vector<64x32xf32> to vector<64x32xbf16>
    %cst_83 = arith.constant dense<0.000000e+00> : vector<64x64xf32>
    %180 = tpu.matmul %178, %179, %cst_83 {dimension_numbers = #tpu.dot_dimension_numbers<[1], [1], [0], [0], [0, 0, 1, 0], [], []>} : vector<64x32xbf16>, vector<64x32xbf16>, vector<64x64xf32> -> vector<64x64xf32>
    %181 = arith.addf %180, %27 : vector<64x64xf32>
    %cst_84 = arith.constant dense<0xFF800000> : vector<64xf32>
    %182 = vector.multi_reduction <maximumf>, %181, %cst_84 [1] : vector<64x64xf32> to vector<64xf32>
    %183 = vector.shape_cast %182 : vector<64xf32> to vector<64x1xf32>
    %184 = vector.broadcast %183 : vector<64x1xf32> to vector<64x64xf32>
    %185 = arith.subf %181, %184 : vector<64x64xf32>
    %186 = math.exp %185 : vector<64x64xf32>
    %cst_85 = arith.constant dense<0.000000e+00> : vector<64xf32>
    %187 = vector.multi_reduction <add>, %186, %cst_85 [1] : vector<64x64xf32> to vector<64xf32>
    %188 = vector.shape_cast %187 : vector<64xf32> to vector<64x1xf32>
    %189 = tpu.reciprocal %188 {approx = true} : vector<64x1xf32> -> vector<64x1xf32>
    %190 = vector.broadcast %189 : vector<64x1xf32> to vector<64x64xf32>
    %191 = arith.mulf %186, %190 : vector<64x64xf32>
    %192 = arith.truncf %191 : vector<64x64xf32> to vector<64x64xbf16>
    %193 = arith.truncf %177 : vector<64x32xf32> to vector<64x32xbf16>
    %cst_86 = arith.constant dense<0.000000e+00> : vector<64x32xf32>
    %194 = tpu.matmul %192, %193, %cst_86 {dimension_numbers = #tpu.dot_dimension_numbers<[1], [0], [0], [1], [0, 0, 1, 1], [], []>} : vector<64x64xbf16>, vector<64x32xbf16>, vector<64x32xf32> -> vector<64x32xf32>
    %195 = vector.extract_strided_slice %194 {offsets = [0, 0], sizes = [16, 32], strides = [1, 1]} : vector<64x32xf32> to vector<16x32xf32>
    %196 = vector.extract_strided_slice %194 {offsets = [16, 0], sizes = [16, 32], strides = [1, 1]} : vector<64x32xf32> to vector<16x32xf32>
    %197 = vector.extract_strided_slice %194 {offsets = [32, 0], sizes = [16, 32], strides = [1, 1]} : vector<64x32xf32> to vector<16x32xf32>
    %198 = vector.extract_strided_slice %194 {offsets = [48, 0], sizes = [16, 32], strides = [1, 1]} : vector<64x32xf32> to vector<16x32xf32>
    %199 = tpu.concatenate %195, %196, %197, %198 in 1 : vector<16x32xf32>, vector<16x32xf32>, vector<16x32xf32>, vector<16x32xf32> -> vector<16x128xf32>
    %c1_87 = arith.constant 1 : index
    %c0_88 = arith.constant 0 : index
    %c0_89 = arith.constant 0 : index
    %200 = vector.load %arg13[%c1_87, %c0_88, %c0_89] : memref<4x128x128xbf16, #tpu.memory_space<vmem>>, vector<1x128x128xbf16>
    %201 = vector.shape_cast %200 : vector<1x128x128xbf16> to vector<128x128xbf16>
    %202 = arith.truncf %199 : vector<16x128xf32> to vector<16x128xbf16>
    %cst_90 = arith.constant dense<0.000000e+00> : vector<16x128xf32>
    %203 = tpu.matmul %202, %201, %cst_90 {dimension_numbers = #tpu.dot_dimension_numbers<[1], [0], [0], [1], [0, 0, 1, 1], [], []>} : vector<16x128xbf16>, vector<128x128xbf16>, vector<16x128xf32> -> vector<16x128xf32>
    %c1_91 = arith.constant 1 : index
    %c0_92 = arith.constant 0 : index
    %c0_93 = arith.constant 0 : index
    %204 = vector.load %arg14[%c1_91, %c0_92, %c0_93] : memref<4x1x128xf32, #tpu.memory_space<vmem>>, vector<1x1x128xf32>
    %205 = vector.shape_cast %204 : vector<1x1x128xf32> to vector<1x128xf32>
    %206 = vector.broadcast %205 : vector<1x128xf32> to vector<16x128xf32>
    %207 = arith.addf %203, %206 : vector<16x128xf32>
    %208 = arith.addf %151, %207 : vector<16x128xf32>
    %c1_94 = arith.constant 1 : index
    %c0_95 = arith.constant 0 : index
    %c0_96 = arith.constant 0 : index
    %209 = vector.load %arg15[%c1_94, %c0_95, %c0_96] : memref<4x1x128xf32, #tpu.memory_space<vmem>>, vector<1x1x128xf32>
    %210 = vector.shape_cast %209 : vector<1x1x128xf32> to vector<1x128xf32>
    %c1_97 = arith.constant 1 : index
    %c0_98 = arith.constant 0 : index
    %c0_99 = arith.constant 0 : index
    %211 = vector.load %arg16[%c1_97, %c0_98, %c0_99] : memref<4x1x128xf32, #tpu.memory_space<vmem>>, vector<1x1x128xf32>
    %212 = vector.shape_cast %211 : vector<1x1x128xf32> to vector<1x128xf32>
    %cst_100 = arith.constant dense<0.000000e+00> : vector<16xf32>
    %213 = vector.multi_reduction <add>, %208, %cst_100 [1] : vector<16x128xf32> to vector<16xf32>
    %214 = vector.shape_cast %213 : vector<16xf32> to vector<16x1xf32>
    %cst_101 = arith.constant 1.280000e+02 : f32
    %215 = vector.broadcast %cst_101 : f32 to vector<16x1xf32>
    %216 = arith.divf %214, %215 : vector<16x1xf32>
    %217 = vector.broadcast %216 : vector<16x1xf32> to vector<16x128xf32>
    %218 = arith.subf %208, %217 : vector<16x128xf32>
    %219 = arith.mulf %218, %218 : vector<16x128xf32>
    %cst_102 = arith.constant dense<0.000000e+00> : vector<16xf32>
    %220 = vector.multi_reduction <add>, %219, %cst_102 [1] : vector<16x128xf32> to vector<16xf32>
    %221 = vector.shape_cast %220 : vector<16xf32> to vector<16x1xf32>
    %cst_103 = arith.constant 1.280000e+02 : f32
    %222 = vector.broadcast %cst_103 : f32 to vector<16x1xf32>
    %223 = arith.divf %221, %222 : vector<16x1xf32>
    %cst_104 = arith.constant 9.99999974E-6 : f32
    %224 = vector.broadcast %cst_104 : f32 to vector<16x1xf32>
    %225 = arith.addf %223, %224 : vector<16x1xf32>
    %226 = math.rsqrt %225 : vector<16x1xf32>
    %227 = vector.broadcast %226 : vector<16x1xf32> to vector<16x128xf32>
    %228 = arith.mulf %218, %227 : vector<16x128xf32>
    %229 = vector.broadcast %210 : vector<1x128xf32> to vector<16x128xf32>
    %230 = arith.mulf %228, %229 : vector<16x128xf32>
    %231 = vector.broadcast %212 : vector<1x128xf32> to vector<16x128xf32>
    %232 = arith.addf %230, %231 : vector<16x128xf32>
    %c1_105 = arith.constant 1 : index
    %c0_106 = arith.constant 0 : index
    %c0_107 = arith.constant 0 : index
    %233 = vector.load %arg17[%c1_105, %c0_106, %c0_107] : memref<4x128x1024xbf16, #tpu.memory_space<vmem>>, vector<1x128x1024xbf16>
    %234 = vector.shape_cast %233 : vector<1x128x1024xbf16> to vector<128x1024xbf16>
    %235 = arith.truncf %232 : vector<16x128xf32> to vector<16x128xbf16>
    %cst_108 = arith.constant dense<0.000000e+00> : vector<16x1024xf32>
    %236 = tpu.matmul %235, %234, %cst_108 {dimension_numbers = #tpu.dot_dimension_numbers<[1], [0], [0], [1], [0, 0, 1, 1], [], []>} : vector<16x128xbf16>, vector<128x1024xbf16>, vector<16x1024xf32> -> vector<16x1024xf32>
    %c1_109 = arith.constant 1 : index
    %c0_110 = arith.constant 0 : index
    %c0_111 = arith.constant 0 : index
    %237 = vector.load %arg18[%c1_109, %c0_110, %c0_111] : memref<4x1x1024xf32, #tpu.memory_space<vmem>>, vector<1x1x1024xf32>
    %238 = vector.shape_cast %237 : vector<1x1x1024xf32> to vector<1x1024xf32>
    %239 = vector.broadcast %238 : vector<1x1024xf32> to vector<16x1024xf32>
    %240 = arith.addf %236, %239 : vector<16x1024xf32>
    %cst_112 = arith.constant 0.000000e+00 : f32
    %241 = vector.broadcast %cst_112 : f32 to vector<16x1024xf32>
    %242 = arith.maximumf %240, %241 : vector<16x1024xf32>
    %c1_113 = arith.constant 1 : index
    %c0_114 = arith.constant 0 : index
    %c0_115 = arith.constant 0 : index
    %243 = vector.load %arg19[%c1_113, %c0_114, %c0_115] : memref<4x1024x128xbf16, #tpu.memory_space<vmem>>, vector<1x1024x128xbf16>
    %244 = vector.shape_cast %243 : vector<1x1024x128xbf16> to vector<1024x128xbf16>
    %245 = arith.truncf %242 : vector<16x1024xf32> to vector<16x1024xbf16>
    %cst_116 = arith.constant dense<0.000000e+00> : vector<16x128xf32>
    %246 = tpu.matmul %245, %244, %cst_116 {dimension_numbers = #tpu.dot_dimension_numbers<[1], [0], [0], [1], [0, 0, 1, 1], [], []>} : vector<16x1024xbf16>, vector<1024x128xbf16>, vector<16x128xf32> -> vector<16x128xf32>
    %c1_117 = arith.constant 1 : index
    %c0_118 = arith.constant 0 : index
    %c0_119 = arith.constant 0 : index
    %247 = vector.load %arg20[%c1_117, %c0_118, %c0_119] : memref<4x1x128xf32, #tpu.memory_space<vmem>>, vector<1x1x128xf32>
    %248 = vector.shape_cast %247 : vector<1x1x128xf32> to vector<1x128xf32>
    %249 = vector.broadcast %248 : vector<1x128xf32> to vector<16x128xf32>
    %250 = arith.addf %246, %249 : vector<16x128xf32>
    %251 = arith.addf %232, %250 : vector<16x128xf32>
    %c1_120 = arith.constant 1 : index
    %c0_121 = arith.constant 0 : index
    %c0_122 = arith.constant 0 : index
    %252 = vector.load %arg21[%c1_120, %c0_121, %c0_122] : memref<4x1x128xf32, #tpu.memory_space<vmem>>, vector<1x1x128xf32>
    %253 = vector.shape_cast %252 : vector<1x1x128xf32> to vector<1x128xf32>
    %c1_123 = arith.constant 1 : index
    %c0_124 = arith.constant 0 : index
    %c0_125 = arith.constant 0 : index
    %254 = vector.load %arg22[%c1_123, %c0_124, %c0_125] : memref<4x1x128xf32, #tpu.memory_space<vmem>>, vector<1x1x128xf32>
    %255 = vector.shape_cast %254 : vector<1x1x128xf32> to vector<1x128xf32>
    %cst_126 = arith.constant dense<0.000000e+00> : vector<16xf32>
    %256 = vector.multi_reduction <add>, %251, %cst_126 [1] : vector<16x128xf32> to vector<16xf32>
    %257 = vector.shape_cast %256 : vector<16xf32> to vector<16x1xf32>
    %cst_127 = arith.constant 1.280000e+02 : f32
    %258 = vector.broadcast %cst_127 : f32 to vector<16x1xf32>
    %259 = arith.divf %257, %258 : vector<16x1xf32>
    %260 = vector.broadcast %259 : vector<16x1xf32> to vector<16x128xf32>
    %261 = arith.subf %251, %260 : vector<16x128xf32>
    %262 = arith.mulf %261, %261 : vector<16x128xf32>
    %cst_128 = arith.constant dense<0.000000e+00> : vector<16xf32>
    %263 = vector.multi_reduction <add>, %262, %cst_128 [1] : vector<16x128xf32> to vector<16xf32>
    %264 = vector.shape_cast %263 : vector<16xf32> to vector<16x1xf32>
    %cst_129 = arith.constant 1.280000e+02 : f32
    %265 = vector.broadcast %cst_129 : f32 to vector<16x1xf32>
    %266 = arith.divf %264, %265 : vector<16x1xf32>
    %cst_130 = arith.constant 9.99999974E-6 : f32
    %267 = vector.broadcast %cst_130 : f32 to vector<16x1xf32>
    %268 = arith.addf %266, %267 : vector<16x1xf32>
    %269 = math.rsqrt %268 : vector<16x1xf32>
    %270 = vector.broadcast %269 : vector<16x1xf32> to vector<16x128xf32>
    %271 = arith.mulf %261, %270 : vector<16x128xf32>
    %272 = vector.broadcast %253 : vector<1x128xf32> to vector<16x128xf32>
    %273 = arith.mulf %271, %272 : vector<16x128xf32>
    %274 = vector.broadcast %255 : vector<1x128xf32> to vector<16x128xf32>
    %275 = arith.addf %273, %274 : vector<16x128xf32>
    %c0_131 = arith.constant 0 : index
    %c0_132 = arith.constant 0 : index
    %276 = vector.load %arg23[%c0_131, %c0_132] : memref<128x32xbf16, #tpu.memory_space<vmem>>, vector<128x32xbf16>
    %277 = arith.truncf %275 : vector<16x128xf32> to vector<16x128xbf16>
    %cst_133 = arith.constant dense<0.000000e+00> : vector<16x32xf32>
    %278 = tpu.matmul %277, %276, %cst_133 {dimension_numbers = #tpu.dot_dimension_numbers<[1], [0], [0], [1], [0, 0, 1, 1], [], []>} : vector<16x128xbf16>, vector<128x32xbf16>, vector<16x32xf32> -> vector<16x32xf32>
    %c0_134 = arith.constant 0 : index
    %c0_135 = arith.constant 0 : index
    %279 = vector.load %arg24[%c0_134, %c0_135] : memref<1x32xf32, #tpu.memory_space<vmem>>, vector<1x32xf32>
    %280 = vector.broadcast %279 : vector<1x32xf32> to vector<16x32xf32>
    %281 = arith.addf %278, %280 : vector<16x32xf32>
    %c0_136 = arith.constant 0 : index
    %c0_137 = arith.constant 0 : index
    %282 = vector.load %arg25[%c0_136, %c0_137] : memref<32x128xbf16, #tpu.memory_space<vmem>>, vector<32x128xbf16>
    %283 = arith.truncf %281 : vector<16x32xf32> to vector<16x32xbf16>
    %cst_138 = arith.constant dense<0.000000e+00> : vector<16x128xf32>
    %284 = tpu.matmul %283, %282, %cst_138 {dimension_numbers = #tpu.dot_dimension_numbers<[1], [0], [0], [1], [0, 0, 1, 1], [], []>} : vector<16x32xbf16>, vector<32x128xbf16>, vector<16x128xf32> -> vector<16x128xf32>
    %c0_139 = arith.constant 0 : index
    %c0_140 = arith.constant 0 : index
    %285 = vector.load %arg26[%c0_139, %c0_140] : memref<1x128xf32, #tpu.memory_space<vmem>>, vector<1x128xf32>
    %286 = vector.broadcast %285 : vector<1x128xf32> to vector<16x128xf32>
    %287 = arith.addf %284, %286 : vector<16x128xf32>
    %c2 = arith.constant 2 : index
    %c0_141 = arith.constant 0 : index
    %c0_142 = arith.constant 0 : index
    %288 = vector.load %arg11[%c2, %c0_141, %c0_142] : memref<4x128x384xbf16, #tpu.memory_space<vmem>>, vector<1x128x384xbf16>
    %289 = vector.shape_cast %288 : vector<1x128x384xbf16> to vector<128x384xbf16>
    %290 = arith.truncf %287 : vector<16x128xf32> to vector<16x128xbf16>
    %cst_143 = arith.constant dense<0.000000e+00> : vector<16x384xf32>
    %291 = tpu.matmul %290, %289, %cst_143 {dimension_numbers = #tpu.dot_dimension_numbers<[1], [0], [0], [1], [0, 0, 1, 1], [], []>} : vector<16x128xbf16>, vector<128x384xbf16>, vector<16x384xf32> -> vector<16x384xf32>
    %c2_144 = arith.constant 2 : index
    %c0_145 = arith.constant 0 : index
    %c0_146 = arith.constant 0 : index
    %292 = vector.load %arg12[%c2_144, %c0_145, %c0_146] : memref<4x1x384xf32, #tpu.memory_space<vmem>>, vector<1x1x384xf32>
    %293 = vector.shape_cast %292 : vector<1x1x384xf32> to vector<1x384xf32>
    %294 = vector.broadcast %293 : vector<1x384xf32> to vector<16x384xf32>
    %295 = arith.addf %291, %294 : vector<16x384xf32>
    %296 = vector.extract_strided_slice %295 {offsets = [0, 0], sizes = [16, 128], strides = [1, 1]} : vector<16x384xf32> to vector<16x128xf32>
    %297 = vector.extract_strided_slice %295 {offsets = [0, 128], sizes = [16, 128], strides = [1, 1]} : vector<16x384xf32> to vector<16x128xf32>
    %298 = vector.extract_strided_slice %295 {offsets = [0, 256], sizes = [16, 128], strides = [1, 1]} : vector<16x384xf32> to vector<16x128xf32>
    %299 = vector.extract_strided_slice %296 {offsets = [0, 0], sizes = [16, 32], strides = [1, 1]} : vector<16x128xf32> to vector<16x32xf32>
    %300 = vector.extract_strided_slice %296 {offsets = [0, 32], sizes = [16, 32], strides = [1, 1]} : vector<16x128xf32> to vector<16x32xf32>
    %301 = vector.extract_strided_slice %296 {offsets = [0, 64], sizes = [16, 32], strides = [1, 1]} : vector<16x128xf32> to vector<16x32xf32>
    %302 = vector.extract_strided_slice %296 {offsets = [0, 96], sizes = [16, 32], strides = [1, 1]} : vector<16x128xf32> to vector<16x32xf32>
    %303 = tpu.concatenate %299, %300, %301, %302 in 0 : vector<16x32xf32>, vector<16x32xf32>, vector<16x32xf32>, vector<16x32xf32> -> vector<64x32xf32>
    %304 = vector.extract_strided_slice %297 {offsets = [0, 0], sizes = [16, 32], strides = [1, 1]} : vector<16x128xf32> to vector<16x32xf32>
    %305 = vector.extract_strided_slice %297 {offsets = [0, 32], sizes = [16, 32], strides = [1, 1]} : vector<16x128xf32> to vector<16x32xf32>
    %306 = vector.extract_strided_slice %297 {offsets = [0, 64], sizes = [16, 32], strides = [1, 1]} : vector<16x128xf32> to vector<16x32xf32>
    %307 = vector.extract_strided_slice %297 {offsets = [0, 96], sizes = [16, 32], strides = [1, 1]} : vector<16x128xf32> to vector<16x32xf32>
    %308 = tpu.concatenate %304, %305, %306, %307 in 0 : vector<16x32xf32>, vector<16x32xf32>, vector<16x32xf32>, vector<16x32xf32> -> vector<64x32xf32>
    %309 = vector.extract_strided_slice %298 {offsets = [0, 0], sizes = [16, 32], strides = [1, 1]} : vector<16x128xf32> to vector<16x32xf32>
    %310 = vector.extract_strided_slice %298 {offsets = [0, 32], sizes = [16, 32], strides = [1, 1]} : vector<16x128xf32> to vector<16x32xf32>
    %311 = vector.extract_strided_slice %298 {offsets = [0, 64], sizes = [16, 32], strides = [1, 1]} : vector<16x128xf32> to vector<16x32xf32>
    %312 = vector.extract_strided_slice %298 {offsets = [0, 96], sizes = [16, 32], strides = [1, 1]} : vector<16x128xf32> to vector<16x32xf32>
    %313 = tpu.concatenate %309, %310, %311, %312 in 0 : vector<16x32xf32>, vector<16x32xf32>, vector<16x32xf32>, vector<16x32xf32> -> vector<64x32xf32>
    %314 = arith.truncf %303 : vector<64x32xf32> to vector<64x32xbf16>
    %315 = arith.truncf %308 : vector<64x32xf32> to vector<64x32xbf16>
    %cst_147 = arith.constant dense<0.000000e+00> : vector<64x64xf32>
    %316 = tpu.matmul %314, %315, %cst_147 {dimension_numbers = #tpu.dot_dimension_numbers<[1], [1], [0], [0], [0, 0, 1, 0], [], []>} : vector<64x32xbf16>, vector<64x32xbf16>, vector<64x64xf32> -> vector<64x64xf32>
    %317 = arith.addf %316, %27 : vector<64x64xf32>
    %cst_148 = arith.constant dense<0xFF800000> : vector<64xf32>
    %318 = vector.multi_reduction <maximumf>, %317, %cst_148 [1] : vector<64x64xf32> to vector<64xf32>
    %319 = vector.shape_cast %318 : vector<64xf32> to vector<64x1xf32>
    %320 = vector.broadcast %319 : vector<64x1xf32> to vector<64x64xf32>
    %321 = arith.subf %317, %320 : vector<64x64xf32>
    %322 = math.exp %321 : vector<64x64xf32>
    %cst_149 = arith.constant dense<0.000000e+00> : vector<64xf32>
    %323 = vector.multi_reduction <add>, %322, %cst_149 [1] : vector<64x64xf32> to vector<64xf32>
    %324 = vector.shape_cast %323 : vector<64xf32> to vector<64x1xf32>
    %325 = tpu.reciprocal %324 {approx = true} : vector<64x1xf32> -> vector<64x1xf32>
    %326 = vector.broadcast %325 : vector<64x1xf32> to vector<64x64xf32>
    %327 = arith.mulf %322, %326 : vector<64x64xf32>
    %328 = arith.truncf %327 : vector<64x64xf32> to vector<64x64xbf16>
    %329 = arith.truncf %313 : vector<64x32xf32> to vector<64x32xbf16>
    %cst_150 = arith.constant dense<0.000000e+00> : vector<64x32xf32>
    %330 = tpu.matmul %328, %329, %cst_150 {dimension_numbers = #tpu.dot_dimension_numbers<[1], [0], [0], [1], [0, 0, 1, 1], [], []>} : vector<64x64xbf16>, vector<64x32xbf16>, vector<64x32xf32> -> vector<64x32xf32>
    %331 = vector.extract_strided_slice %330 {offsets = [0, 0], sizes = [16, 32], strides = [1, 1]} : vector<64x32xf32> to vector<16x32xf32>
    %332 = vector.extract_strided_slice %330 {offsets = [16, 0], sizes = [16, 32], strides = [1, 1]} : vector<64x32xf32> to vector<16x32xf32>
    %333 = vector.extract_strided_slice %330 {offsets = [32, 0], sizes = [16, 32], strides = [1, 1]} : vector<64x32xf32> to vector<16x32xf32>
    %334 = vector.extract_strided_slice %330 {offsets = [48, 0], sizes = [16, 32], strides = [1, 1]} : vector<64x32xf32> to vector<16x32xf32>
    %335 = tpu.concatenate %331, %332, %333, %334 in 1 : vector<16x32xf32>, vector<16x32xf32>, vector<16x32xf32>, vector<16x32xf32> -> vector<16x128xf32>
    %c2_151 = arith.constant 2 : index
    %c0_152 = arith.constant 0 : index
    %c0_153 = arith.constant 0 : index
    %336 = vector.load %arg13[%c2_151, %c0_152, %c0_153] : memref<4x128x128xbf16, #tpu.memory_space<vmem>>, vector<1x128x128xbf16>
    %337 = vector.shape_cast %336 : vector<1x128x128xbf16> to vector<128x128xbf16>
    %338 = arith.truncf %335 : vector<16x128xf32> to vector<16x128xbf16>
    %cst_154 = arith.constant dense<0.000000e+00> : vector<16x128xf32>
    %339 = tpu.matmul %338, %337, %cst_154 {dimension_numbers = #tpu.dot_dimension_numbers<[1], [0], [0], [1], [0, 0, 1, 1], [], []>} : vector<16x128xbf16>, vector<128x128xbf16>, vector<16x128xf32> -> vector<16x128xf32>
    %c2_155 = arith.constant 2 : index
    %c0_156 = arith.constant 0 : index
    %c0_157 = arith.constant 0 : index
    %340 = vector.load %arg14[%c2_155, %c0_156, %c0_157] : memref<4x1x128xf32, #tpu.memory_space<vmem>>, vector<1x1x128xf32>
    %341 = vector.shape_cast %340 : vector<1x1x128xf32> to vector<1x128xf32>
    %342 = vector.broadcast %341 : vector<1x128xf32> to vector<16x128xf32>
    %343 = arith.addf %339, %342 : vector<16x128xf32>
    %344 = arith.addf %287, %343 : vector<16x128xf32>
    %c2_158 = arith.constant 2 : index
    %c0_159 = arith.constant 0 : index
    %c0_160 = arith.constant 0 : index
    %345 = vector.load %arg15[%c2_158, %c0_159, %c0_160] : memref<4x1x128xf32, #tpu.memory_space<vmem>>, vector<1x1x128xf32>
    %346 = vector.shape_cast %345 : vector<1x1x128xf32> to vector<1x128xf32>
    %c2_161 = arith.constant 2 : index
    %c0_162 = arith.constant 0 : index
    %c0_163 = arith.constant 0 : index
    %347 = vector.load %arg16[%c2_161, %c0_162, %c0_163] : memref<4x1x128xf32, #tpu.memory_space<vmem>>, vector<1x1x128xf32>
    %348 = vector.shape_cast %347 : vector<1x1x128xf32> to vector<1x128xf32>
    %cst_164 = arith.constant dense<0.000000e+00> : vector<16xf32>
    %349 = vector.multi_reduction <add>, %344, %cst_164 [1] : vector<16x128xf32> to vector<16xf32>
    %350 = vector.shape_cast %349 : vector<16xf32> to vector<16x1xf32>
    %cst_165 = arith.constant 1.280000e+02 : f32
    %351 = vector.broadcast %cst_165 : f32 to vector<16x1xf32>
    %352 = arith.divf %350, %351 : vector<16x1xf32>
    %353 = vector.broadcast %352 : vector<16x1xf32> to vector<16x128xf32>
    %354 = arith.subf %344, %353 : vector<16x128xf32>
    %355 = arith.mulf %354, %354 : vector<16x128xf32>
    %cst_166 = arith.constant dense<0.000000e+00> : vector<16xf32>
    %356 = vector.multi_reduction <add>, %355, %cst_166 [1] : vector<16x128xf32> to vector<16xf32>
    %357 = vector.shape_cast %356 : vector<16xf32> to vector<16x1xf32>
    %cst_167 = arith.constant 1.280000e+02 : f32
    %358 = vector.broadcast %cst_167 : f32 to vector<16x1xf32>
    %359 = arith.divf %357, %358 : vector<16x1xf32>
    %cst_168 = arith.constant 9.99999974E-6 : f32
    %360 = vector.broadcast %cst_168 : f32 to vector<16x1xf32>
    %361 = arith.addf %359, %360 : vector<16x1xf32>
    %362 = math.rsqrt %361 : vector<16x1xf32>
    %363 = vector.broadcast %362 : vector<16x1xf32> to vector<16x128xf32>
    %364 = arith.mulf %354, %363 : vector<16x128xf32>
    %365 = vector.broadcast %346 : vector<1x128xf32> to vector<16x128xf32>
    %366 = arith.mulf %364, %365 : vector<16x128xf32>
    %367 = vector.broadcast %348 : vector<1x128xf32> to vector<16x128xf32>
    %368 = arith.addf %366, %367 : vector<16x128xf32>
    %c2_169 = arith.constant 2 : index
    %c0_170 = arith.constant 0 : index
    %c0_171 = arith.constant 0 : index
    %369 = vector.load %arg17[%c2_169, %c0_170, %c0_171] : memref<4x128x1024xbf16, #tpu.memory_space<vmem>>, vector<1x128x1024xbf16>
    %370 = vector.shape_cast %369 : vector<1x128x1024xbf16> to vector<128x1024xbf16>
    %371 = arith.truncf %368 : vector<16x128xf32> to vector<16x128xbf16>
    %cst_172 = arith.constant dense<0.000000e+00> : vector<16x1024xf32>
    %372 = tpu.matmul %371, %370, %cst_172 {dimension_numbers = #tpu.dot_dimension_numbers<[1], [0], [0], [1], [0, 0, 1, 1], [], []>} : vector<16x128xbf16>, vector<128x1024xbf16>, vector<16x1024xf32> -> vector<16x1024xf32>
    %c2_173 = arith.constant 2 : index
    %c0_174 = arith.constant 0 : index
    %c0_175 = arith.constant 0 : index
    %373 = vector.load %arg18[%c2_173, %c0_174, %c0_175] : memref<4x1x1024xf32, #tpu.memory_space<vmem>>, vector<1x1x1024xf32>
    %374 = vector.shape_cast %373 : vector<1x1x1024xf32> to vector<1x1024xf32>
    %375 = vector.broadcast %374 : vector<1x1024xf32> to vector<16x1024xf32>
    %376 = arith.addf %372, %375 : vector<16x1024xf32>
    %cst_176 = arith.constant 0.000000e+00 : f32
    %377 = vector.broadcast %cst_176 : f32 to vector<16x1024xf32>
    %378 = arith.maximumf %376, %377 : vector<16x1024xf32>
    %c2_177 = arith.constant 2 : index
    %c0_178 = arith.constant 0 : index
    %c0_179 = arith.constant 0 : index
    %379 = vector.load %arg19[%c2_177, %c0_178, %c0_179] : memref<4x1024x128xbf16, #tpu.memory_space<vmem>>, vector<1x1024x128xbf16>
    %380 = vector.shape_cast %379 : vector<1x1024x128xbf16> to vector<1024x128xbf16>
    %381 = arith.truncf %378 : vector<16x1024xf32> to vector<16x1024xbf16>
    %cst_180 = arith.constant dense<0.000000e+00> : vector<16x128xf32>
    %382 = tpu.matmul %381, %380, %cst_180 {dimension_numbers = #tpu.dot_dimension_numbers<[1], [0], [0], [1], [0, 0, 1, 1], [], []>} : vector<16x1024xbf16>, vector<1024x128xbf16>, vector<16x128xf32> -> vector<16x128xf32>
    %c2_181 = arith.constant 2 : index
    %c0_182 = arith.constant 0 : index
    %c0_183 = arith.constant 0 : index
    %383 = vector.load %arg20[%c2_181, %c0_182, %c0_183] : memref<4x1x128xf32, #tpu.memory_space<vmem>>, vector<1x1x128xf32>
    %384 = vector.shape_cast %383 : vector<1x1x128xf32> to vector<1x128xf32>
    %385 = vector.broadcast %384 : vector<1x128xf32> to vector<16x128xf32>
    %386 = arith.addf %382, %385 : vector<16x128xf32>
    %387 = arith.addf %368, %386 : vector<16x128xf32>
    %c2_184 = arith.constant 2 : index
    %c0_185 = arith.constant 0 : index
    %c0_186 = arith.constant 0 : index
    %388 = vector.load %arg21[%c2_184, %c0_185, %c0_186] : memref<4x1x128xf32, #tpu.memory_space<vmem>>, vector<1x1x128xf32>
    %389 = vector.shape_cast %388 : vector<1x1x128xf32> to vector<1x128xf32>
    %c2_187 = arith.constant 2 : index
    %c0_188 = arith.constant 0 : index
    %c0_189 = arith.constant 0 : index
    %390 = vector.load %arg22[%c2_187, %c0_188, %c0_189] : memref<4x1x128xf32, #tpu.memory_space<vmem>>, vector<1x1x128xf32>
    %391 = vector.shape_cast %390 : vector<1x1x128xf32> to vector<1x128xf32>
    %cst_190 = arith.constant dense<0.000000e+00> : vector<16xf32>
    %392 = vector.multi_reduction <add>, %387, %cst_190 [1] : vector<16x128xf32> to vector<16xf32>
    %393 = vector.shape_cast %392 : vector<16xf32> to vector<16x1xf32>
    %cst_191 = arith.constant 1.280000e+02 : f32
    %394 = vector.broadcast %cst_191 : f32 to vector<16x1xf32>
    %395 = arith.divf %393, %394 : vector<16x1xf32>
    %396 = vector.broadcast %395 : vector<16x1xf32> to vector<16x128xf32>
    %397 = arith.subf %387, %396 : vector<16x128xf32>
    %398 = arith.mulf %397, %397 : vector<16x128xf32>
    %cst_192 = arith.constant dense<0.000000e+00> : vector<16xf32>
    %399 = vector.multi_reduction <add>, %398, %cst_192 [1] : vector<16x128xf32> to vector<16xf32>
    %400 = vector.shape_cast %399 : vector<16xf32> to vector<16x1xf32>
    %cst_193 = arith.constant 1.280000e+02 : f32
    %401 = vector.broadcast %cst_193 : f32 to vector<16x1xf32>
    %402 = arith.divf %400, %401 : vector<16x1xf32>
    %cst_194 = arith.constant 9.99999974E-6 : f32
    %403 = vector.broadcast %cst_194 : f32 to vector<16x1xf32>
    %404 = arith.addf %402, %403 : vector<16x1xf32>
    %405 = math.rsqrt %404 : vector<16x1xf32>
    %406 = vector.broadcast %405 : vector<16x1xf32> to vector<16x128xf32>
    %407 = arith.mulf %397, %406 : vector<16x128xf32>
    %408 = vector.broadcast %389 : vector<1x128xf32> to vector<16x128xf32>
    %409 = arith.mulf %407, %408 : vector<16x128xf32>
    %410 = vector.broadcast %391 : vector<1x128xf32> to vector<16x128xf32>
    %411 = arith.addf %409, %410 : vector<16x128xf32>
    %c3 = arith.constant 3 : index
    %c0_195 = arith.constant 0 : index
    %c0_196 = arith.constant 0 : index
    %412 = vector.load %arg11[%c3, %c0_195, %c0_196] : memref<4x128x384xbf16, #tpu.memory_space<vmem>>, vector<1x128x384xbf16>
    %413 = vector.shape_cast %412 : vector<1x128x384xbf16> to vector<128x384xbf16>
    %414 = arith.truncf %411 : vector<16x128xf32> to vector<16x128xbf16>
    %cst_197 = arith.constant dense<0.000000e+00> : vector<16x384xf32>
    %415 = tpu.matmul %414, %413, %cst_197 {dimension_numbers = #tpu.dot_dimension_numbers<[1], [0], [0], [1], [0, 0, 1, 1], [], []>} : vector<16x128xbf16>, vector<128x384xbf16>, vector<16x384xf32> -> vector<16x384xf32>
    %c3_198 = arith.constant 3 : index
    %c0_199 = arith.constant 0 : index
    %c0_200 = arith.constant 0 : index
    %416 = vector.load %arg12[%c3_198, %c0_199, %c0_200] : memref<4x1x384xf32, #tpu.memory_space<vmem>>, vector<1x1x384xf32>
    %417 = vector.shape_cast %416 : vector<1x1x384xf32> to vector<1x384xf32>
    %418 = vector.broadcast %417 : vector<1x384xf32> to vector<16x384xf32>
    %419 = arith.addf %415, %418 : vector<16x384xf32>
    %420 = vector.extract_strided_slice %419 {offsets = [0, 0], sizes = [16, 128], strides = [1, 1]} : vector<16x384xf32> to vector<16x128xf32>
    %421 = vector.extract_strided_slice %419 {offsets = [0, 128], sizes = [16, 128], strides = [1, 1]} : vector<16x384xf32> to vector<16x128xf32>
    %422 = vector.extract_strided_slice %419 {offsets = [0, 256], sizes = [16, 128], strides = [1, 1]} : vector<16x384xf32> to vector<16x128xf32>
    %423 = vector.extract_strided_slice %420 {offsets = [0, 0], sizes = [16, 32], strides = [1, 1]} : vector<16x128xf32> to vector<16x32xf32>
    %424 = vector.extract_strided_slice %420 {offsets = [0, 32], sizes = [16, 32], strides = [1, 1]} : vector<16x128xf32> to vector<16x32xf32>
    %425 = vector.extract_strided_slice %420 {offsets = [0, 64], sizes = [16, 32], strides = [1, 1]} : vector<16x128xf32> to vector<16x32xf32>
    %426 = vector.extract_strided_slice %420 {offsets = [0, 96], sizes = [16, 32], strides = [1, 1]} : vector<16x128xf32> to vector<16x32xf32>
    %427 = tpu.concatenate %423, %424, %425, %426 in 0 : vector<16x32xf32>, vector<16x32xf32>, vector<16x32xf32>, vector<16x32xf32> -> vector<64x32xf32>
    %428 = vector.extract_strided_slice %421 {offsets = [0, 0], sizes = [16, 32], strides = [1, 1]} : vector<16x128xf32> to vector<16x32xf32>
    %429 = vector.extract_strided_slice %421 {offsets = [0, 32], sizes = [16, 32], strides = [1, 1]} : vector<16x128xf32> to vector<16x32xf32>
    %430 = vector.extract_strided_slice %421 {offsets = [0, 64], sizes = [16, 32], strides = [1, 1]} : vector<16x128xf32> to vector<16x32xf32>
    %431 = vector.extract_strided_slice %421 {offsets = [0, 96], sizes = [16, 32], strides = [1, 1]} : vector<16x128xf32> to vector<16x32xf32>
    %432 = tpu.concatenate %428, %429, %430, %431 in 0 : vector<16x32xf32>, vector<16x32xf32>, vector<16x32xf32>, vector<16x32xf32> -> vector<64x32xf32>
    %433 = vector.extract_strided_slice %422 {offsets = [0, 0], sizes = [16, 32], strides = [1, 1]} : vector<16x128xf32> to vector<16x32xf32>
    %434 = vector.extract_strided_slice %422 {offsets = [0, 32], sizes = [16, 32], strides = [1, 1]} : vector<16x128xf32> to vector<16x32xf32>
    %435 = vector.extract_strided_slice %422 {offsets = [0, 64], sizes = [16, 32], strides = [1, 1]} : vector<16x128xf32> to vector<16x32xf32>
    %436 = vector.extract_strided_slice %422 {offsets = [0, 96], sizes = [16, 32], strides = [1, 1]} : vector<16x128xf32> to vector<16x32xf32>
    %437 = tpu.concatenate %433, %434, %435, %436 in 0 : vector<16x32xf32>, vector<16x32xf32>, vector<16x32xf32>, vector<16x32xf32> -> vector<64x32xf32>
    %438 = arith.truncf %427 : vector<64x32xf32> to vector<64x32xbf16>
    %439 = arith.truncf %432 : vector<64x32xf32> to vector<64x32xbf16>
    %cst_201 = arith.constant dense<0.000000e+00> : vector<64x64xf32>
    %440 = tpu.matmul %438, %439, %cst_201 {dimension_numbers = #tpu.dot_dimension_numbers<[1], [1], [0], [0], [0, 0, 1, 0], [], []>} : vector<64x32xbf16>, vector<64x32xbf16>, vector<64x64xf32> -> vector<64x64xf32>
    %441 = arith.addf %440, %27 : vector<64x64xf32>
    %cst_202 = arith.constant dense<0xFF800000> : vector<64xf32>
    %442 = vector.multi_reduction <maximumf>, %441, %cst_202 [1] : vector<64x64xf32> to vector<64xf32>
    %443 = vector.shape_cast %442 : vector<64xf32> to vector<64x1xf32>
    %444 = vector.broadcast %443 : vector<64x1xf32> to vector<64x64xf32>
    %445 = arith.subf %441, %444 : vector<64x64xf32>
    %446 = math.exp %445 : vector<64x64xf32>
    %cst_203 = arith.constant dense<0.000000e+00> : vector<64xf32>
    %447 = vector.multi_reduction <add>, %446, %cst_203 [1] : vector<64x64xf32> to vector<64xf32>
    %448 = vector.shape_cast %447 : vector<64xf32> to vector<64x1xf32>
    %449 = tpu.reciprocal %448 {approx = true} : vector<64x1xf32> -> vector<64x1xf32>
    %450 = vector.broadcast %449 : vector<64x1xf32> to vector<64x64xf32>
    %451 = arith.mulf %446, %450 : vector<64x64xf32>
    %452 = arith.truncf %451 : vector<64x64xf32> to vector<64x64xbf16>
    %453 = arith.truncf %437 : vector<64x32xf32> to vector<64x32xbf16>
    %cst_204 = arith.constant dense<0.000000e+00> : vector<64x32xf32>
    %454 = tpu.matmul %452, %453, %cst_204 {dimension_numbers = #tpu.dot_dimension_numbers<[1], [0], [0], [1], [0, 0, 1, 1], [], []>} : vector<64x64xbf16>, vector<64x32xbf16>, vector<64x32xf32> -> vector<64x32xf32>
    %455 = vector.extract_strided_slice %454 {offsets = [0, 0], sizes = [16, 32], strides = [1, 1]} : vector<64x32xf32> to vector<16x32xf32>
    %456 = vector.extract_strided_slice %454 {offsets = [16, 0], sizes = [16, 32], strides = [1, 1]} : vector<64x32xf32> to vector<16x32xf32>
    %457 = vector.extract_strided_slice %454 {offsets = [32, 0], sizes = [16, 32], strides = [1, 1]} : vector<64x32xf32> to vector<16x32xf32>
    %458 = vector.extract_strided_slice %454 {offsets = [48, 0], sizes = [16, 32], strides = [1, 1]} : vector<64x32xf32> to vector<16x32xf32>
    %459 = tpu.concatenate %455, %456, %457, %458 in 1 : vector<16x32xf32>, vector<16x32xf32>, vector<16x32xf32>, vector<16x32xf32> -> vector<16x128xf32>
    %c3_205 = arith.constant 3 : index
    %c0_206 = arith.constant 0 : index
    %c0_207 = arith.constant 0 : index
    %460 = vector.load %arg13[%c3_205, %c0_206, %c0_207] : memref<4x128x128xbf16, #tpu.memory_space<vmem>>, vector<1x128x128xbf16>
    %461 = vector.shape_cast %460 : vector<1x128x128xbf16> to vector<128x128xbf16>
    %462 = arith.truncf %459 : vector<16x128xf32> to vector<16x128xbf16>
    %cst_208 = arith.constant dense<0.000000e+00> : vector<16x128xf32>
    %463 = tpu.matmul %462, %461, %cst_208 {dimension_numbers = #tpu.dot_dimension_numbers<[1], [0], [0], [1], [0, 0, 1, 1], [], []>} : vector<16x128xbf16>, vector<128x128xbf16>, vector<16x128xf32> -> vector<16x128xf32>
    %c3_209 = arith.constant 3 : index
    %c0_210 = arith.constant 0 : index
    %c0_211 = arith.constant 0 : index
    %464 = vector.load %arg14[%c3_209, %c0_210, %c0_211] : memref<4x1x128xf32, #tpu.memory_space<vmem>>, vector<1x1x128xf32>
    %465 = vector.shape_cast %464 : vector<1x1x128xf32> to vector<1x128xf32>
    %466 = vector.broadcast %465 : vector<1x128xf32> to vector<16x128xf32>
    %467 = arith.addf %463, %466 : vector<16x128xf32>
    %468 = arith.addf %411, %467 : vector<16x128xf32>
    %c3_212 = arith.constant 3 : index
    %c0_213 = arith.constant 0 : index
    %c0_214 = arith.constant 0 : index
    %469 = vector.load %arg15[%c3_212, %c0_213, %c0_214] : memref<4x1x128xf32, #tpu.memory_space<vmem>>, vector<1x1x128xf32>
    %470 = vector.shape_cast %469 : vector<1x1x128xf32> to vector<1x128xf32>
    %c3_215 = arith.constant 3 : index
    %c0_216 = arith.constant 0 : index
    %c0_217 = arith.constant 0 : index
    %471 = vector.load %arg16[%c3_215, %c0_216, %c0_217] : memref<4x1x128xf32, #tpu.memory_space<vmem>>, vector<1x1x128xf32>
    %472 = vector.shape_cast %471 : vector<1x1x128xf32> to vector<1x128xf32>
    %cst_218 = arith.constant dense<0.000000e+00> : vector<16xf32>
    %473 = vector.multi_reduction <add>, %468, %cst_218 [1] : vector<16x128xf32> to vector<16xf32>
    %474 = vector.shape_cast %473 : vector<16xf32> to vector<16x1xf32>
    %cst_219 = arith.constant 1.280000e+02 : f32
    %475 = vector.broadcast %cst_219 : f32 to vector<16x1xf32>
    %476 = arith.divf %474, %475 : vector<16x1xf32>
    %477 = vector.broadcast %476 : vector<16x1xf32> to vector<16x128xf32>
    %478 = arith.subf %468, %477 : vector<16x128xf32>
    %479 = arith.mulf %478, %478 : vector<16x128xf32>
    %cst_220 = arith.constant dense<0.000000e+00> : vector<16xf32>
    %480 = vector.multi_reduction <add>, %479, %cst_220 [1] : vector<16x128xf32> to vector<16xf32>
    %481 = vector.shape_cast %480 : vector<16xf32> to vector<16x1xf32>
    %cst_221 = arith.constant 1.280000e+02 : f32
    %482 = vector.broadcast %cst_221 : f32 to vector<16x1xf32>
    %483 = arith.divf %481, %482 : vector<16x1xf32>
    %cst_222 = arith.constant 9.99999974E-6 : f32
    %484 = vector.broadcast %cst_222 : f32 to vector<16x1xf32>
    %485 = arith.addf %483, %484 : vector<16x1xf32>
    %486 = math.rsqrt %485 : vector<16x1xf32>
    %487 = vector.broadcast %486 : vector<16x1xf32> to vector<16x128xf32>
    %488 = arith.mulf %478, %487 : vector<16x128xf32>
    %489 = vector.broadcast %470 : vector<1x128xf32> to vector<16x128xf32>
    %490 = arith.mulf %488, %489 : vector<16x128xf32>
    %491 = vector.broadcast %472 : vector<1x128xf32> to vector<16x128xf32>
    %492 = arith.addf %490, %491 : vector<16x128xf32>
    %c3_223 = arith.constant 3 : index
    %c0_224 = arith.constant 0 : index
    %c0_225 = arith.constant 0 : index
    %493 = vector.load %arg17[%c3_223, %c0_224, %c0_225] : memref<4x128x1024xbf16, #tpu.memory_space<vmem>>, vector<1x128x1024xbf16>
    %494 = vector.shape_cast %493 : vector<1x128x1024xbf16> to vector<128x1024xbf16>
    %495 = arith.truncf %492 : vector<16x128xf32> to vector<16x128xbf16>
    %cst_226 = arith.constant dense<0.000000e+00> : vector<16x1024xf32>
    %496 = tpu.matmul %495, %494, %cst_226 {dimension_numbers = #tpu.dot_dimension_numbers<[1], [0], [0], [1], [0, 0, 1, 1], [], []>} : vector<16x128xbf16>, vector<128x1024xbf16>, vector<16x1024xf32> -> vector<16x1024xf32>
    %c3_227 = arith.constant 3 : index
    %c0_228 = arith.constant 0 : index
    %c0_229 = arith.constant 0 : index
    %497 = vector.load %arg18[%c3_227, %c0_228, %c0_229] : memref<4x1x1024xf32, #tpu.memory_space<vmem>>, vector<1x1x1024xf32>
    %498 = vector.shape_cast %497 : vector<1x1x1024xf32> to vector<1x1024xf32>
    %499 = vector.broadcast %498 : vector<1x1024xf32> to vector<16x1024xf32>
    %500 = arith.addf %496, %499 : vector<16x1024xf32>
    %cst_230 = arith.constant 0.000000e+00 : f32
    %501 = vector.broadcast %cst_230 : f32 to vector<16x1024xf32>
    %502 = arith.maximumf %500, %501 : vector<16x1024xf32>
    %c3_231 = arith.constant 3 : index
    %c0_232 = arith.constant 0 : index
    %c0_233 = arith.constant 0 : index
    %503 = vector.load %arg19[%c3_231, %c0_232, %c0_233] : memref<4x1024x128xbf16, #tpu.memory_space<vmem>>, vector<1x1024x128xbf16>
    %504 = vector.shape_cast %503 : vector<1x1024x128xbf16> to vector<1024x128xbf16>
    %505 = arith.truncf %502 : vector<16x1024xf32> to vector<16x1024xbf16>
    %cst_234 = arith.constant dense<0.000000e+00> : vector<16x128xf32>
    %506 = tpu.matmul %505, %504, %cst_234 {dimension_numbers = #tpu.dot_dimension_numbers<[1], [0], [0], [1], [0, 0, 1, 1], [], []>} : vector<16x1024xbf16>, vector<1024x128xbf16>, vector<16x128xf32> -> vector<16x128xf32>
    %c3_235 = arith.constant 3 : index
    %c0_236 = arith.constant 0 : index
    %c0_237 = arith.constant 0 : index
    %507 = vector.load %arg20[%c3_235, %c0_236, %c0_237] : memref<4x1x128xf32, #tpu.memory_space<vmem>>, vector<1x1x128xf32>
    %508 = vector.shape_cast %507 : vector<1x1x128xf32> to vector<1x128xf32>
    %509 = vector.broadcast %508 : vector<1x128xf32> to vector<16x128xf32>
    %510 = arith.addf %506, %509 : vector<16x128xf32>
    %511 = arith.addf %492, %510 : vector<16x128xf32>
    %c3_238 = arith.constant 3 : index
    %c0_239 = arith.constant 0 : index
    %c0_240 = arith.constant 0 : index
    %512 = vector.load %arg21[%c3_238, %c0_239, %c0_240] : memref<4x1x128xf32, #tpu.memory_space<vmem>>, vector<1x1x128xf32>
    %513 = vector.shape_cast %512 : vector<1x1x128xf32> to vector<1x128xf32>
    %c3_241 = arith.constant 3 : index
    %c0_242 = arith.constant 0 : index
    %c0_243 = arith.constant 0 : index
    %514 = vector.load %arg22[%c3_241, %c0_242, %c0_243] : memref<4x1x128xf32, #tpu.memory_space<vmem>>, vector<1x1x128xf32>
    %515 = vector.shape_cast %514 : vector<1x1x128xf32> to vector<1x128xf32>
    %cst_244 = arith.constant dense<0.000000e+00> : vector<16xf32>
    %516 = vector.multi_reduction <add>, %511, %cst_244 [1] : vector<16x128xf32> to vector<16xf32>
    %517 = vector.shape_cast %516 : vector<16xf32> to vector<16x1xf32>
    %cst_245 = arith.constant 1.280000e+02 : f32
    %518 = vector.broadcast %cst_245 : f32 to vector<16x1xf32>
    %519 = arith.divf %517, %518 : vector<16x1xf32>
    %520 = vector.broadcast %519 : vector<16x1xf32> to vector<16x128xf32>
    %521 = arith.subf %511, %520 : vector<16x128xf32>
    %522 = arith.mulf %521, %521 : vector<16x128xf32>
    %cst_246 = arith.constant dense<0.000000e+00> : vector<16xf32>
    %523 = vector.multi_reduction <add>, %522, %cst_246 [1] : vector<16x128xf32> to vector<16xf32>
    %524 = vector.shape_cast %523 : vector<16xf32> to vector<16x1xf32>
    %cst_247 = arith.constant 1.280000e+02 : f32
    %525 = vector.broadcast %cst_247 : f32 to vector<16x1xf32>
    %526 = arith.divf %524, %525 : vector<16x1xf32>
    %cst_248 = arith.constant 9.99999974E-6 : f32
    %527 = vector.broadcast %cst_248 : f32 to vector<16x1xf32>
    %528 = arith.addf %526, %527 : vector<16x1xf32>
    %529 = math.rsqrt %528 : vector<16x1xf32>
    %530 = vector.broadcast %529 : vector<16x1xf32> to vector<16x128xf32>
    %531 = arith.mulf %521, %530 : vector<16x128xf32>
    %532 = vector.broadcast %513 : vector<1x128xf32> to vector<16x128xf32>
    %533 = arith.mulf %531, %532 : vector<16x128xf32>
    %534 = vector.broadcast %515 : vector<1x128xf32> to vector<16x128xf32>
    %535 = arith.addf %533, %534 : vector<16x128xf32>
    %536 = vector.shape_cast %535 : vector<16x128xf32> to vector<2x8x128xf32>
    %cst_249 = arith.constant dense<0.000000e+00> : vector<2x128xf32>
    %537 = vector.multi_reduction <add>, %536, %cst_249 [1] : vector<2x8x128xf32> to vector<2x128xf32>
    %cst_250 = arith.constant 8.000000e+00 : f32
    %538 = vector.broadcast %cst_250 : f32 to vector<2x128xf32>
    %539 = arith.divf %537, %538 : vector<2x128xf32>
    %c0_251 = arith.constant 0 : index
    %c0_252 = arith.constant 0 : index
    %540 = vector.load %arg27[%c0_251, %c0_252] : memref<128x128xbf16, #tpu.memory_space<vmem>>, vector<128x128xbf16>
    %541 = arith.truncf %539 : vector<2x128xf32> to vector<2x128xbf16>
    %cst_253 = arith.constant dense<0.000000e+00> : vector<2x128xf32>
    %542 = tpu.matmul %541, %540, %cst_253 {dimension_numbers = #tpu.dot_dimension_numbers<[1], [0], [0], [1], [0, 0, 1, 1], [], []>} : vector<2x128xbf16>, vector<128x128xbf16>, vector<2x128xf32> -> vector<2x128xf32>
    %c0_254 = arith.constant 0 : index
    %c0_255 = arith.constant 0 : index
    %543 = vector.load %arg28[%c0_254, %c0_255] : memref<1x128xf32, #tpu.memory_space<vmem>>, vector<1x128xf32>
    %544 = vector.broadcast %543 : vector<1x128xf32> to vector<2x128xf32>
    %545 = arith.addf %542, %544 : vector<2x128xf32>
    %c0_256 = arith.constant 0 : index
    %c0_257 = arith.constant 0 : index
    %546 = vector.load %arg35[%c0_256, %c0_257] : memref<2x128xf32, #tpu.memory_space<vmem>>, vector<2x128xf32>
    tpu.vector_store %arg35[%c0_256, %c0_257], %545 {strides = array<i32>} : memref<2x128xf32, #tpu.memory_space<vmem>>, vector<2x128xf32>,
    %547 = vector.shape_cast %281 : vector<16x32xf32> to vector<2x8x32xf32>
    %cst_258 = arith.constant dense<0xFF800000> : vector<2x32xf32>
    %548 = vector.multi_reduction <maximumf>, %547, %cst_258 [1] : vector<2x8x32xf32> to vector<2x32xf32>
    %c0_259 = arith.constant 0 : index
    %c0_260 = arith.constant 0 : index
    %549 = vector.load %arg29[%c0_259, %c0_260] : memref<32x32xbf16, #tpu.memory_space<vmem>>, vector<32x32xbf16>
    %550 = arith.truncf %548 : vector<2x32xf32> to vector<2x32xbf16>
    %cst_261 = arith.constant dense<0.000000e+00> : vector<2x32xf32>
    %551 = tpu.matmul %550, %549, %cst_261 {dimension_numbers = #tpu.dot_dimension_numbers<[1], [0], [0], [1], [0, 0, 1, 1], [], []>} : vector<2x32xbf16>, vector<32x32xbf16>, vector<2x32xf32> -> vector<2x32xf32>
    %c0_262 = arith.constant 0 : index
    %c0_263 = arith.constant 0 : index
    %552 = vector.load %arg30[%c0_262, %c0_263] : memref<1x32xf32, #tpu.memory_space<vmem>>, vector<1x32xf32>
    %553 = vector.broadcast %552 : vector<1x32xf32> to vector<2x32xf32>
    %554 = arith.addf %551, %553 : vector<2x32xf32>
    %c0_264 = arith.constant 0 : index
    %c0_265 = arith.constant 0 : index
    %555 = vector.load %arg31[%c0_264, %c0_265] : memref<1x32xf32, #tpu.memory_space<vmem>>, vector<1x32xf32>
    %c0_266 = arith.constant 0 : index
    %c0_267 = arith.constant 0 : index
    %556 = vector.load %arg32[%c0_266, %c0_267] : memref<1x32xf32, #tpu.memory_space<vmem>>, vector<1x32xf32>
    %cst_268 = arith.constant dense<0.000000e+00> : vector<2xf32>
    %557 = vector.multi_reduction <add>, %554, %cst_268 [1] : vector<2x32xf32> to vector<2xf32>
    %558 = vector.shape_cast %557 : vector<2xf32> to vector<2x1xf32>
    %cst_269 = arith.constant 3.200000e+01 : f32
    %559 = vector.broadcast %cst_269 : f32 to vector<2x1xf32>
    %560 = arith.divf %558, %559 : vector<2x1xf32>
    %561 = vector.broadcast %560 : vector<2x1xf32> to vector<2x32xf32>
    %562 = arith.subf %554, %561 : vector<2x32xf32>
    %563 = arith.mulf %562, %562 : vector<2x32xf32>
    %cst_270 = arith.constant dense<0.000000e+00> : vector<2xf32>
    %564 = vector.multi_reduction <add>, %563, %cst_270 [1] : vector<2x32xf32> to vector<2xf32>
    %565 = vector.shape_cast %564 : vector<2xf32> to vector<2x1xf32>
    %cst_271 = arith.constant 3.200000e+01 : f32
    %566 = vector.broadcast %cst_271 : f32 to vector<2x1xf32>
    %567 = arith.divf %565, %566 : vector<2x1xf32>
    %cst_272 = arith.constant 9.99999974E-6 : f32
    %568 = vector.broadcast %cst_272 : f32 to vector<2x1xf32>
    %569 = arith.addf %567, %568 : vector<2x1xf32>
    %570 = math.rsqrt %569 : vector<2x1xf32>
    %571 = vector.broadcast %570 : vector<2x1xf32> to vector<2x32xf32>
    %572 = arith.mulf %562, %571 : vector<2x32xf32>
    %573 = vector.broadcast %555 : vector<1x32xf32> to vector<2x32xf32>
    %574 = arith.mulf %572, %573 : vector<2x32xf32>
    %575 = vector.broadcast %556 : vector<1x32xf32> to vector<2x32xf32>
    %576 = arith.addf %574, %575 : vector<2x32xf32>
    %cst_273 = arith.constant 0.000000e+00 : f32
    %577 = vector.broadcast %cst_273 : f32 to vector<2x32xf32>
    %578 = arith.maximumf %576, %577 : vector<2x32xf32>
    %c0_274 = arith.constant 0 : index
    %c0_275 = arith.constant 0 : index
    %579 = vector.load %arg33[%c0_274, %c0_275] : memref<32x4xbf16, #tpu.memory_space<vmem>>, vector<32x4xbf16>
    %580 = arith.truncf %578 : vector<2x32xf32> to vector<2x32xbf16>
    %cst_276 = arith.constant dense<0.000000e+00> : vector<2x4xf32>
    %581 = tpu.matmul %580, %579, %cst_276 {dimension_numbers = #tpu.dot_dimension_numbers<[1], [0], [0], [1], [0, 0, 1, 1], [], []>} : vector<2x32xbf16>, vector<32x4xbf16>, vector<2x4xf32> -> vector<2x4xf32>
    %c0_277 = arith.constant 0 : index
    %c0_278 = arith.constant 0 : index
    %582 = vector.load %arg34[%c0_277, %c0_278] : memref<1x4xf32, #tpu.memory_space<vmem>>, vector<1x4xf32>
    %583 = vector.broadcast %582 : vector<1x4xf32> to vector<2x4xf32>
    %584 = arith.addf %581, %583 : vector<2x4xf32>
    %c0_279 = arith.constant 0 : index
    %c0_280 = arith.constant 0 : index
    %585 = vector.load %arg36[%c0_279, %c0_280] : memref<2x4xf32, #tpu.memory_space<vmem>>, vector<2x4xf32>
    tpu.vector_store %arg36[%c0_279, %c0_280], %584 {strides = array<i32>} : memref<2x4xf32, #tpu.memory_space<vmem>>, vector<2x4xf32>,
    return
  }
}

</mosaic_0001>

<bundles_post_ra>
// kernel: eq.24
= control target key start
LH: loop header
LB: loop body
LE: loop exit
PB: predicated region body
PF: predicated region fallthrough
CT: control target
= control target key end

     0   :  { %vm22_vm0 = vcmask 64512   ;;  %s87_s14 = smov 40   ;;  %s88_s15 = smov 48   ;;  %vm28_vm1 = vcmask 523712   ;;  %vm34_vm2 = vcmask 458112   ;;  %vm40_vm3 = vcmask 392512   ;;  %s118_s0 = inlined_call_operand.vmem [shape: s32[4,2,8], index: 0, kind: input, shape index: {}]   ;;  %s119_s1 = inlined_call_operand.vmem [shape: s32[64], index: 1, kind: output, shape index: {}]  }
   0x1   :  { %v76_v0 = vld [vmem:[%s118_s0 + $0x6] sm:$0x3]  ;;  %v77_v1 = vld [vmem:[%s118_s0 + $0x4] sm:$0x3]  ;;  %v78_v2 = vld [vmem:[%s118_s0 + $0x2] sm:$0x3] }
   0x2   :  { %9 = vst [vmem:[#allocation1 + $0x18] sm:$0x3] %v76_v0  ;;  %14 = vst [vmem:[#allocation1 + $0x10] sm:$0x3] %v77_v1  ;;  %v19_v3 = vld [vmem:[%s118_s0] sm:$0x3] }
   0x3   :  { %18 = vst [vmem:[#allocation1 + $0x8] sm:$0x3] %v78_v2  ;;  %20 = vst [vmem:[#allocation1] sm:$0x3] %v19_v3  ;;  %s86_s0 = smov 56   ;;  %s89_s16 = smov 32  }
   0x4   :  { %s90_s17 = smov 24   ;;  %s91_s18 = smov 16   ;;  %vm46_vm4 = vcmask 326912   ;;  %vm52_vm5 = vcmask 261312   ;;  %vm58_vm6 = vcmask 195712   ;;  %vm64_vm7 = vcmask 130112  }
   0x5   :  { %s92_s19 = smov 8  }
   0x9   :  { %v25_v4 = vld [vmem:[#allocation1 + $0x19] sm:$0x1]   ;;  %v37_v5 = vld [vmem:[#allocation1 + $0x11] sm:$0x1]   ;;  %v31_v6 = vld [vmem:[#allocation1 + $0x18] sm:$0x1]  }
   0xa   :  { %26 = vrot.lane.b32.xlu0 %v25_v4, %s86_s0  ;;  %38 = vrot.lane.b32.xlu1 %v37_v5, %s87_s14  ;;  %v43_v7 = vld [vmem:[#allocation1 + $0x10] sm:$0x1]   ;;  %v21_v8 = vld [vmem:[#allocation1] sm:$0x1]   ;;  %v49_v9 = vld [vmem:[#allocation1 + $0x9] sm:$0x1]  }
   0xb   :  { %23 = vst.msk [vmem:[#allocation0] sm:$0x1] %vm22_vm0, %v21_v8   ;;  %v55_v10 = vld [vmem:[#allocation1 + $0x8] sm:$0x1]   ;;  %v61_v11 = vld [vmem:[#allocation1 + $0x1] sm:$0x1]  }
   0xe   :  { %32 = vrot.lane.b32.xlu0 %v31_v6, %s88_s15  ;;  %44 = vrot.lane.b32.xlu1 %v43_v7, %s89_s16 }
  0x12   :  { %50 = vrot.lane.b32.xlu0 %v49_v9, %s90_s17  ;;  %56 = vrot.lane.b32.xlu1 %v55_v10, %s91_s18 }
  0x16   :  { %62 = vrot.lane.b32.xlu0 %v61_v11, %s92_s19 }
  0x7c   :  { %v27_v12 = vpop.permute.xlu0 %26   ;;  %v39_v13 = vpop.permute.xlu1 %38  }
  0x7d   :  { %29 = vst.msk [vmem:[#allocation0] sm:$0x1] %vm28_vm1, %v27_v12  }
  0x80   :  { %v33_v14 = vpop.permute.xlu0 %32   ;;  %v45_v15 = vpop.permute.xlu1 %44  }
  0x81   :  { %35 = vst.msk [vmem:[#allocation0] sm:$0x1] %vm34_vm2, %v33_v14  }
  0x82   :  { %41 = vst.msk [vmem:[#allocation0] sm:$0x1] %vm40_vm3, %v39_v13  }
  0x83   :  { %47 = vst.msk [vmem:[#allocation0] sm:$0x1] %vm46_vm4, %v45_v15  }
  0x84   :  { %v51_v16 = vpop.permute.xlu0 %50   ;;  %v57_v17 = vpop.permute.xlu1 %56  }
  0x85   :  { %53 = vst.msk [vmem:[#allocation0] sm:$0x1] %vm52_vm5, %v51_v16  }
  0x86   :  { %59 = vst.msk [vmem:[#allocation0] sm:$0x1] %vm58_vm6, %v57_v17  }
  0x88   :  { %v63_v18 = vpop.permute.xlu0 %62  }
  0x89   :  { %65 = vst.msk [vmem:[#allocation0] sm:$0x1] %vm64_vm7, %v63_v18  }
  0x90   :  { %v70_v19 = vld [vmem:[#allocation0] sm:$0x1] }
  0x91   :  { %73 = vst [vmem:[%s119_s1] sm:$0x1] %v70_v19 }

// kernel: transae_forward.1
= control target key start
LH: loop header
LB: loop body
LE: loop exit
PB: predicated region body
PF: predicated region fallthrough
CT: control target
= control target key end

     0   :  { %s13135_s6 = smov 1   ;;  %s13136_s10 = smov 2   ;;  %s14247_s0 = inlined_call_operand.smem [shape: u32[37], index: -1, kind: input, shape index: {}] }
   0x1   :  { %s13220_s5 = sld [smem:[%s14247_s0]]   ;;  %s13137_s14 = smov 3  }
   0x2   :  { %s13225_s9 = sld [smem:[%s14247_s0 + %s13135_s6]]   ;;  %s13138_s18 = smov 4  }
   0x3   :  { %s13230_s13 = sld [smem:[%s14247_s0 + %s13136_s10]]   ;;  %s13139_s22 = smov 5  }
   0x4   :  { %s13235_s17 = sld [smem:[%s14247_s0 + %s13137_s14]]   ;;  %s13140_s26 = smov 6  }
   0x5   :  { %s13240_s21 = sld [smem:[%s14247_s0 + %s13138_s18]]   ;;  %s13141_s30 = smov 7  }
   0x6   :  { %s13245_s25 = sld [smem:[%s14247_s0 + %s13139_s22]]   ;;  %s13142_s4 = smov 8  }
   0x7   :  { %s13250_s29 = sld [smem:[%s14247_s0 + %s13140_s26]]   ;;  %s13143_s10 = smov 9  }
   0x8   :  { %s13255_s3 = sld [smem:[%s14247_s0 + %s13141_s30]]   ;;  %s13144_s15 = smov 10  }
   0x9   :  { %14257 = sst [smem:[#allocation54_spill]] %s13230_s13  ;;  %s13145_s20 = smov 11  }
   0xa   :  { %s13260_s8 = sld [smem:[%s14247_s0 + %s13142_s4]]   ;;  %s13146_s26 = smov 12  }
   0xb   :  { %s13265_s14 = sld [smem:[%s14247_s0 + %s13143_s10]]   ;;  %s13147_s1 = smov 13  }
   0xc   :  { %14258 = sst [smem:[#allocation55_spill]] %s13245_s25  ;;  %s13148_s7 = smov 14  }
   0xd   :  { %14259 = sst [smem:[#allocation56_spill]] %s13250_s29  ;;  %s13150_s22 = smov 16  }
   0xe   :  { %s13270_s19 = sld [smem:[%s14247_s0 + %s13144_s15]]   ;;  %s13149_s15 = smov 15  }
   0xf   :  { %s13275_s24 = sld [smem:[%s14247_s0 + %s13145_s20]]   ;;  %s13151_s28 = smov 17  }
  0x10   :  { %s13280_s30 = sld [smem:[%s14247_s0 + %s13146_s26]]  }
  0x11   :  { %14260 = sst [smem:[#allocation57_spill]] %s13265_s14 }
  0x12   :  { %s13285_s6 = sld [smem:[%s14247_s0 + %s13147_s1]]  }
  0x13   :  { %s13290_s12 = sld [smem:[%s14247_s0 + %s13148_s7]]   ;;  %s13152_s7 = smov 18  }
  0x14   :  { %14261 = sst [smem:[#allocation58_spill]] %s13270_s19 }
  0x15   :  { %s13295_s20 = sld [smem:[%s14247_s0 + %s13149_s15]]   ;;  %s13153_s15 = smov 19  }
  0x16   :  { %s13300_s27 = sld [smem:[%s14247_s0 + %s13150_s22]]   ;;  %s13154_s22 = smov 20  }
  0x17   :  { %s13305_s4 = sld [smem:[%s14247_s0 + %s13151_s28]]   ;;  %s13155_s28 = smov 21  }
  0x18   :  { %14262 = sst [smem:[#allocation59_spill]] %s13285_s6 }
  0x19   :  { %14263 = sst [smem:[#allocation60_spill]] %s13290_s12 }
  0x1a   :  { %s13310_s6 = sld [smem:[%s14247_s0 + %s13152_s7]]   ;;  %s13156_s7 = smov 22  }
  0x1b   :  { %s13315_s13 = sld [smem:[%s14247_s0 + %s13153_s15]]   ;;  %s13157_s15 = smov 23  }
  0x1c   :  { %14264 = sst [smem:[#allocation61_spill]] %s13300_s27 }
  0x1d   :  { %s13320_s19 = sld [smem:[%s14247_s0 + %s13154_s22]]   ;;  %s13158_s22 = smov 24  }
  0x1e   :  { %s13325_s14 = sld [smem:[%s14247_s0 + %s13155_s28]]   ;;  %s13159_s28 = smov 25  }
  0x1f   :  { %s13330_s29 = sld [smem:[%s14247_s0 + %s13156_s7]]   ;;  %s13160_s7 = smov 26  }
  0x20   :  { %14265 = sst [smem:[#allocation62_spill]] %s13310_s6 }
  0x21   :  { %s13335_s25 = sld [smem:[%s14247_s0 + %s13157_s15]]   ;;  %s13161_s15 = smov 27  }
  0x22   :  { %s13345_s6 = sld [smem:[%s14247_s0 + %s13159_s28]]   ;;  %s13163_s28 = smov 29  }
  0x23   :  { %14266 = sst [smem:[#allocation63_spill]] %s13320_s19 }
  0x24   :  { %s13340_s19 = sld [smem:[%s14247_s0 + %s13158_s22]]   ;;  %s13162_s22 = smov 28  }
  0x25   :  { %14267 = sst [smem:[#allocation64_spill]] %s13330_s29 }
  0x26   :  { %s13350_s29 = sld [smem:[%s14247_s0 + %s13160_s7]]   ;;  %s13164_s7 = smov 30  }
  0x27   :  { %14268 = sst [smem:[#allocation65_spill]] %s13335_s25 }
  0x28   :  { %14269 = sst [smem:[#allocation66_spill]] %s13345_s6 }
  0x29   :  { %s13355_s25 = sld [smem:[%s14247_s0 + %s13161_s15]]   ;;  %s13165_s15 = smov 31  }
  0x2a   :  { %s13360_s27 = sld [smem:[%s14247_s0 + %s13162_s22]]   ;;  %s13166_s22 = smov 32  }
  0x2b   :  { %s13365_s6 = sld [smem:[%s14247_s0 + %s13163_s28]]   ;;  %s13167_s28 = smov 33  }
  0x2c   :  { %s13370_s12 = sld [smem:[%s14247_s0 + %s13164_s7]]   ;;  %s13168_s7 = smov 34  }
  0x2f   :  { %14270 = sst [smem:[#allocation67_spill]] %s13355_s25 }
  0x30   :  { %14271 = sst [smem:[#allocation68_spill]] %s13360_s27 }
  0x31   :  { %14272 = sst [smem:[#allocation69_spill]] %s13365_s6 }
  0x32   :  { %14273 = sst [smem:[#allocation70_spill]] %s13370_s12 }
  0x33   :  { %s13375_s25 = sld [smem:[%s14247_s0 + %s13165_s15]]   ;;  %s13169_s15 = smov 35  }
  0x34   :  { %s13380_s27 = sld [smem:[%s14247_s0 + %s13166_s22]]   ;;  %s13170_s22 = smov 36  }
  0x35   :  { %s13385_s6 = sld [smem:[%s14247_s0 + %s13167_s28]]  }
  0x36   :  { %s13390_s12 = sld [smem:[%s14247_s0 + %s13168_s7]]  }
  0x39   :  { %14274 = sst [smem:[#allocation71_spill]] %s13375_s25 }
  0x3a   :  { %14275 = sst [smem:[#allocation72_spill]] %s13380_s27 }
  0x3b   :  { %s13395_s25 = sld [smem:[%s14247_s0 + %s13169_s15]]  }
  0x3c   :  { %s13400_s27 = sld [smem:[%s14247_s0 + %s13170_s22]]  }
  0x3d   :  { %79 = vsyncpa [#allocation3], 0 }
  0x3e   :  { %80 = vsyncpa [#allocation6], 0 }
  0x3f   :  { %81 = vsyncpa [#allocation9], 0 }
  0x40   :  { %82 = vsyncpa [#allocation12], 0 }
  0x41   :  { %83 = vsyncpa [#allocation15], 0 }
  0x42   :  { %84 = vsyncpa [#allocation18], 0 }
  0x43   :  { %85 = vsyncpa [#allocation21], 0 }
  0x44   :  { %86 = vsyncpa [#allocation24], 0 }
  0x45   :  { %87 = vsyncpa [#allocation27], 0 }
  0x46   :  { %88 = vsyncpa [#allocation30], 0 }
  0x47   :  { %89 = vsyncpa [#allocation33], 0 }
  0x48   :  { %90 = vsyncpa [#allocation36], 0 }
  0x49   :  { %91 = vsyncpa [#allocation4], 0 }
  0x4a   :  { %92 = vsyncpa [#allocation39], 0  ;;  %s13171_s28 = smov [#allocation5]  }
  0x4b   :  { %s110_s1 = sshll.u32 %s13171_s28, 4  ;;  %s111_s1 = int_to_ptr.vmem [resolvable:$true] %s110_s1 }
  0x4c   :  { %s12635_s2 = scalar_lea.vmem %s111_s1, 256  ;;  %p12640_p1 = scmp.lt.s32.totalorder %s111_s1, %s111_s1 }
  0x4d   :  { %p12636_p0 = scmp.ne.s32.totalorder %s111_s1, %s12635_s2  ;;  %p12641_p2 = scmp.lt.s32.totalorder %s12635_s2, %s12635_s2 }
  0x4f   :  { %p12642_p3 = por %p12641_p2, %p12640_p1 }
  0x51   :  { %p12643_p4 = pnand %p12642_p3, %p12636_p0 }
  0x53   :  { %12646 = shalt.err (!%p12643_p4)
}
  0x54   :  { %s13172_s0 = smov 128   ;;  %s13173_s7 = smov 8  }
  0x55   :  { %116 = dma.hbm_to_vmem [thread:$0]  %s13225_s9, 256, %s111_s1, [#allocation6], %s13172_s0, %s13172_s0, %s13173_s7  }
  0x56   :  { %s13174_s10 = smov [#allocation8]   ;;  %s13175_s15 = smov [#allocation11]  }
  0x57   :  { %s137_s11 = sshll.u32 %s13174_s10, 4  ;;  %s163_s16 = sshll.u32 %s13175_s15, 4  ;;  %s138_s11 = int_to_ptr.vmem [resolvable:$true] %s137_s11  ;;  %s164_s16 = int_to_ptr.vmem [resolvable:$true] %s163_s16 }
  0x58   :  { %s12655_s18 = scalar_lea.vmem %s138_s11, 16  ;;  %s12659_s22 = scalar_lea.vmem %s138_s11, 32 }
  0x59   :  { %p12656_p5 = scmp.ne.s32.totalorder %s138_s11, %s12655_s18  ;;  %p12660_p6 = scmp.lt.s32.totalorder %s138_s11, %s138_s11 }
  0x5a   :  { %p12661_p7 = scmp.lt.s32.totalorder %s12659_s22, %s12655_s18 }
  0x5c   :  { %p12662_p8 = por %p12661_p7, %p12660_p6 }
  0x5e   :  { %p12663_p9 = pnand %p12662_p8, %p12656_p5 }
  0x60   :  { %12666 = shalt.err (!%p12663_p9)
}
  0x61   :  { %140 = dma.hbm_to_vmem [thread:$0]  %s13240_s21, 16, %s138_s11, [#allocation9]  }
  0x62   :  { %s12675_s23 = scalar_lea.vmem %s164_s16, 16  ;;  %s12679_s26 = scalar_lea.vmem %s164_s16, 32 }
  0x63   :  { %p12676_p10 = scmp.ne.s32.totalorder %s164_s16, %s12675_s23  ;;  %p12680_p11 = scmp.lt.s32.totalorder %s164_s16, %s164_s16 }
  0x64   :  { %p12681_p12 = scmp.lt.s32.totalorder %s12679_s26, %s12675_s23 }
  0x66   :  { %p12682_p13 = por %p12681_p12, %p12680_p11 }
  0x68   :  { %p12683_p0 = pnand %p12682_p13, %p12676_p10 }
  0x6a   :  { %12686 = shalt.err (!%p12683_p0)
}
  0x6b   :  { %166 = dma.hbm_to_vmem [thread:$0]  %s13260_s8, 16, %s164_s16, [#allocation12]  }
  0x6c   :  { %s13176_s9 = smov [#allocation14]  }
  0x6d   :  { %s188_s28 = sshll.u32 %s13176_s9, 4  ;;  %s189_s28 = int_to_ptr.vmem [resolvable:$true] %s188_s28 }
  0x6e   :  { %s12695_s1 = scalar_lea.vmem %s189_s28, 192  ;;  %p12700_p2 = scmp.lt.s32.totalorder %s189_s28, %s189_s28 }
  0x6f   :  { %p12696_p1 = scmp.ne.s32.totalorder %s189_s28, %s12695_s1  ;;  %p12701_p3 = scmp.lt.s32.totalorder %s12695_s1, %s12695_s1 }
  0x71   :  { %p12702_p4 = por %p12701_p3, %p12700_p2 }
  0x73   :  { %p12703_p5 = pnand %p12702_p4, %p12696_p1 }
  0x75   :  { %12706 = shalt.err (!%p12703_p5)
}
  0x76   :  { %s13177_s21 = smov 48   ;;  %s13178_s2 = smov 3  }
  0x77   :  { %194 = dma.hbm_to_vmem [thread:$0]  %s13280_s30, 192, %s189_s28, [#allocation15], %s13177_s21, %s13177_s21, %s13178_s2  }
  0x78   :  { %s13179_s10 = smov [#allocation17]   ;;  %s13180_s15 = smov [#allocation20]  }
  0x79   :  { %s214_s11 = sshll.u32 %s13179_s10, 4  ;;  %s238_s18 = sshll.u32 %s13180_s15, 4  ;;  %s215_s11 = int_to_ptr.vmem [resolvable:$true] %s214_s11  ;;  %s239_s18 = int_to_ptr.vmem [resolvable:$true] %s238_s18 }
  0x7a   :  { %s12715_s8 = scalar_lea.vmem %s215_s11, 64  ;;  %p12720_p7 = scmp.lt.s32.totalorder %s215_s11, %s215_s11 }
  0x7b   :  { %p12716_p6 = scmp.ne.s32.totalorder %s215_s11, %s12715_s8  ;;  %p12721_p8 = scmp.lt.s32.totalorder %s12715_s8, %s12715_s8 }
  0x7d   :  { %p12722_p9 = por %p12721_p8, %p12720_p7 }
  0x7f   :  { %p12723_p10 = pnand %p12722_p9, %p12716_p6 }
  0x81   :  { %12726 = shalt.err (!%p12723_p10)
}
  0x82   :  { %s13181_s16 = smov 16   ;;  %s13182_s22 = smov 1  }
  0x83   :  { %220 = dma.hbm_to_vmem [thread:$0]  %s13295_s20, 64, %s215_s11, [#allocation18], %s13181_s16, %s13181_s16, %s13182_s22  }
  0x84   :  { %s12735_s30 = scalar_lea.vmem %s239_s18, 32768  ;;  %p12740_p12 = scmp.lt.s32.totalorder %s239_s18, %s239_s18 }
  0x85   :  { %p12736_p11 = scmp.ne.s32.totalorder %s239_s18, %s12735_s30  ;;  %p12741_p13 = scmp.lt.s32.totalorder %s12735_s30, %s12735_s30 }
  0x87   :  { %p12742_p0 = por %p12741_p13, %p12740_p12 }
  0x89   :  { %p12743_p1 = pnand %p12742_p0, %p12736_p11 }
  0x8b   :  { %12746 = shalt.err (!%p12743_p1)
}
  0x8c   :  { %s13183_s23 = smov 512   ;;  %s13184_s26 = smov 32  }
  0x8d   :  { %244 = dma.hbm_to_vmem [thread:$0]  %s13305_s4, 32768, %s239_s18, [#allocation21], %s13183_s23, %s13183_s23, %s13184_s26  }
  0x8e   :  { %s13185_s9 = smov [#allocation23]   ;;  %s13186_s1 = smov [#allocation26]  }
  0x8f   :  { %s262_s28 = sshll.u32 %s13185_s9, 4  ;;  %s286_s21 = sshll.u32 %s13186_s1, 4  ;;  %s263_s28 = int_to_ptr.vmem [resolvable:$true] %s262_s28  ;;  %s287_s21 = int_to_ptr.vmem [resolvable:$true] %s286_s21 }
  0x90   :  { %s12755_s2 = scalar_lea.vmem %s263_s28, 32768  ;;  %p12760_p3 = scmp.lt.s32.totalorder %s263_s28, %s263_s28 }
  0x91   :  { %p12756_p2 = scmp.ne.s32.totalorder %s263_s28, %s12755_s2  ;;  %p12761_p4 = scmp.lt.s32.totalorder %s12755_s2, %s12755_s2 }
  0x93   :  { %p12762_p5 = por %p12761_p4, %p12760_p3 }
  0x95   :  { %p12763_p6 = pnand %p12762_p5, %p12756_p2 }
  0x97   :  { %12766 = shalt.err (!%p12763_p6)
}
  0x98   :  { %s13187_s20 = smov 64   ;;  %s13188_s10 = smov 4  }
  0x99   :  { %268 = dma.hbm_to_vmem [thread:$0]  %s13315_s13, 32768, %s263_s28, [#allocation24], %s13187_s20, %s13187_s20, %s13188_s10  }
  0x9a   :  { %s12775_s4 = scalar_lea.vmem %s287_s21, 64  ;;  %p12780_p8 = scmp.lt.s32.totalorder %s287_s21, %s287_s21 }
  0x9b   :  { %p12776_p7 = scmp.ne.s32.totalorder %s287_s21, %s12775_s4  ;;  %p12781_p9 = scmp.lt.s32.totalorder %s12775_s4, %s12775_s4 }
  0x9d   :  { %p12782_p10 = por %p12781_p9, %p12780_p8 }
  0x9f   :  { %p12783_p11 = pnand %p12782_p10, %p12776_p7 }
  0xa1   :  { %12786 = shalt.err (!%p12783_p11)
}
  0xa2   :  { %292 = dma.hbm_to_vmem [thread:$0]  %s13325_s14, 64, %s287_s21, [#allocation27], %s13181_s16, %s13181_s16, %s13182_s22  }
  0xa3   :  { %s13189_s11 = smov [#allocation29]   ;;  %s13190_s18 = smov [#allocation32]  }
  0xa4   :  { %s313_s15 = sshll.u32 %s13189_s11, 4  ;;  %s335_s8 = sshll.u32 %s13190_s18, 4  ;;  %s314_s15 = int_to_ptr.vmem [resolvable:$true] %s313_s15  ;;  %s336_s8 = int_to_ptr.vmem [resolvable:$true] %s335_s8 }
  0xa5   :  { %s12795_s30 = scalar_lea.vmem %s314_s15, 16  ;;  %s12799_s13 = scalar_lea.vmem %s314_s15, 32 }
  0xa6   :  { %p12796_p12 = scmp.ne.s32.totalorder %s314_s15, %s12795_s30  ;;  %p12800_p13 = scmp.lt.s32.totalorder %s314_s15, %s314_s15 }
  0xa7   :  { %p12801_p0 = scmp.lt.s32.totalorder %s12799_s13, %s12795_s30 }
  0xa9   :  { %p12802_p1 = por %p12801_p0, %p12800_p13 }
  0xab   :  { %p12803_p2 = pnand %p12802_p1, %p12796_p12 }
  0xad   :  { %12806 = shalt.err (!%p12803_p2)
}
  0xae   :  { %316 = dma.hbm_to_vmem [thread:$0]  %s13340_s19, 16, %s314_s15, [#allocation30]  }
  0xaf   :  { %s12815_s23 = scalar_lea.vmem %s336_s8, 16  ;;  %s12819_s9 = scalar_lea.vmem %s336_s8, 32 }
  0xb0   :  { %p12816_p3 = scmp.ne.s32.totalorder %s336_s8, %s12815_s23  ;;  %p12820_p4 = scmp.lt.s32.totalorder %s336_s8, %s336_s8 }
  0xb1   :  { %p12821_p5 = scmp.lt.s32.totalorder %s12819_s9, %s12815_s23 }
  0xb3   :  { %p12822_p6 = por %p12821_p5, %p12820_p4 }
  0xb5   :  { %p12823_p7 = pnand %p12822_p6, %p12816_p3 }
  0xb7   :  { %12826 = shalt.err (!%p12823_p7)
}
  0xb8   :  { %338 = dma.hbm_to_vmem [thread:$0]  %s13350_s29, 16, %s336_s8, [#allocation33]  }
  0xb9   :  { %s13191_s14 = smov [#allocation2]   ;;  %s13192_s1 = smov [#allocation7]  }
  0xba   :  { %s98_s28 = sshll.u32 %s13191_s14, 4  ;;  %s124_s21 = sshll.u32 %s13192_s1, 4  ;;  %s99_s28 = int_to_ptr.vmem [resolvable:$true] %s98_s28  ;;  %s125_s21 = int_to_ptr.vmem [resolvable:$true] %s124_s21 }
  0xbb   :  { %s12835_s2 = scalar_lea.vmem %s99_s28, 512  ;;  %p12840_p9 = scmp.lt.s32.totalorder %s99_s28, %s99_s28 }
  0xbc   :  { %p12836_p8 = scmp.ne.s32.totalorder %s99_s28, %s12835_s2  ;;  %p12841_p10 = scmp.lt.s32.totalorder %s12835_s2, %s12835_s2 }
  0xbe   :  { %p12842_p11 = por %p12841_p10, %p12840_p9 }
  0xc0   :  { %p12843_p12 = pnand %p12842_p11, %p12836_p8 }
  0xc2   :  { %12846 = shalt.err (!%p12843_p12)
}
  0xc3   :  { %s13193_s19 = smov 256   ;;  %s12855_s4 = scalar_lea.vmem %s125_s21, 2048 }
  0xc4   :  { %104 = dma.hbm_to_vmem [thread:$0]  %s13220_s5, 512, %s99_s28, [#allocation3], %s13193_s19, %s13193_s19, %s13181_s16  }
  0xc5   :  { %p12856_p13 = scmp.ne.s32.totalorder %s125_s21, %s12855_s4  ;;  %p12860_p0 = scmp.lt.s32.totalorder %s125_s21, %s125_s21 }
  0xc6   :  { %p12861_p1 = scmp.lt.s32.totalorder %s12855_s4, %s12855_s4 }
  0xc8   :  { %p12862_p2 = por %p12861_p1, %p12860_p0 }
  0xca   :  { %p12863_p3 = pnand %p12862_p2, %p12856_p13 }
  0xcc   :  { %12866 = shalt.err (!%p12863_p3)
}
  0xcd   :  { %130 = dma.hbm_to_vmem [thread:$0]  %s13235_s17, 2048, %s125_s21, [#allocation6], %s13187_s20, %s13187_s20, %s13188_s10  }
  0xce   :  { %s13194_s29 = smov [#allocation10]   ;;  %s13195_s15 = smov [#allocation13]  }
  0xcf   :  { %s150_s11 = sshll.u32 %s13194_s29, 4  ;;  %s176_s18 = sshll.u32 %s13195_s15, 4  ;;  %s151_s11 = int_to_ptr.vmem [resolvable:$true] %s150_s11  ;;  %s177_s18 = int_to_ptr.vmem [resolvable:$true] %s176_s18 }
  0xd0   :  { %s12875_s8 = scalar_lea.vmem %s151_s11, 1024  ;;  %p12880_p5 = scmp.lt.s32.totalorder %s151_s11, %s151_s11 }
  0xd1   :  { %p12876_p4 = scmp.ne.s32.totalorder %s151_s11, %s12875_s8  ;;  %p12881_p6 = scmp.lt.s32.totalorder %s12875_s8, %s12875_s8 }
  0xd3   :  { %p12882_p7 = por %p12881_p6, %p12880_p5 }
  0xd5   :  { %p12883_p8 = pnand %p12882_p7, %p12876_p4 }
  0xd7   :  { %12886 = shalt.err (!%p12883_p8)
}
  0xd8   :  { %156 = dma.hbm_to_vmem [thread:$0]  %s13255_s3, 1024, %s151_s11, [#allocation9], %s13187_s20, %s13187_s20, %s13188_s10  }
  0xd9   :  { %s12895_s5 = scalar_lea.vmem %s177_s18, 12288  ;;  %p12900_p10 = scmp.lt.s32.totalorder %s177_s18, %s177_s18 }
  0xda   :  { %p12896_p9 = scmp.ne.s32.totalorder %s177_s18, %s12895_s5  ;;  %p12901_p11 = scmp.lt.s32.totalorder %s12895_s5, %s12895_s5 }
  0xdc   :  { %p12902_p12 = por %p12901_p11, %p12900_p10 }
  0xde   :  { %p12903_p13 = pnand %p12902_p12, %p12896_p9 }
  0xe0   :  { %12906 = shalt.err (!%p12903_p13)
}
  0xe1   :  { %s13196_s17 = smov 192   ;;  %s13197_s30 = smov 12  }
  0xe2   :  { %182 = dma.hbm_to_vmem [thread:$0]  %s13275_s24, 12288, %s177_s18, [#allocation12], %s13196_s17, %s13196_s17, %s13197_s30  }
  0xe3   :  { %s13198_s13 = smov [#allocation16]   ;;  %s13199_s9 = smov [#allocation19]  }
  0xe4   :  { %s202_s23 = sshll.u32 %s13198_s13, 4  ;;  %s226_s14 = sshll.u32 %s13199_s9, 4  ;;  %s203_s23 = int_to_ptr.vmem [resolvable:$true] %s202_s23  ;;  %s227_s14 = int_to_ptr.vmem [resolvable:$true] %s226_s14 }
  0xe5   :  { %s12915_s28 = scalar_lea.vmem %s203_s23, 64  ;;  %p12920_p1 = scmp.lt.s32.totalorder %s203_s23, %s203_s23 }
  0xe6   :  { %p12916_p0 = scmp.ne.s32.totalorder %s203_s23, %s12915_s28  ;;  %p12921_p2 = scmp.lt.s32.totalorder %s12915_s28, %s12915_s28 }
  0xe8   :  { %p12922_p3 = por %p12921_p2, %p12920_p1 }
  0xea   :  { %p12923_p4 = pnand %p12922_p3, %p12916_p0 }
  0xec   :  { %12926 = shalt.err (!%p12923_p4)
}
  0xed   :  { %s14276_s3 = sld [smem:[#allocation60_spill]]  ;;  %s12935_s1 = scalar_lea.vmem %s227_s14, 64 }
  0xee   :  { %p12936_p5 = scmp.ne.s32.totalorder %s227_s14, %s12935_s1  ;;  %p12940_p6 = scmp.lt.s32.totalorder %s227_s14, %s227_s14 }
  0xef   :  { %p12941_p7 = scmp.lt.s32.totalorder %s12935_s1, %s12935_s1 }
  0xf1   :  { %p12942_p8 = por %p12941_p7, %p12940_p6 }
  0xf3   :  { %208 = dma.hbm_to_vmem [thread:$0]  %s14276_s3, 64, %s203_s23, [#allocation15], %s13181_s16, %s13181_s16, %s13182_s22  }
  0xf4   :  { %p12943_p9 = pnand %p12942_p8, %p12936_p5 }
  0xf6   :  { %12946 = shalt.err (!%p12943_p9)
}
  0xf7   :  { %s14277_s24 = sld [smem:[#allocation61_spill]]  ;;  %s13200_s21 = smov [#allocation22]  }
  0xf8   :  { %s250_s2 = sshll.u32 %s13200_s21, 4  ;;  %s13201_s19 = smov [#allocation25]   ;;  %s251_s2 = int_to_ptr.vmem [resolvable:$true] %s250_s2 }
  0xf9   :  { %s274_s4 = sshll.u32 %s13201_s19, 4  ;;  %s12955_s29 = scalar_lea.vmem %s251_s2, 512  ;;  %s275_s4 = int_to_ptr.vmem [resolvable:$true] %s274_s4 }
  0xfa   :  { %p12956_p10 = scmp.ne.s32.totalorder %s251_s2, %s12955_s29  ;;  %p12960_p11 = scmp.lt.s32.totalorder %s251_s2, %s251_s2 }
  0xfb   :  { %p12961_p12 = scmp.lt.s32.totalorder %s12955_s29, %s12955_s29 }
  0xfd   :  { %232 = dma.hbm_to_vmem [thread:$0]  %s14277_s24, 64, %s227_s14, [#allocation18], %s13181_s16, %s13181_s16, %s13182_s22  }
  0xfe   :  { %p12962_p13 = por %p12961_p12, %p12960_p11 }
 0x100   :  { %p12963_p0 = pnand %p12962_p13, %p12956_p10 }
 0x102   :  { %12966 = shalt.err (!%p12963_p0)
}
 0x103   :  { %s14278_s11 = sld [smem:[#allocation62_spill]]  ;;  %s12975_s15 = scalar_lea.vmem %s275_s4, 64 }
 0x104   :  { %p12976_p1 = scmp.ne.s32.totalorder %s275_s4, %s12975_s15  ;;  %p12980_p2 = scmp.lt.s32.totalorder %s275_s4, %s275_s4 }
 0x105   :  { %p12981_p3 = scmp.lt.s32.totalorder %s12975_s15, %s12975_s15 }
 0x107   :  { %p12982_p4 = por %p12981_p3, %p12980_p2 }
 0x109   :  { %256 = dma.hbm_to_vmem [thread:$0]  %s14278_s11, 512, %s251_s2, [#allocation21], %s13172_s0, %s13172_s0, %s13173_s7  }
 0x10a   :  { %p12983_p5 = pnand %p12982_p4, %p12976_p1 }
 0x10c   :  { %12986 = shalt.err (!%p12983_p5)
}
 0x10d   :  { %s14279_s18 = sld [smem:[#allocation63_spill]]  ;;  %s13202_s8 = smov [#allocation28]  }
 0x10e   :  { %s298_s5 = sshll.u32 %s13202_s8, 4  ;;  %s13203_s17 = smov [#allocation31]   ;;  %s299_s5 = int_to_ptr.vmem [resolvable:$true] %s298_s5 }
 0x10f   :  { %s322_s30 = sshll.u32 %s13203_s17, 4  ;;  %s12995_s13 = scalar_lea.vmem %s299_s5, 64  ;;  %s323_s30 = int_to_ptr.vmem [resolvable:$true] %s322_s30 }
 0x110   :  { %p12996_p6 = scmp.ne.s32.totalorder %s299_s5, %s12995_s13  ;;  %p13000_p7 = scmp.lt.s32.totalorder %s299_s5, %s299_s5 }
 0x111   :  { %p13001_p8 = scmp.lt.s32.totalorder %s12995_s13, %s12995_s13 }
 0x113   :  { %280 = dma.hbm_to_vmem [thread:$0]  %s14279_s18, 64, %s275_s4, [#allocation24], %s13181_s16, %s13181_s16, %s13182_s22  }
 0x114   :  { %p13002_p9 = por %p13001_p8, %p13000_p7 }
 0x116   :  { %p13003_p10 = pnand %p13002_p9, %p12996_p6 }
 0x118   :  { %13006 = shalt.err (!%p13003_p10)
}
 0x119   :  { %s14280_s0 = sld [smem:[#allocation64_spill]]  ;;  %s13015_s7 = scalar_lea.vmem %s323_s30, 256 }
 0x11a   :  { %p13016_p11 = scmp.ne.s32.totalorder %s323_s30, %s13015_s7  ;;  %p13020_p12 = scmp.lt.s32.totalorder %s323_s30, %s323_s30 }
 0x11b   :  { %p13021_p13 = scmp.lt.s32.totalorder %s13015_s7, %s13015_s7 }
 0x11d   :  { %p13022_p0 = por %p13021_p13, %p13020_p12 }
 0x11f   :  { %304 = dma.hbm_to_vmem [thread:$0]  %s14280_s0, 64, %s299_s5, [#allocation27], %s13181_s16, %s13181_s16, %s13182_s22  }
 0x120   :  { %p13023_p1 = pnand %p13022_p0, %p13016_p11 }
 0x122   :  { %13026 = shalt.err (!%p13023_p1)
}
 0x123   :  { %s14281_s23 = sld [smem:[#allocation66_spill]]  ;;  %s13204_s9 = smov [#allocation34]  }
 0x124   :  { %s347_s14 = sshll.u32 %s13204_s9, 4  ;;  %s13205_s28 = smov [#allocation35]   ;;  %s348_s14 = int_to_ptr.vmem [resolvable:$true] %s347_s14 }
 0x125   :  { %s359_s3 = sshll.u32 %s13205_s28, 4  ;;  %s13035_s1 = scalar_lea.vmem %s348_s14, 16  ;;  %s360_s3 = int_to_ptr.vmem [resolvable:$true] %s359_s3 }
 0x126   :  { %p13036_p2 = scmp.ne.s32.totalorder %s348_s14, %s13035_s1  ;;  %s13039_s16 = scalar_lea.vmem %s348_s14, 32 }
 0x127   :  { %p13040_p3 = scmp.lt.s32.totalorder %s348_s14, %s348_s14  ;;  %p13041_p4 = scmp.lt.s32.totalorder %s13039_s16, %s13035_s1 }
 0x129   :  { %328 = dma.hbm_to_vmem [thread:$0]  %s14281_s23, 256, %s323_s30, [#allocation30], %s13187_s20, %s13187_s20, %s13188_s10  }
 0x12a   :  { %p13042_p5 = por %p13041_p4, %p13040_p3 }
 0x12c   :  { %p13043_p6 = pnand %p13042_p5, %p13036_p2 }
 0x12e   :  { %13046 = shalt.err (!%p13043_p6)
}
 0x12f   :  { %s14282_s22 = sld [smem:[#allocation68_spill]]  ;;  %s13055_s24 = scalar_lea.vmem %s360_s3, 16 }
 0x130   :  { %p13056_p7 = scmp.ne.s32.totalorder %s360_s3, %s13055_s24  ;;  %s13059_s21 = scalar_lea.vmem %s360_s3, 32 }
 0x131   :  { %p13060_p8 = scmp.lt.s32.totalorder %s360_s3, %s360_s3  ;;  %p13061_p9 = scmp.lt.s32.totalorder %s13059_s21, %s13055_s24 }
 0x133   :  { %p13062_p10 = por %p13061_p9, %p13060_p8 }
 0x135   :  { %350 = dma.hbm_to_vmem [thread:$0]  %s14282_s22, 16, %s348_s14, [#allocation33]  }
 0x136   :  { %p13063_p11 = pnand %p13062_p10, %p13056_p7 }
 0x138   :  { %13066 = shalt.err (!%p13063_p11)
}
 0x139   :  { %s14283_s10 = sld [smem:[#allocation70_spill]] }
 0x13f   :  { %362 = dma.hbm_to_vmem [thread:$0]  %s14283_s10, 16, %s360_s3, [#allocation36]  }
 0x140   :  { %13107 = dma.done.wait [#allocation3], 512  }
 0x141   :  { %13108 = vsyncadd [#allocation3], 4294966784 }
 0x142   :  { %13109 = dma.done.wait [#allocation6], 2304  }
 0x143   :  { %13110 = vsyncadd [#allocation6], 4294964992 }
 0x144   :  { %13111 = dma.done.wait [#allocation9], 1040  }
 0x145   :  { %13112 = vsyncadd [#allocation9], 4294966256 }
 0x146   :  { %13113 = dma.done.wait [#allocation12], 12304  }
 0x147   :  { %13114 = vsyncadd [#allocation12], 4294954992 }
 0x148   :  { %13115 = dma.done.wait [#allocation15], 256  }
 0x149   :  { %13116 = vsyncadd [#allocation15], 4294967040 }
 0x14a   :  { %13117 = dma.done.wait [#allocation18], 128  }
 0x14b   :  { %13118 = vsyncadd [#allocation18], 4294967168 }
 0x14c   :  { %13119 = dma.done.wait [#allocation21], 33280  }
 0x14d   :  { %13120 = vsyncadd [#allocation21], 4294934016 }
 0x14e   :  { %13121 = dma.done.wait [#allocation24], 32832  }
 0x14f   :  { %13122 = vsyncadd [#allocation24], 4294934464 }
 0x150   :  { %13123 = dma.done.wait [#allocation27], 128  }
 0x151   :  { %13124 = vsyncadd [#allocation27], 4294967168 }
 0x152   :  { %13125 = dma.done.wait [#allocation30], 272  }
 0x153   :  { %13126 = vsyncadd [#allocation30], 4294967024 }
 0x154   :  { %13127 = dma.done.wait [#allocation33], 32  }
 0x155   :  { %13128 = vsyncadd [#allocation33], 4294967264 }
 0x156   :  { %13129 = dma.done.wait [#allocation36], 16  }
 0x157   :  { %13130 = vsyncadd [#allocation36], 4294967280  ;;  %v13206_v0 = vmov 0   ;;  %v13207_v1 = vmov 0.0   ;;  %v11979_v2 = vld [vmem:[#allocation7 + $0x78] sm:$0xff]   ;;  %v11981_v4 = vld [vmem:[#allocation7 + $0x70] sm:$0xff]  }
 0x158   :  { %11737 = vset.pattern.permute.xlu0 %v13206_v0  ;;  %11738 = vset.pattern.permute.xlu1 %v13206_v0  ;;  %v11980_v3 = vld [vmem:[#allocation7 + $0x38] sm:$0xff]   ;;  %v11982_v5 = vld [vmem:[#allocation7 + $0x30] sm:$0xff]   ;;  %v11983_v6 = vld [vmem:[#allocation7 + $0x68] sm:$0xff]   ;;  %s14284_s2 = sld [smem:[#allocation55_spill]]  ;;  %vm13208_vm0 = vmmov 0   ;;  %vm1131_vm1 = vcmask 261120  }
 0x159   :  { %11272 = vmatprep.subr.bf16.mxu1 %v13207_v1  ;;  %10726 = vmatprep.subr.bf16.mxu0 %v11979_v2  ;;  %s14285_s19 = sld [smem:[#allocation56_spill]]  ;;  %v11984_v7 = vld [vmem:[#allocation7 + $0x28] sm:$0xff]   ;;  %v11985_v8 = vld [vmem:[#allocation7 + $0x60] sm:$0xff]   ;;  %v11987_v10 = vld [vmem:[#allocation7 + $0x58] sm:$0xff]   ;;  %s13209_s11 = smov 96   ;;  %vm1221_vm2 = vcmask 523264  }
 0x15a   :  { %10727 = vmatpush3.bf16.msra.mxu0 %v11980_v3  ;;  %v11986_v9 = vld [vmem:[#allocation7 + $0x20] sm:$0xff]   ;;  %v11988_v11 = vld [vmem:[#allocation7 + $0x18] sm:$0xff]   ;;  %v11989_v12 = vld [vmem:[#allocation7 + $0x50] sm:$0xff]   ;;  %s14286_s4 = sld [smem:[#allocation57_spill]]  ;;  %11288 = vmatprep.mubr.msk.bf16.mxu1 %vm13208_vm0, %v13207_v1  ;;  %vm1423_vm3 = vcmask 785408   ;;  %vm9566_vm4 = vcmask 1041409  }
 0x15b   :  { %10728 = vmatprep.subr.bf16.mxu0 %v11981_v4  ;;  %v439_v13 = vld [vmem:[#allocation2 + $0x8] sm:$0xff]  ;;  %v441_v14 = vld [vmem:[#allocation2 + $0x18] sm:$0xff]  ;;  %v11990_v18 = vld [vmem:[#allocation7 + $0x10] sm:$0xff]   ;;  %s14287_s29 = sld [smem:[#allocation58_spill]]  ;;  %vm9749_vm5 = vcmask 254976   ;;  %s13210_s30 = smov [#allocation37]  }
 0x15c   :  { %v475_v15 = vpack.c.bf16 %v441_v14, %v439_v13  ;;  %v11991_v19 = vld [vmem:[#allocation7 + $0x48] sm:$0xff]   ;;  %v11995_v22 = vld [vmem:[#allocation10 + $0x38] sm:$0xff]   ;;  %v11996_v27 = vld [vmem:[#allocation10 + $0x30] sm:$0xff]   ;;  %s14288_s15 = sld [smem:[#allocation54_spill]]  ;;  %s9854_s13 = sshll.u32 %s13210_s30, 4  ;;  %s9855_s13 = int_to_ptr.vmem [resolvable:$true] %s9854_s13 }
 0x15d   :  { %v11992_v23 = vld [vmem:[#allocation7 + $0x8] sm:$0xff]   ;;  %v11993_v25 = vld [vmem:[#allocation7 + $0x40] sm:$0xff]   ;;  %11273 = vmatpush3.bf16.msra.mxu1 %v11995_v22  ;;  %v438_v29 = vld [vmem:[#allocation2] sm:$0xff]  ;;  %s14289_s18 = sld [smem:[#allocation59_spill]]  ;;  %p13072_p13 = scmp.lt.s32.totalorder %s9855_s13, %s9855_s13 }
 0x15e   :  { %10729 = vmatpush3.bf16.msra.mxu0 %v11982_v5  ;;  %v620_v16 = vld [vmem:[%s14284_s2] sm:$0xff]  ;;  %611 = vmatprep.mubr.bf16.mxu0 %v475_v15  ;;  %v621_v20 = vld [vmem:[%s14284_s2 + $0x8] sm:$0xff]  ;;  %v11994_v28 = vld [vmem:[#allocation7] sm:$0xff]   ;;  %s14290_s8 = sld [smem:[#allocation65_spill]] }
 0x15f   :  { %10730 = vmatprep.subr.bf16.mxu0 %v11983_v6  ;;  %v634_v17 = vld [vmem:[%s14285_s19] sm:$0xff]  ;;  %624 = vperm.xlu0 %11737, %v620_v16   ;;  %v635_v21 = vld [vmem:[%s14285_s19 + $0x8] sm:$0xff]  ;;  %v440_v30 = vld [vmem:[#allocation2 + $0x10] sm:$0xff]  ;;  %s14293_s5 = sld [smem:[#allocation71_spill]] }
 0x160   :  { %638 = vperm.xlu1 %11738, %v634_v17   ;;  %v761_v24 = vld [vmem:[%s14286_s4] sm:$0xff]  ;;  %v762_v26 = vld [vmem:[%s14286_s4 + $0x8] sm:$0xff]  ;;  %11274 = vmatprep.subr.bf16.mxu1 %v13207_v1  ;;  %v11998_v34 = vld [vmem:[#allocation10 + $0x20] sm:$0xff]   ;;  %v474_v35 = vpack.c.bf16 %v440_v30, %v438_v29  ;;  %s14294_s17 = sld [smem:[#allocation72_spill]] }
 0x161   :  { %v775_v31 = vld [vmem:[%s14287_s29] sm:$0xff]  ;;  %v776_v32 = vld [vmem:[%s14287_s29 + $0x8] sm:$0xff]  ;;  %11275 = vmatpush3.bf16.msra.mxu1 %v11996_v27  ;;  %v12002_v39 = vld [vmem:[#allocation10] sm:$0xff]  }
 0x162   :  { %10731 = vmatpush3.bf16.msra.mxu0 %v11984_v7  ;;  %v11997_v33 = vld [vmem:[#allocation10 + $0x28] sm:$0xff]   ;;  %11276 = vmatprep.subr.bf16.mxu1 %v13207_v1  ;;  %v11999_v36 = vld [vmem:[#allocation10 + $0x18] sm:$0xff]   ;;  %v12000_v37 = vld [vmem:[#allocation10 + $0x10] sm:$0xff]  }
 0x163   :  { %10732 = vmatprep.subr.bf16.mxu0 %v11985_v8  ;;  %629 = vperm.xlu0 %11737, %v621_v20   ;;  %v12001_v38 = vld [vmem:[#allocation10 + $0x8] sm:$0xff]   ;;  %v12009_v42 = vld [vmem:[#allocation13 + $0x94] ss:$12 sps:$4 sm:$0xff]   ;;  %v12007_v43 = vld [vmem:[#allocation13 + $0x90] ss:$12 sps:$4 sm:$0xff]  }
 0x164   :  { %643 = vperm.xlu1 %11738, %v635_v21   ;;  %v12003_v40 = vld [vmem:[#allocation13 + $0xa8] ss:$12 sps:$4 sm:$0xff]   ;;  %v12005_v41 = vld [vmem:[#allocation13 + $0xac] ss:$12 sps:$4 sm:$0xff]   ;;  %v12017_v46 = vld [vmem:[#allocation13 + $0x64] ss:$12 sps:$4 sm:$0xff]  }
 0x165   :  { %11277 = vmatpush3.bf16.msra.mxu1 %v11997_v33  ;;  %v12013_v44 = vld [vmem:[#allocation13 + $0x7c] ss:$12 sps:$4 sm:$0xff]   ;;  %v12011_v45 = vld [vmem:[#allocation13 + $0x78] ss:$12 sps:$4 sm:$0xff]   ;;  %v12015_v47 = vld [vmem:[#allocation13 + $0x60] ss:$12 sps:$4 sm:$0xff]  }
 0x166   :  { %10733 = vmatpush3.bf16.msra.mxu0 %v11986_v9  ;;  %11278 = vmatprep.subr.bf16.mxu1 %v13207_v1  ;;  %v12021_v48 = vld [vmem:[#allocation13 + $0x4c] ss:$12 sps:$4 sm:$0xff]   ;;  %v12019_v49 = vld [vmem:[#allocation13 + $0x48] ss:$12 sps:$4 sm:$0xff]   ;;  %v9924_v51 = vld [vmem:[#allocation8] ss:$0 sm:$0xff] }
 0x167   :  { %10734 = vmatprep.subr.bf16.mxu0 %v11987_v10  ;;  %765 = vperm.xlu0 %11737, %v761_v24   ;;  %v12006_v3 = vld [vmem:[#allocation13 + $0xb0] ss:$12 sps:$4 sm:$0xff]   ;;  %v12010_v7 = vld [vmem:[#allocation13 + $0x98] ss:$12 sps:$4 sm:$0xff]   ;;  %v12014_v8 = vld [vmem:[#allocation13 + $0x80] ss:$12 sps:$4 sm:$0xff]  }
 0x168   :  { %770 = vperm.xlu1 %11738, %v762_v26   ;;  %v12018_v9 = vld [vmem:[#allocation13 + $0x68] ss:$12 sps:$4 sm:$0xff]   ;;  %v12022_v10 = vld [vmem:[#allocation13 + $0x50] ss:$12 sps:$4 sm:$0xff]   ;;  %v12026_v13 = vld [vmem:[#allocation13 + $0x38] ss:$12 sps:$4 sm:$0xff]  }
 0x169   :  { %11279 = vmatpush3.bf16.msra.mxu1 %v11998_v34  ;;  %v12029_v14 = vld [vmem:[#allocation13 + $0x1c] ss:$12 sps:$4 sm:$0xff]   ;;  %v12027_v15 = vld [vmem:[#allocation13 + $0x18] ss:$12 sps:$4 sm:$0xff]   ;;  %v12030_v16 = vld [vmem:[#allocation13 + $0x20] ss:$12 sps:$4 sm:$0xff]  }
 0x16a   :  { %10735 = vmatpush3.bf16.msra.mxu0 %v11988_v11  ;;  %11280 = vmatprep.subr.bf16.mxu1 %v13207_v1  ;;  %v12025_v11 = vld [vmem:[#allocation13 + $0x34] ss:$12 sps:$4 sm:$0xff]   ;;  %v12033_v17 = vld [vmem:[#allocation13 + $0x4] ss:$12 sps:$4 sm:$0xff]   ;;  %v9941_v20 = vld [vmem:[#allocation11] ss:$0 sm:$0xff] }
 0x16b   :  { %10736 = vmatprep.subr.bf16.mxu0 %v11989_v12  ;;  %779 = vperm.xlu0 %11737, %v775_v31   ;;  %v12023_v12 = vld [vmem:[#allocation13 + $0x30] ss:$12 sps:$4 sm:$0xff]  }
 0x16c   :  { %784 = vperm.xlu1 %11738, %v776_v32   ;;  %v789_v34 = vld [vmem:[#allocation5] sm:$0xff] }
 0x16d   :  { %11281 = vmatpush3.bf16.msra.mxu1 %v11999_v36 }
 0x16e   :  { %10737 = vmatpush3.bf16.msra.mxu0 %v11990_v18  ;;  %11282 = vmatprep.subr.bf16.mxu1 %v13207_v1  ;;  %v12031_v18 = vld [vmem:[#allocation13] ss:$12 sps:$4 sm:$0xff]  }
 0x16f   :  { %10738 = vmatprep.subr.bf16.mxu0 %v11991_v19  ;;  %v12034_v19 = vld [vmem:[#allocation13 + $0x8] ss:$12 sps:$4 sm:$0xff]  }
 0x171   :  { %11283 = vmatpush3.bf16.msra.mxu1 %v12000_v37 }
 0x172   :  { %10739 = vmatpush3.bf16.msra.mxu0 %v11992_v23  ;;  %11284 = vmatprep.subr.bf16.mxu1 %v13207_v1 }
 0x173   :  { %10740 = vmatprep.subr.bf16.mxu0 %v11993_v25 }
 0x175   :  { %11285 = vmatpush3.bf16.msra.mxu1 %v12001_v38 }
 0x176   :  { %10741 = vmatpush3.bf16.msra.mxu0 %v11994_v28  ;;  %11286 = vmatprep.subr.bf16.mxu1 %v13207_v1 }
 0x177   :  { %979 = vmatprep.subr.bf16.mxu0 %v12005_v41 }
 0x179   :  { %612 = vmatmul.mubr.bf16.vlgmr.msra.gmra.mxu0 %v474_v35  ;;  %11287 = vmatpush3.bf16.msra.mxu1 %v12002_v39  ;;  %v790_v35 = vld [vmem:[#allocation5 + $0x8] sm:$0xff] }
 0x17a   :  { %1011 = vmatprep.mubr.bf16.mxu0 %v13206_v0  ;;  %11292 = vmatprep.subr.bf16.mxu1 %v13207_v1 }
 0x17b   :  { %980 = vmatpush1.bf16.msra.mxu0 %v12003_v40  ;;  %v836_v40 = vlaneseq }
 0x17c   :  { %981 = vmatprep.subr.bf16.mxu0 %v12009_v42 }
 0x17d   :  { %v13499_v41 = vshrl.u32 %v836_v40, 7 }
 0x17f   :  { %982 = vmatpush1.bf16.msra.mxu0 %v12007_v43  ;;  %v13502_v42 = vsub.s32 0, %v13499_v41  ;;  %v834_v43 = vld [vmem:[#allocation14] sm:$0x7] }
 0x180   :  { %983 = vmatprep.subr.bf16.mxu0 %v12013_v44  ;;  %v13505_v44 = vsub.s32 2, %v13499_v41 }
 0x183   :  { %984 = vmatpush1.bf16.msra.mxu0 %v12011_v45  ;;  %v13508_v45 = vsub.s32 1, %v13499_v41 }
 0x184   :  { %985 = vmatprep.subr.bf16.mxu0 %v12017_v46 }
 0x187   :  { %986 = vmatpush1.bf16.msra.mxu0 %v12015_v47 }
 0x188   :  { %987 = vmatprep.subr.bf16.mxu0 %v12021_v48  ;;  %v839_v48 = vrot.slane %v834_v43, %v13502_v42 }
 0x18b   :  { %988 = vmatpush1.bf16.msra.mxu0 %v12019_v49  ;;  %v847_v49 = vrot.slane %v834_v43, %v13505_v44 }
 0x18c   :  { %989 = vmatprep.subr.bf16.mxu0 %v12025_v11 }
 0x18f   :  { %990 = vmatpush1.bf16.msra.mxu0 %v12023_v12 }
 0x190   :  { %991 = vmatprep.subr.bf16.mxu0 %v12029_v14 }
 0x193   :  { %992 = vmatpush1.bf16.msra.mxu0 %v12027_v15 }
 0x194   :  { %993 = vmatprep.subr.bf16.mxu0 %v12033_v17 }
 0x197   :  { %994 = vmatpush1.bf16.msra.mxu0 %v12031_v18 }
 0x1da   :  { %v625_v54 = vpop.permute.xlu0 %624 }
 0x1db   :  { %v639_v57 = vpop.permute.xlu1 %638 }
 0x1de   :  { %v630_v62 = vpop.permute.xlu0 %629 }
 0x1df   :  { %v644_v2 = vpop.permute.xlu1 %643 }
 0x1e2   :  { %v766_v21 = vpop.permute.xlu0 %765 }
 0x1e3   :  { %v771_v24 = vpop.permute.xlu1 %770 }
 0x1e6   :  { %v780_v29 = vpop.permute.xlu0 %779 }
 0x1e7   :  { %v785_v33 = vpop.permute.xlu1 %784 }
 0x239   :  { %v10742_v50 = vpop.f32.mrf.mxu0 }
 0x23b   :  { %v10743_v52 = vpop.f32.mrf.mxu0 }
 0x23c   :  { %v10744_v53 = vadd.f32 %v10743_v52, %v10742_v50  ;;  %v843_v52 = vrot.slane %v834_v43, %v13508_v45 }
 0x23d   :  { %v10745_v55 = vpop.f32.mrf.mxu0 }
 0x23e   :  { %v614_v56 = vadd.f32 %v10744_v53, %v9924_v51 }
 0x23f   :  { %v10746_v58 = vpop.f32.mrf.mxu0 }
 0x240   :  { %v10747_v59 = vadd.f32 %v10746_v58, %v10745_v55  ;;  %v632_v60 = vmul.f32 %v625_v54, %v614_v56 }
 0x242   :  { %v617_v61 = vadd.f32 %v10747_v59, %v9924_v51  ;;  %v646_v4 = vadd.f32 %v639_v57, %v632_v60 }
 0x244   :  { %v633_v63 = vmul.f32 %v630_v62, %v617_v61 }
 0x246   :  { %v647_v5 = vadd.f32 %v644_v2, %v633_v63 }
 0x248   :  { %v664_v6 = vpack.c.bf16 %v647_v5, %v646_v4 }
 0x24a   :  { %11289 = vmatmul.mubr.bf16.vlgmr.msra.gmra.mxu1 %v664_v6 }
 0x24b   :  { %11293 = vmatpush3.bf16.msra.mxu1 %v12006_v3  ;;  %11308 = vmatprep.mubr.msk.bf16.mxu1 %vm13208_vm0, %v13207_v1 }
 0x24c   :  { %11294 = vmatprep.subr.bf16.mxu1 %v13207_v1 }
 0x24f   :  { %11295 = vmatpush3.bf16.msra.mxu1 %v12010_v7 }
 0x250   :  { %11296 = vmatprep.subr.bf16.mxu1 %v13207_v1 }
 0x253   :  { %11297 = vmatpush3.bf16.msra.mxu1 %v12014_v8 }
 0x254   :  { %11298 = vmatprep.subr.bf16.mxu1 %v13207_v1 }
 0x257   :  { %11299 = vmatpush3.bf16.msra.mxu1 %v12018_v9 }
 0x258   :  { %11300 = vmatprep.subr.bf16.mxu1 %v13207_v1 }
 0x25b   :  { %11301 = vmatpush3.bf16.msra.mxu1 %v12022_v10 }
 0x25c   :  { %11302 = vmatprep.subr.bf16.mxu1 %v13207_v1 }
 0x25f   :  { %11303 = vmatpush3.bf16.msra.mxu1 %v12026_v13 }
 0x260   :  { %11304 = vmatprep.subr.bf16.mxu1 %v13207_v1 }
 0x263   :  { %11305 = vmatpush3.bf16.msra.mxu1 %v12030_v16 }
 0x264   :  { %11306 = vmatprep.subr.bf16.mxu1 %v13207_v1 }
 0x267   :  { %11307 = vmatpush3.bf16.msra.mxu1 %v12034_v19 }
 0x30a   :  { %v754_v22 = vpop.f32.mrf.mxu1 }
 0x30b   :  { %v755_v23 = vadd.f32 %v9941_v20, %v754_v22 }
 0x30c   :  { %v11290_v25 = vpop.f32.mrf.mxu1 }
 0x30d   :  { %v773_v26 = vmul.f32 %v766_v21, %v755_v23 }
 0x30e   :  { %v757_v27 = vpop.f32.mrf.mxu1 }
 0x30f   :  { %v758_v28 = vadd.f32 %v9941_v20, %v757_v27  ;;  %v787_v31 = vadd.f32 %v780_v29, %v773_v26 }
 0x310   :  { %v11291_v30 = vpop.f32.mrf.mxu1 }
 0x311   :  { %v774_v32 = vmul.f32 %v771_v24, %v758_v28  ;;  %v13493_v37 = vadd.f32 %v789_v34, %v787_v31 }
 0x313   :  { %v788_v36 = vadd.f32 %v785_v33, %v774_v32 }
 0x315   :  { %v13495_v38 = vadd.f32 %v790_v35, %v788_v36  ;;  %v793_v36 = vld [vmem:[%s14288_s15] sm:$0xff] }
 0x317   :  { %v833_v39 = vpack.c.bf16 %v13495_v38, %v13493_v37 }
 0x319   :  { %1012 = vmatmul.mubr.bf16.vlgmr.msra.gmra.mxu0 %v833_v39  ;;  %11309 = vmatmul.mubr.bf16.vlgmr.msra.gmra.mxu1 %v833_v39  ;;  %v795_v39 = vld [vmem:[%s14288_s15 + $0x10] sm:$0xff] }
 0x3d9   :  { %v1013_v46 = vpop.f32.mrf.mxu0  ;;  %v1056_v47 = vpop.f32.mrf.mxu1 }
 0x3da   :  { %v1014_v55 = vadd.f32 %v1013_v46, %v839_v48  ;;  %v1057_v58 = vadd.f32 %v1056_v47, %v847_v49  ;;  %v794_v47 = vld [vmem:[%s14288_s15 + $0x8] sm:$0xff] }
 0x3db   :  { %v1015_v50 = vpop.f32.mrf.mxu0  ;;  %v11310_v51 = vpop.f32.mrf.mxu1 }
 0x3dc   :  { %v1016_v61 = vadd.f32 %v1015_v50, %v843_v52  ;;  %v796_v50 = vld [vmem:[%s14288_s15 + $0x18] sm:$0xff] }
 0x3dd   :  { %v1017_v53 = vpop.f32.mrf.mxu0  ;;  %v1059_v54 = vpop.f32.mrf.mxu1 }
 0x3de   :  { %v1018_v56 = vadd.f32 %v1017_v53, %v839_v48  ;;  %v1060_v57 = vadd.f32 %v1059_v54, %v847_v49  ;;  %v797_v54 = vld [vmem:[%s14288_s15 + $0x20] sm:$0xff] }
 0x3df   :  { %v1019_v59 = vpop.f32.mrf.mxu0  ;;  %v11311_v60 = vpop.f32.mrf.mxu1 }
 0x3e0   :  { %v1020_v62 = vadd.f32 %v1019_v59, %v843_v52  ;;  %v1123_v63 = vpack.c.bf16 %v1018_v56, %v1014_v55  ;;  %v13513_v2 = vpack.i.bf16 %v1060_v57, %v1057_v58  ;;  %v13516_v5 = vpack.c.bf16 %v1060_v57, %v1057_v58  ;;  %v799_v58 = vld [vmem:[%s14288_s15 + $0x30] sm:$0xff] }
 0x3e1   :  { %v11754_v6 = vpack.i.bf16 %v1018_v56, %v1014_v55 }
 0x3e2   :  { %11320 = vmatprep.mubr.msk.bf16.mxu0 %vm1131_vm1, %v1123_v63  ;;  %v11744_v3 = vpack.i.bf16 %v1020_v62, %v1016_v61  ;;  %v1127_v4 = vpack.c.bf16 %v1020_v62, %v1016_v61  ;;  %v798_v62 = vld [vmem:[%s14288_s15 + $0x28] sm:$0xff] }
 0x3e4   :  { %11745 = vrot.lane.b32.xlu1 %v11744_v3, %s13187_s20  ;;  %11740 = vrot.lane.b32.xlu0 %v11744_v3, %s13184_s26  ;;  %v1145_v24 = vsel %vm1131_vm1, %v1127_v4, 0 }
 0x3e8   :  { %11750 = vrot.lane.b32.xlu0 %v11744_v3, %s13209_s11  ;;  %11755 = vrot.lane.b32.xlu1 %v11754_v6, %s13209_s11 }
 0x3ec   :  { %11760 = vrot.lane.b32.xlu0 %v11754_v6, %s13187_s20  ;;  %11765 = vrot.lane.b32.xlu1 %v11754_v6, %s13184_s26  ;;  %v800_v6 = vld [vmem:[%s14288_s15 + $0x38] sm:$0xff] }
 0x456   :  { %v11746_v7 = vpop.permute.xlu1 %11745  ;;  %v11741_v8 = vpop.permute.xlu0 %11740 }
 0x457   :  { %v11743_v9 = vunpack.i.h.bf16 %v11741_v8  ;;  %v11742_v10 = vunpack.i.l.bf16 %v11741_v8  ;;  %v11748_v11 = vunpack.i.h.bf16 %v11746_v7  ;;  %v11747_v12 = vunpack.i.l.bf16 %v11746_v7 }
 0x459   :  { %v1130_v13 = vpack.c.bf16 %v11743_v9, %v11742_v10  ;;  %v1129_v14 = vpack.c.bf16 %v11748_v11, %v11747_v12 }
 0x45a   :  { %v11751_v16 = vpop.permute.xlu0 %11750  ;;  %v11756_v22 = vpop.permute.xlu1 %11755 }
 0x45b   :  { %11644 = vmatprep.subr.msk.bf16.mxu0 %vm1131_vm1, %v1130_v13  ;;  %v1154_v15 = vsel %vm1131_vm1, %v1130_v13, 0  ;;  %v11753_v17 = vunpack.i.h.bf16 %v11751_v16  ;;  %v11752_v18 = vunpack.i.l.bf16 %v11751_v16  ;;  %v1151_v20 = vsel %vm1131_vm1, %v1129_v14, 0 }
 0x45c   :  { %11313 = vmatpush3.bf16.xpose.msra.mxu0 %v1154_v15  ;;  %v11758_v25 = vunpack.i.h.bf16 %v11756_v22  ;;  %v11757_v26 = vunpack.i.l.bf16 %v11756_v22 }
 0x45d   :  { %11645 = vmatprep.subr.msk.bf16.mxu0 %vm1131_vm1, %v1129_v14  ;;  %v1128_v19 = vpack.c.bf16 %v11753_v17, %v11752_v18 }
 0x45e   :  { %v11761_v23 = vpop.permute.xlu0 %11760  ;;  %v1124_v29 = vpack.c.bf16 %v11758_v25, %v11757_v26  ;;  %v11766_v31 = vpop.permute.xlu1 %11765 }
 0x45f   :  { %v1148_v21 = vsel %vm1131_vm1, %v1128_v19, 0  ;;  %v11763_v27 = vunpack.i.h.bf16 %v11761_v23  ;;  %v11762_v28 = vunpack.i.l.bf16 %v11761_v23  ;;  %v11768_v32 = vunpack.i.h.bf16 %v11766_v31 }
 0x460   :  { %v11767_v33 = vunpack.i.l.bf16 %v11766_v31 }
 0x461   :  { %v1125_v30 = vpack.c.bf16 %v11763_v27, %v11762_v28 }
 0x462   :  { %v1126_v34 = vpack.c.bf16 %v11768_v32, %v11767_v33 }
 0x464   :  { %11315 = vmatpush3.bf16.xpose.msra.mxu0 %v1151_v20 }
 0x465   :  { %11646 = vmatprep.subr.msk.bf16.mxu0 %vm1131_vm1, %v1128_v19 }
 0x46c   :  { %11317 = vmatpush3.bf16.xpose.msra.mxu0 %v1148_v21 }
 0x46d   :  { %11647 = vmatprep.subr.msk.bf16.mxu0 %vm1131_vm1, %v1127_v4 }
 0x474   :  { %11319 = vmatpush3.bf16.xpose.msra.mxu0 %v1145_v24 }
 0x47b   :  { %11321 = vmatmul.mubr.msk.bf16.vlgmr.msra.gmra.mxu0 %vm1131_vm1, %v1124_v29 }
 0x47c   :  { %11324 = vmatprep.mubr.msk.bf16.mxu0 %vm1131_vm1, %v1125_v30 }
 0x483   :  { %11325 = vmatmul.mubr.msk.bf16.gmra.mxu0 %vm1131_vm1, %v1126_v34 }
 0x484   :  { %2041 = vmatprep.mubr.bf16.mxu0 %v13206_v0 }
 0x53b   :  { %v11322_v35 = vpop.f32.mrf.mxu0 }
 0x53c   :  { %v1199_v48 = vadd.f32 %v11322_v35, %v795_v39 }
 0x53d   :  { %v1190_v40 = vpop.f32.mrf.mxu0 }
 0x53e   :  { %v1191_v43 = vadd.f32 %v1190_v40, %v793_v36  ;;  %v1228_v57 = vsel %vm1221_vm2, %v1199_v48, -inf }
 0x53f   :  { %v11323_v46 = vpop.f32.mrf.mxu0 }
 0x540   :  { %v1222_v49 = vsel %vm1221_vm2, %v1191_v43, -inf  ;;  %v1202_v55 = vadd.f32 %v11323_v46, %v796_v50 }
 0x541   :  { %v1193_v51 = vpop.f32.mrf.mxu0  ;;  %1223 = vmax.xlane.f32.xlu0 %v1222_v49 }
 0x542   :  { %v1194_v52 = vadd.f32 %v1193_v51, %v794_v47  ;;  %v1231_v4 = vsel %vm1221_vm2, %v1202_v55, -inf }
 0x543   :  { %v11326_v53 = vpop.f32.mrf.mxu0 }
 0x544   :  { %v1225_v56 = vsel %vm1221_vm2, %v1194_v52, -inf  ;;  %v1215_v63 = vadd.f32 %v11326_v53, %v799_v58 }
 0x545   :  { %v1206_v59 = vpop.f32.mrf.mxu0  ;;  %1226 = vmax.xlane.f32.xlu1 %v1225_v56  ;;  %1229 = vmax.xlane.f32.xlu0 %v1228_v57 }
 0x546   :  { %v1207_v60 = vadd.f32 %v1206_v59, %v797_v54  ;;  %v1240_v10 = vsel %vm1221_vm2, %v1215_v63, -inf }
 0x547   :  { %v11327_v61 = vpop.f32.mrf.mxu0 }
 0x548   :  { %v1234_v3 = vsel %vm1221_vm2, %v1207_v60, -inf  ;;  %v1218_v9 = vadd.f32 %v11327_v61, %v800_v6 }
 0x549   :  { %v1209_v7 = vpop.f32.mrf.mxu0  ;;  %1235 = vmax.xlane.f32.xlu1 %v1234_v3  ;;  %1232 = vmax.xlane.f32.xlu0 %v1231_v4 }
 0x54a   :  { %v1210_v8 = vadd.f32 %v1209_v7, %v798_v62  ;;  %v1243_v12 = vsel %vm1221_vm2, %v1218_v9, -inf }
 0x54c   :  { %v1237_v11 = vsel %vm1221_vm2, %v1210_v8, -inf }
 0x54d   :  { %1241 = vmax.xlane.f32.xlu1 %v1240_v10  ;;  %1238 = vmax.xlane.f32.xlu0 %v1237_v11 }
 0x551   :  { %1244 = vmax.xlane.f32.xlu0 %v1243_v12 }
 0x55e   :  { %11770 = vrot.lane.b32.xlu1 %v13513_v2, %s13184_s26 }
 0x5ca   :  { %v1224_v13 = vpop.xlane.xlu0 %1223 }
 0x5cb   :  { %v1246_v14 = vsub.f32 %v1191_v43, %v1224_v13 }
 0x5cd   :  { %v1254_v19 = vmul.f32 1.442695, %v1246_v14 }
 0x5ce   :  { %v1227_v15 = vpop.xlane.xlu1 %1226  ;;  %v1230_v16 = vpop.xlane.xlu0 %1229 }
 0x5cf   :  { %v1248_v17 = vsub.f32 %v1199_v48, %v1230_v16  ;;  %v1247_v20 = vsub.f32 %v1194_v52, %v1227_v15 }
 0x5d1   :  { %v1258_v18 = vmul.f32 1.442695, %v1248_v17  ;;  %v1256_v25 = vmul.f32 1.442695, %v1247_v20 }
 0x5d2   :  { %v1236_v21 = vpop.xlane.xlu1 %1235  ;;  %v1233_v22 = vpop.xlane.xlu0 %1232 }
 0x5d3   :  { %v1249_v23 = vsub.f32 %v1202_v55, %v1233_v22  ;;  %12441 = vpow2.f32 %v1258_v18  ;;  %v1250_v26 = vsub.f32 %v1207_v60, %v1236_v21 }
 0x5d4   :  { %12443 = vpow2.f32 %v1254_v19 }
 0x5d5   :  { %v1260_v24 = vmul.f32 1.442695, %v1249_v23  ;;  %v1262_v31 = vmul.f32 1.442695, %v1250_v26 }
 0x5d6   :  { %v1242_v27 = vpop.xlane.xlu1 %1241  ;;  %v1239_v28 = vpop.xlane.xlu0 %1238 }
 0x5d7   :  { %v1252_v29 = vsub.f32 %v1215_v63, %v1242_v27  ;;  %12445 = vpow2.f32 %v1260_v24  ;;  %v1251_v32 = vsub.f32 %v1210_v8, %v1239_v28 }
 0x5d8   :  { %12447 = vpow2.f32 %v1256_v25 }
 0x5d9   :  { %v1266_v30 = vmul.f32 1.442695, %v1252_v29  ;;  %v1264_v46 = vmul.f32 1.442695, %v1251_v32 }
 0x5da   :  { %v1245_v33 = vpop.xlane.xlu0 %1244  ;;  %v11771_v34 = vpop.permute.xlu1 %11770 }
 0x5db   :  { %12449 = vpow2.f32 %v1266_v30  ;;  %v1253_v35 = vsub.f32 %v1218_v9, %v1245_v33  ;;  %v11773_v36 = vunpack.i.h.bf16 %v11771_v34  ;;  %v11772_v39 = vunpack.i.l.bf16 %v11771_v34 }
 0x5dc   :  { %12451 = vpow2.f32 %v1262_v31 }
 0x5dd   :  { %v1268_v40 = vmul.f32 1.442695, %v1253_v35  ;;  %v1317_v43 = vpack.c.bf16 %v11773_v36, %v11772_v39 }
 0x5df   :  { %12453 = vpow2.f32 %v1268_v40  ;;  %11328 = vmatprep.subr.bf16.mxu1 %v1317_v43  ;;  %v12036_v40 = vld [vmem:[%s14289_s18 + $0x30] sm:$0xff]  }
 0x5e0   :  { %11329 = vmatpush3.bf16.msra.mxu1 %v1317_v43  ;;  %v13554_v47 = vpop.eup %12441  ;;  %12455 = vpow2.f32 %v1264_v46  ;;  %v12037_v43 = vld [vmem:[%s14289_s18 + $0x28] sm:$0xff]   ;;  %v12038_v46 = vld [vmem:[%s14289_s18 + $0x20] sm:$0xff]  }
 0x5e1   :  { %v1276_v48 = vsel %vm1221_vm2, %v13554_v47, 0.0  ;;  %v12444_v49 = vpop.eup %12443 }
 0x5e2   :  { %1277 = vadd.xlane.f32.xlu1 %v1276_v48  ;;  %v1270_v52 = vsel %vm1221_vm2, %v12444_v49, 0.0  ;;  %v12040_v48 = vld [vmem:[%s14289_s18 + $0x10] sm:$0xff]  }
 0x5e4   :  { %v12446_v50 = vpop.eup %12445 }
 0x5e5   :  { %v1279_v51 = vsel %vm1221_vm2, %v12446_v50, 0.0  ;;  %v12448_v53 = vpop.eup %12447 }
 0x5e6   :  { %1280 = vadd.xlane.f32.xlu0 %v1279_v51  ;;  %1271 = vadd.xlane.f32.xlu1 %v1270_v52  ;;  %v1273_v56 = vsel %vm1221_vm2, %v12448_v53, 0.0  ;;  %v12041_v51 = vld [vmem:[%s14289_s18 + $0x8] sm:$0xff]  }
 0x5e8   :  { %v13560_v54 = vpop.eup %12449 }
 0x5e9   :  { %v1288_v55 = vsel %vm1221_vm2, %v13560_v54, 0.0  ;;  %v12452_v57 = vpop.eup %12451 }
 0x5ea   :  { %1274 = vadd.xlane.f32.xlu0 %v1273_v56  ;;  %1289 = vadd.xlane.f32.xlu1 %v1288_v55  ;;  %v1282_v60 = vsel %vm1221_vm2, %v12452_v57, 0.0  ;;  %v12042_v55 = vld [vmem:[%s14289_s18] sm:$0xff]  }
 0x5ec   :  { %v12454_v58 = vpop.eup %12453 }
 0x5ed   :  { %v1291_v59 = vsel %vm1221_vm2, %v12454_v58, 0.0  ;;  %v12456_v61 = vpop.eup %12455 }
 0x5ee   :  { %1292 = vadd.xlane.f32.xlu0 %v1291_v59  ;;  %1283 = vadd.xlane.f32.xlu1 %v1282_v60  ;;  %v1285_v62 = vsel %vm1221_vm2, %v12456_v61, 0.0 }
 0x5f2   :  { %1286 = vadd.xlane.f32.xlu0 %v1285_v62 }
 0x5ff   :  { %11780 = vrot.lane.b32.xlu1 %v13513_v2, %s13209_s11 }
 0x608   :  { %11775 = vrot.lane.b32.xlu0 %v13513_v2, %s13187_s20 }
 0x66b   :  { %v1278_v63 = vpop.xlane.xlu1 %1277 }
 0x66f   :  { %v1281_v3 = vpop.xlane.xlu0 %1280  ;;  %v1272_v4 = vpop.xlane.xlu1 %1271 }
 0x670   :  { %12457 = vrcp.f32 %v1272_v4 }
 0x673   :  { %v1275_v6 = vpop.xlane.xlu0 %1274  ;;  %v1290_v7 = vpop.xlane.xlu1 %1289 }
 0x674   :  { %12459 = vrcp.f32 %v1275_v6 }
 0x675   :  { %12461 = vrcp.f32 %v1281_v3 }
 0x676   :  { %12463 = vrcp.f32 %v1278_v63 }
 0x677   :  { %v1293_v8 = vpop.xlane.xlu0 %1292  ;;  %v1284_v9 = vpop.xlane.xlu1 %1283 }
 0x67b   :  { %v1287_v10 = vpop.xlane.xlu0 %1286  ;;  %v11781_v11 = vpop.permute.xlu1 %11780 }
 0x67c   :  { %12465 = vrcp.f32 %v1287_v10  ;;  %v11783_v14 = vunpack.i.h.bf16 %v11781_v11  ;;  %v11782_v15 = vunpack.i.l.bf16 %v11781_v11 }
 0x67d   :  { %12467 = vrcp.f32 %v1284_v9  ;;  %v12458_v12 = vpop.eup %12457 }
 0x67e   :  { %12469 = vrcp.f32 %v1293_v8  ;;  %v1302_v19 = vmul.f32 %v12458_v12, %v12444_v49  ;;  %v1315_v21 = vpack.c.bf16 %v11783_v14, %v11782_v15 }
 0x67f   :  { %v11776_v13 = vpop.permute.xlu0 %11775  ;;  %12471 = vrcp.f32 %v1290_v7 }
 0x680   :  { %v11778_v2 = vunpack.i.h.bf16 %v11776_v13  ;;  %v11777_v16 = vunpack.i.l.bf16 %v11776_v13 }
 0x681   :  { %v12460_v17 = vpop.eup %12459 }
 0x682   :  { %v1316_v18 = vpack.c.bf16 %v11778_v2, %v11777_v16  ;;  %v1303_v20 = vmul.f32 %v12460_v17, %v12448_v53  ;;  %v12462_v23 = vpop.eup %12461  ;;  %v9982_v17 = vld [vmem:[#allocation16] ss:$0 sm:$0xff] }
 0x683   :  { %v12464_v24 = vpop.eup %12463  ;;  %v1305_v27 = vmul.f32 %v12462_v23, %v12446_v50 }
 0x684   :  { %11330 = vmatprep.subr.bf16.mxu1 %v1316_v18  ;;  %v1310_v22 = vpack.c.bf16 %v1303_v20, %v1302_v19  ;;  %v1304_v29 = vmul.f32 %v12464_v24, %v13554_v47  ;;  %v12039_v47 = vld [vmem:[%s14289_s18 + $0x18] sm:$0xff]  }
 0x685   :  { %11331 = vmatpush3.bf16.msra.mxu1 %v1316_v18 }
 0x686   :  { %11332 = vmatprep.subr.bf16.mxu1 %v1315_v21  ;;  %11336 = vmatprep.mubr.msk.bf16.mxu1 %vm1221_vm2, %v1310_v22  ;;  %v1311_v31 = vpack.c.bf16 %v1305_v27, %v1304_v29  ;;  %v1642_v27 = vld [vmem:[#allocation20 + $0x1e0] sm:$0xff] }
 0x689   :  { %v12466_v25 = vpop.eup %12465  ;;  %11333 = vmatpush3.bf16.msra.mxu1 %v1315_v21 }
 0x68a   :  { %v12468_v26 = vpop.eup %12467  ;;  %11334 = vmatprep.subr.bf16.mxu1 %v13516_v5  ;;  %v1307_v28 = vmul.f32 %v12466_v25, %v12456_v61 }
 0x68b   :  { %v1306_v30 = vmul.f32 %v12468_v26, %v12452_v57  ;;  %v12470_v32 = vpop.eup %12469  ;;  %v1638_v26 = vld [vmem:[#allocation20 + $0x1c0] sm:$0xff] }
 0x68c   :  { %v12472_v34 = vpop.eup %12471  ;;  %v1309_v35 = vmul.f32 %v12470_v32, %v12454_v58  ;;  %v10049_v29 = vcombine.low %v1638_v26, %v1642_v27 }
 0x68d   :  { %11335 = vmatpush3.bf16.msra.mxu1 %v13516_v5  ;;  %v1312_v33 = vpack.c.bf16 %v1307_v28, %v1306_v30  ;;  %v1308_v36 = vmul.f32 %v12472_v34, %v13560_v54  ;;  %v12035_v5 = vld [vmem:[%s14289_s18 + $0x38] sm:$0xff]   ;;  %v10050_v30 = vcombine.high %v1638_v26, %v1642_v27 }
 0x68e   :  { %11344 = vmatprep.subr.bf16.mxu1 %v13207_v1  ;;  %v1639_v28 = vld [vmem:[#allocation20 + $0x1c8] sm:$0xff] }
 0x68f   :  { %v1313_v39 = vpack.c.bf16 %v1309_v35, %v1308_v36  ;;  %2009 = vmatprep.subr.bf16.mxu0 %v10050_v30  ;;  %v1591_v26 = vld [vmem:[#allocation20 + $0x48] sm:$0xff] }
 0x690   :  { %11337 = vmatmul.mubr.msk.bf16.vlgmr.msra.gmra.mxu1 %vm1221_vm2, %v1311_v31  ;;  %v1643_v31 = vld [vmem:[#allocation20 + $0x1e8] sm:$0xff]  ;;  %2010 = vmatpush1.bf16.msra.mxu0 %v10049_v29 }
 0x691   :  { %11340 = vmatprep.mubr.msk.bf16.mxu1 %vm1221_vm2, %v1312_v33  ;;  %11345 = vmatpush3.bf16.msra.mxu1 %v12035_v5  ;;  %v10051_v32 = vcombine.low %v1639_v28, %v1643_v31  ;;  %v10052_v33 = vcombine.high %v1639_v28, %v1643_v31  ;;  %v1595_v28 = vld [vmem:[#allocation20 + $0x68] sm:$0xff] }
 0x692   :  { %11346 = vmatprep.subr.bf16.mxu1 %v13207_v1  ;;  %v10003_v30 = vcombine.low %v1591_v26, %v1595_v28  ;;  %v10004_v31 = vcombine.high %v1591_v26, %v1595_v28 }
 0x695   :  { %11347 = vmatpush3.bf16.msra.mxu1 %v12036_v40 }
 0x696   :  { %11348 = vmatprep.subr.bf16.mxu1 %v13207_v1 }
 0x698   :  { %11341 = vmatmul.mubr.msk.bf16.gmra.mxu1 %vm1221_vm2, %v1313_v39 }
 0x699   :  { %11360 = vmatprep.mubr.msk.bf16.mxu1 %vm13208_vm0, %v13207_v1  ;;  %11349 = vmatpush3.bf16.msra.mxu1 %v12037_v43  ;;  %v1630_v43 = vld [vmem:[#allocation20 + $0x180] sm:$0xff] }
 0x69a   :  { %11350 = vmatprep.subr.bf16.mxu1 %v13207_v1 }
 0x69d   :  { %11351 = vmatpush3.bf16.msra.mxu1 %v12038_v46  ;;  %v1634_v46 = vld [vmem:[#allocation20 + $0x1a0] sm:$0xff] }
 0x69e   :  { %11352 = vmatprep.subr.bf16.mxu1 %v13207_v1 }
 0x6a1   :  { %11353 = vmatpush3.bf16.msra.mxu1 %v12039_v47  ;;  %v1631_v47 = vld [vmem:[#allocation20 + $0x188] sm:$0xff] }
 0x6a2   :  { %11354 = vmatprep.subr.bf16.mxu1 %v13207_v1 }
 0x6a5   :  { %11355 = vmatpush3.bf16.msra.mxu1 %v12040_v48  ;;  %v10042_v48 = vcombine.high %v1630_v43, %v1634_v46 }
 0x6a6   :  { %11356 = vmatprep.subr.bf16.mxu1 %v13207_v1 }
 0x6a7   :  { %2011 = vmatprep.subr.bf16.mxu0 %v10042_v48 }
 0x6a9   :  { %11357 = vmatpush3.bf16.msra.mxu1 %v12041_v51 }
 0x6aa   :  { %11358 = vmatprep.subr.bf16.mxu1 %v13207_v1 }
 0x6ad   :  { %11359 = vmatpush3.bf16.msra.mxu1 %v12042_v55  ;;  %v1623_v55 = vld [vmem:[#allocation20 + $0x148] sm:$0xff] }
 0x6ae   :  { %2052 = vmatprep.subr.bf16.mxu1 %v10052_v33  ;;  %v1586_v33 = vld [vmem:[#allocation20 + $0x20] sm:$0xff] }
 0x750   :  { %v11338_v49 = vpop.f32.mrf.mxu1 }
 0x752   :  { %v1364_v50 = vpop.f32.mrf.mxu1 }
 0x754   :  { %v11339_v52 = vpop.f32.mrf.mxu1 }
 0x755   :  { %v11784_v53 = vpack.i.bf16 %v11339_v52, %v11338_v49  ;;  %v1635_v49 = vld [vmem:[#allocation20 + $0x1a8] sm:$0xff] }
 0x756   :  { %v1367_v54 = vpop.f32.mrf.mxu1  ;;  %v10043_v51 = vcombine.low %v1631_v47, %v1635_v49  ;;  %v10044_v52 = vcombine.high %v1631_v47, %v1635_v49  ;;  %v1641_v49 = vld [vmem:[#allocation20 + $0x1d8] sm:$0xff] }
 0x757   :  { %11785 = vrot.lane.b32.xlu1 %v11784_v53, %s13184_s26  ;;  %v1622_v53 = vld [vmem:[#allocation20 + $0x140] sm:$0xff] }
 0x758   :  { %v11342_v56 = vpop.f32.mrf.mxu1 }
 0x75a   :  { %v1380_v57 = vpop.f32.mrf.mxu1 }
 0x75c   :  { %v11343_v58 = vpop.f32.mrf.mxu1 }
 0x75d   :  { %v11794_v59 = vpack.i.bf16 %v11343_v58, %v11342_v56 }
 0x75e   :  { %v1383_v60 = vpop.f32.mrf.mxu1 }
 0x75f   :  { %11795 = vrot.lane.b32.xlu1 %v11794_v59, %s13209_s11  ;;  %v11789_v61 = vpack.i.bf16 %v1383_v60, %v1380_v57  ;;  %v1627_v57 = vld [vmem:[#allocation20 + $0x168] sm:$0xff] }
 0x760   :  { %v10035_v59 = vcombine.low %v1623_v55, %v1627_v57  ;;  %v10036_v60 = vcombine.high %v1623_v55, %v1627_v57 }
 0x761   :  { %11790 = vrot.lane.b32.xlu0 %v11789_v61, %s13187_s20  ;;  %v1614_v61 = vld [vmem:[#allocation20 + $0x100] sm:$0xff] }
 0x7c9   :  { %v11786_v62 = vpop.permute.xlu1 %11785 }
 0x7ca   :  { %v11788_v63 = vunpack.i.h.bf16 %v11786_v62  ;;  %v11787_v3 = vunpack.i.l.bf16 %v11786_v62  ;;  %v1618_v62 = vld [vmem:[#allocation20 + $0x120] sm:$0xff] }
 0x7cc   :  { %v1419_v9 = vsel %vm1131_vm1, %v1364_v50, %v11787_v3  ;;  %v1420_v10 = vsel %vm1131_vm1, %v1367_v54, %v11788_v63  ;;  %v10041_v50 = vcombine.low %v1630_v43, %v1634_v46  ;;  %v1626_v54 = vld [vmem:[#allocation20 + $0x160] sm:$0xff]  ;;  %v1615_v63 = vld [vmem:[#allocation20 + $0x108] sm:$0xff]  ;;  %v10026_v3 = vcombine.high %v1614_v61, %v1618_v62 }
 0x7cd   :  { %v10034_v56 = vcombine.high %v1622_v53, %v1626_v54  ;;  %v10033_v58 = vcombine.low %v1622_v53, %v1626_v54 }
 0x7ce   :  { %2012 = vmatpush1.bf16.msra.mxu0 %v10041_v50  ;;  %v1645_v50 = vld [vmem:[#allocation20 + $0x1f8] sm:$0xff] }
 0x7cf   :  { %2013 = vmatprep.subr.bf16.mxu0 %v10034_v56 }
 0x7d1   :  { %v11796_v4 = vpop.permute.xlu1 %11795 }
 0x7d2   :  { %v11798_v11 = vunpack.i.h.bf16 %v11796_v4  ;;  %v11797_v12 = vunpack.i.l.bf16 %v11796_v4  ;;  %2014 = vmatpush1.bf16.msra.mxu0 %v10033_v58  ;;  %v1619_v4 = vld [vmem:[#allocation20 + $0x128] sm:$0xff] }
 0x7d3   :  { %v11791_v6 = vpop.permute.xlu0 %11790  ;;  %2015 = vmatprep.subr.bf16.mxu0 %v10026_v3 }
 0x7d4   :  { %v11793_v7 = vunpack.i.h.bf16 %v11791_v6  ;;  %v11792_v8 = vunpack.i.l.bf16 %v11791_v6  ;;  %v10025_v6 = vcombine.low %v1614_v61, %v1618_v62  ;;  %v9991_v61 = vld [vmem:[#allocation17] ss:$0 sm:$0xff] }
 0x7d6   :  { %v1422_v13 = vsel %vm1221_vm2, %v1420_v10, %v11793_v7  ;;  %v1421_v14 = vsel %vm1221_vm2, %v1419_v9, %v11792_v8  ;;  %v10027_v7 = vcombine.low %v1615_v63, %v1619_v4  ;;  %v10028_v8 = vcombine.high %v1615_v63, %v1619_v4  ;;  %2016 = vmatpush1.bf16.msra.mxu0 %v10025_v6  ;;  %v1606_v9 = vld [vmem:[#allocation20 + $0xc0] sm:$0xff]  ;;  %v9992_v4 = vld [vmem:[#allocation19] ss:$0 sm:$0xff] }
 0x7d7   :  { %v1425_v15 = vsel %vm1423_vm3, %v1422_v13, %v11798_v11  ;;  %v1424_v2 = vsel %vm1423_vm3, %v1421_v14, %v11797_v12  ;;  %v1610_v10 = vld [vmem:[#allocation20 + $0xe0] sm:$0xff]  ;;  %v1607_v11 = vld [vmem:[#allocation20 + $0xc8] sm:$0xff] }
 0x7d8   :  { %v1442_v16 = vpack.c.bf16 %v1425_v15, %v1424_v2  ;;  %v10018_v12 = vcombine.high %v1606_v9, %v1610_v10  ;;  %v1611_v13 = vld [vmem:[#allocation20 + $0xe8] sm:$0xff]  ;;  %v10017_v14 = vcombine.low %v1606_v9, %v1610_v10  ;;  %v1633_v9 = vld [vmem:[#allocation20 + $0x198] sm:$0xff] }
 0x7d9   :  { %v10019_v15 = vcombine.low %v1607_v11, %v1611_v13  ;;  %v10020_v2 = vcombine.high %v1607_v11, %v1611_v13  ;;  %v1637_v10 = vld [vmem:[#allocation20 + $0x1b8] sm:$0xff] }
 0x7da   :  { %11361 = vmatmul.mubr.bf16.vlgmr.msra.gmra.mxu1 %v1442_v16  ;;  %2017 = vmatprep.subr.bf16.mxu0 %v10018_v12  ;;  %v1598_v16 = vld [vmem:[#allocation20 + $0x80] sm:$0xff] }
 0x7db   :  { %2084 = vmatprep.mubr.bf16.mxu1 %v13206_v0  ;;  %2053 = vmatpush1.bf16.msra.mxu1 %v10051_v32  ;;  %v1582_v32 = vld [vmem:[#allocation20] sm:$0xff] }
 0x7dc   :  { %2054 = vmatprep.subr.bf16.mxu1 %v10044_v52  ;;  %2018 = vmatpush1.bf16.msra.mxu0 %v10017_v14  ;;  %v10056_v52 = vcombine.high %v1641_v49, %v1645_v50  ;;  %v10048_v14 = vcombine.high %v1633_v9, %v1637_v10 }
 0x7df   :  { %2055 = vmatpush1.bf16.msra.mxu1 %v10043_v51  ;;  %v10055_v51 = vcombine.low %v1641_v49, %v1645_v50  ;;  %v1592_v50 = vld [vmem:[#allocation20 + $0x50] sm:$0xff] }
 0x7e0   :  { %2056 = vmatprep.subr.bf16.mxu1 %v10036_v60 }
 0x7e3   :  { %2057 = vmatpush1.bf16.msra.mxu1 %v10035_v59 }
 0x7e4   :  { %2058 = vmatprep.subr.bf16.mxu1 %v10028_v8  ;;  %v1636_v8 = vld [vmem:[#allocation20 + $0x1b0] sm:$0xff] }
 0x7e7   :  { %2059 = vmatpush1.bf16.msra.mxu1 %v10027_v7  ;;  %v1632_v7 = vld [vmem:[#allocation20 + $0x190] sm:$0xff] }
 0x7e8   :  { %2060 = vmatprep.subr.bf16.mxu1 %v10020_v2  ;;  %v1628_v2 = vld [vmem:[#allocation20 + $0x170] sm:$0xff] }
 0x7eb   :  { %2061 = vmatpush1.bf16.msra.mxu1 %v10019_v15  ;;  %v1624_v15 = vld [vmem:[#allocation20 + $0x150] sm:$0xff] }
 0x89a   :  { %v1532_v18 = vpop.f32.mrf.mxu1 }
 0x89b   :  { %v1533_v19 = vadd.f32 %v9982_v17, %v1532_v18  ;;  %v1599_v18 = vld [vmem:[#allocation20 + $0x88] sm:$0xff] }
 0x89c   :  { %v11362_v20 = vpop.f32.mrf.mxu1 }
 0x89d   :  { %v1539_v21 = vadd.f32 %v1533_v19, %v13493_v37  ;;  %v1603_v20 = vld [vmem:[#allocation20 + $0xa8] sm:$0xff] }
 0x89e   :  { %v1535_v22 = vpop.f32.mrf.mxu1 }
 0x89f   :  { %v1536_v23 = vadd.f32 %v9982_v17, %v1535_v22  ;;  %1543 = vadd.xlane.f32.xlu0 %v1539_v21  ;;  %v1602_v17 = vld [vmem:[#allocation20 + $0xa0] sm:$0xff]  ;;  %v10011_v22 = vcombine.low %v1599_v18, %v1603_v20 }
 0x8a0   :  { %v11363_v24 = vpop.f32.mrf.mxu1  ;;  %v10010_v19 = vcombine.high %v1598_v16, %v1602_v17 }
 0x8a1   :  { %v1540_v25 = vadd.f32 %v1536_v23, %v13495_v38  ;;  %v10012_v23 = vcombine.high %v1599_v18, %v1603_v20  ;;  %v1590_v24 = vld [vmem:[#allocation20 + $0x40] sm:$0xff]  ;;  %v10047_v18 = vcombine.low %v1633_v9, %v1637_v10  ;;  %v12044_v9 = vld [vmem:[#allocation23 + $0xf8] sm:$0xff]  }
 0x8a2   :  { %2019 = vmatprep.subr.bf16.mxu0 %v10010_v19  ;;  %v10038_v19 = vcombine.high %v1624_v15, %v1628_v2  ;;  %v12045_v10 = vld [vmem:[#allocation23 + $0x38] sm:$0xff]  }
 0x8a3   :  { %1545 = vadd.xlane.f32.xlu1 %v1540_v25  ;;  %2062 = vmatprep.subr.bf16.mxu1 %v10012_v23  ;;  %v1617_v23 = vld [vmem:[#allocation20 + $0x118] sm:$0xff] }
 0x8a4   :  { %2063 = vmatpush1.bf16.msra.mxu1 %v10011_v22  ;;  %v1620_v22 = vld [vmem:[#allocation20 + $0x130] sm:$0xff] }
 0x8a5   :  { %2064 = vmatprep.subr.bf16.mxu1 %v10004_v31  ;;  %v1609_v31 = vld [vmem:[#allocation20 + $0xd8] sm:$0xff] }
 0x8a8   :  { %2065 = vmatpush1.bf16.msra.mxu1 %v10003_v30  ;;  %v1612_v30 = vld [vmem:[#allocation20 + $0xf0] sm:$0xff] }
 0x928   :  { %v1544_v37 = vpop.xlane.xlu0 %1543 }
 0x929   :  { %v1548_v34 = vmul.f32 0.0078125, %v1544_v37  ;;  %v1583_v37 = vld [vmem:[#allocation20 + $0x8] sm:$0xff] }
 0x92b   :  { %v13610_v35 = vsub.f32 %v1539_v21, %v1548_v34  ;;  %v10009_v21 = vcombine.low %v1598_v16, %v1602_v17  ;;  %v9993_v34 = vcombine.low %v1582_v32, %v1586_v33  ;;  %v1629_v16 = vld [vmem:[#allocation20 + $0x178] sm:$0xff]  ;;  %v10045_v17 = vcombine.low %v1632_v7, %v1636_v8 }
 0x92c   :  { %v1546_v36 = vpop.xlane.xlu1 %1545 }
 0x92d   :  { %v1549_v39 = vmul.f32 0.0078125, %v1546_v36  ;;  %v1552_v38 = vmul.f32 %v13610_v35, %v13610_v35  ;;  %2020 = vmatpush1.bf16.msra.mxu0 %v10009_v21  ;;  %v9994_v36 = vcombine.high %v1582_v32, %v1586_v33  ;;  %v1616_v21 = vld [vmem:[#allocation20 + $0x110] sm:$0xff]  ;;  %v1613_v32 = vld [vmem:[#allocation20 + $0xf8] sm:$0xff] }
 0x92e   :  { %v10029_v33 = vcombine.low %v1616_v21, %v1620_v22 }
 0x92f   :  { %1554 = vadd.xlane.f32.xlu0 %v1552_v38  ;;  %v13614_v5 = vsub.f32 %v1540_v25, %v1549_v39  ;;  %v1594_v25 = vld [vmem:[#allocation20 + $0x60] sm:$0xff]  ;;  %v1587_v39 = vld [vmem:[#allocation20 + $0x28] sm:$0xff]  ;;  %v1640_v38 = vld [vmem:[#allocation20 + $0x1d0] sm:$0xff] }
 0x930   :  { %v10002_v27 = vcombine.high %v1590_v24, %v1594_v25  ;;  %v10001_v29 = vcombine.low %v1590_v24, %v1594_v25  ;;  %v9995_v43 = vcombine.low %v1583_v37, %v1587_v39  ;;  %v9996_v46 = vcombine.high %v1583_v37, %v1587_v39  ;;  %v1621_v24 = vld [vmem:[#allocation20 + $0x138] sm:$0xff]  ;;  %v1600_v39 = vld [vmem:[#allocation20 + $0x90] sm:$0xff] }
 0x931   :  { %v1553_v40 = vmul.f32 %v13614_v5, %v13614_v5  ;;  %v10037_v25 = vcombine.low %v1624_v15, %v1628_v2  ;;  %v10032_v28 = vcombine.high %v1617_v23, %v1621_v24  ;;  %v10031_v37 = vcombine.low %v1617_v23, %v1621_v24  ;;  %v12048_v15 = vld [vmem:[#allocation23 + $0xf0] sm:$0xff]   ;;  %v12059_v23 = vld [vmem:[#allocation23 + $0x58] sm:$0xff]  }
 0x932   :  { %2021 = vmatprep.subr.bf16.mxu0 %v10002_v27  ;;  %2066 = vmatprep.subr.bf16.mxu1 %v9996_v46  ;;  %v10030_v27 = vcombine.high %v1616_v21, %v1620_v22  ;;  %v12049_v2 = vld [vmem:[#allocation23 + $0x30] sm:$0xff]   ;;  %v12056_v21 = vld [vmem:[#allocation23 + $0xe0] sm:$0xff]   ;;  %v12060_v24 = vld [vmem:[#allocation23 + $0xd8] sm:$0xff]  }
 0x933   :  { %1556 = vadd.xlane.f32.xlu0 %v1553_v40  ;;  %2022 = vmatpush1.bf16.msra.mxu0 %v10001_v29  ;;  %v1644_v40 = vld [vmem:[#allocation20 + $0x1f0] sm:$0xff]  ;;  %v12057_v22 = vld [vmem:[#allocation23 + $0x20] sm:$0xff]  }
 0x934   :  { %v10053_v47 = vcombine.low %v1640_v38, %v1644_v40  ;;  %v10054_v48 = vcombine.high %v1640_v38, %v1644_v40  ;;  %2023 = vmatprep.subr.bf16.mxu0 %v9994_v36  ;;  %2067 = vmatpush1.bf16.msra.mxu1 %v9995_v43  ;;  %v1608_v29 = vld [vmem:[#allocation20 + $0xd0] sm:$0xff]  ;;  %v10024_v36 = vcombine.high %v1609_v31, %v1613_v32  ;;  %v1601_v40 = vld [vmem:[#allocation20 + $0x98] sm:$0xff] }
 0x935   :  { %2138 = vmatprep.subr.bf16.mxu1 %v10056_v52  ;;  %v1604_v38 = vld [vmem:[#allocation20 + $0xb0] sm:$0xff]  ;;  %v1605_v43 = vld [vmem:[#allocation20 + $0xb8] sm:$0xff]  ;;  %v10021_v46 = vcombine.low %v1608_v29, %v1612_v30 }
 0x936   :  { %v10016_v49 = vcombine.high %v1601_v40, %v1605_v43  ;;  %v1593_v52 = vld [vmem:[#allocation20 + $0x58] sm:$0xff] }
 0x937   :  { %2024 = vmatpush1.bf16.msra.mxu0 %v9993_v34  ;;  %v10022_v34 = vcombine.high %v1608_v29, %v1612_v30  ;;  %v12065_v29 = vld [vmem:[#allocation23 + $0x10] sm:$0xff]  }
 0x938   :  { %2095 = vmatprep.subr.bf16.mxu0 %v10054_v48  ;;  %v10014_v48 = vcombine.high %v1600_v39, %v1604_v38  ;;  %v12066_v30 = vld [vmem:[#allocation23 + $0x90] sm:$0xff]  }
 0x9b8   :  { %v1555_v53 = vpop.xlane.xlu0 %1554 }
 0x9b9   :  { %v1558_v54 = vmul.f32 0.0078125, %v1555_v53  ;;  %v1597_v53 = vld [vmem:[#allocation20 + $0x78] sm:$0xff] }
 0x9bb   :  { %v1560_v55 = vadd.f32 1e-05, %v1558_v54  ;;  %v10013_v54 = vcombine.low %v1600_v39, %v1604_v38  ;;  %v12073_v39 = vld [vmem:[#allocation23] sm:$0xff]  }
 0x9bc   :  { %v1557_v56 = vpop.xlane.xlu0 %1556  ;;  %v12074_v38 = vld [vmem:[#allocation23 + $0x80] sm:$0xff]  }
 0x9bd   :  { %12473 = vrsqrt.f32 %v1560_v55  ;;  %v1559_v57 = vmul.f32 0.0078125, %v1557_v56  ;;  %v10015_v55 = vcombine.low %v1601_v40, %v1605_v43  ;;  %v12075_v40 = vld [vmem:[#allocation23 + $0x178] sm:$0xff]  }
 0x9be   :  { %v12076_v43 = vld [vmem:[#allocation23 + $0x1f8] sm:$0xff]  }
 0x9bf   :  { %v1561_v58 = vadd.f32 1e-05, %v1559_v57  ;;  %v10008_v57 = vcombine.high %v1593_v52, %v1597_v53 }
 0x9c1   :  { %12475 = vrsqrt.f32 %v1561_v58  ;;  %v1584_v58 = vld [vmem:[#allocation20 + $0x10] sm:$0xff] }
 0x9ca   :  { %v12474_v59 = vpop.eup %12473 }
 0x9cb   :  { %v1564_v60 = vmul.f32 %v12474_v59, %v13610_v35  ;;  %v10046_v35 = vcombine.high %v1632_v7, %v1636_v8  ;;  %v1588_v59 = vld [vmem:[#allocation20 + $0x30] sm:$0xff]  ;;  %v12043_v8 = vld [vmem:[#allocation23 + $0x78] sm:$0xff]  }
 0x9cd   :  { %v1572_v3 = vmul.f32 %v9991_v61, %v1564_v60  ;;  %v1585_v60 = vld [vmem:[#allocation20 + $0x18] sm:$0xff] }
 0x9ce   :  { %v12476_v62 = vpop.eup %12475 }
 0x9cf   :  { %v1565_v63 = vmul.f32 %v12476_v62, %v13614_v5  ;;  %v13620_v11 = vadd.f32 %v9992_v4, %v1572_v3  ;;  %v1625_v5 = vld [vmem:[#allocation20 + $0x158] sm:$0xff]  ;;  %v9998_v3 = vcombine.high %v1584_v58, %v1588_v59 }
 0x9d0   :  { %v10040_v20 = vcombine.high %v1625_v5, %v1629_v16  ;;  %v10039_v26 = vcombine.low %v1625_v5, %v1629_v16  ;;  %v12050_v5 = vld [vmem:[#allocation23 + $0xb0] sm:$0xff]   ;;  %v12051_v16 = vld [vmem:[#allocation23 + $0x68] sm:$0xff]  }
 0x9d1   :  { %v1573_v6 = vmul.f32 %v9991_v61, %v1565_v63  ;;  %v1589_v61 = vld [vmem:[#allocation20 + $0x38] sm:$0xff]  ;;  %v10007_v63 = vcombine.low %v1593_v52, %v1597_v53 }
 0x9d2   :  { %v9999_v7 = vcombine.low %v1585_v60, %v1589_v61 }
 0x9d3   :  { %v13622_v12 = vadd.f32 %v9992_v4, %v1573_v6  ;;  %v10000_v4 = vcombine.high %v1585_v60, %v1589_v61  ;;  %v9997_v6 = vcombine.low %v1584_v58, %v1588_v59 }
 0x9d5   :  { %v13626_v13 = vpack.c.bf16 %v13622_v12, %v13620_v11 }
 0x9d7   :  { %2042 = vmatmul.mubr.bf16.vlgmr.msra.gmra.mxu0 %v13626_v13  ;;  %2085 = vmatmul.mubr.bf16.vlgmr.msra.gmra.mxu1 %v13626_v13 }
 0x9d8   :  { %2096 = vmatpush1.bf16.msra.mxu0 %v10053_v47  ;;  %2139 = vmatpush1.bf16.msra.mxu1 %v10055_v51  ;;  %v10023_v47 = vcombine.low %v1609_v31, %v1613_v32  ;;  %v1596_v51 = vld [vmem:[#allocation20 + $0x70] sm:$0xff]  ;;  %v12067_v31 = vld [vmem:[#allocation23 + $0x48] sm:$0xff]  }
 0x9d9   :  { %2097 = vmatprep.subr.bf16.mxu0 %v10046_v35  ;;  %2140 = vmatprep.subr.bf16.mxu1 %v10048_v14  ;;  %v10006_v56 = vcombine.high %v1592_v50, %v1596_v51  ;;  %v10005_v62 = vcombine.low %v1592_v50, %v1596_v51  ;;  %v12046_v35 = vld [vmem:[#allocation23 + $0xb8] sm:$0xff]   ;;  %v12047_v14 = vld [vmem:[#allocation23 + $0x70] sm:$0xff]   ;;  %v12068_v32 = vld [vmem:[#allocation23 + $0xc8] sm:$0xff]  }
 0x9da   :  { %2127 = vmatprep.mubr.bf16.mxu0 %v13206_v0  ;;  %2170 = vmatprep.mubr.bf16.mxu1 %v13206_v0 }
 0x9dc   :  { %2098 = vmatpush1.bf16.msra.mxu0 %v10045_v17  ;;  %2141 = vmatpush1.bf16.msra.mxu1 %v10047_v18  ;;  %v12052_v17 = vld [vmem:[#allocation23 + $0xe8] sm:$0xff]  }
 0x9dd   :  { %2099 = vmatprep.subr.bf16.mxu0 %v10038_v19  ;;  %2142 = vmatprep.subr.bf16.mxu1 %v10040_v20  ;;  %v12053_v18 = vld [vmem:[#allocation23 + $0x28] sm:$0xff]   ;;  %v12055_v20 = vld [vmem:[#allocation23 + $0x60] sm:$0xff]  }
 0x9de   :  { %v12054_v19 = vld [vmem:[#allocation23 + $0xa8] sm:$0xff]  }
 0x9e0   :  { %2100 = vmatpush1.bf16.msra.mxu0 %v10037_v25  ;;  %2143 = vmatpush1.bf16.msra.mxu1 %v10039_v26  ;;  %v12061_v25 = vld [vmem:[#allocation23 + $0x18] sm:$0xff]  }
 0x9e1   :  { %2101 = vmatprep.subr.bf16.mxu0 %v10030_v27  ;;  %2144 = vmatprep.subr.bf16.mxu1 %v10032_v28  ;;  %v12062_v26 = vld [vmem:[#allocation23 + $0x98] sm:$0xff]   ;;  %v12063_v27 = vld [vmem:[#allocation23 + $0x50] sm:$0xff]  }
 0x9e2   :  { %v12064_v28 = vld [vmem:[#allocation23 + $0xd0] sm:$0xff]  }
 0x9e4   :  { %2102 = vmatpush1.bf16.msra.mxu0 %v10029_v33  ;;  %2145 = vmatpush1.bf16.msra.mxu1 %v10031_v37  ;;  %v12069_v33 = vld [vmem:[#allocation23 + $0x8] sm:$0xff]  }
 0x9e5   :  { %2103 = vmatprep.subr.bf16.mxu0 %v10022_v34  ;;  %2146 = vmatprep.subr.bf16.mxu1 %v10024_v36  ;;  %v12070_v37 = vld [vmem:[#allocation23 + $0x88] sm:$0xff]   ;;  %v12071_v34 = vld [vmem:[#allocation23 + $0x40] sm:$0xff]  }
 0x9e6   :  { %v12072_v36 = vld [vmem:[#allocation23 + $0xc0] sm:$0xff]  }
 0x9e8   :  { %2104 = vmatpush1.bf16.msra.mxu0 %v10021_v46  ;;  %2147 = vmatpush1.bf16.msra.mxu1 %v10023_v47  ;;  %v13635_v46 = vsub.s32 3, %v13499_v41  ;;  %v13637_v47 = vld [vmem:[#allocation22] sm:$0xff] }
 0x9e9   :  { %2105 = vmatprep.subr.bf16.mxu0 %v10014_v48  ;;  %2148 = vmatprep.subr.bf16.mxu1 %v10016_v49  ;;  %v1656_v50 = vrot.slane %v13637_v47, %v13508_v45  ;;  %v1652_v52 = vrot.slane %v13637_v47, %v13502_v42  ;;  %v1660_v53 = vrot.slane %v13637_v47, %v13505_v44 }
 0x9ea   :  { %v1664_v51 = vrot.slane %v13637_v47, %v13635_v46 }
 0x9ec   :  { %2106 = vmatpush1.bf16.msra.mxu0 %v10013_v54  ;;  %2149 = vmatpush1.bf16.msra.mxu1 %v10015_v55 }
 0x9ed   :  { %2107 = vmatprep.subr.bf16.mxu0 %v10006_v56  ;;  %2150 = vmatprep.subr.bf16.mxu1 %v10008_v57 }
 0x9f0   :  { %2108 = vmatpush1.bf16.msra.mxu0 %v10005_v62  ;;  %2151 = vmatpush1.bf16.msra.mxu1 %v10007_v63 }
 0x9f1   :  { %2109 = vmatprep.subr.bf16.mxu0 %v9998_v3  ;;  %2152 = vmatprep.subr.bf16.mxu1 %v10000_v4 }
 0x9f4   :  { %2110 = vmatpush1.bf16.msra.mxu0 %v9997_v6  ;;  %2153 = vmatpush1.bf16.msra.mxu1 %v9999_v7 }
 0x9f5   :  { %10791 = vmatprep.subr.bf16.mxu0 %v12043_v8  ;;  %10813 = vmatprep.subr.bf16.mxu1 %v12044_v9 }
 0x9f7   :  { %2128 = vmatmul.mubr.bf16.vlgmr.msra.gmra.mxu0 %v13626_v13  ;;  %2171 = vmatmul.mubr.bf16.vlgmr.msra.gmra.mxu1 %v13626_v13  ;;  %v12058_v13 = vld [vmem:[#allocation23 + $0xa0] sm:$0xff]  }
 0x9f8   :  { %10792 = vmatpush3.bf16.msra.mxu0 %v12045_v10  ;;  %10814 = vmatpush3.bf16.msra.mxu1 %v12046_v35 }
 0x9f9   :  { %10793 = vmatprep.subr.bf16.mxu0 %v12047_v14  ;;  %10815 = vmatprep.subr.bf16.mxu1 %v12048_v15 }
 0x9fc   :  { %10794 = vmatpush3.bf16.msra.mxu0 %v12049_v2  ;;  %10816 = vmatpush3.bf16.msra.mxu1 %v12050_v5 }
 0x9fd   :  { %10795 = vmatprep.subr.bf16.mxu0 %v12051_v16  ;;  %10817 = vmatprep.subr.bf16.mxu1 %v12052_v17 }
 0xa00   :  { %10796 = vmatpush3.bf16.msra.mxu0 %v12053_v18  ;;  %10818 = vmatpush3.bf16.msra.mxu1 %v12054_v19  ;;  %v12077_v18 = vld [vmem:[#allocation23 + $0x138] sm:$0xff]  }
 0xa01   :  { %10797 = vmatprep.subr.bf16.mxu0 %v12055_v20  ;;  %10819 = vmatprep.subr.bf16.mxu1 %v12056_v21  ;;  %v12078_v19 = vld [vmem:[#allocation23 + $0x1b8] sm:$0xff]  }
 0xa04   :  { %10798 = vmatpush3.bf16.msra.mxu0 %v12057_v22  ;;  %10820 = vmatpush3.bf16.msra.mxu1 %v12058_v13  ;;  %v12079_v22 = vld [vmem:[#allocation23 + $0x170] sm:$0xff]  }
 0xa05   :  { %10799 = vmatprep.subr.bf16.mxu0 %v12059_v23  ;;  %10821 = vmatprep.subr.bf16.mxu1 %v12060_v24  ;;  %v12080_v13 = vld [vmem:[#allocation23 + $0x1f0] sm:$0xff]  }
 0xa06   :  { %v12081_v23 = vld [vmem:[#allocation23 + $0x130] sm:$0xff]  }
 0xa07   :  { %v12082_v24 = vld [vmem:[#allocation23 + $0x1b0] sm:$0xff]  }
 0xa08   :  { %10800 = vmatpush3.bf16.msra.mxu0 %v12061_v25  ;;  %10822 = vmatpush3.bf16.msra.mxu1 %v12062_v26  ;;  %v12083_v25 = vld [vmem:[#allocation23 + $0x168] sm:$0xff]  }
 0xa09   :  { %10801 = vmatprep.subr.bf16.mxu0 %v12063_v27  ;;  %10823 = vmatprep.subr.bf16.mxu1 %v12064_v28  ;;  %v12084_v26 = vld [vmem:[#allocation23 + $0x1e8] sm:$0xff]  }
 0xa0a   :  { %v12085_v27 = vld [vmem:[#allocation23 + $0x128] sm:$0xff]  }
 0xa0b   :  { %v12086_v28 = vld [vmem:[#allocation23 + $0x1a8] sm:$0xff]  }
 0xa0c   :  { %10802 = vmatpush3.bf16.msra.mxu0 %v12065_v29  ;;  %10824 = vmatpush3.bf16.msra.mxu1 %v12066_v30  ;;  %v12087_v29 = vld [vmem:[#allocation23 + $0x160] sm:$0xff]  }
 0xa0d   :  { %10803 = vmatprep.subr.bf16.mxu0 %v12067_v31  ;;  %10825 = vmatprep.subr.bf16.mxu1 %v12068_v32  ;;  %v12088_v30 = vld [vmem:[#allocation23 + $0x1e0] sm:$0xff]  }
 0xa0e   :  { %v12089_v31 = vld [vmem:[#allocation23 + $0x120] sm:$0xff]  }
 0xa0f   :  { %v12090_v32 = vld [vmem:[#allocation23 + $0x1a0] sm:$0xff]  }
 0xa10   :  { %10804 = vmatpush3.bf16.msra.mxu0 %v12069_v33  ;;  %10826 = vmatpush3.bf16.msra.mxu1 %v12070_v37  ;;  %v12091_v33 = vld [vmem:[#allocation23 + $0x158] sm:$0xff]  }
 0xa11   :  { %10805 = vmatprep.subr.bf16.mxu0 %v12071_v34  ;;  %10827 = vmatprep.subr.bf16.mxu1 %v12072_v36  ;;  %v12092_v37 = vld [vmem:[#allocation23 + $0x1d8] sm:$0xff]  }
 0xa12   :  { %v12093_v34 = vld [vmem:[#allocation23 + $0x118] sm:$0xff]  }
 0xa13   :  { %v12094_v36 = vld [vmem:[#allocation23 + $0x198] sm:$0xff]  }
 0xa14   :  { %10806 = vmatpush3.bf16.msra.mxu0 %v12073_v39  ;;  %10828 = vmatpush3.bf16.msra.mxu1 %v12074_v38  ;;  %v12095_v39 = vld [vmem:[#allocation23 + $0x150] sm:$0xff]  }
 0xa15   :  { %10835 = vmatprep.subr.bf16.mxu0 %v12075_v40  ;;  %10857 = vmatprep.subr.bf16.mxu1 %v12076_v43  ;;  %v12096_v38 = vld [vmem:[#allocation23 + $0x1d0] sm:$0xff]   ;;  %v13648_v40 = vsub.s32 5, %v13499_v41  ;;  %v13651_v43 = vsub.s32 7, %v13499_v41 }
 0xa97   :  { %v2043_v48 = vpop.f32.mrf.mxu0  ;;  %v2086_v49 = vpop.f32.mrf.mxu1 }
 0xa98   :  { %v2044_v62 = vadd.f32 %v2043_v48, %v1652_v52  ;;  %v2087_v63 = vadd.f32 %v2086_v49, %v1660_v53  ;;  %v13654_v48 = vsub.s32 4, %v13499_v41  ;;  %v13657_v49 = vsub.s32 6, %v13499_v41 }
 0xa99   :  { %v2045_v54 = vpop.f32.mrf.mxu0  ;;  %v2088_v55 = vpop.f32.mrf.mxu1 }
 0xa9a   :  { %v2046_v58 = vadd.f32 %v2045_v54, %v1656_v50  ;;  %v2089_v59 = vadd.f32 %v2088_v55, %v1664_v51  ;;  %v2181_v2 = vmax.f32 %v2044_v62, 0.0  ;;  %v2183_v5 = vmax.f32 %v2087_v63, 0.0  ;;  %v12099_v54 = vld [vmem:[#allocation23 + $0x148] sm:$0xff]  }
 0xa9b   :  { %v2047_v56 = vpop.f32.mrf.mxu0  ;;  %v2090_v57 = vpop.f32.mrf.mxu1  ;;  %v12100_v55 = vld [vmem:[#allocation23 + $0x1c8] sm:$0xff]   ;;  %v1668_v41 = vrot.slane %v13637_v47, %v13654_v48 }
 0xa9c   :  { %v2048_v60 = vadd.f32 %v2047_v56, %v1652_v52  ;;  %v2091_v61 = vadd.f32 %v2090_v57, %v1660_v53  ;;  %v2182_v10 = vmax.f32 %v2046_v58, 0.0  ;;  %v2184_v35 = vmax.f32 %v2089_v59, 0.0  ;;  %v12102_v62 = vld [vmem:[#allocation23 + $0x188] sm:$0xff]  }
 0xa9d   :  { %v2049_v3 = vpop.f32.mrf.mxu0  ;;  %v2092_v4 = vpop.f32.mrf.mxu1  ;;  %v1672_v56 = vrot.slane %v13637_v47, %v13648_v40  ;;  %v1680_v57 = vrot.slane %v13637_v47, %v13651_v43  ;;  %v1676_v58 = vrot.slane %v13637_v47, %v13657_v49 }
 0xa9e   :  { %v2050_v6 = vadd.f32 %v2049_v3, %v1656_v50  ;;  %v2093_v7 = vadd.f32 %v2092_v4, %v1664_v51  ;;  %v2189_v8 = vmax.f32 %v2048_v60, 0.0  ;;  %v2191_v9 = vmax.f32 %v2091_v61, 0.0  ;;  %v12097_v50 = vld [vmem:[#allocation23 + $0x110] sm:$0xff]   ;;  %v12101_v61 = vld [vmem:[#allocation23 + $0x108] sm:$0xff]   ;;  %v12103_v4 = vld [vmem:[#allocation23 + $0x140] sm:$0xff]  }
 0xa9f   :  { %v12098_v51 = vld [vmem:[#allocation23 + $0x190] sm:$0xff]  }
 0xaa0   :  { %v2190_v14 = vmax.f32 %v2050_v6, 0.0  ;;  %v2192_v15 = vmax.f32 %v2093_v7, 0.0  ;;  %v2325_v20 = vpack.c.bf16 %v2189_v8, %v2181_v2  ;;  %v2327_v21 = vpack.c.bf16 %v2191_v9, %v2183_v5  ;;  %v12104_v6 = vld [vmem:[#allocation23 + $0x1c0] sm:$0xff]  }
 0xaa2   :  { %v2328_v16 = vpack.c.bf16 %v2192_v15, %v2184_v35  ;;  %v2326_v17 = vpack.c.bf16 %v2190_v14, %v2182_v10 }
 0xaa4   :  { %2756 = vmatprep.mubr.bf16.mxu0 %v2326_v17  ;;  %2797 = vmatprep.mubr.bf16.mxu1 %v2328_v16  ;;  %v12105_v16 = vld [vmem:[#allocation23 + $0x100] sm:$0xff]  }
 0xaa5   :  { %2757 = vmatmul.mubr.bf16.vlgmr.msra.gmra.mxu0 %v2325_v20  ;;  %2798 = vmatmul.mubr.bf16.vlgmr.msra.gmra.mxu1 %v2327_v21  ;;  %v12106_v17 = vld [vmem:[#allocation23 + $0x180] sm:$0xff]  }
 0xaa6   :  { %10836 = vmatpush3.bf16.msra.mxu0 %v12077_v18  ;;  %10858 = vmatpush3.bf16.msra.mxu1 %v12078_v19 }
 0xaa7   :  { %10837 = vmatprep.subr.bf16.mxu0 %v12079_v22  ;;  %10859 = vmatprep.subr.bf16.mxu1 %v12080_v13 }
 0xaaa   :  { %10838 = vmatpush3.bf16.msra.mxu0 %v12081_v23  ;;  %10860 = vmatpush3.bf16.msra.mxu1 %v12082_v24 }
 0xaab   :  { %10839 = vmatprep.subr.bf16.mxu0 %v12083_v25  ;;  %10861 = vmatprep.subr.bf16.mxu1 %v12084_v26 }
 0xaae   :  { %10840 = vmatpush3.bf16.msra.mxu0 %v12085_v27  ;;  %10862 = vmatpush3.bf16.msra.mxu1 %v12086_v28 }
 0xaaf   :  { %10841 = vmatprep.subr.bf16.mxu0 %v12087_v29  ;;  %10863 = vmatprep.subr.bf16.mxu1 %v12088_v30 }
 0xab2   :  { %10842 = vmatpush3.bf16.msra.mxu0 %v12089_v31  ;;  %10864 = vmatpush3.bf16.msra.mxu1 %v12090_v32 }
 0xab3   :  { %10843 = vmatprep.subr.bf16.mxu0 %v12091_v33  ;;  %10865 = vmatprep.subr.bf16.mxu1 %v12092_v37 }
 0xab6   :  { %10844 = vmatpush3.bf16.msra.mxu0 %v12093_v34  ;;  %10866 = vmatpush3.bf16.msra.mxu1 %v12094_v36  ;;  %v10057_v36 = vld [vmem:[#allocation25] ss:$0 sm:$0xff] }
 0xab7   :  { %v2129_v52 = vpop.f32.mrf.mxu0  ;;  %v2172_v53 = vpop.f32.mrf.mxu1  ;;  %10845 = vmatprep.subr.bf16.mxu0 %v12095_v39  ;;  %10867 = vmatprep.subr.bf16.mxu1 %v12096_v38 }
 0xab8   :  { %v2130_v35 = vadd.f32 %v2129_v52, %v1668_v41  ;;  %v2173_v14 = vadd.f32 %v2172_v53, %v1676_v58 }
 0xab9   :  { %v2131_v59 = vpop.f32.mrf.mxu0  ;;  %v2174_v60 = vpop.f32.mrf.mxu1 }
 0xaba   :  { %10846 = vmatpush3.bf16.msra.mxu0 %v12097_v50  ;;  %10868 = vmatpush3.bf16.msra.mxu1 %v12098_v51  ;;  %v2132_v7 = vadd.f32 %v2131_v59, %v1672_v56  ;;  %v2175_v8 = vadd.f32 %v2174_v60, %v1680_v57  ;;  %v2185_v23 = vmax.f32 %v2130_v35, 0.0  ;;  %v2187_v24 = vmax.f32 %v2173_v14, 0.0 }
 0xabb   :  { %v2133_v63 = vpop.f32.mrf.mxu0  ;;  %v2176_v3 = vpop.f32.mrf.mxu1  ;;  %10847 = vmatprep.subr.bf16.mxu0 %v12099_v54  ;;  %10869 = vmatprep.subr.bf16.mxu1 %v12100_v55 }
 0xabc   :  { %v2134_v9 = vadd.f32 %v2133_v63, %v1668_v41  ;;  %v2177_v10 = vadd.f32 %v2176_v3, %v1676_v58  ;;  %v2186_v20 = vmax.f32 %v2132_v7, 0.0  ;;  %v2188_v21 = vmax.f32 %v2175_v8, 0.0 }
 0xabd   :  { %v2135_v15 = vpop.f32.mrf.mxu0  ;;  %v2178_v47 = vpop.f32.mrf.mxu1 }
 0xabe   :  { %v2136_v2 = vadd.f32 %v2135_v15, %v1672_v56  ;;  %v2179_v5 = vadd.f32 %v2178_v47, %v1680_v57  ;;  %10848 = vmatpush3.bf16.msra.mxu0 %v12101_v61  ;;  %10870 = vmatpush3.bf16.msra.mxu1 %v12102_v62  ;;  %v2193_v18 = vmax.f32 %v2134_v9, 0.0  ;;  %v2195_v19 = vmax.f32 %v2177_v10, 0.0  ;;  %v12107_v47 = vld [vmem:[#allocation13 + $0x168] ss:$12 sps:$4 sm:$0xff]  }
 0xabf   :  { %10849 = vmatprep.subr.bf16.mxu0 %v12103_v4  ;;  %10871 = vmatprep.subr.bf16.mxu1 %v12104_v6 }
 0xac0   :  { %v2194_v22 = vmax.f32 %v2136_v2, 0.0  ;;  %v2196_v13 = vmax.f32 %v2179_v5, 0.0  ;;  %v2329_v27 = vpack.c.bf16 %v2193_v18, %v2185_v23  ;;  %v2331_v28 = vpack.c.bf16 %v2195_v19, %v2187_v24  ;;  %v12109_v2 = vld [vmem:[#allocation13 + $0x16c] ss:$12 sps:$4 sm:$0xff]   ;;  %v12110_v5 = vld [vmem:[#allocation13 + $0x170] ss:$12 sps:$4 sm:$0xff]  }
 0xac1   :  { %v12114_v23 = vld [vmem:[#allocation13 + $0x158] ss:$12 sps:$4 sm:$0xff]   ;;  %v12117_v24 = vld [vmem:[#allocation13 + $0x13c] ss:$12 sps:$4 sm:$0xff]  }
 0xac2   :  { %v2332_v25 = vpack.c.bf16 %v2196_v13, %v2188_v21  ;;  %10850 = vmatpush3.bf16.msra.mxu0 %v12105_v16  ;;  %10872 = vmatpush3.bf16.msra.mxu1 %v12106_v17  ;;  %v2330_v26 = vpack.c.bf16 %v2194_v22, %v2186_v20  ;;  %v12113_v22 = vld [vmem:[#allocation13 + $0x154] ss:$12 sps:$4 sm:$0xff]   ;;  %v12111_v13 = vld [vmem:[#allocation13 + $0x150] ss:$12 sps:$4 sm:$0xff]  }
 0xac3   :  { %11364 = vmatprep.subr.bf16.mxu1 %v13207_v1  ;;  %3110 = vmatprep.subr.bf16.mxu0 %v12109_v2 }
 0xac4   :  { %2838 = vmatprep.mubr.bf16.mxu0 %v2330_v26  ;;  %2879 = vmatprep.mubr.bf16.mxu1 %v2332_v25  ;;  %v12115_v25 = vld [vmem:[#allocation13 + $0x138] ss:$12 sps:$4 sm:$0xff]   ;;  %v12118_v26 = vld [vmem:[#allocation13 + $0x140] ss:$12 sps:$4 sm:$0xff]  }
 0xac5   :  { %2839 = vmatmul.mubr.bf16.vlgmr.msra.gmra.mxu0 %v2329_v27  ;;  %2880 = vmatmul.mubr.bf16.vlgmr.msra.gmra.mxu1 %v2331_v28  ;;  %v12119_v27 = vld [vmem:[#allocation13 + $0x120] ss:$12 sps:$4 sm:$0xff]   ;;  %v12121_v28 = vld [vmem:[#allocation13 + $0x124] ss:$12 sps:$4 sm:$0xff]  }
 0xac6   :  { %3142 = vmatprep.mubr.bf16.mxu0 %v13206_v0  ;;  %11380 = vmatprep.mubr.msk.bf16.mxu1 %vm13208_vm0, %v13207_v1 }
 0xac7   :  { %11365 = vmatpush3.bf16.msra.mxu1 %v12110_v5  ;;  %3111 = vmatpush1.bf16.msra.mxu0 %v12107_v47 }
 0xac8   :  { %11366 = vmatprep.subr.bf16.mxu1 %v13207_v1  ;;  %3112 = vmatprep.subr.bf16.mxu0 %v12113_v22 }
 0xacb   :  { %3113 = vmatpush1.bf16.msra.mxu0 %v12111_v13  ;;  %11367 = vmatpush3.bf16.msra.mxu1 %v12114_v23 }
 0xacc   :  { %11368 = vmatprep.subr.bf16.mxu1 %v13207_v1  ;;  %3114 = vmatprep.subr.bf16.mxu0 %v12117_v24 }
 0xacf   :  { %3115 = vmatpush1.bf16.msra.mxu0 %v12115_v25  ;;  %11369 = vmatpush3.bf16.msra.mxu1 %v12118_v26 }
 0xad0   :  { %11370 = vmatprep.subr.bf16.mxu1 %v13207_v1  ;;  %3116 = vmatprep.subr.bf16.mxu0 %v12121_v28 }
 0xad3   :  { %3117 = vmatpush1.bf16.msra.mxu0 %v12119_v27 }
 0xb65   :  { %v10807_v29 = vpop.f32.mrf.mxu0  ;;  %v10829_v30 = vpop.f32.mrf.mxu1 }
 0xb67   :  { %v10808_v31 = vpop.f32.mrf.mxu0  ;;  %v10830_v32 = vpop.f32.mrf.mxu1 }
 0xb68   :  { %v10809_v34 = vadd.f32 %v10808_v31, %v10807_v29  ;;  %v10831_v54 = vadd.f32 %v10830_v32, %v10829_v30  ;;  %v12122_v29 = vld [vmem:[#allocation13 + $0x128] ss:$12 sps:$4 sm:$0xff]   ;;  %v12125_v30 = vld [vmem:[#allocation13 + $0x10c] ss:$12 sps:$4 sm:$0xff]   ;;  %v12126_v32 = vld [vmem:[#allocation13 + $0x110] ss:$12 sps:$4 sm:$0xff]  }
 0xb69   :  { %v10810_v33 = vpop.f32.mrf.mxu0  ;;  %v10832_v37 = vpop.f32.mrf.mxu1  ;;  %11371 = vmatpush3.bf16.msra.mxu1 %v12122_v29  ;;  %v12123_v31 = vld [vmem:[#allocation13 + $0x108] ss:$12 sps:$4 sm:$0xff]   ;;  %3118 = vmatprep.subr.bf16.mxu0 %v12125_v30 }
 0xb6a   :  { %v2759_v50 = vadd.f32 %v10809_v34, %v10057_v36  ;;  %11372 = vmatprep.subr.bf16.mxu1 %v13207_v1  ;;  %3119 = vmatpush1.bf16.msra.mxu0 %v12123_v31  ;;  %v12130_v34 = vld [vmem:[#allocation13 + $0xf8] ss:$12 sps:$4 sm:$0xff]  }
 0xb6b   :  { %v10811_v39 = vpop.f32.mrf.mxu0  ;;  %v10833_v38 = vpop.f32.mrf.mxu1 }
 0xb6c   :  { %v10812_v51 = vadd.f32 %v10811_v39, %v10810_v33  ;;  %v2800_v57 = vadd.f32 %v10831_v54, %v2759_v50  ;;  %v10834_v61 = vadd.f32 %v10833_v38, %v10832_v37  ;;  %v12129_v33 = vld [vmem:[#allocation13 + $0xf4] ss:$12 sps:$4 sm:$0xff]   ;;  %v12127_v37 = vld [vmem:[#allocation13 + $0xf0] ss:$12 sps:$4 sm:$0xff]   ;;  %v12131_v39 = vld [vmem:[#allocation13 + $0xd8] ss:$12 sps:$4 sm:$0xff]  }
 0xb6d   :  { %11373 = vmatpush3.bf16.msra.mxu1 %v12126_v32  ;;  %3120 = vmatprep.subr.bf16.mxu0 %v12129_v33  ;;  %v12134_v38 = vld [vmem:[#allocation13 + $0xe0] ss:$12 sps:$4 sm:$0xff]   ;;  %v12137_v50 = vld [vmem:[#allocation13 + $0xc4] ss:$12 sps:$4 sm:$0xff]  }
 0xb6e   :  { %v2762_v41 = vadd.f32 %v10812_v51, %v10057_v36  ;;  %11374 = vmatprep.subr.bf16.mxu1 %v13207_v1  ;;  %v12133_v36 = vld [vmem:[#allocation13 + $0xdc] ss:$12 sps:$4 sm:$0xff]   ;;  %3121 = vmatpush1.bf16.msra.mxu0 %v12127_v37  ;;  %v12135_v51 = vld [vmem:[#allocation13 + $0xc0] ss:$12 sps:$4 sm:$0xff]  }
 0xb6f   :  { %3122 = vmatprep.subr.bf16.mxu0 %v12133_v36 }
 0xb70   :  { %v2803_v6 = vadd.f32 %v10834_v61, %v2762_v41 }
 0xb71   :  { %11375 = vmatpush3.bf16.msra.mxu1 %v12130_v34 }
 0xb72   :  { %11376 = vmatprep.subr.bf16.mxu1 %v13207_v1  ;;  %3123 = vmatpush1.bf16.msra.mxu0 %v12131_v39 }
 0xb73   :  { %3124 = vmatprep.subr.bf16.mxu0 %v12137_v50 }
 0xb75   :  { %11377 = vmatpush3.bf16.msra.mxu1 %v12134_v38 }
 0xb76   :  { %11378 = vmatprep.subr.bf16.mxu1 %v13207_v1  ;;  %3125 = vmatpush1.bf16.msra.mxu0 %v12135_v51 }
 0xb85   :  { %v10851_v52 = vpop.f32.mrf.mxu0  ;;  %v10873_v53 = vpop.f32.mrf.mxu1 }
 0xb87   :  { %v10852_v55 = vpop.f32.mrf.mxu0  ;;  %v10874_v56 = vpop.f32.mrf.mxu1 }
 0xb88   :  { %v10853_v58 = vadd.f32 %v10852_v55, %v10851_v52  ;;  %v10875_v63 = vadd.f32 %v10874_v56, %v10873_v53  ;;  %v12138_v52 = vld [vmem:[#allocation13 + $0xc8] ss:$12 sps:$4 sm:$0xff]  }
 0xb89   :  { %v10854_v59 = vpop.f32.mrf.mxu0  ;;  %v10876_v60 = vpop.f32.mrf.mxu1  ;;  %11379 = vmatpush3.bf16.msra.mxu1 %v12138_v52 }
 0xb8a   :  { %v2841_v62 = vadd.f32 %v10853_v58, %v2800_v57 }
 0xb8b   :  { %v10855_v3 = vpop.f32.mrf.mxu0  ;;  %v10877_v4 = vpop.f32.mrf.mxu1 }
 0xb8c   :  { %v2882_v7 = vadd.f32 %v10875_v63, %v2841_v62  ;;  %v10856_v8 = vadd.f32 %v10855_v3, %v10854_v59  ;;  %v10878_v10 = vadd.f32 %v10877_v4, %v10876_v60  ;;  %v10122_v60 = vld [vmem:[#allocation26] ss:$0 sm:$0xff]  ;;  %v10123_v3 = vld [vmem:[#allocation28] ss:$0 sm:$0xff] }
 0xb8e   :  { %v2844_v9 = vadd.f32 %v10856_v8, %v2803_v6  ;;  %v2888_v35 = vadd.f32 %v2882_v7, %v13620_v11 }
 0xb90   :  { %v2885_v14 = vadd.f32 %v10878_v10, %v2844_v9  ;;  %2892 = vadd.xlane.f32.xlu1 %v2888_v35  ;;  %v2965_v9 = vld [vmem:[#allocation14 + $0x3] sm:$0x7] }
 0xb91   :  { %v2974_v5 = vrot.slane %v2965_v9, %v13508_v45 }
 0xb92   :  { %v2889_v15 = vadd.f32 %v2885_v14, %v13622_v12  ;;  %v2970_v14 = vrot.slane %v2965_v9, %v13502_v42 }
 0xb94   :  { %2894 = vadd.xlane.f32.xlu0 %v2889_v15 }
 0xc19   :  { %v2893_v16 = vpop.xlane.xlu1 %2892 }
 0xc1a   :  { %v2896_v17 = vmul.f32 0.0078125, %v2893_v16 }
 0xc1c   :  { %v13674_v18 = vsub.f32 %v2888_v35, %v2896_v17 }
 0xc1d   :  { %v2895_v19 = vpop.xlane.xlu0 %2894 }
 0xc1e   :  { %v2897_v20 = vmul.f32 0.0078125, %v2895_v19  ;;  %v2900_v11 = vmul.f32 %v13674_v18, %v13674_v18 }
 0xc20   :  { %2902 = vadd.xlane.f32.xlu1 %v2900_v11  ;;  %v13678_v12 = vsub.f32 %v2889_v15, %v2897_v20  ;;  %v2978_v15 = vrot.slane %v2965_v9, %v13505_v44 }
 0xc22   :  { %v2901_v21 = vmul.f32 %v13678_v12, %v13678_v12 }
 0xc24   :  { %2904 = vadd.xlane.f32.xlu0 %v2901_v21 }
 0xca9   :  { %v2903_v53 = vpop.xlane.xlu1 %2902 }
 0xcaa   :  { %v2906_v54 = vmul.f32 0.0078125, %v2903_v53 }
 0xcac   :  { %v2908_v55 = vadd.f32 1e-05, %v2906_v54 }
 0xcad   :  { %v2905_v56 = vpop.xlane.xlu0 %2904 }
 0xcae   :  { %12477 = vrsqrt.f32 %v2908_v55  ;;  %v2907_v57 = vmul.f32 0.0078125, %v2905_v56 }
 0xcb0   :  { %v2909_v41 = vadd.f32 1e-05, %v2907_v57 }
 0xcb2   :  { %12479 = vrsqrt.f32 %v2909_v41 }
 0xcbb   :  { %v12478_v58 = vpop.eup %12477 }
 0xcbc   :  { %v2912_v59 = vmul.f32 %v12478_v58, %v13674_v18 }
 0xcbe   :  { %v2920_v63 = vmul.f32 %v10122_v60, %v2912_v59 }
 0xcbf   :  { %v12480_v61 = vpop.eup %12479 }
 0xcc0   :  { %v2913_v62 = vmul.f32 %v12480_v61, %v13678_v12  ;;  %v13690_v6 = vadd.f32 %v10123_v3, %v2920_v63 }
 0xcc2   :  { %v2921_v4 = vmul.f32 %v10122_v60, %v2913_v62 }
 0xcc4   :  { %v13692_v7 = vadd.f32 %v10123_v3, %v2921_v4 }
 0xcc6   :  { %v2963_v8 = vpack.c.bf16 %v13692_v7, %v13690_v6 }
 0xcc8   :  { %3143 = vmatmul.mubr.bf16.vlgmr.msra.gmra.mxu0 %v2963_v8  ;;  %11381 = vmatmul.mubr.bf16.vlgmr.msra.gmra.mxu1 %v2963_v8 }
 0xd88   :  { %v3144_v10 = vpop.f32.mrf.mxu0  ;;  %v3187_v35 = vpop.f32.mrf.mxu1 }
 0xd89   :  { %v3145_v18 = vadd.f32 %v3144_v10, %v2970_v14  ;;  %v3188_v11 = vadd.f32 %v3187_v35, %v2978_v15  ;;  %v12603_v35 = vld [vmem:[%s14288_s15] sm:$0xff] }
 0xd8a   :  { %v3146_v47 = vpop.f32.mrf.mxu0  ;;  %v11382_v2 = vpop.f32.mrf.mxu1 }
 0xd8b   :  { %v3147_v22 = vadd.f32 %v3146_v47, %v2974_v5  ;;  %v12604_v47 = vld [vmem:[%s14288_s15 + $0x10] sm:$0xff] }
 0xd8c   :  { %v3148_v16 = vpop.f32.mrf.mxu0  ;;  %v3190_v17 = vpop.f32.mrf.mxu1 }
 0xd8d   :  { %v3149_v19 = vadd.f32 %v3148_v16, %v2970_v14  ;;  %v3191_v20 = vadd.f32 %v3190_v17, %v2978_v15  ;;  %v12605_v17 = vld [vmem:[%s14288_s15 + $0x8] sm:$0xff] }
 0xd8e   :  { %v3150_v12 = vpop.f32.mrf.mxu0  ;;  %v11383_v21 = vpop.f32.mrf.mxu1 }
 0xd8f   :  { %v3151_v13 = vadd.f32 %v3150_v12, %v2974_v5  ;;  %v3254_v23 = vpack.c.bf16 %v3149_v19, %v3145_v18  ;;  %v13699_v24 = vpack.i.bf16 %v3191_v20, %v3188_v11  ;;  %v13702_v27 = vpack.c.bf16 %v3191_v20, %v3188_v11  ;;  %v12606_v20 = vld [vmem:[%s14288_s15 + $0x18] sm:$0xff] }
 0xd90   :  { %v11819_v28 = vpack.i.bf16 %v3149_v19, %v3145_v18 }
 0xd91   :  { %11392 = vmatprep.mubr.msk.bf16.mxu0 %vm1131_vm1, %v3254_v23  ;;  %v11804_v25 = vpack.i.bf16 %v3151_v13, %v3147_v22  ;;  %v3258_v26 = vpack.c.bf16 %v3151_v13, %v3147_v22  ;;  %v12607_v13 = vld [vmem:[%s14288_s15 + $0x20] sm:$0xff] }
 0xd93   :  { %11805 = vrot.lane.b32.xlu0 %v11804_v25, %s13187_s20  ;;  %11800 = vrot.lane.b32.xlu1 %v11804_v25, %s13184_s26  ;;  %v3275_v57 = vsel %vm1131_vm1, %v3258_v26, 0 }
 0xd97   :  { %11810 = vrot.lane.b32.xlu1 %v11804_v25, %s13209_s11  ;;  %11820 = vrot.lane.b32.xlu0 %v11819_v28, %s13187_s20 }
 0xd9b   :  { %11815 = vrot.lane.b32.xlu1 %v11819_v28, %s13209_s11 }
 0xd9f   :  { %11825 = vrot.lane.b32.xlu1 %v11819_v28, %s13184_s26 }
 0xe05   :  { %v11806_v29 = vpop.permute.xlu0 %11805  ;;  %v11801_v30 = vpop.permute.xlu1 %11800 }
 0xe06   :  { %v11803_v31 = vunpack.i.h.bf16 %v11801_v30  ;;  %v11802_v32 = vunpack.i.l.bf16 %v11801_v30  ;;  %v11808_v33 = vunpack.i.h.bf16 %v11806_v29  ;;  %v11807_v37 = vunpack.i.l.bf16 %v11806_v29 }
 0xe08   :  { %v3261_v34 = vpack.c.bf16 %v11803_v31, %v11802_v32  ;;  %v3260_v36 = vpack.c.bf16 %v11808_v33, %v11807_v37  ;;  %v12609_v32 = vld [vmem:[%s14288_s15 + $0x28] sm:$0xff]  ;;  %v12610_v37 = vld [vmem:[%s14288_s15 + $0x38] sm:$0xff] }
 0xe09   :  { %v11811_v38 = vpop.permute.xlu1 %11810  ;;  %v11821_v56 = vpop.permute.xlu0 %11820 }
 0xe0a   :  { %11648 = vmatprep.subr.msk.bf16.mxu0 %vm1131_vm1, %v3261_v34  ;;  %v3284_v39 = vsel %vm1131_vm1, %v3261_v34, 0  ;;  %v11813_v50 = vunpack.i.h.bf16 %v11811_v38  ;;  %v11812_v51 = vunpack.i.l.bf16 %v11811_v38  ;;  %v3281_v53 = vsel %vm1131_vm1, %v3260_v36, 0 }
 0xe0b   :  { %11385 = vmatpush3.bf16.xpose.msra.mxu0 %v3284_v39  ;;  %v11823_v59 = vunpack.i.h.bf16 %v11821_v56  ;;  %v11822_v60 = vunpack.i.l.bf16 %v11821_v56 }
 0xe0c   :  { %11649 = vmatprep.subr.msk.bf16.mxu0 %vm1131_vm1, %v3260_v36  ;;  %v3259_v52 = vpack.c.bf16 %v11813_v50, %v11812_v51 }
 0xe0d   :  { %v11816_v55 = vpop.permute.xlu1 %11815  ;;  %v3256_v62 = vpack.c.bf16 %v11823_v59, %v11822_v60 }
 0xe0e   :  { %v3278_v54 = vsel %vm1131_vm1, %v3259_v52, 0  ;;  %v11818_v41 = vunpack.i.h.bf16 %v11816_v55  ;;  %v11817_v58 = vunpack.i.l.bf16 %v11816_v55 }
 0xe10   :  { %v3255_v61 = vpack.c.bf16 %v11818_v41, %v11817_v58 }
 0xe11   :  { %v11826_v63 = vpop.permute.xlu1 %11825 }
 0xe12   :  { %v11828_v3 = vunpack.i.h.bf16 %v11826_v63  ;;  %v11827_v4 = vunpack.i.l.bf16 %v11826_v63 }
 0xe13   :  { %11387 = vmatpush3.bf16.xpose.msra.mxu0 %v3281_v53 }
 0xe14   :  { %11650 = vmatprep.subr.msk.bf16.mxu0 %vm1131_vm1, %v3259_v52  ;;  %v3257_v8 = vpack.c.bf16 %v11828_v3, %v11827_v4 }
 0xe1b   :  { %11389 = vmatpush3.bf16.xpose.msra.mxu0 %v3278_v54 }
 0xe1c   :  { %11651 = vmatprep.subr.msk.bf16.mxu0 %vm1131_vm1, %v3258_v26  ;;  %v12608_v26 = vld [vmem:[%s14288_s15 + $0x30] sm:$0xff] }
 0xe23   :  { %11391 = vmatpush3.bf16.xpose.msra.mxu0 %v3275_v57 }
 0xe24   :  { %11416 = vmatprep.subr.bf16.mxu0 %v13207_v1 }
 0xe2a   :  { %11393 = vmatmul.mubr.msk.bf16.vlgmr.msra.gmra.mxu0 %vm1131_vm1, %v3255_v61 }
 0xe2b   :  { %11396 = vmatprep.mubr.msk.bf16.mxu0 %vm1131_vm1, %v3256_v62 }
 0xe32   :  { %11397 = vmatmul.mubr.msk.bf16.gmra.mxu0 %vm1131_vm1, %v3257_v8 }
 0xe33   :  { %11432 = vmatprep.mubr.msk.bf16.mxu0 %vm13208_vm0, %v13207_v1 }
 0xeea   :  { %v11394_v9 = vpop.f32.mrf.mxu0 }
 0xeeb   :  { %v3329_v2 = vadd.f32 %v12604_v47, %v11394_v9 }
 0xeec   :  { %v3320_v10 = vpop.f32.mrf.mxu0 }
 0xeed   :  { %v3321_v14 = vadd.f32 %v12603_v35, %v3320_v10  ;;  %v3357_v21 = vsel %vm1221_vm2, %v3329_v2, -inf }
 0xeee   :  { %v11395_v15 = vpop.f32.mrf.mxu0 }
 0xeef   :  { %v3351_v5 = vsel %vm1221_vm2, %v3321_v14, -inf  ;;  %v3332_v11 = vadd.f32 %v12606_v20, %v11395_v15 }
 0xef0   :  { %v3323_v16 = vpop.f32.mrf.mxu0  ;;  %3352 = vmax.xlane.f32.xlu0 %v3351_v5 }
 0xef1   :  { %v3324_v18 = vadd.f32 %v12605_v17, %v3323_v16  ;;  %v3360_v30 = vsel %vm1221_vm2, %v3332_v11, -inf }
 0xef2   :  { %v11398_v19 = vpop.f32.mrf.mxu0 }
 0xef3   :  { %v3354_v12 = vsel %vm1221_vm2, %v3324_v18, -inf  ;;  %v3345_v28 = vadd.f32 %v12608_v26, %v11398_v19 }
 0xef4   :  { %v3336_v22 = vpop.f32.mrf.mxu0  ;;  %3355 = vmax.xlane.f32.xlu1 %v3354_v12  ;;  %3358 = vmax.xlane.f32.xlu0 %v3357_v21 }
 0xef5   :  { %v3337_v23 = vadd.f32 %v12607_v13, %v3336_v22  ;;  %v3369_v36 = vsel %vm1221_vm2, %v3345_v28, -inf }
 0xef6   :  { %v11399_v25 = vpop.f32.mrf.mxu0 }
 0xef7   :  { %v3363_v29 = vsel %vm1221_vm2, %v3337_v23, -inf  ;;  %v3348_v34 = vadd.f32 %v12610_v37, %v11399_v25 }
 0xef8   :  { %v3339_v31 = vpop.f32.mrf.mxu0  ;;  %3364 = vmax.xlane.f32.xlu1 %v3363_v29  ;;  %3361 = vmax.xlane.f32.xlu0 %v3360_v30 }
 0xef9   :  { %v3340_v33 = vadd.f32 %v12609_v32, %v3339_v31  ;;  %v3372_v38 = vsel %vm1221_vm2, %v3348_v34, -inf }
 0xefb   :  { %v3366_v39 = vsel %vm1221_vm2, %v3340_v33, -inf }
 0xefc   :  { %3370 = vmax.xlane.f32.xlu1 %v3369_v36  ;;  %3367 = vmax.xlane.f32.xlu0 %v3366_v39 }
 0xf00   :  { %3373 = vmax.xlane.f32.xlu0 %v3372_v38 }
 0xf0d   :  { %11830 = vrot.lane.b32.xlu1 %v13699_v24, %s13184_s26 }
 0xf79   :  { %v3353_v50 = vpop.xlane.xlu0 %3352 }
 0xf7a   :  { %v3375_v51 = vsub.f32 %v3321_v14, %v3353_v50 }
 0xf7c   :  { %v3383_v56 = vmul.f32 1.442695, %v3375_v51 }
 0xf7d   :  { %v3356_v52 = vpop.xlane.xlu1 %3355  ;;  %v3359_v53 = vpop.xlane.xlu0 %3358 }
 0xf7e   :  { %v3377_v54 = vsub.f32 %v3329_v2, %v3359_v53  ;;  %v3376_v57 = vsub.f32 %v3324_v18, %v3356_v52 }
 0xf80   :  { %v3387_v55 = vmul.f32 1.442695, %v3377_v54  ;;  %v3385_v61 = vmul.f32 1.442695, %v3376_v57 }
 0xf81   :  { %v3365_v41 = vpop.xlane.xlu1 %3364  ;;  %v3362_v58 = vpop.xlane.xlu0 %3361 }
 0xf82   :  { %v3378_v59 = vsub.f32 %v3332_v11, %v3362_v58  ;;  %12481 = vpow2.f32 %v3387_v55  ;;  %v3379_v62 = vsub.f32 %v3337_v23, %v3365_v41 }
 0xf83   :  { %12483 = vpow2.f32 %v3383_v56 }
 0xf84   :  { %v3389_v60 = vmul.f32 1.442695, %v3378_v59  ;;  %v3391_v9 = vmul.f32 1.442695, %v3379_v62 }
 0xf85   :  { %v3371_v63 = vpop.xlane.xlu1 %3370  ;;  %v3368_v3 = vpop.xlane.xlu0 %3367 }
 0xf86   :  { %v3381_v4 = vsub.f32 %v3345_v28, %v3371_v63  ;;  %12485 = vpow2.f32 %v3389_v60  ;;  %v3380_v10 = vsub.f32 %v3340_v33, %v3368_v3 }
 0xf87   :  { %12487 = vpow2.f32 %v3385_v61 }
 0xf88   :  { %v3395_v8 = vmul.f32 1.442695, %v3381_v4  ;;  %v3393_v17 = vmul.f32 1.442695, %v3380_v10 }
 0xf89   :  { %v11831_v35 = vpop.permute.xlu1 %11830  ;;  %v3374_v14 = vpop.xlane.xlu0 %3373 }
 0xf8a   :  { %12489 = vpow2.f32 %v3395_v8  ;;  %v11833_v15 = vunpack.i.h.bf16 %v11831_v35  ;;  %v11832_v47 = vunpack.i.l.bf16 %v11831_v35  ;;  %v3382_v2 = vsub.f32 %v3348_v34, %v3374_v14 }
 0xf8b   :  { %12491 = vpow2.f32 %v3391_v9 }
 0xf8c   :  { %v3446_v5 = vpack.c.bf16 %v11833_v15, %v11832_v47  ;;  %v3397_v16 = vmul.f32 1.442695, %v3382_v2 }
 0xf8e   :  { %12493 = vpow2.f32 %v3397_v16  ;;  %11400 = vmatprep.subr.bf16.mxu1 %v3446_v5 }
 0xf8f   :  { %11401 = vmatpush3.bf16.msra.mxu1 %v3446_v5  ;;  %v13742_v18 = vpop.eup %12481  ;;  %12495 = vpow2.f32 %v3393_v17 }
 0xf90   :  { %v3405_v19 = vsel %vm1221_vm2, %v13742_v18, 0.0  ;;  %v12484_v20 = vpop.eup %12483 }
 0xf91   :  { %3406 = vadd.xlane.f32.xlu1 %v3405_v19  ;;  %v3399_v12 = vsel %vm1221_vm2, %v12484_v20, 0.0 }
 0xf93   :  { %v12486_v11 = vpop.eup %12485 }
 0xf94   :  { %v3408_v21 = vsel %vm1221_vm2, %v12486_v11, 0.0  ;;  %v12488_v22 = vpop.eup %12487 }
 0xf95   :  { %3400 = vadd.xlane.f32.xlu1 %v3399_v12  ;;  %3409 = vadd.xlane.f32.xlu0 %v3408_v21  ;;  %v3402_v25 = vsel %vm1221_vm2, %v12488_v22, 0.0  ;;  %v12143_v12 = vld [vmem:[%s14289_s18 + $0x58] sm:$0xff]   ;;  %v12144_v21 = vld [vmem:[%s14289_s18 + $0x50] sm:$0xff]  }
 0xf97   :  { %v13748_v13 = vpop.eup %12489 }
 0xf98   :  { %v3417_v23 = vsel %vm1221_vm2, %v13748_v13, 0.0  ;;  %v12492_v26 = vpop.eup %12491 }
 0xf99   :  { %3418 = vadd.xlane.f32.xlu1 %v3417_v23  ;;  %3403 = vadd.xlane.f32.xlu0 %v3402_v25  ;;  %v3411_v30 = vsel %vm1221_vm2, %v12492_v26, 0.0  ;;  %v12145_v23 = vld [vmem:[%s14289_s18 + $0x48] sm:$0xff]  }
 0xf9b   :  { %v12494_v28 = vpop.eup %12493 }
 0xf9c   :  { %v3420_v29 = vsel %vm1221_vm2, %v12494_v28, 0.0  ;;  %v12496_v31 = vpop.eup %12495 }
 0xf9d   :  { %3412 = vadd.xlane.f32.xlu1 %v3411_v30  ;;  %3421 = vadd.xlane.f32.xlu0 %v3420_v29  ;;  %v3414_v32 = vsel %vm1221_vm2, %v12496_v31, 0.0  ;;  %v12146_v29 = vld [vmem:[%s14289_s18 + $0x40] sm:$0xff]  }
 0xfa1   :  { %3415 = vadd.xlane.f32.xlu0 %v3414_v32 }
 0xfae   :  { %11840 = vrot.lane.b32.xlu1 %v13699_v24, %s13209_s11 }
 0xfb7   :  { %11835 = vrot.lane.b32.xlu0 %v13699_v24, %s13187_s20 }
0x101a   :  { %v3407_v33 = vpop.xlane.xlu1 %3406 }
0x101e   :  { %v3401_v37 = vpop.xlane.xlu1 %3400  ;;  %v3410_v34 = vpop.xlane.xlu0 %3409 }
0x101f   :  { %12497 = vrcp.f32 %v3401_v37 }
0x1022   :  { %v3419_v36 = vpop.xlane.xlu1 %3418  ;;  %v3404_v39 = vpop.xlane.xlu0 %3403 }
0x1023   :  { %12499 = vrcp.f32 %v3404_v39 }
0x1024   :  { %12501 = vrcp.f32 %v3410_v34 }
0x1025   :  { %12503 = vrcp.f32 %v3407_v33 }
0x1026   :  { %v3413_v38 = vpop.xlane.xlu1 %3412  ;;  %v3422_v50 = vpop.xlane.xlu0 %3421 }
0x102a   :  { %v3416_v51 = vpop.xlane.xlu0 %3415  ;;  %v11841_v52 = vpop.permute.xlu1 %11840 }
0x102b   :  { %12505 = vrcp.f32 %v3416_v51  ;;  %v11843_v55 = vunpack.i.h.bf16 %v11841_v52  ;;  %v11842_v56 = vunpack.i.l.bf16 %v11841_v52 }
0x102c   :  { %12507 = vrcp.f32 %v3413_v38  ;;  %v12498_v54 = vpop.eup %12497 }
0x102d   :  { %12509 = vrcp.f32 %v3422_v50  ;;  %v3431_v59 = vmul.f32 %v12498_v54, %v12484_v20  ;;  %v3444_v61 = vpack.c.bf16 %v11843_v55, %v11842_v56  ;;  %v12141_v20 = vld [vmem:[%s14289_s18 + $0x68] sm:$0xff]  }
0x102e   :  { %v11836_v53 = vpop.permute.xlu0 %11835  ;;  %12511 = vrcp.f32 %v3419_v36 }
0x102f   :  { %v11838_v24 = vunpack.i.h.bf16 %v11836_v53  ;;  %v11837_v57 = vunpack.i.l.bf16 %v11836_v53 }
0x1030   :  { %v12500_v41 = vpop.eup %12499 }
0x1031   :  { %v3445_v58 = vpack.c.bf16 %v11838_v24, %v11837_v57  ;;  %v3432_v60 = vmul.f32 %v12500_v41, %v12488_v22  ;;  %v12502_v63 = vpop.eup %12501 }
0x1032   :  { %v12504_v3 = vpop.eup %12503  ;;  %v3434_v9 = vmul.f32 %v12502_v63, %v12486_v11  ;;  %v12142_v11 = vld [vmem:[%s14289_s18 + $0x60] sm:$0xff]  }
0x1033   :  { %11402 = vmatprep.subr.bf16.mxu1 %v3445_v58  ;;  %v3439_v62 = vpack.c.bf16 %v3432_v60, %v3431_v59  ;;  %v3433_v35 = vmul.f32 %v12504_v3, %v13742_v18  ;;  %v12140_v18 = vld [vmem:[%s14289_s18 + $0x70] sm:$0xff]  }
0x1034   :  { %11403 = vmatpush3.bf16.msra.mxu1 %v3445_v58 }
0x1035   :  { %11404 = vmatprep.subr.bf16.mxu1 %v3444_v61  ;;  %11408 = vmatprep.mubr.msk.bf16.mxu1 %vm1221_vm2, %v3439_v62  ;;  %v3440_v15 = vpack.c.bf16 %v3434_v9, %v3433_v35 }
0x1038   :  { %v12506_v4 = vpop.eup %12505  ;;  %11405 = vmatpush3.bf16.msra.mxu1 %v3444_v61  ;;  %v10172_v61 = vld [vmem:[#allocation16 + $0x1] ss:$0 sm:$0xff] }
0x1039   :  { %v12508_v8 = vpop.eup %12507  ;;  %11406 = vmatprep.subr.bf16.mxu1 %v13702_v27  ;;  %v3436_v10 = vmul.f32 %v12506_v4, %v12496_v31 }
0x103a   :  { %v3435_v14 = vmul.f32 %v12508_v8, %v12492_v26  ;;  %v12510_v47 = vpop.eup %12509 }
0x103b   :  { %v12512_v5 = vpop.eup %12511  ;;  %v3438_v16 = vmul.f32 %v12510_v47, %v12494_v28  ;;  %v3771_v47 = vld [vmem:[#allocation20 + $0x3c8] sm:$0xff] }
0x103c   :  { %11407 = vmatpush3.bf16.msra.mxu1 %v13702_v27  ;;  %v3441_v2 = vpack.c.bf16 %v3436_v10, %v3435_v14  ;;  %v3437_v17 = vmul.f32 %v12512_v5, %v13748_v13  ;;  %v12139_v27 = vld [vmem:[%s14289_s18 + $0x78] sm:$0xff]   ;;  %v3770_v14 = vld [vmem:[#allocation20 + $0x3c0] sm:$0xff] }
0x103d   :  { %11417 = vmatpush3.bf16.msra.mxu0 %v12139_v27 }
0x103e   :  { %v3442_v19 = vpack.c.bf16 %v3438_v16, %v3437_v17  ;;  %11418 = vmatprep.subr.bf16.mxu0 %v13207_v1  ;;  %v3775_v16 = vld [vmem:[#allocation20 + $0x3e8] sm:$0xff] }
0x103f   :  { %11409 = vmatmul.mubr.msk.bf16.vlgmr.msra.gmra.mxu1 %vm1221_vm2, %v3440_v15  ;;  %v3774_v15 = vld [vmem:[#allocation20 + $0x3e0] sm:$0xff]  ;;  %v10241_v17 = vcombine.low %v3771_v47, %v3775_v16 }
0x1040   :  { %11412 = vmatprep.mubr.msk.bf16.mxu1 %vm1221_vm2, %v3441_v2  ;;  %v10239_v2 = vcombine.low %v3770_v14, %v3774_v15  ;;  %v10240_v5 = vcombine.high %v3770_v14, %v3774_v15 }
0x1041   :  { %11419 = vmatpush3.bf16.msra.mxu0 %v12140_v18 }
0x1042   :  { %11420 = vmatprep.subr.bf16.mxu0 %v13207_v1  ;;  %4142 = vmatprep.subr.bf16.mxu1 %v10240_v5  ;;  %v3723_v5 = vld [vmem:[#allocation20 + $0x248] sm:$0xff] }
0x1043   :  { %4143 = vmatpush1.bf16.msra.mxu1 %v10239_v2  ;;  %v3726_v2 = vld [vmem:[#allocation20 + $0x260] sm:$0xff] }
0x1045   :  { %11421 = vmatpush3.bf16.msra.mxu0 %v12141_v20 }
0x1046   :  { %11422 = vmatprep.subr.bf16.mxu0 %v13207_v1 }
0x1047   :  { %11413 = vmatmul.mubr.msk.bf16.gmra.mxu1 %vm1221_vm2, %v3442_v19  ;;  %v10242_v19 = vcombine.high %v3771_v47, %v3775_v16  ;;  %v3722_v47 = vld [vmem:[#allocation20 + $0x240] sm:$0xff] }
0x1048   :  { %4174 = vmatprep.mubr.bf16.mxu1 %v13206_v0  ;;  %v10192_v16 = vcombine.high %v3722_v47, %v3726_v2 }
0x1049   :  { %11423 = vmatpush3.bf16.msra.mxu0 %v12142_v11 }
0x104a   :  { %11424 = vmatprep.subr.bf16.mxu0 %v13207_v1 }
0x104d   :  { %11425 = vmatpush3.bf16.msra.mxu0 %v12143_v12 }
0x104e   :  { %11426 = vmatprep.subr.bf16.mxu0 %v13207_v1 }
0x1051   :  { %11427 = vmatpush3.bf16.msra.mxu0 %v12144_v21 }
0x1052   :  { %11428 = vmatprep.subr.bf16.mxu0 %v13207_v1 }
0x1055   :  { %11429 = vmatpush3.bf16.msra.mxu0 %v12145_v23  ;;  %v3763_v23 = vld [vmem:[#allocation20 + $0x388] sm:$0xff] }
0x1056   :  { %11430 = vmatprep.subr.bf16.mxu0 %v13207_v1 }
0x1059   :  { %11431 = vmatpush3.bf16.msra.mxu0 %v12146_v29 }
0x105a   :  { %4185 = vmatprep.subr.bf16.mxu0 %v10242_v19  ;;  %v10191_v19 = vcombine.low %v3722_v47, %v3726_v2  ;;  %v3748_v2 = vld [vmem:[#allocation20 + $0x310] sm:$0xff] }
0x10ff   :  { %v11410_v22 = vpop.f32.mrf.mxu1 }
0x1101   :  { %v3493_v13 = vpop.f32.mrf.mxu1 }
0x1103   :  { %v11411_v25 = vpop.f32.mrf.mxu1 }
0x1104   :  { %v11844_v26 = vpack.i.bf16 %v11411_v25, %v11410_v22  ;;  %v3762_v22 = vld [vmem:[#allocation20 + $0x380] sm:$0xff] }
0x1105   :  { %v3496_v28 = vpop.f32.mrf.mxu1 }
0x1106   :  { %11845 = vrot.lane.b32.xlu1 %v11844_v26, %s13184_s26  ;;  %v3767_v26 = vld [vmem:[#allocation20 + $0x3a8] sm:$0xff] }
0x1107   :  { %v11414_v30 = vpop.f32.mrf.mxu1  ;;  %v10233_v29 = vcombine.low %v3763_v23, %v3767_v26 }
0x1109   :  { %v3509_v31 = vpop.f32.mrf.mxu1 }
0x110b   :  { %v11415_v32 = vpop.f32.mrf.mxu1 }
0x110c   :  { %v11854_v33 = vpack.i.bf16 %v11415_v32, %v11414_v30  ;;  %v10234_v30 = vcombine.high %v3763_v23, %v3767_v26  ;;  %v3758_v32 = vld [vmem:[#allocation20 + $0x360] sm:$0xff]  ;;  %v3772_v23 = vld [vmem:[#allocation20 + $0x3d0] sm:$0xff] }
0x110d   :  { %v3512_v37 = vpop.f32.mrf.mxu1 }
0x110e   :  { %v11849_v34 = vpack.i.bf16 %v3512_v37, %v3509_v31  ;;  %11855 = vrot.lane.b32.xlu1 %v11854_v33, %s13209_s11  ;;  %v3754_v31 = vld [vmem:[#allocation20 + $0x340] sm:$0xff]  ;;  %v3755_v33 = vld [vmem:[#allocation20 + $0x348] sm:$0xff] }
0x110f   :  { %v10224_v37 = vcombine.high %v3754_v31, %v3758_v32 }
0x1110   :  { %11850 = vrot.lane.b32.xlu0 %v11849_v34, %s13187_s20  ;;  %v3759_v34 = vld [vmem:[#allocation20 + $0x368] sm:$0xff] }
0x1178   :  { %v11846_v36 = vpop.permute.xlu1 %11845 }
0x1179   :  { %v11848_v39 = vunpack.i.h.bf16 %v11846_v36  ;;  %v11847_v38 = vunpack.i.l.bf16 %v11846_v36  ;;  %v10223_v36 = vcombine.low %v3754_v31, %v3758_v32  ;;  %v3773_v31 = vld [vmem:[#allocation20 + $0x3d8] sm:$0xff] }
0x117a   :  { %v3777_v32 = vld [vmem:[#allocation20 + $0x3f8] sm:$0xff] }
0x117b   :  { %v3548_v54 = vsel %vm1131_vm1, %v3493_v13, %v11847_v38  ;;  %v3549_v55 = vsel %vm1131_vm1, %v3496_v28, %v11848_v39  ;;  %v3766_v13 = vld [vmem:[#allocation20 + $0x3a0] sm:$0xff]  ;;  %v10225_v39 = vcombine.low %v3755_v33, %v3759_v34  ;;  %v10226_v38 = vcombine.high %v3755_v33, %v3759_v34 }
0x117c   :  { %v10232_v25 = vcombine.high %v3762_v22, %v3766_v13  ;;  %v10231_v28 = vcombine.low %v3762_v22, %v3766_v13  ;;  %v3719_v13 = vld [vmem:[#allocation20 + $0x228] sm:$0xff]  ;;  %v10245_v33 = vcombine.low %v3773_v31, %v3777_v32 }
0x117e   :  { %4144 = vmatprep.subr.bf16.mxu1 %v10232_v25  ;;  %v3776_v25 = vld [vmem:[#allocation20 + $0x3f0] sm:$0xff] }
0x117f   :  { %4145 = vmatpush1.bf16.msra.mxu1 %v10231_v28 }
0x1180   :  { %v11856_v50 = vpop.permute.xlu1 %11855  ;;  %4146 = vmatprep.subr.bf16.mxu1 %v10224_v37  ;;  %v10246_v37 = vcombine.high %v3773_v31, %v3777_v32  ;;  %v3737_v31 = vld [vmem:[#allocation20 + $0x2b8] sm:$0xff] }
0x1181   :  { %v11858_v56 = vunpack.i.h.bf16 %v11856_v50  ;;  %v11857_v24 = vunpack.i.l.bf16 %v11856_v50  ;;  %v3746_v50 = vld [vmem:[#allocation20 + $0x300] sm:$0xff] }
0x1182   :  { %v11851_v51 = vpop.permute.xlu0 %11850 }
0x1183   :  { %v11853_v52 = vunpack.i.h.bf16 %v11851_v51  ;;  %v11852_v53 = vunpack.i.l.bf16 %v11851_v51  ;;  %4147 = vmatpush1.bf16.msra.mxu1 %v10223_v36  ;;  %v3750_v51 = vld [vmem:[#allocation20 + $0x320] sm:$0xff] }
0x1185   :  { %v3551_v57 = vsel %vm1221_vm2, %v3549_v55, %v11853_v52  ;;  %v3550_v41 = vsel %vm1221_vm2, %v3548_v54, %v11852_v53  ;;  %v3747_v52 = vld [vmem:[#allocation20 + $0x308] sm:$0xff]  ;;  %v10216_v53 = vcombine.high %v3746_v50, %v3750_v51  ;;  %v10215_v55 = vcombine.low %v3746_v50, %v3750_v51 }
0x1186   :  { %v3553_v58 = vsel %vm1423_vm3, %v3551_v57, %v11858_v56  ;;  %v3552_v59 = vsel %vm1423_vm3, %v3550_v41, %v11857_v24  ;;  %v3751_v54 = vld [vmem:[#allocation20 + $0x328] sm:$0xff]  ;;  %v3738_v57 = vld [vmem:[#allocation20 + $0x2c0] sm:$0xff] }
0x1187   :  { %v3571_v60 = vpack.c.bf16 %v3553_v58, %v3552_v59  ;;  %v10217_v56 = vcombine.low %v3747_v52, %v3751_v54  ;;  %v10218_v24 = vcombine.high %v3747_v52, %v3751_v54  ;;  %4148 = vmatprep.subr.bf16.mxu1 %v10216_v53  ;;  %v3742_v41 = vld [vmem:[#allocation20 + $0x2e0] sm:$0xff]  ;;  %v3739_v58 = vld [vmem:[#allocation20 + $0x2c8] sm:$0xff]  ;;  %v10181_v54 = vld [vmem:[#allocation17 + $0x1] ss:$0 sm:$0xff] }
0x1188   :  { %4149 = vmatpush1.bf16.msra.mxu1 %v10215_v55  ;;  %v10208_v59 = vcombine.high %v3738_v57, %v3742_v41 }
0x1189   :  { %11433 = vmatmul.mubr.bf16.vlgmr.msra.gmra.mxu0 %v3571_v60  ;;  %v3743_v60 = vld [vmem:[#allocation20 + $0x2e8] sm:$0xff] }
0x118a   :  { %4217 = vmatprep.mubr.bf16.mxu0 %v13206_v0  ;;  %4186 = vmatpush1.bf16.msra.mxu0 %v10241_v17  ;;  %v3727_v17 = vld [vmem:[#allocation20 + $0x268] sm:$0xff] }
0x118b   :  { %4187 = vmatprep.subr.bf16.mxu0 %v10234_v30  ;;  %4150 = vmatprep.subr.bf16.mxu1 %v10208_v59  ;;  %v10244_v30 = vcombine.high %v3772_v23, %v3776_v25  ;;  %v3768_v59 = vld [vmem:[#allocation20 + $0x3b0] sm:$0xff] }
0x118e   :  { %4188 = vmatpush1.bf16.msra.mxu0 %v10233_v29  ;;  %v10243_v29 = vcombine.low %v3772_v23, %v3776_v25 }
0x118f   :  { %4189 = vmatprep.subr.bf16.mxu0 %v10226_v38 }
0x1192   :  { %4190 = vmatpush1.bf16.msra.mxu0 %v10225_v39 }
0x1193   :  { %4191 = vmatprep.subr.bf16.mxu0 %v10218_v24 }
0x1196   :  { %4192 = vmatpush1.bf16.msra.mxu0 %v10217_v56 }
0x1249   :  { %v3662_v62 = vpop.f32.mrf.mxu0 }
0x124a   :  { %v3663_v63 = vadd.f32 %v10172_v61, %v3662_v62  ;;  %v10209_v62 = vcombine.low %v3739_v58, %v3743_v60 }
0x124b   :  { %v11434_v3 = vpop.f32.mrf.mxu0 }
0x124c   :  { %v3669_v4 = vadd.f32 %v3663_v63, %v13690_v6  ;;  %v10210_v63 = vcombine.high %v3739_v58, %v3743_v60  ;;  %v3730_v3 = vld [vmem:[#allocation20 + $0x280] sm:$0xff]  ;;  %v3764_v58 = vld [vmem:[#allocation20 + $0x390] sm:$0xff]  ;;  %v3765_v60 = vld [vmem:[#allocation20 + $0x398] sm:$0xff] }
0x124d   :  { %v3665_v8 = vpop.f32.mrf.mxu0 }
0x124e   :  { %v3666_v9 = vadd.f32 %v10172_v61, %v3665_v8  ;;  %3675 = vadd.xlane.f32.xlu0 %v3669_v4  ;;  %v10207_v61 = vcombine.low %v3738_v57, %v3742_v41  ;;  %4193 = vmatprep.subr.bf16.mxu0 %v10210_v63  ;;  %v3731_v8 = vld [vmem:[#allocation20 + $0x288] sm:$0xff]  ;;  %v10182_v57 = vld [vmem:[#allocation19 + $0x1] ss:$0 sm:$0xff] }
0x124f   :  { %v11435_v10 = vpop.f32.mrf.mxu0  ;;  %4194 = vmatpush1.bf16.msra.mxu0 %v10209_v62 }
0x1250   :  { %v3670_v35 = vadd.f32 %v3666_v9, %v13692_v7  ;;  %4151 = vmatpush1.bf16.msra.mxu1 %v10207_v61  ;;  %v3735_v10 = vld [vmem:[#allocation20 + $0x2a8] sm:$0xff]  ;;  %v3769_v61 = vld [vmem:[#allocation20 + $0x3b8] sm:$0xff] }
0x1251   :  { %v10201_v14 = vcombine.low %v3731_v8, %v3735_v10  ;;  %v10202_v15 = vcombine.high %v3731_v8, %v3735_v10  ;;  %v3756_v8 = vld [vmem:[#allocation20 + $0x350] sm:$0xff]  ;;  %v3761_v10 = vld [vmem:[#allocation20 + $0x378] sm:$0xff] }
0x1252   :  { %3677 = vadd.xlane.f32.xlu1 %v3670_v35 }
0x1253   :  { %4195 = vmatprep.subr.bf16.mxu0 %v10202_v15 }
0x1254   :  { %4196 = vmatpush1.bf16.msra.mxu0 %v10201_v14  ;;  %v10237_v14 = vcombine.low %v3765_v60, %v3769_v61 }
0x12d7   :  { %v3676_v6 = vpop.xlane.xlu0 %3675 }
0x12d8   :  { %v3679_v27 = vmul.f32 0.0078125, %v3676_v6  ;;  %v10193_v6 = vcombine.low %v3723_v5, %v3727_v17 }
0x12da   :  { %v13796_v18 = vsub.f32 %v3669_v4, %v3679_v27  ;;  %v3734_v4 = vld [vmem:[#allocation20 + $0x2a0] sm:$0xff]  ;;  %v10194_v27 = vcombine.high %v3723_v5, %v3727_v17  ;;  %v3752_v5 = vld [vmem:[#allocation20 + $0x330] sm:$0xff]  ;;  %v3753_v17 = vld [vmem:[#allocation20 + $0x338] sm:$0xff] }
0x12db   :  { %v3678_v20 = vpop.xlane.xlu1 %3677  ;;  %v10200_v9 = vcombine.high %v3730_v3, %v3734_v4 }
0x12dc   :  { %v3680_v11 = vmul.f32 0.0078125, %v3678_v20  ;;  %v3683_v7 = vmul.f32 %v13796_v18, %v13796_v18  ;;  %v3714_v20 = vld [vmem:[#allocation20 + $0x200] sm:$0xff]  ;;  %4197 = vmatprep.subr.bf16.mxu0 %v10194_v27  ;;  %v10220_v27 = vcombine.high %v3748_v2, %v3752_v5 }
0x12dd   :  { %4152 = vmatprep.subr.bf16.mxu1 %v10200_v9  ;;  %4198 = vmatpush1.bf16.msra.mxu0 %v10193_v6  ;;  %v3760_v9 = vld [vmem:[#allocation20 + $0x370] sm:$0xff] }
0x12de   :  { %v13800_v12 = vsub.f32 %v3670_v35, %v3680_v11  ;;  %3685 = vadd.xlane.f32.xlu0 %v3683_v7  ;;  %v10199_v35 = vcombine.low %v3730_v3, %v3734_v4  ;;  %v3718_v11 = vld [vmem:[#allocation20 + $0x220] sm:$0xff]  ;;  %v3715_v7 = vld [vmem:[#allocation20 + $0x208] sm:$0xff]  ;;  %v10238_v4 = vcombine.high %v3765_v60, %v3769_v61  ;;  %v10228_v15 = vcombine.high %v3756_v8, %v3760_v9 }
0x12df   :  { %v10184_v22 = vcombine.high %v3714_v20, %v3718_v11  ;;  %v10185_v26 = vcombine.low %v3715_v7, %v3719_v13  ;;  %v10186_v28 = vcombine.high %v3715_v7, %v3719_v13  ;;  %v3744_v7 = vld [vmem:[#allocation20 + $0x2f0] sm:$0xff]  ;;  %v10219_v13 = vcombine.low %v3748_v2, %v3752_v5  ;;  %v12156_v2 = vld [vmem:[#allocation23 + $0x2e8] sm:$0xff]  }
0x12e0   :  { %v3684_v21 = vmul.f32 %v13800_v12, %v13800_v12  ;;  %4153 = vmatpush1.bf16.msra.mxu1 %v10199_v35  ;;  %v10235_v35 = vcombine.low %v3764_v58, %v3768_v59  ;;  %v12157_v5 = vld [vmem:[#allocation23 + $0x228] sm:$0xff]  }
0x12e1   :  { %4154 = vmatprep.subr.bf16.mxu1 %v10192_v16  ;;  %4199 = vmatprep.subr.bf16.mxu0 %v10186_v28  ;;  %v3749_v16 = vld [vmem:[#allocation20 + $0x318] sm:$0xff]  ;;  %v3732_v28 = vld [vmem:[#allocation20 + $0x290] sm:$0xff] }
0x12e2   :  { %3687 = vadd.xlane.f32.xlu0 %v3684_v21  ;;  %v10183_v21 = vcombine.low %v3714_v20, %v3718_v11  ;;  %4200 = vmatpush1.bf16.msra.mxu0 %v10185_v26  ;;  %v10222_v20 = vcombine.high %v3749_v16, %v3753_v17  ;;  %v3740_v11 = vld [vmem:[#allocation20 + $0x2d0] sm:$0xff]  ;;  %v10221_v23 = vcombine.low %v3749_v16, %v3753_v17  ;;  %v12158_v16 = vld [vmem:[#allocation23 + $0x2a8] sm:$0xff]   ;;  %v12159_v17 = vld [vmem:[#allocation23 + $0x260] sm:$0xff]  }
0x12e3   :  { %4271 = vmatprep.subr.bf16.mxu0 %v10246_v37  ;;  %v10212_v25 = vcombine.high %v3740_v11, %v3744_v7  ;;  %v10211_v32 = vcombine.low %v3740_v11, %v3744_v7  ;;  %v12165_v11 = vld [vmem:[#allocation23 + $0x218] sm:$0xff]  }
0x12e4   :  { %4155 = vmatpush1.bf16.msra.mxu1 %v10191_v19  ;;  %v10227_v19 = vcombine.low %v3756_v8, %v3760_v9  ;;  %v12148_v8 = vld [vmem:[#allocation23 + $0x2f8] sm:$0xff]  }
0x12e5   :  { %4156 = vmatprep.subr.bf16.mxu1 %v10184_v22  ;;  %v3745_v22 = vld [vmem:[#allocation20 + $0x2f8] sm:$0xff] }
0x12e6   :  { %v12149_v9 = vld [vmem:[#allocation23 + $0x238] sm:$0xff]  }
0x12e7   :  { %v12166_v7 = vld [vmem:[#allocation23 + $0x298] sm:$0xff]  }
0x12e8   :  { %4157 = vmatpush1.bf16.msra.mxu1 %v10183_v21  ;;  %v3741_v21 = vld [vmem:[#allocation20 + $0x2d8] sm:$0xff] }
0x12e9   :  { %4228 = vmatprep.subr.bf16.mxu1 %v10244_v30  ;;  %v10214_v26 = vcombine.high %v3741_v21, %v3745_v22  ;;  %v3733_v30 = vld [vmem:[#allocation20 + $0x298] sm:$0xff] }
0x1367   :  { %v3686_v34 = vpop.xlane.xlu0 %3685 }
0x1368   :  { %v3689_v36 = vmul.f32 0.0078125, %v3686_v34  ;;  %v10206_v34 = vcombine.high %v3733_v30, %v3737_v31 }
0x136a   :  { %v3691_v39 = vadd.f32 1e-05, %v3689_v36  ;;  %v3724_v36 = vld [vmem:[#allocation20 + $0x250] sm:$0xff] }
0x136b   :  { %v3688_v38 = vpop.xlane.xlu0 %3687 }
0x136c   :  { %12513 = vrsqrt.f32 %v3691_v39  ;;  %v3690_v50 = vmul.f32 0.0078125, %v3688_v38  ;;  %v3728_v39 = vld [vmem:[#allocation20 + $0x270] sm:$0xff]  ;;  %v3725_v38 = vld [vmem:[#allocation20 + $0x258] sm:$0xff] }
0x136e   :  { %v3692_v51 = vadd.f32 1e-05, %v3690_v50  ;;  %v3729_v50 = vld [vmem:[#allocation20 + $0x278] sm:$0xff] }
0x1370   :  { %12515 = vrsqrt.f32 %v3692_v51 }
0x1379   :  { %v12514_v52 = vpop.eup %12513 }
0x137a   :  { %v3695_v53 = vmul.f32 %v12514_v52, %v13796_v18  ;;  %v10236_v18 = vcombine.high %v3764_v58, %v3768_v59  ;;  %v10205_v52 = vcombine.low %v3733_v30, %v3737_v31  ;;  %v10197_v58 = vcombine.low %v3725_v38, %v3729_v50  ;;  %v12175_v30 = vld [vmem:[#allocation23 + $0x240] sm:$0xff]  }
0x137b   :  { %v12176_v31 = vld [vmem:[#allocation23 + $0x2c0] sm:$0xff]  }
0x137c   :  { %v3703_v24 = vmul.f32 %v10181_v54, %v3695_v53  ;;  %v10196_v53 = vcombine.high %v3724_v36, %v3728_v39 }
0x137d   :  { %v12516_v55 = vpop.eup %12515 }
0x137e   :  { %v3696_v56 = vmul.f32 %v12516_v55, %v13800_v12  ;;  %v13806_v62 = vadd.f32 %v10182_v57, %v3703_v24  ;;  %v3757_v12 = vld [vmem:[#allocation20 + $0x358] sm:$0xff]  ;;  %v3716_v55 = vld [vmem:[#allocation20 + $0x210] sm:$0xff] }
0x137f   :  { %v10230_v47 = vcombine.high %v3757_v12, %v3761_v10  ;;  %v10229_v6 = vcombine.low %v3757_v12, %v3761_v10  ;;  %v3717_v24 = vld [vmem:[#allocation20 + $0x218] sm:$0xff]  ;;  %v12151_v10 = vld [vmem:[#allocation23 + $0x270] sm:$0xff]  }
0x1380   :  { %v3704_v41 = vmul.f32 %v10181_v54, %v3696_v56  ;;  %v10198_v54 = vcombine.high %v3725_v38, %v3729_v50  ;;  %v3720_v56 = vld [vmem:[#allocation20 + $0x230] sm:$0xff]  ;;  %v12150_v12 = vld [vmem:[#allocation23 + $0x2b8] sm:$0xff]  }
0x1381   :  { %v10188_v59 = vcombine.high %v3716_v55, %v3720_v56  ;;  %v10187_v61 = vcombine.low %v3716_v55, %v3720_v56 }
0x1382   :  { %v13808_v63 = vadd.f32 %v10182_v57, %v3704_v41  ;;  %v3721_v57 = vld [vmem:[#allocation20 + $0x238] sm:$0xff]  ;;  %v10195_v41 = vcombine.low %v3724_v36, %v3728_v39  ;;  %v13820_v36 = vld [vmem:[#allocation22 + $0x8] sm:$0xff] }
0x1383   :  { %v10190_v60 = vcombine.high %v3717_v24, %v3721_v57  ;;  %v3789_v50 = vrot.slane %v13820_v36, %v13508_v45 }
0x1384   :  { %v13812_v3 = vpack.c.bf16 %v13808_v63, %v13806_v62 }
0x1386   :  { %4175 = vmatmul.mubr.bf16.vlgmr.msra.gmra.mxu1 %v13812_v3  ;;  %4218 = vmatmul.mubr.bf16.vlgmr.msra.gmra.mxu0 %v13812_v3 }
0x1387   :  { %4229 = vmatpush1.bf16.msra.mxu1 %v10243_v29  ;;  %4272 = vmatpush1.bf16.msra.mxu0 %v10245_v33  ;;  %v3736_v29 = vld [vmem:[#allocation20 + $0x2b0] sm:$0xff]  ;;  %v10213_v33 = vcombine.low %v3741_v21, %v3745_v22 }
0x1388   :  { %4230 = vmatprep.subr.bf16.mxu1 %v10236_v18  ;;  %4273 = vmatprep.subr.bf16.mxu0 %v10238_v4  ;;  %v10204_v37 = vcombine.high %v3732_v28, %v3736_v29  ;;  %v10203_v51 = vcombine.low %v3732_v28, %v3736_v29  ;;  %v10189_v18 = vcombine.low %v3717_v24, %v3721_v57  ;;  %v12147_v4 = vld [vmem:[#allocation23 + $0x278] sm:$0xff]   ;;  %v12167_v21 = vld [vmem:[#allocation23 + $0x250] sm:$0xff]   ;;  %v12173_v28 = vld [vmem:[#allocation23 + $0x208] sm:$0xff]  }
0x1389   :  { %4260 = vmatprep.mubr.bf16.mxu1 %v13206_v0  ;;  %4303 = vmatprep.mubr.bf16.mxu0 %v13206_v0  ;;  %v12168_v22 = vld [vmem:[#allocation23 + $0x2d0] sm:$0xff]   ;;  %v12174_v29 = vld [vmem:[#allocation23 + $0x288] sm:$0xff]  }
0x138b   :  { %4231 = vmatpush1.bf16.msra.mxu1 %v10235_v35  ;;  %4274 = vmatpush1.bf16.msra.mxu0 %v10237_v14  ;;  %v12152_v35 = vld [vmem:[#allocation23 + $0x2f0] sm:$0xff]  }
0x138c   :  { %4232 = vmatprep.subr.bf16.mxu1 %v10228_v15  ;;  %4275 = vmatprep.subr.bf16.mxu0 %v10230_v47  ;;  %v12153_v14 = vld [vmem:[#allocation23 + $0x230] sm:$0xff]   ;;  %v12155_v47 = vld [vmem:[#allocation23 + $0x268] sm:$0xff]  }
0x138d   :  { %v12154_v15 = vld [vmem:[#allocation23 + $0x2b0] sm:$0xff]  }
0x138f   :  { %4233 = vmatpush1.bf16.msra.mxu1 %v10227_v19  ;;  %4276 = vmatpush1.bf16.msra.mxu0 %v10229_v6  ;;  %v12160_v19 = vld [vmem:[#allocation23 + $0x2e0] sm:$0xff]  }
0x1390   :  { %4234 = vmatprep.subr.bf16.mxu1 %v10220_v27  ;;  %4277 = vmatprep.subr.bf16.mxu0 %v10222_v20  ;;  %v12161_v6 = vld [vmem:[#allocation23 + $0x220] sm:$0xff]   ;;  %v12163_v27 = vld [vmem:[#allocation23 + $0x258] sm:$0xff]  }
0x1391   :  { %v12164_v20 = vld [vmem:[#allocation23 + $0x2d8] sm:$0xff]  }
0x1393   :  { %4235 = vmatpush1.bf16.msra.mxu1 %v10219_v13  ;;  %4278 = vmatpush1.bf16.msra.mxu0 %v10221_v23  ;;  %v12169_v13 = vld [vmem:[#allocation23 + $0x210] sm:$0xff]  }
0x1394   :  { %4236 = vmatprep.subr.bf16.mxu1 %v10212_v25  ;;  %4279 = vmatprep.subr.bf16.mxu0 %v10214_v26  ;;  %v12170_v23 = vld [vmem:[#allocation23 + $0x290] sm:$0xff]   ;;  %v12171_v25 = vld [vmem:[#allocation23 + $0x248] sm:$0xff]  }
0x1395   :  { %v12172_v26 = vld [vmem:[#allocation23 + $0x2c8] sm:$0xff]  }
0x1397   :  { %4237 = vmatpush1.bf16.msra.mxu1 %v10211_v32  ;;  %4280 = vmatpush1.bf16.msra.mxu0 %v10213_v33  ;;  %v12177_v32 = vld [vmem:[#allocation23 + $0x200] sm:$0xff]  }
0x1398   :  { %4238 = vmatprep.subr.bf16.mxu1 %v10204_v37  ;;  %4281 = vmatprep.subr.bf16.mxu0 %v10206_v34  ;;  %v12178_v33 = vld [vmem:[#allocation23 + $0x280] sm:$0xff]   ;;  %v12179_v37 = vld [vmem:[#allocation23 + $0x378] sm:$0xff]  }
0x1399   :  { %v12180_v34 = vld [vmem:[#allocation23 + $0x3f8] sm:$0xff]  }
0x139b   :  { %4239 = vmatpush1.bf16.msra.mxu1 %v10203_v51  ;;  %4282 = vmatpush1.bf16.msra.mxu0 %v10205_v52  ;;  %v3797_v51 = vrot.slane %v13820_v36, %v13635_v46  ;;  %v3785_v52 = vrot.slane %v13820_v36, %v13502_v42 }
0x139c   :  { %4240 = vmatprep.subr.bf16.mxu1 %v10196_v53  ;;  %4283 = vmatprep.subr.bf16.mxu0 %v10198_v54  ;;  %v3793_v53 = vrot.slane %v13820_v36, %v13505_v44 }
0x139f   :  { %4241 = vmatpush1.bf16.msra.mxu1 %v10195_v41  ;;  %4284 = vmatpush1.bf16.msra.mxu0 %v10197_v58 }
0x13a0   :  { %4242 = vmatprep.subr.bf16.mxu1 %v10188_v59  ;;  %4285 = vmatprep.subr.bf16.mxu0 %v10190_v60 }
0x13a3   :  { %4243 = vmatpush1.bf16.msra.mxu1 %v10187_v61  ;;  %4286 = vmatpush1.bf16.msra.mxu0 %v10189_v18 }
0x13a4   :  { %10913 = vmatprep.subr.bf16.mxu1 %v12147_v4  ;;  %10935 = vmatprep.subr.bf16.mxu0 %v12148_v8 }
0x13a6   :  { %4261 = vmatmul.mubr.bf16.vlgmr.msra.gmra.mxu1 %v13812_v3  ;;  %4304 = vmatmul.mubr.bf16.vlgmr.msra.gmra.mxu0 %v13812_v3  ;;  %v12162_v3 = vld [vmem:[#allocation23 + $0x2a0] sm:$0xff]  }
0x13a7   :  { %10914 = vmatpush3.bf16.msra.mxu1 %v12149_v9  ;;  %10936 = vmatpush3.bf16.msra.mxu0 %v12150_v12 }
0x13a8   :  { %10915 = vmatprep.subr.bf16.mxu1 %v12151_v10  ;;  %10937 = vmatprep.subr.bf16.mxu0 %v12152_v35 }
0x13ab   :  { %10916 = vmatpush3.bf16.msra.mxu1 %v12153_v14  ;;  %10938 = vmatpush3.bf16.msra.mxu0 %v12154_v15 }
0x13ac   :  { %10917 = vmatprep.subr.bf16.mxu1 %v12155_v47  ;;  %10939 = vmatprep.subr.bf16.mxu0 %v12156_v2 }
0x13af   :  { %10918 = vmatpush3.bf16.msra.mxu1 %v12157_v5  ;;  %10940 = vmatpush3.bf16.msra.mxu0 %v12158_v16 }
0x13b0   :  { %10919 = vmatprep.subr.bf16.mxu1 %v12159_v17  ;;  %10941 = vmatprep.subr.bf16.mxu0 %v12160_v19  ;;  %v12181_v19 = vld [vmem:[#allocation23 + $0x338] sm:$0xff]  }
0x13b3   :  { %10920 = vmatpush3.bf16.msra.mxu1 %v12161_v6  ;;  %10942 = vmatpush3.bf16.msra.mxu0 %v12162_v3  ;;  %v12182_v6 = vld [vmem:[#allocation23 + $0x3b8] sm:$0xff]  }
0x13b4   :  { %10921 = vmatprep.subr.bf16.mxu1 %v12163_v27  ;;  %10943 = vmatprep.subr.bf16.mxu0 %v12164_v20  ;;  %v12183_v20 = vld [vmem:[#allocation23 + $0x370] sm:$0xff]  }
0x13b7   :  { %10922 = vmatpush3.bf16.msra.mxu1 %v12165_v11  ;;  %10944 = vmatpush3.bf16.msra.mxu0 %v12166_v7  ;;  %v12184_v11 = vld [vmem:[#allocation23 + $0x3f0] sm:$0xff]  }
0x13b8   :  { %10923 = vmatprep.subr.bf16.mxu1 %v12167_v21  ;;  %10945 = vmatprep.subr.bf16.mxu0 %v12168_v22  ;;  %v12185_v7 = vld [vmem:[#allocation23 + $0x330] sm:$0xff]   ;;  %v12187_v22 = vld [vmem:[#allocation23 + $0x368] sm:$0xff]  }
0x13b9   :  { %v12186_v21 = vld [vmem:[#allocation23 + $0x3b0] sm:$0xff]  }
0x13bb   :  { %10924 = vmatpush3.bf16.msra.mxu1 %v12169_v13  ;;  %10946 = vmatpush3.bf16.msra.mxu0 %v12170_v23  ;;  %v12188_v13 = vld [vmem:[#allocation23 + $0x3e8] sm:$0xff]  }
0x13bc   :  { %10925 = vmatprep.subr.bf16.mxu1 %v12171_v25  ;;  %10947 = vmatprep.subr.bf16.mxu0 %v12172_v26  ;;  %v12189_v23 = vld [vmem:[#allocation23 + $0x328] sm:$0xff]   ;;  %v12191_v26 = vld [vmem:[#allocation23 + $0x360] sm:$0xff]  }
0x13bd   :  { %v12190_v25 = vld [vmem:[#allocation23 + $0x3a8] sm:$0xff]  }
0x13bf   :  { %10926 = vmatpush3.bf16.msra.mxu1 %v12173_v28  ;;  %10948 = vmatpush3.bf16.msra.mxu0 %v12174_v29  ;;  %v12192_v28 = vld [vmem:[#allocation23 + $0x3e0] sm:$0xff]  }
0x13c0   :  { %10927 = vmatprep.subr.bf16.mxu1 %v12175_v30  ;;  %10949 = vmatprep.subr.bf16.mxu0 %v12176_v31  ;;  %v12193_v29 = vld [vmem:[#allocation23 + $0x320] sm:$0xff]   ;;  %v12195_v31 = vld [vmem:[#allocation23 + $0x358] sm:$0xff]  }
0x13c1   :  { %v12194_v30 = vld [vmem:[#allocation23 + $0x3a0] sm:$0xff]  }
0x13c3   :  { %10928 = vmatpush3.bf16.msra.mxu1 %v12177_v32  ;;  %10950 = vmatpush3.bf16.msra.mxu0 %v12178_v33  ;;  %v12196_v32 = vld [vmem:[#allocation23 + $0x3d8] sm:$0xff]  }
0x13c4   :  { %10957 = vmatprep.subr.bf16.mxu1 %v12179_v37  ;;  %10979 = vmatprep.subr.bf16.mxu0 %v12180_v34  ;;  %v12197_v33 = vld [vmem:[#allocation23 + $0x318] sm:$0xff]   ;;  %v12199_v34 = vld [vmem:[#allocation23 + $0x350] sm:$0xff]  }
0x13c5   :  { %v12198_v37 = vld [vmem:[#allocation23 + $0x398] sm:$0xff]  }
0x1446   :  { %v4176_v39 = vpop.f32.mrf.mxu1  ;;  %v4219_v38 = vpop.f32.mrf.mxu0 }
0x1447   :  { %v4177_v60 = vadd.f32 %v4176_v39, %v3785_v52  ;;  %v4220_v61 = vadd.f32 %v4219_v38, %v3793_v53  ;;  %v12200_v39 = vld [vmem:[#allocation23 + $0x3d0] sm:$0xff]  }
0x1448   :  { %v4178_v54 = vpop.f32.mrf.mxu1  ;;  %v4221_v55 = vpop.f32.mrf.mxu0  ;;  %v12201_v38 = vld [vmem:[#allocation23 + $0x310] sm:$0xff]  }
0x1449   :  { %v4179_v57 = vadd.f32 %v4178_v54, %v3789_v50  ;;  %v4222_v41 = vadd.f32 %v4221_v55, %v3797_v51  ;;  %v4314_v2 = vmax.f32 %v4177_v60, 0.0  ;;  %v4316_v5 = vmax.f32 %v4220_v61, 0.0  ;;  %v12204_v54 = vld [vmem:[#allocation23 + $0x3c8] sm:$0xff]  }
0x144a   :  { %v4180_v56 = vpop.f32.mrf.mxu1  ;;  %v4223_v24 = vpop.f32.mrf.mxu0  ;;  %v3805_v55 = vrot.slane %v13820_v36, %v13648_v40  ;;  %v12206_v60 = vld [vmem:[#allocation23 + $0x388] sm:$0xff]  }
0x144b   :  { %v4181_v58 = vadd.f32 %v4180_v56, %v3785_v52  ;;  %v4224_v59 = vadd.f32 %v4223_v24, %v3793_v53  ;;  %v4315_v35 = vmax.f32 %v4179_v57, 0.0  ;;  %v4317_v14 = vmax.f32 %v4222_v41, 0.0  ;;  %v12203_v53 = vld [vmem:[#allocation23 + $0x348] sm:$0xff]  }
0x144c   :  { %v4182_v18 = vpop.f32.mrf.mxu1  ;;  %v4225_v4 = vpop.f32.mrf.mxu0  ;;  %v3813_v56 = vrot.slane %v13820_v36, %v13651_v43  ;;  %v3801_v24 = vrot.slane %v13820_v36, %v13654_v48  ;;  %v3809_v57 = vrot.slane %v13820_v36, %v13657_v49 }
0x144d   :  { %v4183_v8 = vadd.f32 %v4182_v18, %v3789_v50  ;;  %v4226_v9 = vadd.f32 %v4225_v4, %v3797_v51  ;;  %v4322_v12 = vmax.f32 %v4181_v58, 0.0  ;;  %v4324_v10 = vmax.f32 %v4224_v59, 0.0  ;;  %v12202_v50 = vld [vmem:[#allocation23 + $0x390] sm:$0xff]   ;;  %v12205_v59 = vld [vmem:[#allocation23 + $0x308] sm:$0xff]   ;;  %v12207_v4 = vld [vmem:[#allocation23 + $0x340] sm:$0xff]  }
0x144f   :  { %v4323_v15 = vmax.f32 %v4183_v8, 0.0  ;;  %v4325_v47 = vmax.f32 %v4226_v9, 0.0  ;;  %v4459_v3 = vpack.c.bf16 %v4322_v12, %v4314_v2  ;;  %v4461_v27 = vpack.c.bf16 %v4324_v10, %v4316_v5  ;;  %v12208_v8 = vld [vmem:[#allocation23 + $0x3c0] sm:$0xff]  }
0x1451   :  { %v4460_v16 = vpack.c.bf16 %v4323_v15, %v4315_v35  ;;  %v4462_v17 = vpack.c.bf16 %v4325_v47, %v4317_v14 }
0x1453   :  { %4891 = vmatprep.mubr.bf16.mxu1 %v4460_v16  ;;  %4932 = vmatprep.mubr.bf16.mxu0 %v4462_v17  ;;  %v12209_v16 = vld [vmem:[#allocation23 + $0x300] sm:$0xff]  }
0x1454   :  { %4892 = vmatmul.mubr.bf16.vlgmr.msra.gmra.mxu1 %v4459_v3  ;;  %4933 = vmatmul.mubr.bf16.vlgmr.msra.gmra.mxu0 %v4461_v27  ;;  %v12210_v17 = vld [vmem:[#allocation23 + $0x380] sm:$0xff]  }
0x1455   :  { %10958 = vmatpush3.bf16.msra.mxu1 %v12181_v19  ;;  %10980 = vmatpush3.bf16.msra.mxu0 %v12182_v6 }
0x1456   :  { %10959 = vmatprep.subr.bf16.mxu1 %v12183_v20  ;;  %10981 = vmatprep.subr.bf16.mxu0 %v12184_v11 }
0x1459   :  { %10960 = vmatpush3.bf16.msra.mxu1 %v12185_v7  ;;  %10982 = vmatpush3.bf16.msra.mxu0 %v12186_v21 }
0x145a   :  { %10961 = vmatprep.subr.bf16.mxu1 %v12187_v22  ;;  %10983 = vmatprep.subr.bf16.mxu0 %v12188_v13 }
0x145d   :  { %10962 = vmatpush3.bf16.msra.mxu1 %v12189_v23  ;;  %10984 = vmatpush3.bf16.msra.mxu0 %v12190_v25 }
0x145e   :  { %10963 = vmatprep.subr.bf16.mxu1 %v12191_v26  ;;  %10985 = vmatprep.subr.bf16.mxu0 %v12192_v28 }
0x1461   :  { %10964 = vmatpush3.bf16.msra.mxu1 %v12193_v29  ;;  %10986 = vmatpush3.bf16.msra.mxu0 %v12194_v30 }
0x1462   :  { %10965 = vmatprep.subr.bf16.mxu1 %v12195_v31  ;;  %10987 = vmatprep.subr.bf16.mxu0 %v12196_v32 }
0x1465   :  { %10966 = vmatpush3.bf16.msra.mxu1 %v12197_v33  ;;  %10988 = vmatpush3.bf16.msra.mxu0 %v12198_v37  ;;  %v10247_v37 = vld [vmem:[#allocation25 + $0x1] ss:$0 sm:$0xff] }
0x1466   :  { %v4262_v51 = vpop.f32.mrf.mxu1  ;;  %v4305_v52 = vpop.f32.mrf.mxu0  ;;  %10967 = vmatprep.subr.bf16.mxu1 %v12199_v34  ;;  %10989 = vmatprep.subr.bf16.mxu0 %v12200_v39 }
0x1467   :  { %v4263_v14 = vadd.f32 %v4262_v51, %v3801_v24  ;;  %v4306_v15 = vadd.f32 %v4305_v52, %v3809_v57 }
0x1468   :  { %v4264_v41 = vpop.f32.mrf.mxu1  ;;  %v4307_v58 = vpop.f32.mrf.mxu0 }
0x1469   :  { %10968 = vmatpush3.bf16.msra.mxu1 %v12201_v38  ;;  %10990 = vmatpush3.bf16.msra.mxu0 %v12202_v50  ;;  %v4265_v9 = vadd.f32 %v4264_v41, %v3805_v55  ;;  %v4308_v12 = vadd.f32 %v4307_v58, %v3813_v56  ;;  %v4318_v7 = vmax.f32 %v4263_v14, 0.0  ;;  %v4320_v21 = vmax.f32 %v4306_v15, 0.0 }
0x146a   :  { %v4266_v61 = vpop.f32.mrf.mxu1  ;;  %v4309_v18 = vpop.f32.mrf.mxu0  ;;  %10969 = vmatprep.subr.bf16.mxu1 %v12203_v53  ;;  %10991 = vmatprep.subr.bf16.mxu0 %v12204_v54 }
0x146b   :  { %v4267_v10 = vadd.f32 %v4266_v61, %v3801_v24  ;;  %v4310_v35 = vadd.f32 %v4309_v18, %v3809_v57  ;;  %v4319_v3 = vmax.f32 %v4265_v9, 0.0  ;;  %v4321_v27 = vmax.f32 %v4308_v12, 0.0 }
0x146c   :  { %v4268_v47 = vpop.f32.mrf.mxu1  ;;  %v4311_v36 = vpop.f32.mrf.mxu0 }
0x146d   :  { %v4269_v2 = vadd.f32 %v4268_v47, %v3805_v55  ;;  %v4312_v5 = vadd.f32 %v4311_v36, %v3813_v56  ;;  %10970 = vmatpush3.bf16.msra.mxu1 %v12205_v59  ;;  %10992 = vmatpush3.bf16.msra.mxu0 %v12206_v60  ;;  %v4326_v19 = vmax.f32 %v4267_v10, 0.0  ;;  %v4328_v6 = vmax.f32 %v4310_v35, 0.0  ;;  %v12211_v36 = vld [vmem:[%s14290_s8 + $0x38] sm:$0xff]  }
0x146e   :  { %10971 = vmatprep.subr.bf16.mxu1 %v12207_v4  ;;  %10993 = vmatprep.subr.bf16.mxu0 %v12208_v8 }
0x146f   :  { %v4327_v20 = vmax.f32 %v4269_v2, 0.0  ;;  %v4329_v11 = vmax.f32 %v4312_v5, 0.0  ;;  %v4463_v23 = vpack.c.bf16 %v4326_v19, %v4318_v7  ;;  %v4465_v25 = vpack.c.bf16 %v4328_v6, %v4320_v21  ;;  %v12216_v7 = vld [vmem:[%s14290_s8 + $0x10] sm:$0xff]   ;;  %v12217_v21 = vld [vmem:[%s14290_s8 + $0x8] sm:$0xff]  }
0x1471   :  { %v4464_v22 = vpack.c.bf16 %v4327_v20, %v4319_v3  ;;  %v4466_v13 = vpack.c.bf16 %v4329_v11, %v4321_v27  ;;  %10972 = vmatpush3.bf16.msra.mxu1 %v12209_v16  ;;  %10994 = vmatpush3.bf16.msra.mxu0 %v12210_v17  ;;  %v12213_v27 = vld [vmem:[%s14290_s8 + $0x28] sm:$0xff]   ;;  %v12214_v20 = vld [vmem:[%s14290_s8 + $0x20] sm:$0xff]   ;;  %v12215_v11 = vld [vmem:[%s14290_s8 + $0x18] sm:$0xff]  }
0x1472   :  { %11436 = vmatprep.subr.bf16.mxu1 %v13207_v1  ;;  %11456 = vmatprep.subr.bf16.mxu0 %v13207_v1 }
0x1473   :  { %4973 = vmatprep.mubr.bf16.mxu1 %v4464_v22  ;;  %5014 = vmatprep.mubr.bf16.mxu0 %v4466_v13  ;;  %v12218_v22 = vld [vmem:[%s14290_s8] sm:$0xff]  }
0x1474   :  { %4974 = vmatmul.mubr.bf16.vlgmr.msra.gmra.mxu1 %v4463_v23  ;;  %5015 = vmatmul.mubr.bf16.vlgmr.msra.gmra.mxu0 %v4465_v25 }
0x1475   :  { %11452 = vmatprep.mubr.msk.bf16.mxu1 %vm13208_vm0, %v13207_v1  ;;  %11460 = vmatprep.mubr.msk.bf16.mxu0 %vm13208_vm0, %v13207_v1 }
0x1476   :  { %11437 = vmatpush3.bf16.msra.mxu1 %v12211_v36 }
0x1477   :  { %11438 = vmatprep.subr.bf16.mxu1 %v13207_v1 }
0x1514   :  { %v10929_v26 = vpop.f32.mrf.mxu1  ;;  %v10951_v28 = vpop.f32.mrf.mxu0 }
0x1516   :  { %v10930_v29 = vpop.f32.mrf.mxu1  ;;  %v10952_v30 = vpop.f32.mrf.mxu0 }
0x1517   :  { %v10931_v33 = vadd.f32 %v10930_v29, %v10929_v26  ;;  %v10953_v53 = vadd.f32 %v10952_v30, %v10951_v28 }
0x1518   :  { %v10932_v31 = vpop.f32.mrf.mxu1  ;;  %v10954_v32 = vpop.f32.mrf.mxu0 }
0x1519   :  { %v4894_v38 = vadd.f32 %v10931_v33, %v10247_v37 }
0x151a   :  { %v10933_v34 = vpop.f32.mrf.mxu1  ;;  %v10955_v39 = vpop.f32.mrf.mxu0 }
0x151b   :  { %v10934_v50 = vadd.f32 %v10933_v34, %v10932_v31  ;;  %v4935_v56 = vadd.f32 %v10953_v53, %v4894_v38  ;;  %v10956_v59 = vadd.f32 %v10955_v39, %v10954_v32  ;;  %v10312_v32 = vld [vmem:[#allocation26 + $0x1] ss:$0 sm:$0xff]  ;;  %v10313_v39 = vld [vmem:[#allocation28 + $0x1] ss:$0 sm:$0xff]  ;;  %v12219_v53 = vld [vmem:[#allocation31 + $0x8] sm:$0xff]  }
0x151c   :  { %11457 = vmatpush3.bf16.msra.mxu0 %v12219_v53  ;;  %v10323_v53 = vld [vmem:[#allocation32] ss:$0 sm:$0xff] }
0x151d   :  { %v4897_v24 = vadd.f32 %v10934_v50, %v10247_v37  ;;  %11458 = vmatprep.subr.bf16.mxu0 %v13207_v1 }
0x151f   :  { %v4938_v8 = vadd.f32 %v10956_v59, %v4897_v24  ;;  %v12227_v24 = vld [vmem:[#allocation13 + $0x214] ss:$12 sps:$4 sm:$0xff]   ;;  %v12235_v59 = vld [vmem:[#allocation13 + $0x1e4] ss:$12 sps:$4 sm:$0xff]  }
0x1534   :  { %v10973_v51 = vpop.f32.mrf.mxu1  ;;  %v10995_v52 = vpop.f32.mrf.mxu0 }
0x1536   :  { %v10974_v54 = vpop.f32.mrf.mxu1  ;;  %v10996_v55 = vpop.f32.mrf.mxu0 }
0x1537   :  { %v10975_v57 = vadd.f32 %v10974_v54, %v10973_v51  ;;  %v10997_v61 = vadd.f32 %v10996_v55, %v10995_v52  ;;  %v12220_v54 = vld [vmem:[#allocation31] sm:$0xff]  }
0x1538   :  { %v10976_v41 = vpop.f32.mrf.mxu1  ;;  %v10998_v58 = vpop.f32.mrf.mxu0  ;;  %11459 = vmatpush3.bf16.msra.mxu0 %v12220_v54  ;;  %v12221_v55 = vld [vmem:[#allocation13 + $0x228] ss:$12 sps:$4 sm:$0xff]  }
0x1539   :  { %v4976_v60 = vadd.f32 %v10975_v57, %v4935_v56  ;;  %11464 = vmatprep.subr.bf16.mxu0 %v13207_v1  ;;  %v12223_v56 = vld [vmem:[#allocation13 + $0x22c] ss:$12 sps:$4 sm:$0xff]   ;;  %v12225_v57 = vld [vmem:[#allocation13 + $0x210] ss:$12 sps:$4 sm:$0xff]  }
0x153a   :  { %v10977_v18 = vpop.f32.mrf.mxu1  ;;  %v10999_v4 = vpop.f32.mrf.mxu0 }
0x153b   :  { %v5017_v9 = vadd.f32 %v10997_v61, %v4976_v60  ;;  %v10978_v12 = vadd.f32 %v10977_v18, %v10976_v41  ;;  %v11000_v35 = vadd.f32 %v10999_v4, %v10998_v58  ;;  %v12231_v41 = vld [vmem:[#allocation13 + $0x1fc] ss:$12 sps:$4 sm:$0xff]   ;;  %v12229_v58 = vld [vmem:[#allocation13 + $0x1f8] ss:$12 sps:$4 sm:$0xff]   ;;  %v12233_v60 = vld [vmem:[#allocation13 + $0x1e0] ss:$12 sps:$4 sm:$0xff]  }
0x153c   :  { %v12239_v61 = vld [vmem:[#allocation13 + $0x1cc] ss:$12 sps:$4 sm:$0xff]   ;;  %v12237_v18 = vld [vmem:[#allocation13 + $0x1c8] ss:$12 sps:$4 sm:$0xff]  }
0x153d   :  { %v4979_v10 = vadd.f32 %v10978_v12, %v4938_v8  ;;  %v5023_v14 = vadd.f32 %v5017_v9, %v13806_v62  ;;  %v12243_v4 = vld [vmem:[#allocation13 + $0x1b4] ss:$12 sps:$4 sm:$0xff]   ;;  %v12241_v8 = vld [vmem:[#allocation13 + $0x1b0] ss:$12 sps:$4 sm:$0xff]   ;;  %v10314_v9 = vld [vmem:[#allocation29] ss:$0 sm:$0xff] }
0x153f   :  { %v5020_v15 = vadd.f32 %v11000_v35, %v4979_v10  ;;  %5029 = vadd.xlane.f32.xlu1 %v5023_v14 }
0x1541   :  { %v5024_v47 = vadd.f32 %v5020_v15, %v13808_v63  ;;  %v12212_v63 = vld [vmem:[%s14290_s8 + $0x30] sm:$0xff]  }
0x1542   :  { %11439 = vmatpush3.bf16.msra.mxu1 %v12212_v63 }
0x1543   :  { %5031 = vadd.xlane.f32.xlu0 %v5024_v47  ;;  %11440 = vmatprep.subr.bf16.mxu1 %v13207_v1 }
0x1546   :  { %11441 = vmatpush3.bf16.msra.mxu1 %v12213_v27  ;;  %v12228_v27 = vld [vmem:[#allocation13 + $0x218] ss:$12 sps:$4 sm:$0xff]  }
0x1547   :  { %11442 = vmatprep.subr.bf16.mxu1 %v13207_v1 }
0x154a   :  { %11443 = vmatpush3.bf16.msra.mxu1 %v12214_v20 }
0x154b   :  { %11444 = vmatprep.subr.bf16.mxu1 %v13207_v1 }
0x154e   :  { %11445 = vmatpush3.bf16.msra.mxu1 %v12215_v11 }
0x154f   :  { %11446 = vmatprep.subr.bf16.mxu1 %v13207_v1 }
0x1552   :  { %11447 = vmatpush3.bf16.msra.mxu1 %v12216_v7 }
0x1553   :  { %11448 = vmatprep.subr.bf16.mxu1 %v13207_v1 }
0x1556   :  { %11449 = vmatpush3.bf16.msra.mxu1 %v12217_v21 }
0x1557   :  { %11450 = vmatprep.subr.bf16.mxu1 %v13207_v1 }
0x155a   :  { %11451 = vmatpush3.bf16.msra.mxu1 %v12218_v22  ;;  %v12232_v22 = vld [vmem:[#allocation13 + $0x200] ss:$12 sps:$4 sm:$0xff]  }
0x155b   :  { %5428 = vmatprep.subr.bf16.mxu1 %v12223_v56 }
0x15c8   :  { %v5030_v2 = vpop.xlane.xlu1 %5029 }
0x15c9   :  { %v5033_v5 = vmul.f32 0.0078125, %v5030_v2 }
0x15cb   :  { %v5035_v16 = vsub.f32 %v5023_v14, %v5033_v5 }
0x15cc   :  { %v5032_v17 = vpop.xlane.xlu0 %5031 }
0x15cd   :  { %v5034_v19 = vmul.f32 0.0078125, %v5032_v17  ;;  %v5037_v6 = vmul.f32 %v5035_v16, %v5035_v16 }
0x15cf   :  { %v5036_v62 = vsub.f32 %v5024_v47, %v5034_v19  ;;  %5039 = vadd.xlane.f32.xlu1 %v5037_v6 }
0x15d1   :  { %v5038_v3 = vmul.f32 %v5036_v62, %v5036_v62 }
0x15d3   :  { %5041 = vadd.xlane.f32.xlu0 %v5038_v3 }
0x1658   :  { %v5040_v13 = vpop.xlane.xlu1 %5039 }
0x1659   :  { %v5043_v23 = vmul.f32 0.0078125, %v5040_v13 }
0x165b   :  { %v5045_v25 = vadd.f32 1e-05, %v5043_v23 }
0x165c   :  { %v5042_v26 = vpop.xlane.xlu0 %5041 }
0x165d   :  { %12517 = vrsqrt.f32 %v5045_v25  ;;  %v5044_v28 = vmul.f32 0.0078125, %v5042_v26  ;;  %v12236_v26 = vld [vmem:[#allocation13 + $0x1e8] ss:$12 sps:$4 sm:$0xff]  }
0x165f   :  { %v5046_v29 = vadd.f32 1e-05, %v5044_v28 }
0x1661   :  { %12519 = vrsqrt.f32 %v5046_v29 }
0x166a   :  { %v12518_v30 = vpop.eup %12517 }
0x166b   :  { %v5049_v31 = vmul.f32 %v12518_v30, %v5035_v16  ;;  %v12224_v16 = vld [vmem:[#allocation13 + $0x230] ss:$12 sps:$4 sm:$0xff]  }
0x166d   :  { %v5057_v34 = vmul.f32 %v10312_v32, %v5049_v31  ;;  %v12240_v31 = vld [vmem:[#allocation13 + $0x1d0] ss:$12 sps:$4 sm:$0xff]  }
0x166e   :  { %v12520_v33 = vpop.eup %12519 }
0x166f   :  { %v5050_v37 = vmul.f32 %v12520_v33, %v5036_v62  ;;  %v5065_v50 = vadd.f32 %v10313_v39, %v5057_v34  ;;  %v12244_v33 = vld [vmem:[#allocation13 + $0x1b8] ss:$12 sps:$4 sm:$0xff]  }
0x1670   :  { %v12245_v34 = vld [vmem:[#allocation13 + $0x198] ss:$12 sps:$4 sm:$0xff]  }
0x1671   :  { %v5058_v38 = vmul.f32 %v10312_v32, %v5050_v37  ;;  %v12247_v37 = vld [vmem:[#allocation13 + $0x19c] ss:$12 sps:$4 sm:$0xff]  }
0x1673   :  { %v5066_v51 = vadd.f32 %v10313_v39, %v5058_v38  ;;  %v12248_v39 = vld [vmem:[#allocation13 + $0x1a0] ss:$12 sps:$4 sm:$0xff]   ;;  %v12251_v38 = vld [vmem:[#allocation13 + $0x184] ss:$12 sps:$4 sm:$0xff]  }
0x1675   :  { %v5083_v52 = vpack.c.bf16 %v5066_v51, %v5065_v50  ;;  %v12249_v50 = vld [vmem:[#allocation13 + $0x180] ss:$12 sps:$4 sm:$0xff]   ;;  %v12252_v51 = vld [vmem:[#allocation13 + $0x188] ss:$12 sps:$4 sm:$0xff]  }
0x1677   :  { %11453 = vmatmul.mubr.bf16.vlgmr.msra.gmra.mxu1 %v5083_v52 }
0x1678   :  { %5460 = vmatprep.mubr.bf16.mxu1 %v13206_v0  ;;  %5429 = vmatpush1.bf16.msra.mxu1 %v12221_v55 }
0x1679   :  { %5430 = vmatprep.subr.bf16.mxu1 %v12227_v24 }
0x167c   :  { %5431 = vmatpush1.bf16.msra.mxu1 %v12225_v57 }
0x167d   :  { %5432 = vmatprep.subr.bf16.mxu1 %v12231_v41 }
0x1680   :  { %5433 = vmatpush1.bf16.msra.mxu1 %v12229_v58  ;;  %v5283_v58 = vld [vmem:[#allocation14 + $0x6] sm:$0x7] }
0x1681   :  { %5434 = vmatprep.subr.bf16.mxu1 %v12235_v59 }
0x1684   :  { %5435 = vmatpush1.bf16.msra.mxu1 %v12233_v60 }
0x1685   :  { %5436 = vmatprep.subr.bf16.mxu1 %v12239_v61  ;;  %v5288_v61 = vrot.slane %v5283_v58, %v13502_v42 }
0x1688   :  { %5437 = vmatpush1.bf16.msra.mxu1 %v12237_v18  ;;  %v5296_v18 = vrot.slane %v5283_v58, %v13505_v44 }
0x1689   :  { %5438 = vmatprep.subr.bf16.mxu1 %v12243_v4 }
0x168c   :  { %5439 = vmatpush1.bf16.msra.mxu1 %v12241_v8 }
0x168d   :  { %5440 = vmatprep.subr.bf16.mxu1 %v12247_v37 }
0x1690   :  { %5441 = vmatpush1.bf16.msra.mxu1 %v12245_v34 }
0x1691   :  { %5442 = vmatprep.subr.bf16.mxu1 %v12251_v38 }
0x1694   :  { %5443 = vmatpush1.bf16.msra.mxu1 %v12249_v50 }
0x1737   :  { %v5173_v12 = vpop.f32.mrf.mxu1 }
0x1738   :  { %v5174_v10 = vadd.f32 %v10314_v9, %v5173_v12 }
0x1739   :  { %v11454_v35 = vpop.f32.mrf.mxu1 }
0x173a   :  { %v9659_v14 = vsel %vm1131_vm1, %v5174_v10, -inf }
0x173b   :  { %v9660_v15 = vrot.slane %v9659_v14, 4  ;;  %v5176_v47 = vpop.f32.mrf.mxu1 }
0x173c   :  { %v5177_v36 = vadd.f32 %v10314_v9, %v5176_v47  ;;  %v5292_v9 = vrot.slane %v5283_v58, %v13508_v45 }
0x173d   :  { %v9661_v2 = vmax.f32 %v9659_v14, %v9660_v15  ;;  %v11455_v5 = vpop.f32.mrf.mxu1 }
0x173e   :  { %v5184_v17 = vpack.c.bf16 %v5177_v36, %v5174_v10  ;;  %v9666_v19 = vsel %vm1131_vm1, %v5177_v36, -inf }
0x173f   :  { %v9662_v6 = vrot.slane %v9661_v2, 2  ;;  %v9667_v62 = vrot.slane %v9666_v19, 4 }
0x1740   :  { %11461 = vmatmul.mubr.msk.bf16.vlgmr.msra.gmra.mxu0 %vm1131_vm1, %v5184_v17 }
0x1741   :  { %v9663_v3 = vmax.f32 %v9661_v2, %v9662_v6  ;;  %v9668_v63 = vmax.f32 %v9666_v19, %v9667_v62  ;;  %11465 = vmatpush3.bf16.msra.mxu0 %v12224_v16  ;;  %11480 = vmatprep.mubr.msk.bf16.mxu0 %vm13208_vm0, %v13207_v1 }
0x1742   :  { %11466 = vmatprep.subr.bf16.mxu0 %v13207_v1 }
0x1743   :  { %v9664_v20 = vrot.slane %v9663_v3, 1  ;;  %v9669_v11 = vrot.slane %v9668_v63, 2 }
0x1745   :  { %v9665_v7 = vmax.f32 %v9663_v3, %v9664_v20  ;;  %v9670_v21 = vmax.f32 %v9668_v63, %v9669_v11  ;;  %11467 = vmatpush3.bf16.msra.mxu0 %v12228_v27 }
0x1746   :  { %11468 = vmatprep.subr.bf16.mxu0 %v13207_v1 }
0x1747   :  { %v9671_v13 = vrot.slane %v9670_v21, 1  ;;  %v9677_v23 = vpack.c.bf16 %v9665_v7, %v9665_v7 }
0x1749   :  { %v9672_v25 = vmax.f32 %v9670_v21, %v9671_v13  ;;  %11469 = vmatpush3.bf16.msra.mxu0 %v12232_v22  ;;  %v9688_v29 = vunpack.c.l.b16 %v9677_v23 }
0x174a   :  { %11470 = vmatprep.subr.bf16.mxu0 %v13207_v1 }
0x174b   :  { %v9678_v28 = vpack.c.bf16 %v9672_v25, %v9672_v25 }
0x174d   :  { %v9689_v30 = vunpack.c.l.b16 %v9678_v28  ;;  %11471 = vmatpush3.bf16.msra.mxu0 %v12236_v26 }
0x174e   :  { %11472 = vmatprep.subr.bf16.mxu0 %v13207_v1 }
0x174f   :  { %v13874_v32 = vsel %vm9566_vm4, %v9689_v30, %v9688_v29 }
0x1751   :  { %11473 = vmatpush3.bf16.msra.mxu0 %v12240_v31 }
0x1752   :  { %11474 = vmatprep.subr.bf16.mxu0 %v13207_v1 }
0x1755   :  { %11475 = vmatpush3.bf16.msra.mxu0 %v12244_v33 }
0x1756   :  { %11476 = vmatprep.subr.bf16.mxu0 %v13207_v1 }
0x1759   :  { %11477 = vmatpush3.bf16.msra.mxu0 %v12248_v39 }
0x175a   :  { %11478 = vmatprep.subr.bf16.mxu0 %v13207_v1 }
0x175d   :  { %11479 = vmatpush3.bf16.msra.mxu0 %v12252_v51 }
0x1800   :  { %v5241_v52 = vpop.f32.mrf.mxu0 }
0x1801   :  { %v13879_v56 = vadd.f32 %v10323_v53, %v5241_v52 }
0x1802   :  { %v11462_v54 = vpop.f32.mrf.mxu0 }
0x1804   :  { %v5244_v55 = vpop.f32.mrf.mxu0 }
0x1805   :  { %v13881_v24 = vadd.f32 %v10323_v53, %v5244_v55 }
0x1806   :  { %v11463_v57 = vpop.f32.mrf.mxu0 }
0x1807   :  { %v5281_v41 = vpack.c.bf16 %v13881_v24, %v13879_v56 }
0x1809   :  { %5461 = vmatmul.mubr.bf16.vlgmr.msra.gmra.mxu1 %v5281_v41  ;;  %11481 = vmatmul.mubr.bf16.vlgmr.msra.gmra.mxu0 %v5281_v41 }
0x18c9   :  { %v5462_v59 = vpop.f32.mrf.mxu1  ;;  %v5505_v60 = vpop.f32.mrf.mxu0 }
0x18ca   :  { %v5463_v35 = vadd.f32 %v5462_v59, %v5288_v61  ;;  %v5506_v47 = vadd.f32 %v5505_v60, %v5296_v18 }
0x18cb   :  { %v5464_v4 = vpop.f32.mrf.mxu1  ;;  %v11482_v8 = vpop.f32.mrf.mxu0 }
0x18cc   :  { %v5465_v5 = vadd.f32 %v5464_v4, %v5292_v9  ;;  %v12612_v8 = vld [vmem:[%s14288_s15 + $0x10] sm:$0xff] }
0x18cd   :  { %v5466_v12 = vpop.f32.mrf.mxu1  ;;  %v5508_v10 = vpop.f32.mrf.mxu0 }
0x18ce   :  { %v5467_v14 = vadd.f32 %v5466_v12, %v5288_v61  ;;  %v5509_v15 = vadd.f32 %v5508_v10, %v5296_v18  ;;  %v12611_v61 = vld [vmem:[%s14288_s15] sm:$0xff] }
0x18cf   :  { %v5468_v36 = vpop.f32.mrf.mxu1  ;;  %v11483_v2 = vpop.f32.mrf.mxu0 }
0x18d0   :  { %v5469_v16 = vadd.f32 %v5468_v36, %v5292_v9  ;;  %v5572_v17 = vpack.c.bf16 %v5467_v14, %v5463_v35  ;;  %v13888_v19 = vpack.i.bf16 %v5509_v15, %v5506_v47  ;;  %v13891_v3 = vpack.c.bf16 %v5509_v15, %v5506_v47  ;;  %v12614_v47 = vld [vmem:[%s14288_s15 + $0x18] sm:$0xff] }
0x18d1   :  { %v11879_v63 = vpack.i.bf16 %v5467_v14, %v5463_v35  ;;  %v12613_v35 = vld [vmem:[%s14288_s15 + $0x8] sm:$0xff] }
0x18d2   :  { %11492 = vmatprep.mubr.msk.bf16.mxu1 %vm1131_vm1, %v5572_v17  ;;  %v11864_v6 = vpack.i.bf16 %v5469_v16, %v5465_v5  ;;  %v5576_v62 = vpack.c.bf16 %v5469_v16, %v5465_v5  ;;  %v12615_v17 = vld [vmem:[%s14288_s15 + $0x20] sm:$0xff] }
0x18d4   :  { %11865 = vrot.lane.b32.xlu0 %v11864_v6, %s13187_s20  ;;  %11860 = vrot.lane.b32.xlu1 %v11864_v6, %s13184_s26  ;;  %v5593_v39 = vsel %vm1131_vm1, %v5576_v62, 0 }
0x18d8   :  { %11870 = vrot.lane.b32.xlu1 %v11864_v6, %s13209_s11  ;;  %11880 = vrot.lane.b32.xlu0 %v11879_v63, %s13187_s20 }
0x18dc   :  { %11875 = vrot.lane.b32.xlu1 %v11879_v63, %s13209_s11 }
0x18e0   :  { %11885 = vrot.lane.b32.xlu1 %v11879_v63, %s13184_s26  ;;  %v12616_v63 = vld [vmem:[%s14288_s15 + $0x30] sm:$0xff] }
0x1946   :  { %v11866_v27 = vpop.permute.xlu0 %11865  ;;  %v11861_v20 = vpop.permute.xlu1 %11860 }
0x1947   :  { %v11863_v11 = vunpack.i.h.bf16 %v11861_v20  ;;  %v11862_v7 = vunpack.i.l.bf16 %v11861_v20  ;;  %v11868_v21 = vunpack.i.h.bf16 %v11866_v27  ;;  %v11867_v22 = vunpack.i.l.bf16 %v11866_v27 }
0x1949   :  { %v5579_v13 = vpack.c.bf16 %v11863_v11, %v11862_v7  ;;  %v5578_v23 = vpack.c.bf16 %v11868_v21, %v11867_v22  ;;  %v12617_v21 = vld [vmem:[%s14288_s15 + $0x28] sm:$0xff] }
0x194a   :  { %v11871_v26 = vpop.permute.xlu1 %11870  ;;  %v11881_v34 = vpop.permute.xlu0 %11880 }
0x194b   :  { %11652 = vmatprep.subr.msk.bf16.mxu1 %vm1131_vm1, %v5579_v13  ;;  %v5602_v25 = vsel %vm1131_vm1, %v5579_v13, 0  ;;  %v11873_v28 = vunpack.i.h.bf16 %v11871_v26  ;;  %v11872_v29 = vunpack.i.l.bf16 %v11871_v26  ;;  %v5599_v31 = vsel %vm1131_vm1, %v5578_v23, 0  ;;  %v12618_v13 = vld [vmem:[%s14288_s15 + $0x38] sm:$0xff] }
0x194c   :  { %11485 = vmatpush3.bf16.xpose.msra.mxu1 %v5602_v25  ;;  %v11883_v51 = vunpack.i.h.bf16 %v11881_v34  ;;  %v11882_v52 = vunpack.i.l.bf16 %v11881_v34 }
0x194d   :  { %11653 = vmatprep.subr.msk.bf16.mxu1 %vm1131_vm1, %v5578_v23  ;;  %v5577_v30 = vpack.c.bf16 %v11873_v28, %v11872_v29 }
0x194e   :  { %v11876_v37 = vpop.permute.xlu1 %11875  ;;  %v5574_v54 = vpack.c.bf16 %v11883_v51, %v11882_v52 }
0x194f   :  { %v5596_v33 = vsel %vm1131_vm1, %v5577_v30, 0  ;;  %v11878_v38 = vunpack.i.h.bf16 %v11876_v37  ;;  %v11877_v50 = vunpack.i.l.bf16 %v11876_v37 }
0x1951   :  { %v5573_v53 = vpack.c.bf16 %v11878_v38, %v11877_v50 }
0x1952   :  { %v11886_v55 = vpop.permute.xlu1 %11885 }
0x1953   :  { %v11888_v57 = vunpack.i.h.bf16 %v11886_v55  ;;  %v11887_v41 = vunpack.i.l.bf16 %v11886_v55 }
0x1954   :  { %11487 = vmatpush3.bf16.xpose.msra.mxu1 %v5599_v31 }
0x1955   :  { %11654 = vmatprep.subr.msk.bf16.mxu1 %vm1131_vm1, %v5577_v30  ;;  %v5575_v58 = vpack.c.bf16 %v11888_v57, %v11887_v41 }
0x195c   :  { %11489 = vmatpush3.bf16.xpose.msra.mxu1 %v5596_v33 }
0x195d   :  { %11655 = vmatprep.subr.msk.bf16.mxu1 %vm1131_vm1, %v5576_v62 }
0x1964   :  { %11491 = vmatpush3.bf16.xpose.msra.mxu1 %v5593_v39 }
0x196b   :  { %11493 = vmatmul.mubr.msk.bf16.vlgmr.msra.gmra.mxu1 %vm1131_vm1, %v5573_v53 }
0x196c   :  { %11496 = vmatprep.mubr.msk.bf16.mxu1 %vm1131_vm1, %v5574_v54 }
0x1973   :  { %11497 = vmatmul.mubr.msk.bf16.gmra.mxu1 %vm1131_vm1, %v5575_v58 }
0x1974   :  { %6492 = vmatprep.mubr.bf16.mxu1 %v13206_v0 }
0x1a2b   :  { %v11494_v59 = vpop.f32.mrf.mxu1 }
0x1a2c   :  { %v5647_v9 = vadd.f32 %v12612_v8, %v11494_v59 }
0x1a2d   :  { %v5638_v60 = vpop.f32.mrf.mxu1 }
0x1a2e   :  { %v5639_v18 = vadd.f32 %v12611_v61, %v5638_v60  ;;  %v5675_v5 = vsel %vm1221_vm2, %v5647_v9, -inf }
0x1a2f   :  { %v11495_v4 = vpop.f32.mrf.mxu1 }
0x1a30   :  { %v5669_v12 = vsel %vm1221_vm2, %v5639_v18, -inf  ;;  %v5650_v36 = vadd.f32 %v12614_v47, %v11495_v4 }
0x1a31   :  { %v5641_v10 = vpop.f32.mrf.mxu1  ;;  %5670 = vmax.xlane.f32.xlu0 %v5669_v12 }
0x1a32   :  { %v5642_v14 = vadd.f32 %v12613_v35, %v5641_v10  ;;  %v5678_v11 = vsel %vm1221_vm2, %v5650_v36, -inf }
0x1a33   :  { %v11498_v15 = vpop.f32.mrf.mxu1 }
0x1a34   :  { %v5672_v2 = vsel %vm1221_vm2, %v5642_v14, -inf  ;;  %v5663_v27 = vadd.f32 %v12616_v63, %v11498_v15 }
0x1a35   :  { %v5654_v16 = vpop.f32.mrf.mxu1  ;;  %5673 = vmax.xlane.f32.xlu1 %v5672_v2  ;;  %5676 = vmax.xlane.f32.xlu0 %v5675_v5 }
0x1a36   :  { %v5655_v6 = vadd.f32 %v12615_v17, %v5654_v16  ;;  %v5687_v25 = vsel %vm1221_vm2, %v5663_v27, -inf }
0x1a37   :  { %v11499_v62 = vpop.f32.mrf.mxu1 }
0x1a38   :  { %v5681_v20 = vsel %vm1221_vm2, %v5655_v6, -inf  ;;  %v5666_v23 = vadd.f32 %v12618_v13, %v11499_v62 }
0x1a39   :  { %v5657_v7 = vpop.f32.mrf.mxu1  ;;  %5682 = vmax.xlane.f32.xlu1 %v5681_v20  ;;  %5679 = vmax.xlane.f32.xlu0 %v5678_v11 }
0x1a3a   :  { %v5658_v22 = vadd.f32 %v12617_v21, %v5657_v7  ;;  %v5690_v28 = vsel %vm1221_vm2, %v5666_v23, -inf }
0x1a3c   :  { %v5684_v26 = vsel %vm1221_vm2, %v5658_v22, -inf }
0x1a3d   :  { %5688 = vmax.xlane.f32.xlu1 %v5687_v25  ;;  %5685 = vmax.xlane.f32.xlu0 %v5684_v26 }
0x1a41   :  { %5691 = vmax.xlane.f32.xlu0 %v5690_v28 }
0x1a4e   :  { %11890 = vrot.lane.b32.xlu1 %v13888_v19, %s13184_s26 }
0x1aba   :  { %v5671_v29 = vpop.xlane.xlu0 %5670 }
0x1abb   :  { %v5693_v30 = vsub.f32 %v5639_v18, %v5671_v29 }
0x1abd   :  { %v5701_v39 = vmul.f32 1.442695, %v5693_v30 }
0x1abe   :  { %v5674_v31 = vpop.xlane.xlu1 %5673  ;;  %v5677_v33 = vpop.xlane.xlu0 %5676 }
0x1abf   :  { %v5695_v37 = vsub.f32 %v5647_v9, %v5677_v33  ;;  %v5694_v38 = vsub.f32 %v5642_v14, %v5674_v31 }
0x1ac1   :  { %v5705_v34 = vmul.f32 1.442695, %v5695_v37  ;;  %v5703_v54 = vmul.f32 1.442695, %v5694_v38 }
0x1ac2   :  { %v5683_v50 = vpop.xlane.xlu1 %5682  ;;  %v5680_v51 = vpop.xlane.xlu0 %5679 }
0x1ac3   :  { %v5696_v52 = vsub.f32 %v5650_v36, %v5680_v51  ;;  %12521 = vpow2.f32 %v5705_v34  ;;  %v5697_v55 = vsub.f32 %v5655_v6, %v5683_v50 }
0x1ac4   :  { %12523 = vpow2.f32 %v5701_v39 }
0x1ac5   :  { %v5707_v53 = vmul.f32 1.442695, %v5696_v52  ;;  %v5709_v60 = vmul.f32 1.442695, %v5697_v55 }
0x1ac6   :  { %v5689_v57 = vpop.xlane.xlu1 %5688  ;;  %v5686_v41 = vpop.xlane.xlu0 %5685 }
0x1ac7   :  { %v5699_v58 = vsub.f32 %v5663_v27, %v5689_v57  ;;  %12525 = vpow2.f32 %v5707_v53  ;;  %v5698_v61 = vsub.f32 %v5658_v22, %v5686_v41 }
0x1ac8   :  { %12527 = vpow2.f32 %v5703_v54 }
0x1ac9   :  { %v5713_v59 = vmul.f32 1.442695, %v5699_v58  ;;  %v5711_v14 = vmul.f32 1.442695, %v5698_v61 }
0x1aca   :  { %v11891_v18 = vpop.permute.xlu1 %11890  ;;  %v5692_v4 = vpop.xlane.xlu0 %5691 }
0x1acb   :  { %12529 = vpow2.f32 %v5713_v59  ;;  %v11893_v8 = vunpack.i.h.bf16 %v11891_v18  ;;  %v11892_v9 = vunpack.i.l.bf16 %v11891_v18  ;;  %v5700_v12 = vsub.f32 %v5666_v23, %v5692_v4 }
0x1acc   :  { %12531 = vpow2.f32 %v5709_v60 }
0x1acd   :  { %v5764_v10 = vpack.c.bf16 %v11893_v8, %v11892_v9  ;;  %v5715_v35 = vmul.f32 1.442695, %v5700_v12 }
0x1acf   :  { %12533 = vpow2.f32 %v5715_v35  ;;  %11500 = vmatprep.subr.bf16.mxu0 %v5764_v10 }
0x1ad0   :  { %11501 = vmatpush3.bf16.msra.mxu0 %v5764_v10  ;;  %v13929_v15 = vpop.eup %12521  ;;  %12535 = vpow2.f32 %v5711_v14 }
0x1ad1   :  { %v5723_v47 = vsel %vm1221_vm2, %v13929_v15, 0.0  ;;  %v12524_v36 = vpop.eup %12523 }
0x1ad2   :  { %5724 = vadd.xlane.f32.xlu1 %v5723_v47  ;;  %v5717_v5 = vsel %vm1221_vm2, %v12524_v36, 0.0 }
0x1ad4   :  { %v12526_v2 = vpop.eup %12525 }
0x1ad5   :  { %v5726_v16 = vsel %vm1221_vm2, %v12526_v2, 0.0  ;;  %v12528_v17 = vpop.eup %12527 }
0x1ad6   :  { %5718 = vadd.xlane.f32.xlu1 %v5717_v5  ;;  %5727 = vadd.xlane.f32.xlu0 %v5726_v16  ;;  %v5720_v63 = vsel %vm1221_vm2, %v12528_v17, 0.0  ;;  %v12256_v5 = vld [vmem:[%s14289_s18 + $0xa0] sm:$0xff]   ;;  %v12257_v16 = vld [vmem:[%s14289_s18 + $0x98] sm:$0xff]  }
0x1ad8   :  { %v13935_v6 = vpop.eup %12529 }
0x1ad9   :  { %v5735_v62 = vsel %vm1221_vm2, %v13935_v6, 0.0  ;;  %v12532_v27 = vpop.eup %12531 }
0x1ada   :  { %5736 = vadd.xlane.f32.xlu1 %v5735_v62  ;;  %5721 = vadd.xlane.f32.xlu0 %v5720_v63  ;;  %v5729_v7 = vsel %vm1221_vm2, %v12532_v27, 0.0  ;;  %v12259_v63 = vld [vmem:[%s14289_s18 + $0x88] sm:$0xff]  }
0x1adc   :  { %v12534_v20 = vpop.eup %12533 }
0x1add   :  { %v5738_v11 = vsel %vm1221_vm2, %v12534_v20, 0.0  ;;  %v12536_v21 = vpop.eup %12535 }
0x1ade   :  { %5730 = vadd.xlane.f32.xlu1 %v5729_v7  ;;  %5739 = vadd.xlane.f32.xlu0 %v5738_v11  ;;  %v5732_v22 = vsel %vm1221_vm2, %v12536_v21, 0.0  ;;  %v12260_v7 = vld [vmem:[%s14289_s18 + $0x80] sm:$0xff]  }
0x1ae2   :  { %5733 = vadd.xlane.f32.xlu0 %v5732_v22 }
0x1aef   :  { %11900 = vrot.lane.b32.xlu1 %v13888_v19, %s13209_s11 }
0x1af8   :  { %11895 = vrot.lane.b32.xlu0 %v13888_v19, %s13187_s20 }
0x1b5b   :  { %v5725_v13 = vpop.xlane.xlu1 %5724 }
0x1b5f   :  { %v5719_v23 = vpop.xlane.xlu1 %5718  ;;  %v5728_v25 = vpop.xlane.xlu0 %5727 }
0x1b60   :  { %12537 = vrcp.f32 %v5719_v23 }
0x1b63   :  { %v5737_v26 = vpop.xlane.xlu1 %5736  ;;  %v5722_v28 = vpop.xlane.xlu0 %5721 }
0x1b64   :  { %12539 = vrcp.f32 %v5722_v28 }
0x1b65   :  { %12541 = vrcp.f32 %v5728_v25 }
0x1b66   :  { %12543 = vrcp.f32 %v5725_v13 }
0x1b67   :  { %v5731_v29 = vpop.xlane.xlu1 %5730  ;;  %v5740_v30 = vpop.xlane.xlu0 %5739 }
0x1b6b   :  { %v5734_v31 = vpop.xlane.xlu0 %5733  ;;  %v11901_v33 = vpop.permute.xlu1 %11900 }
0x1b6c   :  { %12545 = vrcp.f32 %v5734_v31  ;;  %v11903_v39 = vunpack.i.h.bf16 %v11901_v33  ;;  %v11902_v38 = vunpack.i.l.bf16 %v11901_v33 }
0x1b6d   :  { %12547 = vrcp.f32 %v5731_v29  ;;  %v12538_v34 = vpop.eup %12537 }
0x1b6e   :  { %12549 = vrcp.f32 %v5740_v30  ;;  %v5749_v53 = vmul.f32 %v12538_v34, %v12524_v36  ;;  %v5762_v55 = vpack.c.bf16 %v11903_v39, %v11902_v38  ;;  %v12254_v36 = vld [vmem:[%s14289_s18 + $0xb0] sm:$0xff]  }
0x1b6f   :  { %v11896_v37 = vpop.permute.xlu0 %11895  ;;  %12551 = vrcp.f32 %v5737_v26 }
0x1b70   :  { %v11898_v19 = vunpack.i.h.bf16 %v11896_v37  ;;  %v11897_v50 = vunpack.i.l.bf16 %v11896_v37 }
0x1b71   :  { %v12540_v51 = vpop.eup %12539 }
0x1b72   :  { %v5763_v52 = vpack.c.bf16 %v11898_v19, %v11897_v50  ;;  %v5750_v54 = vmul.f32 %v12540_v51, %v12528_v17  ;;  %v12542_v41 = vpop.eup %12541  ;;  %v12258_v17 = vld [vmem:[%s14289_s18 + $0x90] sm:$0xff]  }
0x1b73   :  { %v12544_v58 = vpop.eup %12543  ;;  %v5752_v61 = vmul.f32 %v12542_v41, %v12526_v2  ;;  %v12255_v2 = vld [vmem:[%s14289_s18 + $0xa8] sm:$0xff]  }
0x1b74   :  { %11502 = vmatprep.subr.bf16.mxu0 %v5763_v52  ;;  %v5757_v57 = vpack.c.bf16 %v5750_v54, %v5749_v53  ;;  %v5751_v4 = vmul.f32 %v12544_v58, %v13929_v15 }
0x1b75   :  { %11503 = vmatpush3.bf16.msra.mxu0 %v5763_v52 }
0x1b76   :  { %11504 = vmatprep.subr.bf16.mxu0 %v5762_v55  ;;  %11508 = vmatprep.mubr.msk.bf16.mxu0 %vm1221_vm2, %v5757_v57  ;;  %v5758_v9 = vpack.c.bf16 %v5752_v61, %v5751_v4  ;;  %v10375_v57 = vld [vmem:[#allocation16 + $0x2] ss:$0 sm:$0xff] }
0x1b79   :  { %v12546_v59 = vpop.eup %12545  ;;  %11505 = vmatpush3.bf16.msra.mxu0 %v5762_v55 }
0x1b7a   :  { %v12548_v60 = vpop.eup %12547  ;;  %11506 = vmatprep.subr.bf16.mxu0 %v13891_v3  ;;  %v5754_v18 = vmul.f32 %v12546_v59, %v12536_v21 }
0x1b7b   :  { %v5753_v8 = vmul.f32 %v12548_v60, %v12532_v27  ;;  %v12550_v12 = vpop.eup %12549 }
0x1b7c   :  { %v12552_v35 = vpop.eup %12551  ;;  %v5756_v14 = vmul.f32 %v12550_v12, %v12534_v20  ;;  %v6092_v12 = vld [vmem:[#allocation20 + $0x5e0] sm:$0xff] }
0x1b7d   :  { %11507 = vmatpush3.bf16.msra.mxu0 %v13891_v3  ;;  %v5759_v10 = vpack.c.bf16 %v5754_v18, %v5753_v8  ;;  %v5755_v47 = vmul.f32 %v12552_v35, %v13935_v6  ;;  %v12253_v3 = vld [vmem:[%s14289_s18 + $0xb8] sm:$0xff]  }
0x1b7e   :  { %11516 = vmatprep.subr.bf16.mxu0 %v13207_v1 }
0x1b7f   :  { %v5760_v15 = vpack.c.bf16 %v5756_v14, %v5755_v47  ;;  %v6093_v47 = vld [vmem:[#allocation20 + $0x5e8] sm:$0xff] }
0x1b80   :  { %11509 = vmatmul.mubr.msk.bf16.vlgmr.msra.gmra.mxu0 %vm1221_vm2, %v5758_v9  ;;  %v6088_v9 = vld [vmem:[#allocation20 + $0x5c0] sm:$0xff] }
0x1b81   :  { %11512 = vmatprep.mubr.msk.bf16.mxu0 %vm1221_vm2, %v5759_v10  ;;  %11517 = vmatpush3.bf16.msra.mxu0 %v12253_v3  ;;  %v6089_v10 = vld [vmem:[#allocation20 + $0x5c8] sm:$0xff]  ;;  %v10442_v35 = vcombine.low %v6088_v9, %v6092_v12  ;;  %v10443_v14 = vcombine.high %v6088_v9, %v6092_v12 }
0x1b82   :  { %11518 = vmatprep.subr.bf16.mxu0 %v13207_v1  ;;  %v10445_v3 = vcombine.high %v6089_v10, %v6093_v47 }
0x1b83   :  { %6460 = vmatprep.subr.bf16.mxu1 %v10443_v14  ;;  %v6044_v14 = vld [vmem:[#allocation20 + $0x460] sm:$0xff] }
0x1b84   :  { %6461 = vmatpush1.bf16.msra.mxu1 %v10442_v35  ;;  %v6040_v35 = vld [vmem:[#allocation20 + $0x440] sm:$0xff] }
0x1b85   :  { %11519 = vmatpush3.bf16.msra.mxu0 %v12254_v36 }
0x1b86   :  { %11520 = vmatprep.subr.bf16.mxu0 %v13207_v1 }
0x1b88   :  { %11513 = vmatmul.mubr.msk.bf16.gmra.mxu0 %vm1221_vm2, %v5760_v15  ;;  %v10444_v15 = vcombine.low %v6089_v10, %v6093_v47  ;;  %v6041_v47 = vld [vmem:[#allocation20 + $0x448] sm:$0xff] }
0x1b89   :  { %11532 = vmatprep.mubr.msk.bf16.mxu0 %vm13208_vm0, %v13207_v1  ;;  %11521 = vmatpush3.bf16.msra.mxu0 %v12255_v2 }
0x1b8a   :  { %11522 = vmatprep.subr.bf16.mxu0 %v13207_v1 }
0x1b8d   :  { %11523 = vmatpush3.bf16.msra.mxu0 %v12256_v5 }
0x1b8e   :  { %11524 = vmatprep.subr.bf16.mxu0 %v13207_v1 }
0x1b91   :  { %11525 = vmatpush3.bf16.msra.mxu0 %v12257_v16 }
0x1b92   :  { %11526 = vmatprep.subr.bf16.mxu0 %v13207_v1 }
0x1b95   :  { %11527 = vmatpush3.bf16.msra.mxu0 %v12258_v17 }
0x1b96   :  { %11528 = vmatprep.subr.bf16.mxu0 %v13207_v1 }
0x1b99   :  { %11529 = vmatpush3.bf16.msra.mxu0 %v12259_v63  ;;  %v6084_v63 = vld [vmem:[#allocation20 + $0x5a0] sm:$0xff] }
0x1b9a   :  { %11530 = vmatprep.subr.bf16.mxu0 %v13207_v1 }
0x1b9d   :  { %11531 = vmatpush3.bf16.msra.mxu0 %v12260_v7 }
0x1b9e   :  { %6503 = vmatprep.subr.bf16.mxu0 %v10445_v3  ;;  %v6045_v3 = vld [vmem:[#allocation20 + $0x468] sm:$0xff] }
0x1c40   :  { %v11510_v6 = vpop.f32.mrf.mxu0 }
0x1c42   :  { %v5811_v62 = vpop.f32.mrf.mxu0 }
0x1c44   :  { %v11511_v27 = vpop.f32.mrf.mxu0 }
0x1c45   :  { %v11904_v20 = vpack.i.bf16 %v11511_v27, %v11510_v6  ;;  %v6081_v27 = vld [vmem:[#allocation20 + $0x588] sm:$0xff] }
0x1c46   :  { %v5814_v11 = vpop.f32.mrf.mxu0 }
0x1c47   :  { %11905 = vrot.lane.b32.xlu1 %v11904_v20, %s13184_s26 }
0x1c48   :  { %v11514_v21 = vpop.f32.mrf.mxu0 }
0x1c4a   :  { %v5827_v22 = vpop.f32.mrf.mxu0 }
0x1c4c   :  { %v11515_v13 = vpop.f32.mrf.mxu0 }
0x1c4d   :  { %v11914_v23 = vpack.i.bf16 %v11515_v13, %v11514_v21  ;;  %v6072_v13 = vld [vmem:[#allocation20 + $0x540] sm:$0xff] }
0x1c4e   :  { %v5830_v25 = vpop.f32.mrf.mxu0 }
0x1c4f   :  { %v11909_v26 = vpack.i.bf16 %v5830_v25, %v5827_v22  ;;  %11915 = vrot.lane.b32.xlu1 %v11914_v23, %s13209_s11  ;;  %v6076_v23 = vld [vmem:[#allocation20 + $0x560] sm:$0xff]  ;;  %v6073_v25 = vld [vmem:[#allocation20 + $0x548] sm:$0xff] }
0x1c51   :  { %11910 = vrot.lane.b32.xlu0 %v11909_v26, %s13187_s20  ;;  %v10427_v26 = vcombine.high %v6072_v13, %v6076_v23 }
0x1cb9   :  { %v11906_v28 = vpop.permute.xlu1 %11905 }
0x1cba   :  { %v11908_v29 = vunpack.i.h.bf16 %v11906_v28  ;;  %v11907_v30 = vunpack.i.l.bf16 %v11906_v28  ;;  %v6077_v28 = vld [vmem:[#allocation20 + $0x568] sm:$0xff] }
0x1cbc   :  { %v5866_v39 = vsel %vm1131_vm1, %v5811_v62, %v11907_v30  ;;  %v5867_v38 = vsel %vm1131_vm1, %v5814_v11, %v11908_v29  ;;  %v6080_v62 = vld [vmem:[#allocation20 + $0x580] sm:$0xff]  ;;  %v6085_v11 = vld [vmem:[#allocation20 + $0x5a8] sm:$0xff]  ;;  %v10426_v29 = vcombine.low %v6072_v13, %v6076_v23  ;;  %v10428_v30 = vcombine.low %v6073_v25, %v6077_v28  ;;  %v6091_v23 = vld [vmem:[#allocation20 + $0x5d8] sm:$0xff] }
0x1cbd   :  { %v10435_v20 = vcombine.high %v6080_v62, %v6084_v63  ;;  %v10434_v7 = vcombine.low %v6080_v62, %v6084_v63  ;;  %v10436_v21 = vcombine.low %v6081_v27, %v6085_v11  ;;  %v10437_v22 = vcombine.high %v6081_v27, %v6085_v11  ;;  %v6037_v27 = vld [vmem:[#allocation20 + $0x428] sm:$0xff]  ;;  %v6094_v11 = vld [vmem:[#allocation20 + $0x5f0] sm:$0xff] }
0x1cbf   :  { %6462 = vmatprep.subr.bf16.mxu1 %v10435_v20  ;;  %v6090_v20 = vld [vmem:[#allocation20 + $0x5d0] sm:$0xff] }
0x1cc0   :  { %6463 = vmatpush1.bf16.msra.mxu1 %v10434_v7  ;;  %v10447_v13 = vcombine.high %v6090_v20, %v6094_v11 }
0x1cc1   :  { %v11916_v31 = vpop.permute.xlu1 %11915  ;;  %6464 = vmatprep.subr.bf16.mxu1 %v10427_v26 }
0x1cc2   :  { %v11918_v19 = vunpack.i.h.bf16 %v11916_v31  ;;  %v11917_v50 = vunpack.i.l.bf16 %v11916_v31  ;;  %v10429_v31 = vcombine.high %v6073_v25, %v6077_v28  ;;  %v6095_v25 = vld [vmem:[#allocation20 + $0x5f8] sm:$0xff] }
0x1cc3   :  { %v11911_v33 = vpop.permute.xlu0 %11910  ;;  %v10448_v26 = vcombine.low %v6091_v23, %v6095_v25  ;;  %v10449_v28 = vcombine.high %v6091_v23, %v6095_v25  ;;  %v6051_v23 = vld [vmem:[#allocation20 + $0x498] sm:$0xff] }
0x1cc4   :  { %v11913_v37 = vunpack.i.h.bf16 %v11911_v33  ;;  %v11912_v34 = vunpack.i.l.bf16 %v11911_v33  ;;  %6465 = vmatpush1.bf16.msra.mxu1 %v10426_v29  ;;  %v6064_v33 = vld [vmem:[#allocation20 + $0x500] sm:$0xff]  ;;  %v6055_v25 = vld [vmem:[#allocation20 + $0x4b8] sm:$0xff] }
0x1cc6   :  { %v5869_v51 = vsel %vm1221_vm2, %v5867_v38, %v11913_v37  ;;  %v5868_v52 = vsel %vm1221_vm2, %v5866_v39, %v11912_v34  ;;  %v6068_v37 = vld [vmem:[#allocation20 + $0x520] sm:$0xff]  ;;  %v6065_v34 = vld [vmem:[#allocation20 + $0x508] sm:$0xff] }
0x1cc7   :  { %v5871_v53 = vsel %vm1423_vm3, %v5869_v51, %v11918_v19  ;;  %v5870_v54 = vsel %vm1423_vm3, %v5868_v52, %v11917_v50  ;;  %v10419_v39 = vcombine.high %v6064_v33, %v6068_v37  ;;  %v6069_v38 = vld [vmem:[#allocation20 + $0x528] sm:$0xff]  ;;  %v10418_v19 = vcombine.low %v6064_v33, %v6068_v37  ;;  %v6056_v52 = vld [vmem:[#allocation20 + $0x4c0] sm:$0xff] }
0x1cc8   :  { %v5889_v55 = vpack.c.bf16 %v5871_v53, %v5870_v54  ;;  %v10420_v50 = vcombine.low %v6065_v34, %v6069_v38  ;;  %v10421_v51 = vcombine.high %v6065_v34, %v6069_v38  ;;  %v6060_v53 = vld [vmem:[#allocation20 + $0x4e0] sm:$0xff]  ;;  %v6057_v54 = vld [vmem:[#allocation20 + $0x4c8] sm:$0xff] }
0x1cc9   :  { %6466 = vmatprep.subr.bf16.mxu1 %v10419_v39 }
0x1cca   :  { %11533 = vmatmul.mubr.bf16.vlgmr.msra.gmra.mxu0 %v5889_v55  ;;  %6467 = vmatpush1.bf16.msra.mxu1 %v10418_v19  ;;  %v10411_v55 = vcombine.high %v6056_v52, %v6060_v53  ;;  %v10384_v19 = vld [vmem:[#allocation17 + $0x2] ss:$0 sm:$0xff] }
0x1ccb   :  { %6535 = vmatprep.mubr.bf16.mxu0 %v13206_v0  ;;  %6504 = vmatpush1.bf16.msra.mxu0 %v10444_v15  ;;  %v10395_v15 = vcombine.high %v6040_v35, %v6044_v14 }
0x1ccc   :  { %6505 = vmatprep.subr.bf16.mxu0 %v10437_v22  ;;  %6468 = vmatprep.subr.bf16.mxu1 %v10411_v55  ;;  %v10446_v22 = vcombine.low %v6090_v20, %v6094_v11  ;;  %v6082_v55 = vld [vmem:[#allocation20 + $0x590] sm:$0xff] }
0x1ccf   :  { %6506 = vmatpush1.bf16.msra.mxu0 %v10436_v21 }
0x1cd0   :  { %6507 = vmatprep.subr.bf16.mxu0 %v10429_v31 }
0x1cd3   :  { %6508 = vmatpush1.bf16.msra.mxu0 %v10428_v30 }
0x1cd4   :  { %6509 = vmatprep.subr.bf16.mxu0 %v10421_v51 }
0x1cd7   :  { %6510 = vmatpush1.bf16.msra.mxu0 %v10420_v50 }
0x1d8a   :  { %v5980_v41 = vpop.f32.mrf.mxu0 }
0x1d8b   :  { %v5981_v58 = vadd.f32 %v10375_v57, %v5980_v41  ;;  %v10410_v41 = vcombine.low %v6056_v52, %v6060_v53  ;;  %v10385_v53 = vld [vmem:[#allocation19 + $0x2] ss:$0 sm:$0xff] }
0x1d8c   :  { %v11534_v59 = vpop.f32.mrf.mxu0 }
0x1d8d   :  { %v5987_v60 = vadd.f32 %v5981_v58, %v13879_v56  ;;  %6469 = vmatpush1.bf16.msra.mxu1 %v10410_v41  ;;  %v6083_v41 = vld [vmem:[#allocation20 + $0x598] sm:$0xff] }
0x1d8e   :  { %v5983_v61 = vpop.f32.mrf.mxu0 }
0x1d8f   :  { %v5984_v18 = vadd.f32 %v10375_v57, %v5983_v61  ;;  %5993 = vadd.xlane.f32.xlu0 %v5987_v60  ;;  %v6061_v57 = vld [vmem:[#allocation20 + $0x4e8] sm:$0xff]  ;;  %v6052_v61 = vld [vmem:[#allocation20 + $0x4a0] sm:$0xff] }
0x1d90   :  { %v11535_v4 = vpop.f32.mrf.mxu0  ;;  %v10412_v58 = vcombine.low %v6057_v54, %v6061_v57  ;;  %v10413_v59 = vcombine.high %v6057_v54, %v6061_v57  ;;  %v6086_v57 = vld [vmem:[#allocation20 + $0x5b0] sm:$0xff] }
0x1d91   :  { %v5988_v8 = vadd.f32 %v5984_v18, %v13881_v24  ;;  %v6049_v18 = vld [vmem:[#allocation20 + $0x488] sm:$0xff] }
0x1d92   :  { %6511 = vmatprep.subr.bf16.mxu0 %v10413_v59 }
0x1d93   :  { %5995 = vadd.xlane.f32.xlu1 %v5988_v8  ;;  %6512 = vmatpush1.bf16.msra.mxu0 %v10412_v58  ;;  %v6087_v58 = vld [vmem:[#allocation20 + $0x5b8] sm:$0xff] }
0x1e18   :  { %v5994_v56 = vpop.xlane.xlu0 %5993 }
0x1e19   :  { %v5997_v36 = vmul.f32 0.0078125, %v5994_v56  ;;  %v10394_v56 = vcombine.low %v6040_v35, %v6044_v14 }
0x1e1b   :  { %v13985_v2 = vsub.f32 %v5987_v60, %v5997_v36  ;;  %v6048_v60 = vld [vmem:[#allocation20 + $0x480] sm:$0xff]  ;;  %v10396_v36 = vcombine.low %v6041_v47, %v6045_v3 }
0x1e1c   :  { %v5996_v5 = vpop.xlane.xlu1 %5995  ;;  %v10403_v4 = vcombine.high %v6048_v60, %v6052_v61  ;;  %v10402_v9 = vcombine.low %v6048_v60, %v6052_v61 }
0x1e1d   :  { %v5998_v16 = vmul.f32 0.0078125, %v5996_v5  ;;  %v6001_v24 = vmul.f32 %v13985_v2, %v13985_v2  ;;  %v10397_v5 = vcombine.high %v6041_v47, %v6045_v3  ;;  %v6066_v47 = vld [vmem:[#allocation20 + $0x510] sm:$0xff]  ;;  %v6067_v3 = vld [vmem:[#allocation20 + $0x518] sm:$0xff] }
0x1e1e   :  { %6470 = vmatprep.subr.bf16.mxu1 %v10403_v4  ;;  %v6074_v4 = vld [vmem:[#allocation20 + $0x550] sm:$0xff] }
0x1e1f   :  { %v13989_v17 = vsub.f32 %v5988_v8, %v5998_v16  ;;  %6003 = vadd.xlane.f32.xlu0 %v6001_v24  ;;  %v6053_v8 = vld [vmem:[#allocation20 + $0x4a8] sm:$0xff]  ;;  %6471 = vmatpush1.bf16.msra.mxu1 %v10402_v9  ;;  %v6032_v16 = vld [vmem:[#allocation20 + $0x400] sm:$0xff]  ;;  %v6079_v9 = vld [vmem:[#allocation20 + $0x578] sm:$0xff] }
0x1e20   :  { %v10404_v12 = vcombine.low %v6049_v18, %v6053_v8  ;;  %v10405_v10 = vcombine.high %v6049_v18, %v6053_v8  ;;  %6472 = vmatprep.subr.bf16.mxu1 %v10395_v15  ;;  %v6036_v24 = vld [vmem:[#allocation20 + $0x420] sm:$0xff]  ;;  %v10441_v18 = vcombine.high %v6083_v41, %v6087_v58  ;;  %v6078_v8 = vld [vmem:[#allocation20 + $0x570] sm:$0xff] }
0x1e21   :  { %v6002_v6 = vmul.f32 %v13989_v17, %v13989_v17  ;;  %v10386_v62 = vcombine.low %v6032_v16, %v6036_v24  ;;  %v10387_v63 = vcombine.high %v6032_v16, %v6036_v24  ;;  %v10431_v35 = vcombine.high %v6074_v4, %v6078_v8  ;;  %v6070_v15 = vld [vmem:[#allocation20 + $0x530] sm:$0xff] }
0x1e22   :  { %6513 = vmatprep.subr.bf16.mxu0 %v10405_v10  ;;  %v10440_v10 = vcombine.low %v6083_v41, %v6087_v58  ;;  %v10423_v16 = vcombine.high %v6066_v47, %v6070_v15  ;;  %v10422_v20 = vcombine.low %v6066_v47, %v6070_v15  ;;  %v12269_v47 = vld [vmem:[#allocation23 + $0x468] sm:$0xff]  }
0x1e23   :  { %6005 = vadd.xlane.f32.xlu0 %v6002_v6  ;;  %6514 = vmatpush1.bf16.msra.mxu0 %v10404_v12  ;;  %v6033_v6 = vld [vmem:[#allocation20 + $0x408] sm:$0xff]  ;;  %v10438_v12 = vcombine.low %v6082_v55, %v6086_v57 }
0x1e24   :  { %6515 = vmatprep.subr.bf16.mxu0 %v10397_v5  ;;  %6473 = vmatpush1.bf16.msra.mxu1 %v10394_v56  ;;  %v10388_v7 = vcombine.low %v6033_v6, %v6037_v27  ;;  %v10389_v21 = vcombine.high %v6033_v6, %v6037_v27  ;;  %v6071_v56 = vld [vmem:[#allocation20 + $0x538] sm:$0xff]  ;;  %v6058_v6 = vld [vmem:[#allocation20 + $0x4d0] sm:$0xff]  ;;  %v12270_v15 = vld [vmem:[#allocation23 + $0x4e8] sm:$0xff]  }
0x1e25   :  { %6474 = vmatprep.subr.bf16.mxu1 %v10387_v63  ;;  %v10425_v24 = vcombine.high %v6067_v3, %v6071_v56  ;;  %v6059_v63 = vld [vmem:[#allocation20 + $0x4d8] sm:$0xff]  ;;  %v10424_v11 = vcombine.low %v6067_v3, %v6071_v56  ;;  %v12271_v3 = vld [vmem:[#allocation23 + $0x428] sm:$0xff]  }
0x1e26   :  { %v6063_v27 = vld [vmem:[#allocation20 + $0x4f8] sm:$0xff]  ;;  %v12272_v56 = vld [vmem:[#allocation23 + $0x4a8] sm:$0xff]  }
0x1e27   :  { %6516 = vmatpush1.bf16.msra.mxu0 %v10396_v36  ;;  %v10430_v36 = vcombine.low %v6074_v4, %v6078_v8  ;;  %v12261_v4 = vld [vmem:[#allocation23 + $0x478] sm:$0xff]  }
0x1e28   :  { %6517 = vmatprep.subr.bf16.mxu0 %v10389_v21  ;;  %6475 = vmatpush1.bf16.msra.mxu1 %v10386_v62  ;;  %v6062_v62 = vld [vmem:[#allocation20 + $0x4f0] sm:$0xff]  ;;  %v10417_v21 = vcombine.high %v6059_v63, %v6063_v27  ;;  %v12262_v8 = vld [vmem:[#allocation23 + $0x4f8] sm:$0xff]  }
0x1e29   :  { %6546 = vmatprep.subr.bf16.mxu1 %v10447_v13  ;;  %v6054_v13 = vld [vmem:[#allocation20 + $0x4b0] sm:$0xff] }
0x1e2b   :  { %6518 = vmatpush1.bf16.msra.mxu0 %v10388_v7  ;;  %v10415_v7 = vcombine.high %v6058_v6, %v6062_v62 }
0x1e2c   :  { %6589 = vmatprep.subr.bf16.mxu0 %v10449_v28  ;;  %v10416_v28 = vcombine.low %v6059_v63, %v6063_v27  ;;  %v12280_v63 = vld [vmem:[#allocation23 + $0x498] sm:$0xff]   ;;  %v12281_v27 = vld [vmem:[#allocation23 + $0x450] sm:$0xff]  }
0x1ea8   :  { %v6004_v29 = vpop.xlane.xlu0 %6003 }
0x1ea9   :  { %v6007_v30 = vmul.f32 0.0078125, %v6004_v29 }
0x1eab   :  { %v6009_v31 = vadd.f32 1e-05, %v6007_v30  ;;  %v10409_v30 = vcombine.high %v6051_v23, %v6055_v25 }
0x1eac   :  { %v6006_v33 = vpop.xlane.xlu0 %6005 }
0x1ead   :  { %12553 = vrsqrt.f32 %v6009_v31  ;;  %v6008_v37 = vmul.f32 0.0078125, %v6006_v33  ;;  %v6042_v31 = vld [vmem:[#allocation20 + $0x450] sm:$0xff] }
0x1eae   :  { %v6046_v33 = vld [vmem:[#allocation20 + $0x470] sm:$0xff] }
0x1eaf   :  { %v6010_v34 = vadd.f32 1e-05, %v6008_v37  ;;  %v6043_v37 = vld [vmem:[#allocation20 + $0x458] sm:$0xff] }
0x1eb1   :  { %12555 = vrsqrt.f32 %v6010_v34  ;;  %v6047_v34 = vld [vmem:[#allocation20 + $0x478] sm:$0xff] }
0x1eba   :  { %v12554_v39 = vpop.eup %12553 }
0x1ebb   :  { %v6013_v38 = vmul.f32 %v12554_v39, %v13985_v2  ;;  %v10439_v2 = vcombine.high %v6082_v55, %v6086_v57  ;;  %v10398_v55 = vcombine.low %v6042_v31, %v6046_v33  ;;  %v10400_v57 = vcombine.low %v6043_v37, %v6047_v34 }
0x1ebd   :  { %v6021_v52 = vmul.f32 %v10384_v19, %v6013_v38  ;;  %v10408_v38 = vcombine.low %v6051_v23, %v6055_v25  ;;  %v12288_v23 = vld [vmem:[#allocation23 + $0x488] sm:$0xff]   ;;  %v12289_v25 = vld [vmem:[#allocation23 + $0x440] sm:$0xff]  }
0x1ebe   :  { %v12556_v50 = vpop.eup %12555 }
0x1ebf   :  { %v6014_v51 = vmul.f32 %v12556_v50, %v13989_v17  ;;  %v13995_v59 = vadd.f32 %v10385_v53, %v6021_v52  ;;  %v6075_v17 = vld [vmem:[#allocation20 + $0x558] sm:$0xff]  ;;  %v10401_v50 = vcombine.high %v6043_v37, %v6047_v34  ;;  %v6038_v52 = vld [vmem:[#allocation20 + $0x430] sm:$0xff] }
0x1ec0   :  { %v10433_v14 = vcombine.high %v6075_v17, %v6079_v9  ;;  %v10432_v5 = vcombine.low %v6075_v17, %v6079_v9  ;;  %v12263_v17 = vld [vmem:[#allocation23 + $0x438] sm:$0xff]  }
0x1ec1   :  { %v6022_v54 = vmul.f32 %v10384_v19, %v6014_v51  ;;  %v10399_v19 = vcombine.high %v6042_v31, %v6046_v33  ;;  %v6034_v51 = vld [vmem:[#allocation20 + $0x410] sm:$0xff]  ;;  %v12264_v9 = vld [vmem:[#allocation23 + $0x4b8] sm:$0xff]  }
0x1ec2   :  { %v10391_v41 = vcombine.high %v6034_v51, %v6038_v52  ;;  %v12294_v31 = vld [vmem:[#allocation23 + $0x5f8] sm:$0xff]   ;;  %v14009_v33 = vld [vmem:[#allocation22 + $0x10] sm:$0xff] }
0x1ec3   :  { %v13997_v60 = vadd.f32 %v10385_v53, %v6022_v54  ;;  %v6035_v53 = vld [vmem:[#allocation20 + $0x418] sm:$0xff] }
0x1ec4   :  { %v6039_v54 = vld [vmem:[#allocation20 + $0x438] sm:$0xff] }
0x1ec5   :  { %v14001_v61 = vpack.c.bf16 %v13997_v60, %v13995_v59  ;;  %v10393_v58 = vcombine.high %v6035_v53, %v6039_v54 }
0x1ec7   :  { %6493 = vmatmul.mubr.bf16.vlgmr.msra.gmra.mxu1 %v14001_v61  ;;  %6536 = vmatmul.mubr.bf16.vlgmr.msra.gmra.mxu0 %v14001_v61 }
0x1ec8   :  { %6547 = vmatpush1.bf16.msra.mxu1 %v10446_v22  ;;  %6590 = vmatpush1.bf16.msra.mxu0 %v10448_v26  ;;  %v6050_v22 = vld [vmem:[#allocation20 + $0x490] sm:$0xff]  ;;  %v10414_v26 = vcombine.low %v6058_v6, %v6062_v62  ;;  %v12278_v6 = vld [vmem:[#allocation23 + $0x4d8] sm:$0xff]  }
0x1ec9   :  { %6548 = vmatprep.subr.bf16.mxu1 %v10439_v2  ;;  %6591 = vmatprep.subr.bf16.mxu0 %v10441_v18  ;;  %v10407_v29 = vcombine.high %v6050_v22, %v6054_v13  ;;  %v10406_v39 = vcombine.low %v6050_v22, %v6054_v13  ;;  %v10390_v2 = vcombine.low %v6034_v51, %v6038_v52  ;;  %v12279_v62 = vld [vmem:[#allocation23 + $0x418] sm:$0xff]   ;;  %v12286_v22 = vld [vmem:[#allocation23 + $0x4c8] sm:$0xff]  }
0x1eca   :  { %6578 = vmatprep.mubr.bf16.mxu1 %v13206_v0  ;;  %6621 = vmatprep.mubr.bf16.mxu0 %v13206_v0  ;;  %v10392_v18 = vcombine.low %v6035_v53, %v6039_v54  ;;  %v12287_v13 = vld [vmem:[#allocation23 + $0x408] sm:$0xff]  }
0x1ecc   :  { %6549 = vmatpush1.bf16.msra.mxu1 %v10438_v12  ;;  %6592 = vmatpush1.bf16.msra.mxu0 %v10440_v10  ;;  %v12265_v12 = vld [vmem:[#allocation23 + $0x470] sm:$0xff]  }
0x1ecd   :  { %6550 = vmatprep.subr.bf16.mxu1 %v10431_v35  ;;  %6593 = vmatprep.subr.bf16.mxu0 %v10433_v14  ;;  %v12266_v10 = vld [vmem:[#allocation23 + $0x4f0] sm:$0xff]  }
0x1ece   :  { %v12267_v35 = vld [vmem:[#allocation23 + $0x430] sm:$0xff]  }
0x1ecf   :  { %v12268_v14 = vld [vmem:[#allocation23 + $0x4b0] sm:$0xff]  }
0x1ed0   :  { %6551 = vmatpush1.bf16.msra.mxu1 %v10430_v36  ;;  %6594 = vmatpush1.bf16.msra.mxu0 %v10432_v5  ;;  %v12273_v36 = vld [vmem:[#allocation23 + $0x460] sm:$0xff]  }
0x1ed1   :  { %6552 = vmatprep.subr.bf16.mxu1 %v10423_v16  ;;  %6595 = vmatprep.subr.bf16.mxu0 %v10425_v24  ;;  %v12274_v5 = vld [vmem:[#allocation23 + $0x4e0] sm:$0xff]   ;;  %v12277_v24 = vld [vmem:[#allocation23 + $0x458] sm:$0xff]  }
0x1ed2   :  { %v12275_v16 = vld [vmem:[#allocation23 + $0x420] sm:$0xff]  }
0x1ed4   :  { %6553 = vmatpush1.bf16.msra.mxu1 %v10422_v20  ;;  %6596 = vmatpush1.bf16.msra.mxu0 %v10424_v11  ;;  %v12282_v20 = vld [vmem:[#allocation23 + $0x4d0] sm:$0xff]  }
0x1ed5   :  { %6554 = vmatprep.subr.bf16.mxu1 %v10415_v7  ;;  %6597 = vmatprep.subr.bf16.mxu0 %v10417_v21  ;;  %v12283_v11 = vld [vmem:[#allocation23 + $0x410] sm:$0xff]   ;;  %v12285_v21 = vld [vmem:[#allocation23 + $0x448] sm:$0xff]  }
0x1ed6   :  { %v12284_v7 = vld [vmem:[#allocation23 + $0x490] sm:$0xff]  }
0x1ed8   :  { %6555 = vmatpush1.bf16.msra.mxu1 %v10414_v26  ;;  %6598 = vmatpush1.bf16.msra.mxu0 %v10416_v28  ;;  %v12290_v26 = vld [vmem:[#allocation23 + $0x4c0] sm:$0xff]  }
0x1ed9   :  { %6556 = vmatprep.subr.bf16.mxu1 %v10407_v29  ;;  %6599 = vmatprep.subr.bf16.mxu0 %v10409_v30  ;;  %v12291_v28 = vld [vmem:[#allocation23 + $0x400] sm:$0xff]   ;;  %v12293_v30 = vld [vmem:[#allocation23 + $0x578] sm:$0xff]  }
0x1eda   :  { %v12292_v29 = vld [vmem:[#allocation23 + $0x480] sm:$0xff]  }
0x1edc   :  { %6557 = vmatpush1.bf16.msra.mxu1 %v10406_v39  ;;  %6600 = vmatpush1.bf16.msra.mxu0 %v10408_v38  ;;  %v6107_v39 = vrot.slane %v14009_v33, %v13508_v45  ;;  %v6115_v38 = vrot.slane %v14009_v33, %v13635_v46 }
0x1edd   :  { %6558 = vmatprep.subr.bf16.mxu1 %v10399_v19  ;;  %6601 = vmatprep.subr.bf16.mxu0 %v10401_v50  ;;  %v6103_v19 = vrot.slane %v14009_v33, %v13502_v42  ;;  %v6111_v50 = vrot.slane %v14009_v33, %v13505_v44 }
0x1ee0   :  { %6559 = vmatpush1.bf16.msra.mxu1 %v10398_v55  ;;  %6602 = vmatpush1.bf16.msra.mxu0 %v10400_v57 }
0x1ee1   :  { %6560 = vmatprep.subr.bf16.mxu1 %v10391_v41  ;;  %6603 = vmatprep.subr.bf16.mxu0 %v10393_v58 }
0x1ee4   :  { %6561 = vmatpush1.bf16.msra.mxu1 %v10390_v2  ;;  %6604 = vmatpush1.bf16.msra.mxu0 %v10392_v18 }
0x1ee5   :  { %11047 = vmatprep.subr.bf16.mxu1 %v12261_v4  ;;  %11069 = vmatprep.subr.bf16.mxu0 %v12262_v8 }
0x1ee7   :  { %6579 = vmatmul.mubr.bf16.vlgmr.msra.gmra.mxu1 %v14001_v61  ;;  %6622 = vmatmul.mubr.bf16.vlgmr.msra.gmra.mxu0 %v14001_v61  ;;  %v12276_v61 = vld [vmem:[#allocation23 + $0x4a0] sm:$0xff]  }
0x1ee8   :  { %11048 = vmatpush3.bf16.msra.mxu1 %v12263_v17  ;;  %11070 = vmatpush3.bf16.msra.mxu0 %v12264_v9 }
0x1ee9   :  { %11049 = vmatprep.subr.bf16.mxu1 %v12265_v12  ;;  %11071 = vmatprep.subr.bf16.mxu0 %v12266_v10 }
0x1eec   :  { %11050 = vmatpush3.bf16.msra.mxu1 %v12267_v35  ;;  %11072 = vmatpush3.bf16.msra.mxu0 %v12268_v14 }
0x1eed   :  { %11051 = vmatprep.subr.bf16.mxu1 %v12269_v47  ;;  %11073 = vmatprep.subr.bf16.mxu0 %v12270_v15 }
0x1ef0   :  { %11052 = vmatpush3.bf16.msra.mxu1 %v12271_v3  ;;  %11074 = vmatpush3.bf16.msra.mxu0 %v12272_v56 }
0x1ef1   :  { %11053 = vmatprep.subr.bf16.mxu1 %v12273_v36  ;;  %11075 = vmatprep.subr.bf16.mxu0 %v12274_v5 }
0x1ef4   :  { %11054 = vmatpush3.bf16.msra.mxu1 %v12275_v16  ;;  %11076 = vmatpush3.bf16.msra.mxu0 %v12276_v61  ;;  %v12295_v16 = vld [vmem:[#allocation23 + $0x538] sm:$0xff]  }
0x1ef5   :  { %11055 = vmatprep.subr.bf16.mxu1 %v12277_v24  ;;  %11077 = vmatprep.subr.bf16.mxu0 %v12278_v6  ;;  %v12296_v61 = vld [vmem:[#allocation23 + $0x5b8] sm:$0xff]  }
0x1ef8   :  { %11056 = vmatpush3.bf16.msra.mxu1 %v12279_v62  ;;  %11078 = vmatpush3.bf16.msra.mxu0 %v12280_v63  ;;  %v12297_v62 = vld [vmem:[#allocation23 + $0x570] sm:$0xff]  }
0x1ef9   :  { %11057 = vmatprep.subr.bf16.mxu1 %v12281_v27  ;;  %11079 = vmatprep.subr.bf16.mxu0 %v12282_v20  ;;  %v12298_v63 = vld [vmem:[#allocation23 + $0x5f0] sm:$0xff]  }
0x1efa   :  { %v12299_v27 = vld [vmem:[#allocation23 + $0x530] sm:$0xff]  }
0x1efb   :  { %v12300_v20 = vld [vmem:[#allocation23 + $0x5b0] sm:$0xff]  }
0x1efc   :  { %11058 = vmatpush3.bf16.msra.mxu1 %v12283_v11  ;;  %11080 = vmatpush3.bf16.msra.mxu0 %v12284_v7  ;;  %v12301_v11 = vld [vmem:[#allocation23 + $0x568] sm:$0xff]  }
0x1efd   :  { %11059 = vmatprep.subr.bf16.mxu1 %v12285_v21  ;;  %11081 = vmatprep.subr.bf16.mxu0 %v12286_v22  ;;  %v12302_v7 = vld [vmem:[#allocation23 + $0x5e8] sm:$0xff]  }
0x1efe   :  { %v12303_v21 = vld [vmem:[#allocation23 + $0x528] sm:$0xff]  }
0x1eff   :  { %v12304_v22 = vld [vmem:[#allocation23 + $0x5a8] sm:$0xff]  }
0x1f00   :  { %11060 = vmatpush3.bf16.msra.mxu1 %v12287_v13  ;;  %11082 = vmatpush3.bf16.msra.mxu0 %v12288_v23  ;;  %v12305_v13 = vld [vmem:[#allocation23 + $0x560] sm:$0xff]  }
0x1f01   :  { %11061 = vmatprep.subr.bf16.mxu1 %v12289_v25  ;;  %11083 = vmatprep.subr.bf16.mxu0 %v12290_v26  ;;  %v12306_v23 = vld [vmem:[#allocation23 + $0x5e0] sm:$0xff]  }
0x1f02   :  { %v12307_v25 = vld [vmem:[#allocation23 + $0x520] sm:$0xff]  }
0x1f03   :  { %v12308_v26 = vld [vmem:[#allocation23 + $0x5a0] sm:$0xff]  }
0x1f04   :  { %11062 = vmatpush3.bf16.msra.mxu1 %v12291_v28  ;;  %11084 = vmatpush3.bf16.msra.mxu0 %v12292_v29  ;;  %v12309_v28 = vld [vmem:[#allocation23 + $0x558] sm:$0xff]  }
0x1f05   :  { %11091 = vmatprep.subr.bf16.mxu1 %v12293_v30  ;;  %11113 = vmatprep.subr.bf16.mxu0 %v12294_v31  ;;  %v12310_v29 = vld [vmem:[#allocation23 + $0x5d8] sm:$0xff]  }
0x1f06   :  { %v12311_v30 = vld [vmem:[#allocation23 + $0x518] sm:$0xff]  }
0x1f07   :  { %v12312_v31 = vld [vmem:[#allocation23 + $0x598] sm:$0xff]  }
0x1f87   :  { %v6494_v37 = vpop.f32.mrf.mxu1  ;;  %v6537_v34 = vpop.f32.mrf.mxu0 }
0x1f88   :  { %v6495_v2 = vadd.f32 %v6494_v37, %v6103_v19  ;;  %v6538_v18 = vadd.f32 %v6537_v34, %v6111_v50  ;;  %v12313_v37 = vld [vmem:[#allocation23 + $0x550] sm:$0xff]  }
0x1f89   :  { %v6496_v51 = vpop.f32.mrf.mxu1  ;;  %v6539_v52 = vpop.f32.mrf.mxu0  ;;  %v12314_v34 = vld [vmem:[#allocation23 + $0x5d0] sm:$0xff]  }
0x1f8a   :  { %v6497_v55 = vadd.f32 %v6496_v51, %v6107_v39  ;;  %v6540_v57 = vadd.f32 %v6539_v52, %v6115_v38  ;;  %v6632_v3 = vmax.f32 %v6495_v2, 0.0  ;;  %v6634_v56 = vmax.f32 %v6538_v18, 0.0  ;;  %v12317_v51 = vld [vmem:[#allocation23 + $0x548] sm:$0xff]  }
0x1f8b   :  { %v6498_v53 = vpop.f32.mrf.mxu1  ;;  %v6541_v54 = vpop.f32.mrf.mxu0  ;;  %v12318_v52 = vld [vmem:[#allocation23 + $0x5c8] sm:$0xff]  }
0x1f8c   :  { %v6499_v41 = vadd.f32 %v6498_v53, %v6103_v19  ;;  %v6542_v58 = vadd.f32 %v6541_v54, %v6111_v50  ;;  %v6633_v35 = vmax.f32 %v6497_v55, 0.0  ;;  %v6635_v14 = vmax.f32 %v6540_v57, 0.0  ;;  %v12319_v2 = vld [vmem:[#allocation23 + $0x508] sm:$0xff]  }
0x1f8d   :  { %v6500_v4 = vpop.f32.mrf.mxu1  ;;  %v6543_v8 = vpop.f32.mrf.mxu0  ;;  %v6123_v53 = vrot.slane %v14009_v33, %v13648_v40  ;;  %v6131_v54 = vrot.slane %v14009_v33, %v13651_v43  ;;  %v6119_v55 = vrot.slane %v14009_v33, %v13654_v48  ;;  %v6127_v57 = vrot.slane %v14009_v33, %v13657_v49  ;;  %v12320_v18 = vld [vmem:[#allocation23 + $0x588] sm:$0xff]  }
0x1f8e   :  { %v6501_v17 = vadd.f32 %v6500_v4, %v6107_v39  ;;  %v6544_v9 = vadd.f32 %v6543_v8, %v6115_v38  ;;  %v6640_v12 = vmax.f32 %v6499_v41, 0.0  ;;  %v6642_v10 = vmax.f32 %v6542_v58, 0.0  ;;  %v12315_v39 = vld [vmem:[#allocation23 + $0x510] sm:$0xff]  }
0x1f8f   :  { %v12316_v38 = vld [vmem:[#allocation23 + $0x590] sm:$0xff]  }
0x1f90   :  { %v6641_v47 = vmax.f32 %v6501_v17, 0.0  ;;  %v6643_v15 = vmax.f32 %v6544_v9, 0.0  ;;  %v6777_v24 = vpack.c.bf16 %v6640_v12, %v6632_v3  ;;  %v6779_v6 = vpack.c.bf16 %v6642_v10, %v6634_v56  ;;  %v12321_v17 = vld [vmem:[#allocation23 + $0x540] sm:$0xff]  }
0x1f91   :  { %v12322_v9 = vld [vmem:[#allocation23 + $0x5c0] sm:$0xff]  }
0x1f92   :  { %v6778_v36 = vpack.c.bf16 %v6641_v47, %v6633_v35  ;;  %v6780_v5 = vpack.c.bf16 %v6643_v15, %v6635_v14 }
0x1f94   :  { %7209 = vmatprep.mubr.bf16.mxu1 %v6778_v36  ;;  %7250 = vmatprep.mubr.bf16.mxu0 %v6780_v5  ;;  %v12323_v5 = vld [vmem:[#allocation23 + $0x500] sm:$0xff]  }
0x1f95   :  { %7210 = vmatmul.mubr.bf16.vlgmr.msra.gmra.mxu1 %v6777_v24  ;;  %7251 = vmatmul.mubr.bf16.vlgmr.msra.gmra.mxu0 %v6779_v6 }
0x1f96   :  { %11092 = vmatpush3.bf16.msra.mxu1 %v12295_v16  ;;  %11114 = vmatpush3.bf16.msra.mxu0 %v12296_v61  ;;  %v12324_v16 = vld [vmem:[#allocation23 + $0x580] sm:$0xff]  }
0x1f97   :  { %11093 = vmatprep.subr.bf16.mxu1 %v12297_v62  ;;  %11115 = vmatprep.subr.bf16.mxu0 %v12298_v63 }
0x1f9a   :  { %11094 = vmatpush3.bf16.msra.mxu1 %v12299_v27  ;;  %11116 = vmatpush3.bf16.msra.mxu0 %v12300_v20 }
0x1f9b   :  { %11095 = vmatprep.subr.bf16.mxu1 %v12301_v11  ;;  %11117 = vmatprep.subr.bf16.mxu0 %v12302_v7 }
0x1f9e   :  { %11096 = vmatpush3.bf16.msra.mxu1 %v12303_v21  ;;  %11118 = vmatpush3.bf16.msra.mxu0 %v12304_v22 }
0x1f9f   :  { %11097 = vmatprep.subr.bf16.mxu1 %v12305_v13  ;;  %11119 = vmatprep.subr.bf16.mxu0 %v12306_v23 }
0x1fa2   :  { %11098 = vmatpush3.bf16.msra.mxu1 %v12307_v25  ;;  %11120 = vmatpush3.bf16.msra.mxu0 %v12308_v26 }
0x1fa3   :  { %11099 = vmatprep.subr.bf16.mxu1 %v12309_v28  ;;  %11121 = vmatprep.subr.bf16.mxu0 %v12310_v29 }
0x1fa6   :  { %11100 = vmatpush3.bf16.msra.mxu1 %v12311_v30  ;;  %11122 = vmatpush3.bf16.msra.mxu0 %v12312_v31 }
0x1fa7   :  { %v6580_v19 = vpop.f32.mrf.mxu1  ;;  %v6623_v50 = vpop.f32.mrf.mxu0  ;;  %11101 = vmatprep.subr.bf16.mxu1 %v12313_v37  ;;  %11123 = vmatprep.subr.bf16.mxu0 %v12314_v34  ;;  %v10450_v37 = vld [vmem:[#allocation25 + $0x2] ss:$0 sm:$0xff] }
0x1fa8   :  { %v6581_v47 = vadd.f32 %v6580_v19, %v6119_v55  ;;  %v6624_v15 = vadd.f32 %v6623_v50, %v6127_v57 }
0x1fa9   :  { %v6582_v41 = vpop.f32.mrf.mxu1  ;;  %v6625_v58 = vpop.f32.mrf.mxu0 }
0x1faa   :  { %11102 = vmatpush3.bf16.msra.mxu1 %v12315_v39  ;;  %11124 = vmatpush3.bf16.msra.mxu0 %v12316_v38  ;;  %v6583_v12 = vadd.f32 %v6582_v41, %v6123_v53  ;;  %v6626_v10 = vadd.f32 %v6625_v58, %v6131_v54  ;;  %v6636_v20 = vmax.f32 %v6581_v47, 0.0  ;;  %v6638_v11 = vmax.f32 %v6624_v15, 0.0 }
0x1fab   :  { %v6584_v4 = vpop.f32.mrf.mxu1  ;;  %v6627_v8 = vpop.f32.mrf.mxu0  ;;  %11103 = vmatprep.subr.bf16.mxu1 %v12317_v51  ;;  %11125 = vmatprep.subr.bf16.mxu0 %v12318_v52 }
0x1fac   :  { %v6585_v35 = vadd.f32 %v6584_v4, %v6119_v55  ;;  %v6628_v14 = vadd.f32 %v6627_v8, %v6127_v57  ;;  %v6637_v6 = vmax.f32 %v6583_v12, 0.0  ;;  %v6639_v62 = vmax.f32 %v6626_v10, 0.0 }
0x1fad   :  { %v6586_v3 = vpop.f32.mrf.mxu1  ;;  %v6629_v33 = vpop.f32.mrf.mxu0 }
0x1fae   :  { %v6587_v56 = vadd.f32 %v6586_v3, %v6123_v53  ;;  %v6630_v36 = vadd.f32 %v6629_v33, %v6131_v54  ;;  %11104 = vmatpush3.bf16.msra.mxu1 %v12319_v2  ;;  %11126 = vmatpush3.bf16.msra.mxu0 %v12320_v18  ;;  %v6644_v61 = vmax.f32 %v6585_v35, 0.0  ;;  %v6646_v24 = vmax.f32 %v6628_v14, 0.0 }
0x1faf   :  { %11105 = vmatprep.subr.bf16.mxu1 %v12321_v17  ;;  %11127 = vmatprep.subr.bf16.mxu0 %v12322_v9 }
0x1fb0   :  { %v6645_v63 = vmax.f32 %v6587_v56, 0.0  ;;  %v6647_v27 = vmax.f32 %v6630_v36, 0.0  ;;  %v6781_v22 = vpack.c.bf16 %v6644_v61, %v6636_v20  ;;  %v6783_v13 = vpack.c.bf16 %v6646_v24, %v6638_v11  ;;  %v12325_v56 = vld [vmem:[#allocation13 + $0x2e8] ss:$12 sps:$4 sm:$0xff]   ;;  %v12327_v36 = vld [vmem:[#allocation13 + $0x2ec] ss:$12 sps:$4 sm:$0xff]  }
0x1fb1   :  { %v12329_v20 = vld [vmem:[#allocation13 + $0x2d0] ss:$12 sps:$4 sm:$0xff]   ;;  %v12332_v11 = vld [vmem:[#allocation13 + $0x2d8] ss:$12 sps:$4 sm:$0xff]  }
0x1fb2   :  { %v6782_v7 = vpack.c.bf16 %v6645_v63, %v6637_v6  ;;  %v6784_v21 = vpack.c.bf16 %v6647_v27, %v6639_v62  ;;  %11106 = vmatpush3.bf16.msra.mxu1 %v12323_v5  ;;  %11128 = vmatpush3.bf16.msra.mxu0 %v12324_v16  ;;  %v12328_v5 = vld [vmem:[#allocation13 + $0x2f0] ss:$12 sps:$4 sm:$0xff]   ;;  %v12331_v27 = vld [vmem:[#allocation13 + $0x2d4] ss:$12 sps:$4 sm:$0xff]  }
0x1fb3   :  { %11536 = vmatprep.subr.bf16.mxu0 %v13207_v1  ;;  %7565 = vmatprep.subr.bf16.mxu1 %v12327_v36 }
0x1fb4   :  { %7291 = vmatprep.mubr.bf16.mxu1 %v6782_v7  ;;  %7332 = vmatprep.mubr.bf16.mxu0 %v6784_v21  ;;  %v12335_v7 = vld [vmem:[#allocation13 + $0x2bc] ss:$12 sps:$4 sm:$0xff]   ;;  %v12333_v21 = vld [vmem:[#allocation13 + $0x2b8] ss:$12 sps:$4 sm:$0xff]  }
0x1fb5   :  { %7292 = vmatmul.mubr.bf16.vlgmr.msra.gmra.mxu1 %v6781_v22  ;;  %7333 = vmatmul.mubr.bf16.vlgmr.msra.gmra.mxu0 %v6783_v13  ;;  %v12336_v22 = vld [vmem:[#allocation13 + $0x2c0] ss:$12 sps:$4 sm:$0xff]  }
0x1fb6   :  { %7597 = vmatprep.mubr.bf16.mxu1 %v13206_v0  ;;  %11552 = vmatprep.mubr.msk.bf16.mxu0 %vm13208_vm0, %v13207_v1  ;;  %v12337_v13 = vld [vmem:[#allocation13 + $0x2a0] ss:$12 sps:$4 sm:$0xff]  }
0x1fb7   :  { %11537 = vmatpush3.bf16.msra.mxu0 %v12328_v5  ;;  %7566 = vmatpush1.bf16.msra.mxu1 %v12325_v56 }
0x1fb8   :  { %11538 = vmatprep.subr.bf16.mxu0 %v13207_v1  ;;  %7567 = vmatprep.subr.bf16.mxu1 %v12331_v27 }
0x1fbb   :  { %7568 = vmatpush1.bf16.msra.mxu1 %v12329_v20  ;;  %11539 = vmatpush3.bf16.msra.mxu0 %v12332_v11 }
0x1fbc   :  { %11540 = vmatprep.subr.bf16.mxu0 %v13207_v1  ;;  %7569 = vmatprep.subr.bf16.mxu1 %v12335_v7 }
0x1fbf   :  { %7570 = vmatpush1.bf16.msra.mxu1 %v12333_v21  ;;  %11541 = vmatpush3.bf16.msra.mxu0 %v12336_v22 }
0x1fc0   :  { %11542 = vmatprep.subr.bf16.mxu0 %v13207_v1 }
0x2055   :  { %v11063_v23 = vpop.f32.mrf.mxu1  ;;  %v11085_v25 = vpop.f32.mrf.mxu0 }
0x2057   :  { %v11064_v26 = vpop.f32.mrf.mxu1  ;;  %v11086_v28 = vpop.f32.mrf.mxu0 }
0x2058   :  { %v11065_v31 = vadd.f32 %v11064_v26, %v11063_v23  ;;  %v11087_v52 = vadd.f32 %v11086_v28, %v11085_v25  ;;  %v12339_v23 = vld [vmem:[#allocation13 + $0x2a4] ss:$12 sps:$4 sm:$0xff]   ;;  %v12340_v25 = vld [vmem:[#allocation13 + $0x2a8] ss:$12 sps:$4 sm:$0xff]   ;;  %v12343_v26 = vld [vmem:[#allocation13 + $0x28c] ss:$12 sps:$4 sm:$0xff]  }
0x2059   :  { %v11066_v29 = vpop.f32.mrf.mxu1  ;;  %v11088_v30 = vpop.f32.mrf.mxu0  ;;  %7571 = vmatprep.subr.bf16.mxu1 %v12339_v23  ;;  %11543 = vmatpush3.bf16.msra.mxu0 %v12340_v25  ;;  %v12341_v28 = vld [vmem:[#allocation13 + $0x288] ss:$12 sps:$4 sm:$0xff]  }
0x205a   :  { %v7212_v38 = vadd.f32 %v11065_v31, %v10450_v37  ;;  %7572 = vmatpush1.bf16.msra.mxu1 %v12337_v13  ;;  %11544 = vmatprep.subr.bf16.mxu0 %v13207_v1  ;;  %v12345_v31 = vld [vmem:[#allocation13 + $0x270] ss:$12 sps:$4 sm:$0xff]  }
0x205b   :  { %v11067_v34 = vpop.f32.mrf.mxu1  ;;  %v11089_v39 = vpop.f32.mrf.mxu0  ;;  %7573 = vmatprep.subr.bf16.mxu1 %v12343_v26 }
0x205c   :  { %v11068_v19 = vadd.f32 %v11067_v34, %v11066_v29  ;;  %v7253_v55 = vadd.f32 %v11087_v52, %v7212_v38  ;;  %v11090_v18 = vadd.f32 %v11089_v39, %v11088_v30  ;;  %v12344_v29 = vld [vmem:[#allocation13 + $0x290] ss:$12 sps:$4 sm:$0xff]   ;;  %v12347_v30 = vld [vmem:[#allocation13 + $0x274] ss:$12 sps:$4 sm:$0xff]   ;;  %v12349_v39 = vld [vmem:[#allocation13 + $0x258] ss:$12 sps:$4 sm:$0xff]  }
0x205d   :  { %11545 = vmatpush3.bf16.msra.mxu0 %v12344_v29  ;;  %v12351_v34 = vld [vmem:[#allocation13 + $0x25c] ss:$12 sps:$4 sm:$0xff]   ;;  %v12352_v38 = vld [vmem:[#allocation13 + $0x260] ss:$12 sps:$4 sm:$0xff]  }
0x205e   :  { %v7215_v57 = vadd.f32 %v11068_v19, %v10450_v37  ;;  %7574 = vmatpush1.bf16.msra.mxu1 %v12341_v28  ;;  %v12348_v37 = vld [vmem:[#allocation13 + $0x278] ss:$12 sps:$4 sm:$0xff]   ;;  %11546 = vmatprep.subr.bf16.mxu0 %v13207_v1 }
0x205f   :  { %7575 = vmatprep.subr.bf16.mxu1 %v12347_v30  ;;  %v12355_v19 = vld [vmem:[#allocation13 + $0x244] ss:$12 sps:$4 sm:$0xff]  }
0x2060   :  { %v7256_v12 = vadd.f32 %v11090_v18, %v7215_v57  ;;  %v10515_v18 = vld [vmem:[#allocation26 + $0x2] ss:$0 sm:$0xff] }
0x2061   :  { %11547 = vmatpush3.bf16.msra.mxu0 %v12348_v37 }
0x2062   :  { %7576 = vmatpush1.bf16.msra.mxu1 %v12345_v31  ;;  %11548 = vmatprep.subr.bf16.mxu0 %v13207_v1 }
0x2063   :  { %7577 = vmatprep.subr.bf16.mxu1 %v12351_v34 }
0x2065   :  { %11549 = vmatpush3.bf16.msra.mxu0 %v12352_v38 }
0x2066   :  { %7578 = vmatpush1.bf16.msra.mxu1 %v12349_v39  ;;  %11550 = vmatprep.subr.bf16.mxu0 %v13207_v1 }
0x2067   :  { %7579 = vmatprep.subr.bf16.mxu1 %v12355_v19 }
0x2075   :  { %v11107_v50 = vpop.f32.mrf.mxu1  ;;  %v11129_v51 = vpop.f32.mrf.mxu0 }
0x2077   :  { %v11108_v53 = vpop.f32.mrf.mxu1  ;;  %v11130_v54 = vpop.f32.mrf.mxu0 }
0x2078   :  { %v11109_v41 = vadd.f32 %v11108_v53, %v11107_v50  ;;  %v11131_v8 = vadd.f32 %v11130_v54, %v11129_v51  ;;  %v12353_v50 = vld [vmem:[#allocation13 + $0x240] ss:$12 sps:$4 sm:$0xff]   ;;  %v12356_v51 = vld [vmem:[#allocation13 + $0x248] ss:$12 sps:$4 sm:$0xff]  }
0x2079   :  { %v11110_v58 = vpop.f32.mrf.mxu1  ;;  %v11132_v2 = vpop.f32.mrf.mxu0  ;;  %7580 = vmatpush1.bf16.msra.mxu1 %v12353_v50  ;;  %11551 = vmatpush3.bf16.msra.mxu0 %v12356_v51 }
0x207a   :  { %v7294_v4 = vadd.f32 %v11109_v41, %v7253_v55 }
0x207b   :  { %v11111_v17 = vpop.f32.mrf.mxu1  ;;  %v11133_v9 = vpop.f32.mrf.mxu0 }
0x207c   :  { %v7335_v10 = vadd.f32 %v11131_v8, %v7294_v4  ;;  %v11112_v35 = vadd.f32 %v11111_v17, %v11110_v58  ;;  %v11134_v47 = vadd.f32 %v11133_v9, %v11132_v2  ;;  %v10516_v9 = vld [vmem:[#allocation28 + $0x2] ss:$0 sm:$0xff] }
0x207e   :  { %v7297_v14 = vadd.f32 %v11112_v35, %v7256_v12  ;;  %v7341_v15 = vadd.f32 %v7335_v10, %v13995_v59 }
0x2080   :  { %v7338_v3 = vadd.f32 %v11134_v47, %v7297_v14  ;;  %7347 = vadd.xlane.f32.xlu1 %v7341_v15  ;;  %v7420_v47 = vld [vmem:[#allocation14 + $0x9] sm:$0x7] }
0x2081   :  { %v7433_v56 = vrot.slane %v7420_v47, %v13505_v44 }
0x2082   :  { %v7342_v33 = vadd.f32 %v7338_v3, %v13997_v60 }
0x2084   :  { %7349 = vadd.xlane.f32.xlu0 %v7342_v33 }
0x2109   :  { %v7348_v16 = vpop.xlane.xlu1 %7347 }
0x210a   :  { %v7351_v61 = vmul.f32 0.0078125, %v7348_v16  ;;  %v7429_v16 = vrot.slane %v7420_v47, %v13508_v45 }
0x210c   :  { %v14034_v24 = vsub.f32 %v7341_v15, %v7351_v61 }
0x210d   :  { %v7350_v6 = vpop.xlane.xlu0 %7349 }
0x210e   :  { %v7352_v62 = vmul.f32 0.0078125, %v7350_v6  ;;  %v7355_v59 = vmul.f32 %v14034_v24, %v14034_v24 }
0x2110   :  { %v14038_v63 = vsub.f32 %v7342_v33, %v7352_v62  ;;  %7357 = vadd.xlane.f32.xlu1 %v7355_v59  ;;  %v7425_v33 = vrot.slane %v7420_v47, %v13502_v42 }
0x2112   :  { %v7356_v60 = vmul.f32 %v14038_v63, %v14038_v63 }
0x2114   :  { %7359 = vadd.xlane.f32.xlu0 %v7356_v60 }
0x2199   :  { %v7358_v52 = vpop.xlane.xlu1 %7357 }
0x219a   :  { %v7361_v53 = vmul.f32 0.0078125, %v7358_v52 }
0x219c   :  { %v7363_v54 = vadd.f32 1e-05, %v7361_v53 }
0x219d   :  { %v7360_v55 = vpop.xlane.xlu0 %7359 }
0x219e   :  { %12557 = vrsqrt.f32 %v7363_v54  ;;  %v7362_v57 = vmul.f32 0.0078125, %v7360_v55 }
0x21a0   :  { %v7364_v41 = vadd.f32 1e-05, %v7362_v57 }
0x21a2   :  { %12559 = vrsqrt.f32 %v7364_v41 }
0x21ab   :  { %v12558_v58 = vpop.eup %12557 }
0x21ac   :  { %v7367_v2 = vmul.f32 %v12558_v58, %v14034_v24 }
0x21ae   :  { %v7375_v17 = vmul.f32 %v10515_v18, %v7367_v2 }
0x21af   :  { %v12560_v4 = vpop.eup %12559 }
0x21b0   :  { %v7368_v8 = vmul.f32 %v12560_v4, %v14038_v63  ;;  %v14050_v10 = vadd.f32 %v10516_v9, %v7375_v17 }
0x21b2   :  { %v7376_v12 = vmul.f32 %v10515_v18, %v7368_v8 }
0x21b4   :  { %v14052_v35 = vadd.f32 %v10516_v9, %v7376_v12 }
0x21b6   :  { %v7418_v14 = vpack.c.bf16 %v14052_v35, %v14050_v10 }
0x21b8   :  { %7598 = vmatmul.mubr.bf16.vlgmr.msra.gmra.mxu1 %v7418_v14  ;;  %11553 = vmatmul.mubr.bf16.vlgmr.msra.gmra.mxu0 %v7418_v14 }
0x2278   :  { %v7599_v15 = vpop.f32.mrf.mxu1  ;;  %v7642_v3 = vpop.f32.mrf.mxu0 }
0x2279   :  { %v7600_v6 = vadd.f32 %v7599_v15, %v7425_v33  ;;  %v7643_v63 = vadd.f32 %v7642_v3, %v7433_v56 }
0x227a   :  { %v7601_v36 = vpop.f32.mrf.mxu1  ;;  %v11554_v5 = vpop.f32.mrf.mxu0 }
0x227b   :  { %v7602_v20 = vadd.f32 %v7601_v36, %v7429_v16  ;;  %v12620_v5 = vld [vmem:[%s14288_s15 + $0x10] sm:$0xff] }
0x227c   :  { %v7603_v61 = vpop.f32.mrf.mxu1  ;;  %v7645_v24 = vpop.f32.mrf.mxu0 }
0x227d   :  { %v7604_v62 = vadd.f32 %v7603_v61, %v7425_v33  ;;  %v7646_v59 = vadd.f32 %v7645_v24, %v7433_v56  ;;  %v12619_v33 = vld [vmem:[%s14288_s15] sm:$0xff] }
0x227e   :  { %v7605_v60 = vpop.f32.mrf.mxu1  ;;  %v11555_v27 = vpop.f32.mrf.mxu0 }
0x227f   :  { %v7606_v11 = vadd.f32 %v7605_v60, %v7429_v16  ;;  %v7709_v7 = vpack.c.bf16 %v7604_v62, %v7600_v6  ;;  %v14059_v21 = vpack.i.bf16 %v7646_v59, %v7643_v63  ;;  %v14062_v23 = vpack.c.bf16 %v7646_v59, %v7643_v63  ;;  %v12622_v63 = vld [vmem:[%s14288_s15 + $0x18] sm:$0xff] }
0x2280   :  { %v11939_v25 = vpack.i.bf16 %v7604_v62, %v7600_v6  ;;  %v12621_v6 = vld [vmem:[%s14288_s15 + $0x8] sm:$0xff] }
0x2281   :  { %11564 = vmatprep.mubr.msk.bf16.mxu1 %vm1131_vm1, %v7709_v7  ;;  %v11924_v22 = vpack.i.bf16 %v7606_v11, %v7602_v20  ;;  %v7713_v13 = vpack.c.bf16 %v7606_v11, %v7602_v20  ;;  %v12623_v7 = vld [vmem:[%s14288_s15 + $0x20] sm:$0xff] }
0x2283   :  { %11925 = vrot.lane.b32.xlu0 %v11924_v22, %s13187_s20  ;;  %11920 = vrot.lane.b32.xlu1 %v11924_v22, %s13184_s26  ;;  %v7730_v41 = vsel %vm1131_vm1, %v7713_v13, 0 }
0x2287   :  { %11930 = vrot.lane.b32.xlu1 %v11924_v22, %s13209_s11  ;;  %11940 = vrot.lane.b32.xlu0 %v11939_v25, %s13187_s20 }
0x228b   :  { %11935 = vrot.lane.b32.xlu1 %v11939_v25, %s13209_s11 }
0x228f   :  { %11945 = vrot.lane.b32.xlu1 %v11939_v25, %s13184_s26  ;;  %v12624_v25 = vld [vmem:[%s14288_s15 + $0x30] sm:$0xff] }
0x22f5   :  { %v11926_v26 = vpop.permute.xlu0 %11925  ;;  %v11921_v28 = vpop.permute.xlu1 %11920 }
0x22f6   :  { %v11923_v29 = vunpack.i.h.bf16 %v11921_v28  ;;  %v11922_v30 = vunpack.i.l.bf16 %v11921_v28  ;;  %v11928_v31 = vunpack.i.h.bf16 %v11926_v26  ;;  %v11927_v37 = vunpack.i.l.bf16 %v11926_v26 }
0x22f8   :  { %v7716_v34 = vpack.c.bf16 %v11923_v29, %v11922_v30  ;;  %v7715_v39 = vpack.c.bf16 %v11928_v31, %v11927_v37  ;;  %v12625_v31 = vld [vmem:[%s14288_s15 + $0x28] sm:$0xff] }
0x22f9   :  { %v11931_v19 = vpop.permute.xlu1 %11930  ;;  %v11941_v57 = vpop.permute.xlu0 %11940 }
0x22fa   :  { %11656 = vmatprep.subr.msk.bf16.mxu1 %vm1131_vm1, %v7716_v34  ;;  %v7739_v38 = vsel %vm1131_vm1, %v7716_v34, 0  ;;  %v11933_v50 = vunpack.i.h.bf16 %v11931_v19  ;;  %v11932_v51 = vunpack.i.l.bf16 %v11931_v19  ;;  %v7736_v53 = vsel %vm1131_vm1, %v7715_v39, 0  ;;  %v12626_v34 = vld [vmem:[%s14288_s15 + $0x38] sm:$0xff] }
0x22fb   :  { %11557 = vmatpush3.bf16.xpose.msra.mxu1 %v7739_v38  ;;  %v11943_v18 = vunpack.i.h.bf16 %v11941_v57  ;;  %v11942_v4 = vunpack.i.l.bf16 %v11941_v57 }
0x22fc   :  { %11657 = vmatprep.subr.msk.bf16.mxu1 %vm1131_vm1, %v7715_v39  ;;  %v7714_v52 = vpack.c.bf16 %v11933_v50, %v11932_v51 }
0x22fd   :  { %v11936_v55 = vpop.permute.xlu1 %11935  ;;  %v7711_v17 = vpack.c.bf16 %v11943_v18, %v11942_v4 }
0x22fe   :  { %v7733_v54 = vsel %vm1131_vm1, %v7714_v52, 0  ;;  %v11938_v58 = vunpack.i.h.bf16 %v11936_v55  ;;  %v11937_v2 = vunpack.i.l.bf16 %v11936_v55 }
0x2300   :  { %v7710_v8 = vpack.c.bf16 %v11938_v58, %v11937_v2 }
0x2301   :  { %v11946_v9 = vpop.permute.xlu1 %11945 }
0x2302   :  { %v11948_v12 = vunpack.i.h.bf16 %v11946_v9  ;;  %v11947_v14 = vunpack.i.l.bf16 %v11946_v9 }
0x2303   :  { %11559 = vmatpush3.bf16.xpose.msra.mxu1 %v7736_v53 }
0x2304   :  { %11658 = vmatprep.subr.msk.bf16.mxu1 %vm1131_vm1, %v7714_v52  ;;  %v7712_v47 = vpack.c.bf16 %v11948_v12, %v11947_v14 }
0x230b   :  { %11561 = vmatpush3.bf16.xpose.msra.mxu1 %v7733_v54 }
0x230c   :  { %11659 = vmatprep.subr.msk.bf16.mxu1 %vm1131_vm1, %v7713_v13 }
0x2313   :  { %11563 = vmatpush3.bf16.xpose.msra.mxu1 %v7730_v41 }
0x2314   :  { %11588 = vmatprep.subr.bf16.mxu1 %v13207_v1 }
0x231a   :  { %11565 = vmatmul.mubr.msk.bf16.vlgmr.msra.gmra.mxu1 %vm1131_vm1, %v7710_v8 }
0x231b   :  { %11568 = vmatprep.mubr.msk.bf16.mxu1 %vm1131_vm1, %v7711_v17 }
0x2322   :  { %11569 = vmatmul.mubr.msk.bf16.gmra.mxu1 %vm1131_vm1, %v7712_v47 }
0x2323   :  { %11604 = vmatprep.mubr.msk.bf16.mxu1 %vm13208_vm0, %v13207_v1 }
0x23da   :  { %v11566_v15 = vpop.f32.mrf.mxu1 }
0x23db   :  { %v7784_v16 = vadd.f32 %v12620_v5, %v11566_v15 }
0x23dc   :  { %v7775_v3 = vpop.f32.mrf.mxu1 }
0x23dd   :  { %v7776_v56 = vadd.f32 %v12619_v33, %v7775_v3  ;;  %v7812_v20 = vsel %vm1221_vm2, %v7784_v16, -inf }
0x23de   :  { %v11567_v36 = vpop.f32.mrf.mxu1 }
0x23df   :  { %v7806_v61 = vsel %vm1221_vm2, %v7776_v56, -inf  ;;  %v7787_v60 = vadd.f32 %v12622_v63, %v11567_v36 }
0x23e0   :  { %v7778_v24 = vpop.f32.mrf.mxu1  ;;  %7807 = vmax.xlane.f32.xlu0 %v7806_v61 }
0x23e1   :  { %v7779_v62 = vadd.f32 %v12621_v6, %v7778_v24  ;;  %v7815_v29 = vsel %vm1221_vm2, %v7787_v60, -inf }
0x23e2   :  { %v11570_v59 = vpop.f32.mrf.mxu1 }
0x23e3   :  { %v7809_v27 = vsel %vm1221_vm2, %v7779_v62, -inf  ;;  %v7800_v26 = vadd.f32 %v12624_v25, %v11570_v59 }
0x23e4   :  { %v7791_v11 = vpop.f32.mrf.mxu1  ;;  %7810 = vmax.xlane.f32.xlu1 %v7809_v27  ;;  %7813 = vmax.xlane.f32.xlu0 %v7812_v20 }
0x23e5   :  { %v7792_v22 = vadd.f32 %v12623_v7, %v7791_v11  ;;  %v7824_v38 = vsel %vm1221_vm2, %v7800_v26, -inf }
0x23e6   :  { %v11571_v13 = vpop.f32.mrf.mxu1 }
0x23e7   :  { %v7818_v28 = vsel %vm1221_vm2, %v7792_v22, -inf  ;;  %v7803_v39 = vadd.f32 %v12626_v34, %v11571_v13 }
0x23e8   :  { %v7794_v30 = vpop.f32.mrf.mxu1  ;;  %7819 = vmax.xlane.f32.xlu1 %v7818_v28  ;;  %7816 = vmax.xlane.f32.xlu0 %v7815_v29 }
0x23e9   :  { %v7795_v37 = vadd.f32 %v12625_v31, %v7794_v30  ;;  %v7827_v50 = vsel %vm1221_vm2, %v7803_v39, -inf }
0x23eb   :  { %v7821_v19 = vsel %vm1221_vm2, %v7795_v37, -inf }
0x23ec   :  { %7825 = vmax.xlane.f32.xlu1 %v7824_v38  ;;  %7822 = vmax.xlane.f32.xlu0 %v7821_v19 }
0x23f0   :  { %7828 = vmax.xlane.f32.xlu0 %v7827_v50 }
0x23fd   :  { %11950 = vrot.lane.b32.xlu1 %v14059_v21, %s13184_s26 }
0x2469   :  { %v7808_v51 = vpop.xlane.xlu0 %7807 }
0x246a   :  { %v7830_v52 = vsub.f32 %v7776_v56, %v7808_v51 }
0x246c   :  { %v7838_v41 = vmul.f32 1.442695, %v7830_v52 }
0x246d   :  { %v7811_v53 = vpop.xlane.xlu1 %7810  ;;  %v7814_v54 = vpop.xlane.xlu0 %7813 }
0x246e   :  { %v7832_v55 = vsub.f32 %v7784_v16, %v7814_v54  ;;  %v7831_v58 = vsub.f32 %v7779_v62, %v7811_v53 }
0x2470   :  { %v7842_v57 = vmul.f32 1.442695, %v7832_v55  ;;  %v7840_v17 = vmul.f32 1.442695, %v7831_v58 }
0x2471   :  { %v7820_v2 = vpop.xlane.xlu1 %7819  ;;  %v7817_v18 = vpop.xlane.xlu0 %7816 }
0x2472   :  { %v7833_v4 = vsub.f32 %v7787_v60, %v7817_v18  ;;  %12561 = vpow2.f32 %v7842_v57  ;;  %v7834_v9 = vsub.f32 %v7792_v22, %v7820_v2 }
0x2473   :  { %12563 = vpow2.f32 %v7838_v41 }
0x2474   :  { %v7844_v8 = vmul.f32 1.442695, %v7833_v4  ;;  %v7846_v3 = vmul.f32 1.442695, %v7834_v9 }
0x2475   :  { %v7826_v12 = vpop.xlane.xlu1 %7825  ;;  %v7823_v14 = vpop.xlane.xlu0 %7822 }
0x2476   :  { %v7836_v47 = vsub.f32 %v7800_v26, %v7826_v12  ;;  %12565 = vpow2.f32 %v7844_v8  ;;  %v7835_v33 = vsub.f32 %v7795_v37, %v7823_v14 }
0x2477   :  { %12567 = vpow2.f32 %v7840_v17 }
0x2478   :  { %v7850_v15 = vmul.f32 1.442695, %v7836_v47  ;;  %v7848_v62 = vmul.f32 1.442695, %v7835_v33 }
0x2479   :  { %v11951_v56 = vpop.permute.xlu1 %11950  ;;  %v7829_v36 = vpop.xlane.xlu0 %7828 }
0x247a   :  { %12569 = vpow2.f32 %v7850_v15  ;;  %v11953_v5 = vunpack.i.h.bf16 %v11951_v56  ;;  %v11952_v16 = vunpack.i.l.bf16 %v11951_v56  ;;  %v7837_v61 = vsub.f32 %v7803_v39, %v7829_v36 }
0x247b   :  { %12571 = vpow2.f32 %v7846_v3 }
0x247c   :  { %v7901_v24 = vpack.c.bf16 %v11953_v5, %v11952_v16  ;;  %v7852_v6 = vmul.f32 1.442695, %v7837_v61 }
0x247e   :  { %12573 = vpow2.f32 %v7852_v6  ;;  %11572 = vmatprep.subr.bf16.mxu0 %v7901_v24 }
0x247f   :  { %11573 = vmatpush3.bf16.msra.mxu0 %v7901_v24  ;;  %v14102_v59 = vpop.eup %12561  ;;  %12575 = vpow2.f32 %v7848_v62 }
0x2480   :  { %v7860_v63 = vsel %vm1221_vm2, %v14102_v59, 0.0  ;;  %v12564_v60 = vpop.eup %12563 }
0x2481   :  { %7861 = vadd.xlane.f32.xlu1 %v7860_v63  ;;  %v7854_v20 = vsel %vm1221_vm2, %v12564_v60, 0.0 }
0x2483   :  { %v12566_v27 = vpop.eup %12565 }
0x2484   :  { %v7863_v11 = vsel %vm1221_vm2, %v12566_v27, 0.0  ;;  %v12568_v7 = vpop.eup %12567 }
0x2485   :  { %7855 = vadd.xlane.f32.xlu1 %v7854_v20  ;;  %7864 = vadd.xlane.f32.xlu0 %v7863_v11  ;;  %v7857_v25 = vsel %vm1221_vm2, %v12568_v7, 0.0  ;;  %v12360_v20 = vld [vmem:[%s14289_s18 + $0xe0] sm:$0xff]   ;;  %v12361_v11 = vld [vmem:[%s14289_s18 + $0xd8] sm:$0xff]  }
0x2487   :  { %v14108_v22 = vpop.eup %12569 }
0x2488   :  { %v7872_v13 = vsel %vm1221_vm2, %v14108_v22, 0.0  ;;  %v12572_v26 = vpop.eup %12571 }
0x2489   :  { %7873 = vadd.xlane.f32.xlu1 %v7872_v13  ;;  %7858 = vadd.xlane.f32.xlu0 %v7857_v25  ;;  %v7866_v30 = vsel %vm1221_vm2, %v12572_v26, 0.0  ;;  %v12363_v25 = vld [vmem:[%s14289_s18 + $0xc8] sm:$0xff]  }
0x248b   :  { %v12574_v28 = vpop.eup %12573 }
0x248c   :  { %v7875_v29 = vsel %vm1221_vm2, %v12574_v28, 0.0  ;;  %v12576_v31 = vpop.eup %12575 }
0x248d   :  { %7867 = vadd.xlane.f32.xlu1 %v7866_v30  ;;  %7876 = vadd.xlane.f32.xlu0 %v7875_v29  ;;  %v7869_v37 = vsel %vm1221_vm2, %v12576_v31, 0.0  ;;  %v12364_v30 = vld [vmem:[%s14289_s18 + $0xc0] sm:$0xff]  }
0x2491   :  { %7870 = vadd.xlane.f32.xlu0 %v7869_v37 }
0x249e   :  { %11960 = vrot.lane.b32.xlu1 %v14059_v21, %s13209_s11 }
0x24a7   :  { %11955 = vrot.lane.b32.xlu0 %v14059_v21, %s13187_s20 }
0x250a   :  { %v7862_v34 = vpop.xlane.xlu1 %7861 }
0x250e   :  { %v7856_v39 = vpop.xlane.xlu1 %7855  ;;  %v7865_v38 = vpop.xlane.xlu0 %7864 }
0x250f   :  { %12577 = vrcp.f32 %v7856_v39 }
0x2512   :  { %v7874_v19 = vpop.xlane.xlu1 %7873  ;;  %v7859_v50 = vpop.xlane.xlu0 %7858 }
0x2513   :  { %12579 = vrcp.f32 %v7859_v50 }
0x2514   :  { %12581 = vrcp.f32 %v7865_v38 }
0x2515   :  { %12583 = vrcp.f32 %v7862_v34 }
0x2516   :  { %v7868_v51 = vpop.xlane.xlu1 %7867  ;;  %v7877_v52 = vpop.xlane.xlu0 %7876 }
0x251a   :  { %v7871_v53 = vpop.xlane.xlu0 %7870  ;;  %v11961_v54 = vpop.permute.xlu1 %11960 }
0x251b   :  { %12585 = vrcp.f32 %v7871_v53  ;;  %v11963_v41 = vunpack.i.h.bf16 %v11961_v54  ;;  %v11962_v58 = vunpack.i.l.bf16 %v11961_v54 }
0x251c   :  { %12587 = vrcp.f32 %v7868_v51  ;;  %v12578_v57 = vpop.eup %12577 }
0x251d   :  { %12589 = vrcp.f32 %v7877_v52  ;;  %v7886_v8 = vmul.f32 %v12578_v57, %v12564_v60  ;;  %v7899_v9 = vpack.c.bf16 %v11963_v41, %v11962_v58 }
0x251e   :  { %v11956_v55 = vpop.permute.xlu0 %11955  ;;  %12591 = vrcp.f32 %v7874_v19 }
0x251f   :  { %v11958_v21 = vunpack.i.h.bf16 %v11956_v55  ;;  %v11957_v2 = vunpack.i.l.bf16 %v11956_v55 }
0x2520   :  { %v12580_v18 = vpop.eup %12579 }
0x2521   :  { %v7900_v4 = vpack.c.bf16 %v11958_v21, %v11957_v2  ;;  %v7887_v17 = vmul.f32 %v12580_v18, %v12568_v7  ;;  %v12582_v14 = vpop.eup %12581  ;;  %v12362_v7 = vld [vmem:[%s14289_s18 + $0xd0] sm:$0xff]  }
0x2522   :  { %v12584_v47 = vpop.eup %12583  ;;  %v7889_v33 = vmul.f32 %v12582_v14, %v12566_v27  ;;  %v12359_v27 = vld [vmem:[%s14289_s18 + $0xe8] sm:$0xff]  }
0x2523   :  { %11574 = vmatprep.subr.bf16.mxu0 %v7900_v4  ;;  %v7894_v12 = vpack.c.bf16 %v7887_v17, %v7886_v8  ;;  %v7888_v36 = vmul.f32 %v12584_v47, %v14102_v59  ;;  %v12358_v59 = vld [vmem:[%s14289_s18 + $0xf0] sm:$0xff]  }
0x2524   :  { %11575 = vmatpush3.bf16.msra.mxu0 %v7900_v4 }
0x2525   :  { %11576 = vmatprep.subr.bf16.mxu0 %v7899_v9  ;;  %11580 = vmatprep.mubr.msk.bf16.mxu0 %vm1221_vm2, %v7894_v12  ;;  %v7895_v16 = vpack.c.bf16 %v7889_v33, %v7888_v36  ;;  %v10565_v12 = vld [vmem:[#allocation16 + $0x3] ss:$0 sm:$0xff] }
0x2528   :  { %v12586_v15 = vpop.eup %12585  ;;  %11577 = vmatpush3.bf16.msra.mxu0 %v7899_v9 }
0x2529   :  { %v12588_v3 = vpop.eup %12587  ;;  %11578 = vmatprep.subr.bf16.mxu0 %v14062_v23  ;;  %v7891_v56 = vmul.f32 %v12586_v15, %v12576_v31 }
0x252a   :  { %v7890_v5 = vmul.f32 %v12588_v3, %v12572_v26  ;;  %v12590_v61 = vpop.eup %12589 }
0x252b   :  { %v12592_v6 = vpop.eup %12591  ;;  %v7893_v62 = vmul.f32 %v12590_v61, %v12574_v28  ;;  %v8229_v61 = vld [vmem:[#allocation20 + $0x7e0] sm:$0xff] }
0x252c   :  { %11579 = vmatpush3.bf16.msra.mxu0 %v14062_v23  ;;  %v7896_v24 = vpack.c.bf16 %v7891_v56, %v7890_v5  ;;  %v7892_v63 = vmul.f32 %v12592_v6, %v14108_v22  ;;  %v12357_v23 = vld [vmem:[%s14289_s18 + $0xf8] sm:$0xff]  }
0x252d   :  { %11589 = vmatpush3.bf16.msra.mxu1 %v12357_v23 }
0x252e   :  { %v7897_v60 = vpack.c.bf16 %v7893_v62, %v7892_v63  ;;  %11590 = vmatprep.subr.bf16.mxu1 %v13207_v1  ;;  %v8230_v63 = vld [vmem:[#allocation20 + $0x7e8] sm:$0xff] }
0x252f   :  { %11581 = vmatmul.mubr.msk.bf16.vlgmr.msra.gmra.mxu0 %vm1221_vm2, %v7895_v16  ;;  %v8225_v16 = vld [vmem:[#allocation20 + $0x7c0] sm:$0xff] }
0x2530   :  { %11584 = vmatprep.mubr.msk.bf16.mxu0 %vm1221_vm2, %v7896_v24  ;;  %v8226_v24 = vld [vmem:[#allocation20 + $0x7c8] sm:$0xff]  ;;  %v10632_v6 = vcombine.low %v8225_v16, %v8229_v61  ;;  %v10633_v62 = vcombine.high %v8225_v16, %v8229_v61 }
0x2531   :  { %11591 = vmatpush3.bf16.msra.mxu1 %v12358_v59  ;;  %v10635_v23 = vcombine.high %v8226_v24, %v8230_v63 }
0x2532   :  { %11592 = vmatprep.subr.bf16.mxu1 %v13207_v1  ;;  %8597 = vmatprep.subr.bf16.mxu0 %v10633_v62  ;;  %v8181_v62 = vld [vmem:[#allocation20 + $0x660] sm:$0xff] }
0x2533   :  { %8598 = vmatpush1.bf16.msra.mxu0 %v10632_v6  ;;  %v8177_v6 = vld [vmem:[#allocation20 + $0x640] sm:$0xff] }
0x2535   :  { %11593 = vmatpush3.bf16.msra.mxu1 %v12359_v27 }
0x2536   :  { %11594 = vmatprep.subr.bf16.mxu1 %v13207_v1 }
0x2537   :  { %11585 = vmatmul.mubr.msk.bf16.gmra.mxu0 %vm1221_vm2, %v7897_v60  ;;  %v10634_v60 = vcombine.low %v8226_v24, %v8230_v63  ;;  %v8178_v63 = vld [vmem:[#allocation20 + $0x648] sm:$0xff] }
0x2538   :  { %8629 = vmatprep.mubr.bf16.mxu0 %v13206_v0 }
0x2539   :  { %11595 = vmatpush3.bf16.msra.mxu1 %v12360_v20 }
0x253a   :  { %11596 = vmatprep.subr.bf16.mxu1 %v13207_v1 }
0x253d   :  { %11597 = vmatpush3.bf16.msra.mxu1 %v12361_v11 }
0x253e   :  { %11598 = vmatprep.subr.bf16.mxu1 %v13207_v1 }
0x2541   :  { %11599 = vmatpush3.bf16.msra.mxu1 %v12362_v7 }
0x2542   :  { %11600 = vmatprep.subr.bf16.mxu1 %v13207_v1 }
0x2545   :  { %11601 = vmatpush3.bf16.msra.mxu1 %v12363_v25  ;;  %v8221_v25 = vld [vmem:[#allocation20 + $0x7a0] sm:$0xff] }
0x2546   :  { %11602 = vmatprep.subr.bf16.mxu1 %v13207_v1 }
0x2549   :  { %11603 = vmatpush3.bf16.msra.mxu1 %v12364_v30 }
0x254a   :  { %8640 = vmatprep.subr.bf16.mxu1 %v10635_v23  ;;  %v8182_v23 = vld [vmem:[#allocation20 + $0x668] sm:$0xff] }
0x25ef   :  { %v11582_v22 = vpop.f32.mrf.mxu0 }
0x25f1   :  { %v7948_v13 = vpop.f32.mrf.mxu0 }
0x25f3   :  { %v11583_v26 = vpop.f32.mrf.mxu0 }
0x25f4   :  { %v11964_v28 = vpack.i.bf16 %v11583_v26, %v11582_v22  ;;  %v8218_v26 = vld [vmem:[#allocation20 + $0x788] sm:$0xff] }
0x25f5   :  { %v7951_v29 = vpop.f32.mrf.mxu0 }
0x25f6   :  { %11965 = vrot.lane.b32.xlu1 %v11964_v28, %s13184_s26  ;;  %s14291_s26 = sld [smem:[#allocation69_spill]] }
0x25f7   :  { %v11586_v31 = vpop.f32.mrf.mxu0 }
0x25f9   :  { %v7964_v37 = vpop.f32.mrf.mxu0 }
0x25fb   :  { %v11587_v34 = vpop.f32.mrf.mxu0 }
0x25fc   :  { %v11974_v39 = vpack.i.bf16 %v11587_v34, %v11586_v31  ;;  %v8209_v34 = vld [vmem:[#allocation20 + $0x740] sm:$0xff] }
0x25fd   :  { %v7967_v38 = vpop.f32.mrf.mxu0 }
0x25fe   :  { %v11969_v19 = vpack.i.bf16 %v7967_v38, %v7964_v37  ;;  %11975 = vrot.lane.b32.xlu1 %v11974_v39, %s13209_s11  ;;  %v8213_v39 = vld [vmem:[#allocation20 + $0x760] sm:$0xff]  ;;  %v8210_v38 = vld [vmem:[#allocation20 + $0x748] sm:$0xff] }
0x2600   :  { %11970 = vrot.lane.b32.xlu0 %v11969_v19, %s13187_s20  ;;  %v10617_v19 = vcombine.high %v8209_v34, %v8213_v39  ;;  %s14292_s20 = sld [smem:[#allocation67_spill]] }
0x2668   :  { %v11966_v50 = vpop.permute.xlu1 %11965 }
0x2669   :  { %v11968_v51 = vunpack.i.h.bf16 %v11966_v50  ;;  %v11967_v52 = vunpack.i.l.bf16 %v11966_v50  ;;  %v8214_v50 = vld [vmem:[#allocation20 + $0x768] sm:$0xff] }
0x266b   :  { %v8003_v41 = vsel %vm1131_vm1, %v7948_v13, %v11967_v52  ;;  %v8004_v58 = vsel %vm1131_vm1, %v7951_v29, %v11968_v51  ;;  %v8217_v13 = vld [vmem:[#allocation20 + $0x780] sm:$0xff]  ;;  %v8222_v29 = vld [vmem:[#allocation20 + $0x7a8] sm:$0xff]  ;;  %v10616_v51 = vcombine.low %v8209_v34, %v8213_v39  ;;  %v10618_v52 = vcombine.low %v8210_v38, %v8214_v50  ;;  %v8228_v39 = vld [vmem:[#allocation20 + $0x7d8] sm:$0xff] }
0x266c   :  { %v10625_v28 = vcombine.high %v8217_v13, %v8221_v25  ;;  %v10624_v30 = vcombine.low %v8217_v13, %v8221_v25  ;;  %v10626_v31 = vcombine.low %v8218_v26, %v8222_v29  ;;  %v10627_v37 = vcombine.high %v8218_v26, %v8222_v29  ;;  %v8174_v26 = vld [vmem:[#allocation20 + $0x628] sm:$0xff]  ;;  %v8231_v29 = vld [vmem:[#allocation20 + $0x7f0] sm:$0xff] }
0x266e   :  { %8599 = vmatprep.subr.bf16.mxu0 %v10625_v28  ;;  %v8227_v28 = vld [vmem:[#allocation20 + $0x7d0] sm:$0xff] }
0x266f   :  { %8600 = vmatpush1.bf16.msra.mxu0 %v10624_v30  ;;  %v10637_v34 = vcombine.high %v8227_v28, %v8231_v29 }
0x2670   :  { %v11976_v53 = vpop.permute.xlu1 %11975  ;;  %8601 = vmatprep.subr.bf16.mxu0 %v10617_v19 }
0x2671   :  { %v11978_v21 = vunpack.i.h.bf16 %v11976_v53  ;;  %v11977_v2 = vunpack.i.l.bf16 %v11976_v53  ;;  %v10619_v53 = vcombine.high %v8210_v38, %v8214_v50  ;;  %v8232_v38 = vld [vmem:[#allocation20 + $0x7f8] sm:$0xff] }
0x2672   :  { %v11971_v54 = vpop.permute.xlu0 %11970  ;;  %v10638_v19 = vcombine.low %v8228_v39, %v8232_v38  ;;  %v10639_v50 = vcombine.high %v8228_v39, %v8232_v38  ;;  %v8192_v39 = vld [vmem:[#allocation20 + $0x6b8] sm:$0xff] }
0x2673   :  { %v11973_v55 = vunpack.i.h.bf16 %v11971_v54  ;;  %v11972_v57 = vunpack.i.l.bf16 %v11971_v54  ;;  %8602 = vmatpush1.bf16.msra.mxu0 %v10616_v51  ;;  %v8201_v54 = vld [vmem:[#allocation20 + $0x700] sm:$0xff] }
0x2675   :  { %v8006_v18 = vsel %vm1221_vm2, %v8004_v58, %v11973_v55  ;;  %v8005_v4 = vsel %vm1221_vm2, %v8003_v41, %v11972_v57  ;;  %v8205_v55 = vld [vmem:[#allocation20 + $0x720] sm:$0xff]  ;;  %v8202_v57 = vld [vmem:[#allocation20 + $0x708] sm:$0xff] }
0x2676   :  { %v8008_v8 = vsel %vm1423_vm3, %v8006_v18, %v11978_v21  ;;  %v8007_v17 = vsel %vm1423_vm3, %v8005_v4, %v11977_v2  ;;  %v10609_v41 = vcombine.high %v8201_v54, %v8205_v55  ;;  %v8206_v58 = vld [vmem:[#allocation20 + $0x728] sm:$0xff]  ;;  %v10608_v21 = vcombine.low %v8201_v54, %v8205_v55  ;;  %v8193_v4 = vld [vmem:[#allocation20 + $0x6c0] sm:$0xff] }
0x2677   :  { %v8026_v9 = vpack.c.bf16 %v8008_v8, %v8007_v17  ;;  %v10610_v2 = vcombine.low %v8202_v57, %v8206_v58  ;;  %v10611_v18 = vcombine.high %v8202_v57, %v8206_v58  ;;  %v8197_v8 = vld [vmem:[#allocation20 + $0x6e0] sm:$0xff]  ;;  %v8194_v17 = vld [vmem:[#allocation20 + $0x6c8] sm:$0xff] }
0x2678   :  { %8603 = vmatprep.subr.bf16.mxu0 %v10609_v41 }
0x2679   :  { %11605 = vmatmul.mubr.bf16.vlgmr.msra.gmra.mxu1 %v8026_v9  ;;  %8604 = vmatpush1.bf16.msra.mxu0 %v10608_v21  ;;  %v10601_v9 = vcombine.high %v8193_v4, %v8197_v8  ;;  %v10574_v21 = vld [vmem:[#allocation17 + $0x3] ss:$0 sm:$0xff] }
0x267a   :  { %8672 = vmatprep.mubr.bf16.mxu1 %v13206_v0  ;;  %8641 = vmatpush1.bf16.msra.mxu1 %v10634_v60  ;;  %v10585_v60 = vcombine.high %v8177_v6, %v8181_v62 }
0x267b   :  { %8642 = vmatprep.subr.bf16.mxu1 %v10627_v37  ;;  %8605 = vmatprep.subr.bf16.mxu0 %v10601_v9  ;;  %v10636_v37 = vcombine.low %v8227_v28, %v8231_v29  ;;  %v8219_v9 = vld [vmem:[#allocation20 + $0x790] sm:$0xff] }
0x267e   :  { %8643 = vmatpush1.bf16.msra.mxu1 %v10626_v31 }
0x267f   :  { %8644 = vmatprep.subr.bf16.mxu1 %v10619_v53 }
0x2682   :  { %8645 = vmatpush1.bf16.msra.mxu1 %v10618_v52 }
0x2683   :  { %8646 = vmatprep.subr.bf16.mxu1 %v10611_v18 }
0x2686   :  { %8647 = vmatpush1.bf16.msra.mxu1 %v10610_v2 }
0x2739   :  { %v8117_v14 = vpop.f32.mrf.mxu1 }
0x273a   :  { %v8118_v47 = vadd.f32 %v10565_v12, %v8117_v14  ;;  %v10600_v14 = vcombine.low %v8193_v4, %v8197_v8  ;;  %v10575_v8 = vld [vmem:[#allocation19 + $0x3] ss:$0 sm:$0xff] }
0x273b   :  { %v11606_v15 = vpop.f32.mrf.mxu1 }
0x273c   :  { %v8124_v3 = vadd.f32 %v8118_v47, %v14050_v10  ;;  %8606 = vmatpush1.bf16.msra.mxu0 %v10600_v14  ;;  %v8220_v14 = vld [vmem:[#allocation20 + $0x798] sm:$0xff] }
0x273d   :  { %v8120_v33 = vpop.f32.mrf.mxu1 }
0x273e   :  { %v8121_v56 = vadd.f32 %v10565_v12, %v8120_v33  ;;  %8130 = vadd.xlane.f32.xlu0 %v8124_v3  ;;  %v8198_v12 = vld [vmem:[#allocation20 + $0x6e8] sm:$0xff]  ;;  %v8189_v33 = vld [vmem:[#allocation20 + $0x6a0] sm:$0xff] }
0x273f   :  { %v11607_v36 = vpop.f32.mrf.mxu1  ;;  %v10602_v47 = vcombine.low %v8194_v17, %v8198_v12  ;;  %v10603_v15 = vcombine.high %v8194_v17, %v8198_v12  ;;  %v8223_v12 = vld [vmem:[#allocation20 + $0x7b0] sm:$0xff] }
0x2740   :  { %v8125_v5 = vadd.f32 %v8121_v56, %v14052_v35  ;;  %v8186_v56 = vld [vmem:[#allocation20 + $0x688] sm:$0xff] }
0x2741   :  { %8648 = vmatprep.subr.bf16.mxu1 %v10603_v15 }
0x2742   :  { %8132 = vadd.xlane.f32.xlu1 %v8125_v5  ;;  %8649 = vmatpush1.bf16.msra.mxu1 %v10602_v47  ;;  %v8224_v47 = vld [vmem:[#allocation20 + $0x7b8] sm:$0xff] }
0x27c7   :  { %v8131_v10 = vpop.xlane.xlu0 %8130 }
0x27c8   :  { %v8134_v59 = vmul.f32 0.0078125, %v8131_v10  ;;  %v10584_v10 = vcombine.low %v8177_v6, %v8181_v62 }
0x27ca   :  { %v14156_v27 = vsub.f32 %v8124_v3, %v8134_v59  ;;  %v8185_v3 = vld [vmem:[#allocation20 + $0x680] sm:$0xff]  ;;  %v10586_v59 = vcombine.low %v8178_v63, %v8182_v23 }
0x27cb   :  { %v8133_v20 = vpop.xlane.xlu1 %8132  ;;  %v10593_v36 = vcombine.high %v8185_v3, %v8189_v33  ;;  %v10592_v16 = vcombine.low %v8185_v3, %v8189_v33 }
0x27cc   :  { %v8135_v11 = vmul.f32 0.0078125, %v8133_v20  ;;  %v8138_v35 = vmul.f32 %v14156_v27, %v14156_v27  ;;  %v10587_v20 = vcombine.high %v8178_v63, %v8182_v23  ;;  %v8203_v63 = vld [vmem:[#allocation20 + $0x710] sm:$0xff]  ;;  %v8204_v23 = vld [vmem:[#allocation20 + $0x718] sm:$0xff] }
0x27cd   :  { %8607 = vmatprep.subr.bf16.mxu0 %v10593_v36  ;;  %v8211_v36 = vld [vmem:[#allocation20 + $0x750] sm:$0xff] }
0x27ce   :  { %v14160_v7 = vsub.f32 %v8125_v5, %v8135_v11  ;;  %8140 = vadd.xlane.f32.xlu0 %v8138_v35  ;;  %v8190_v5 = vld [vmem:[#allocation20 + $0x6a8] sm:$0xff]  ;;  %8608 = vmatpush1.bf16.msra.mxu0 %v10592_v16  ;;  %v8169_v11 = vld [vmem:[#allocation20 + $0x600] sm:$0xff]  ;;  %v8212_v16 = vld [vmem:[#allocation20 + $0x758] sm:$0xff] }
0x27cf   :  { %v10594_v61 = vcombine.low %v8186_v56, %v8190_v5  ;;  %v10595_v24 = vcombine.high %v8186_v56, %v8190_v5  ;;  %8609 = vmatprep.subr.bf16.mxu0 %v10585_v60  ;;  %v8173_v35 = vld [vmem:[#allocation20 + $0x620] sm:$0xff]  ;;  %v10631_v56 = vcombine.high %v8220_v14, %v8224_v47  ;;  %v8215_v5 = vld [vmem:[#allocation20 + $0x770] sm:$0xff] }
0x27d0   :  { %v8139_v22 = vmul.f32 %v14160_v7, %v14160_v7  ;;  %v10576_v13 = vcombine.low %v8169_v11, %v8173_v35  ;;  %v10577_v25 = vcombine.high %v8169_v11, %v8173_v35  ;;  %v10621_v6 = vcombine.high %v8211_v36, %v8215_v5  ;;  %v8207_v60 = vld [vmem:[#allocation20 + $0x730] sm:$0xff] }
0x27d1   :  { %8650 = vmatprep.subr.bf16.mxu1 %v10595_v24  ;;  %v10630_v24 = vcombine.low %v8220_v14, %v8224_v47  ;;  %v10613_v11 = vcombine.high %v8203_v63, %v8207_v60  ;;  %v10612_v28 = vcombine.low %v8203_v63, %v8207_v60  ;;  %v12374_v63 = vld [vmem:[#allocation23 + $0x6e8] sm:$0xff]  }
0x27d2   :  { %8142 = vadd.xlane.f32.xlu0 %v8139_v22  ;;  %8651 = vmatpush1.bf16.msra.mxu1 %v10594_v61  ;;  %v8170_v22 = vld [vmem:[#allocation20 + $0x608] sm:$0xff]  ;;  %v10628_v61 = vcombine.low %v8219_v9, %v8223_v12 }
0x27d3   :  { %8652 = vmatprep.subr.bf16.mxu1 %v10587_v20  ;;  %8610 = vmatpush1.bf16.msra.mxu0 %v10584_v10  ;;  %v10578_v30 = vcombine.low %v8170_v22, %v8174_v26  ;;  %v10579_v31 = vcombine.high %v8170_v22, %v8174_v26  ;;  %v8208_v10 = vld [vmem:[#allocation20 + $0x738] sm:$0xff]  ;;  %v8195_v22 = vld [vmem:[#allocation20 + $0x6d0] sm:$0xff]  ;;  %v12375_v60 = vld [vmem:[#allocation23 + $0x628] sm:$0xff]  }
0x27d4   :  { %8611 = vmatprep.subr.bf16.mxu0 %v10577_v25  ;;  %v10615_v35 = vcombine.high %v8204_v23, %v8208_v10  ;;  %v8196_v25 = vld [vmem:[#allocation20 + $0x6d8] sm:$0xff]  ;;  %v10614_v29 = vcombine.low %v8204_v23, %v8208_v10  ;;  %v12376_v23 = vld [vmem:[#allocation23 + $0x6a8] sm:$0xff]   ;;  %v12377_v10 = vld [vmem:[#allocation23 + $0x660] sm:$0xff]  }
0x27d5   :  { %v8200_v26 = vld [vmem:[#allocation20 + $0x6f8] sm:$0xff] }
0x27d6   :  { %8653 = vmatpush1.bf16.msra.mxu1 %v10586_v59  ;;  %v10620_v59 = vcombine.low %v8211_v36, %v8215_v5  ;;  %v12366_v36 = vld [vmem:[#allocation23 + $0x6f8] sm:$0xff]  }
0x27d7   :  { %8654 = vmatprep.subr.bf16.mxu1 %v10579_v31  ;;  %8612 = vmatpush1.bf16.msra.mxu0 %v10576_v13  ;;  %v8199_v13 = vld [vmem:[#allocation20 + $0x6f0] sm:$0xff]  ;;  %v12367_v5 = vld [vmem:[#allocation23 + $0x638] sm:$0xff]  }
0x27d8   :  { %8683 = vmatprep.subr.bf16.mxu0 %v10637_v34  ;;  %v8187_v31 = vld [vmem:[#allocation20 + $0x690] sm:$0xff]  ;;  %v8188_v34 = vld [vmem:[#allocation20 + $0x698] sm:$0xff]  ;;  %v10604_v38 = vcombine.low %v8195_v22, %v8199_v13 }
0x27da   :  { %8655 = vmatpush1.bf16.msra.mxu1 %v10578_v30  ;;  %v10605_v30 = vcombine.high %v8195_v22, %v8199_v13  ;;  %v12383_v22 = vld [vmem:[#allocation23 + $0x618] sm:$0xff]  }
0x27db   :  { %8726 = vmatprep.subr.bf16.mxu1 %v10639_v50  ;;  %v12384_v13 = vld [vmem:[#allocation23 + $0x698] sm:$0xff]  }
0x2857   :  { %v8141_v51 = vpop.xlane.xlu0 %8140 }
0x2858   :  { %v8144_v52 = vmul.f32 0.0078125, %v8141_v51  ;;  %v10599_v51 = vcombine.high %v8188_v34, %v8192_v39 }
0x285a   :  { %v8146_v53 = vadd.f32 1e-05, %v8144_v52  ;;  %v8179_v52 = vld [vmem:[#allocation20 + $0x650] sm:$0xff] }
0x285b   :  { %v8143_v54 = vpop.xlane.xlu0 %8142 }
0x285c   :  { %12593 = vrsqrt.f32 %v8146_v53  ;;  %v8145_v55 = vmul.f32 0.0078125, %v8143_v54  ;;  %v8183_v53 = vld [vmem:[#allocation20 + $0x670] sm:$0xff]  ;;  %v8180_v54 = vld [vmem:[#allocation20 + $0x658] sm:$0xff] }
0x285e   :  { %v8147_v57 = vadd.f32 1e-05, %v8145_v55  ;;  %v8184_v55 = vld [vmem:[#allocation20 + $0x678] sm:$0xff] }
0x2860   :  { %12595 = vrsqrt.f32 %v8147_v57 }
0x2869   :  { %v12594_v41 = vpop.eup %12593 }
0x286a   :  { %v8150_v58 = vmul.f32 %v12594_v41, %v14156_v27  ;;  %v10629_v27 = vcombine.high %v8219_v9, %v8223_v12  ;;  %v10598_v41 = vcombine.low %v8188_v34, %v8192_v39  ;;  %v10590_v9 = vcombine.low %v8180_v54, %v8184_v55  ;;  %v12393_v34 = vld [vmem:[#allocation23 + $0x640] sm:$0xff]  }
0x286b   :  { %v12394_v39 = vld [vmem:[#allocation23 + $0x6c0] sm:$0xff]  }
0x286c   :  { %v8158_v18 = vmul.f32 %v10574_v21, %v8150_v58  ;;  %v10589_v58 = vcombine.high %v8179_v52, %v8183_v53 }
0x286d   :  { %v12596_v2 = vpop.eup %12595 }
0x286e   :  { %v8151_v4 = vmul.f32 %v12596_v2, %v14160_v7  ;;  %v14166_v15 = vadd.f32 %v10575_v8, %v8158_v18  ;;  %v8216_v7 = vld [vmem:[#allocation20 + $0x778] sm:$0xff]  ;;  %v8171_v2 = vld [vmem:[#allocation20 + $0x610] sm:$0xff] }
0x286f   :  { %v10623_v62 = vcombine.high %v8212_v16, %v8216_v7  ;;  %v10622_v20 = vcombine.low %v8212_v16, %v8216_v7  ;;  %v8175_v18 = vld [vmem:[#allocation20 + $0x630] sm:$0xff]  ;;  %v12368_v16 = vld [vmem:[#allocation23 + $0x6b8] sm:$0xff]  }
0x2870   :  { %v8159_v17 = vmul.f32 %v10574_v21, %v8151_v4  ;;  %v10591_v21 = vcombine.high %v8180_v54, %v8184_v55  ;;  %v8172_v4 = vld [vmem:[#allocation20 + $0x618] sm:$0xff]  ;;  %v10581_v12 = vcombine.high %v8171_v2, %v8175_v18  ;;  %v10580_v47 = vcombine.low %v8171_v2, %v8175_v18  ;;  %v12369_v7 = vld [vmem:[#allocation23 + $0x670] sm:$0xff]  }
0x2872   :  { %v14168_v3 = vadd.f32 %v10575_v8, %v8159_v17  ;;  %v8176_v8 = vld [vmem:[#allocation20 + $0x638] sm:$0xff]  ;;  %v10588_v17 = vcombine.low %v8179_v52, %v8183_v53 }
0x2873   :  { %v10583_v14 = vcombine.high %v8172_v4, %v8176_v8  ;;  %v14180_v52 = vld [vmem:[#allocation22 + $0x18] sm:$0xff] }
0x2874   :  { %v14172_v33 = vpack.c.bf16 %v14168_v3, %v14166_v15  ;;  %v8244_v55 = vrot.slane %v14180_v52, %v13508_v45 }
0x2876   :  { %8630 = vmatmul.mubr.bf16.vlgmr.msra.gmra.mxu0 %v14172_v33  ;;  %8673 = vmatmul.mubr.bf16.vlgmr.msra.gmra.mxu1 %v14172_v33 }
0x2877   :  { %8684 = vmatpush1.bf16.msra.mxu0 %v10636_v37  ;;  %8727 = vmatpush1.bf16.msra.mxu1 %v10638_v19  ;;  %v8191_v37 = vld [vmem:[#allocation20 + $0x6b0] sm:$0xff]  ;;  %v10606_v19 = vcombine.low %v8196_v25, %v8200_v26 }
0x2878   :  { %8685 = vmatprep.subr.bf16.mxu0 %v10629_v27  ;;  %8728 = vmatprep.subr.bf16.mxu1 %v10631_v56  ;;  %v10597_v50 = vcombine.high %v8187_v31, %v8191_v37  ;;  %v10596_v57 = vcombine.low %v8187_v31, %v8191_v37  ;;  %v10582_v27 = vcombine.low %v8172_v4, %v8176_v8  ;;  %v12365_v56 = vld [vmem:[#allocation23 + $0x678] sm:$0xff]   ;;  %v12391_v31 = vld [vmem:[#allocation23 + $0x608] sm:$0xff]  }
0x2879   :  { %8715 = vmatprep.mubr.bf16.mxu0 %v13206_v0  ;;  %8758 = vmatprep.mubr.bf16.mxu1 %v13206_v0  ;;  %v10607_v0 = vcombine.high %v8196_v25, %v8200_v26  ;;  %v12385_v25 = vld [vmem:[#allocation23 + $0x650] sm:$0xff]   ;;  %v12392_v37 = vld [vmem:[#allocation23 + $0x688] sm:$0xff]  }
0x287a   :  { %v12386_v26 = vld [vmem:[#allocation23 + $0x6d0] sm:$0xff]  }
0x287b   :  { %8686 = vmatpush1.bf16.msra.mxu0 %v10628_v61  ;;  %8729 = vmatpush1.bf16.msra.mxu1 %v10630_v24  ;;  %v12370_v61 = vld [vmem:[#allocation23 + $0x6f0] sm:$0xff]  }
0x287c   :  { %8687 = vmatprep.subr.bf16.mxu0 %v10621_v6  ;;  %8730 = vmatprep.subr.bf16.mxu1 %v10623_v62  ;;  %v12371_v24 = vld [vmem:[#allocation23 + $0x630] sm:$0xff]   ;;  %v12373_v62 = vld [vmem:[#allocation23 + $0x668] sm:$0xff]  }
0x287d   :  { %v12372_v6 = vld [vmem:[#allocation23 + $0x6b0] sm:$0xff]  }
0x287f   :  { %8688 = vmatpush1.bf16.msra.mxu0 %v10620_v59  ;;  %8731 = vmatpush1.bf16.msra.mxu1 %v10622_v20  ;;  %v12378_v59 = vld [vmem:[#allocation23 + $0x6e0] sm:$0xff]  }
0x2880   :  { %8689 = vmatprep.subr.bf16.mxu0 %v10613_v11  ;;  %8732 = vmatprep.subr.bf16.mxu1 %v10615_v35  ;;  %v12379_v20 = vld [vmem:[#allocation23 + $0x620] sm:$0xff]   ;;  %v12381_v11 = vld [vmem:[#allocation23 + $0x658] sm:$0xff]  }
0x2881   :  { %v12382_v35 = vld [vmem:[#allocation23 + $0x6d8] sm:$0xff]  }
0x2883   :  { %8690 = vmatpush1.bf16.msra.mxu0 %v10612_v28  ;;  %8733 = vmatpush1.bf16.msra.mxu1 %v10614_v29  ;;  %v12387_v28 = vld [vmem:[#allocation23 + $0x610] sm:$0xff]  }
0x2884   :  { %8691 = vmatprep.subr.bf16.mxu0 %v10605_v30  ;;  %8734 = vmatprep.subr.bf16.mxu1 %v10607_v0  ;;  %v12388_v29 = vld [vmem:[#allocation23 + $0x690] sm:$0xff]   ;;  %v12389_v30 = vld [vmem:[#allocation23 + $0x648] sm:$0xff]  }
0x2885   :  { %v12390_v0 = vld [vmem:[#allocation23 + $0x6c8] sm:$0xff]  }
0x2887   :  { %8692 = vmatpush1.bf16.msra.mxu0 %v10604_v38  ;;  %8735 = vmatpush1.bf16.msra.mxu1 %v10606_v19  ;;  %v12395_v38 = vld [vmem:[#allocation23 + $0x600] sm:$0xff]  }
0x2888   :  { %8693 = vmatprep.subr.bf16.mxu0 %v10597_v50  ;;  %8736 = vmatprep.subr.bf16.mxu1 %v10599_v51  ;;  %v12396_v19 = vld [vmem:[#allocation23 + $0x680] sm:$0xff]   ;;  %v12397_v50 = vld [vmem:[#allocation23 + $0x778] sm:$0xff]  }
0x2889   :  { %v12398_v51 = vld [vmem:[#allocation23 + $0x7f8] sm:$0xff]  }
0x288b   :  { %8694 = vmatpush1.bf16.msra.mxu0 %v10596_v57  ;;  %8737 = vmatpush1.bf16.msra.mxu1 %v10598_v41  ;;  %v8252_v57 = vrot.slane %v14180_v52, %v13635_v46  ;;  %v8240_v41 = vrot.slane %v14180_v52, %v13502_v42 }
0x288c   :  { %8695 = vmatprep.subr.bf16.mxu0 %v10589_v58  ;;  %8738 = vmatprep.subr.bf16.mxu1 %v10591_v21  ;;  %v8248_v58 = vrot.slane %v14180_v52, %v13505_v44 }
0x288f   :  { %8696 = vmatpush1.bf16.msra.mxu0 %v10588_v17  ;;  %8739 = vmatpush1.bf16.msra.mxu1 %v10590_v9 }
0x2890   :  { %8697 = vmatprep.subr.bf16.mxu0 %v10581_v12  ;;  %8740 = vmatprep.subr.bf16.mxu1 %v10583_v14 }
0x2893   :  { %8698 = vmatpush1.bf16.msra.mxu0 %v10580_v47  ;;  %8741 = vmatpush1.bf16.msra.mxu1 %v10582_v27 }
0x2894   :  { %11169 = vmatprep.subr.bf16.mxu0 %v12365_v56  ;;  %11191 = vmatprep.subr.bf16.mxu1 %v12366_v36 }
0x2896   :  { %8716 = vmatmul.mubr.bf16.vlgmr.msra.gmra.mxu0 %v14172_v33  ;;  %8759 = vmatmul.mubr.bf16.vlgmr.msra.gmra.mxu1 %v14172_v33  ;;  %v12380_v33 = vld [vmem:[#allocation23 + $0x6a0] sm:$0xff]  }
0x2897   :  { %11170 = vmatpush3.bf16.msra.mxu0 %v12367_v5  ;;  %11192 = vmatpush3.bf16.msra.mxu1 %v12368_v16 }
0x2898   :  { %11171 = vmatprep.subr.bf16.mxu0 %v12369_v7  ;;  %11193 = vmatprep.subr.bf16.mxu1 %v12370_v61 }
0x289b   :  { %11172 = vmatpush3.bf16.msra.mxu0 %v12371_v24  ;;  %11194 = vmatpush3.bf16.msra.mxu1 %v12372_v6 }
0x289c   :  { %11173 = vmatprep.subr.bf16.mxu0 %v12373_v62  ;;  %11195 = vmatprep.subr.bf16.mxu1 %v12374_v63  ;;  %v12399_v63 = vld [vmem:[#allocation23 + $0x738] sm:$0xff]  }
0x289f   :  { %11174 = vmatpush3.bf16.msra.mxu0 %v12375_v60  ;;  %11196 = vmatpush3.bf16.msra.mxu1 %v12376_v23  ;;  %v12400_v60 = vld [vmem:[#allocation23 + $0x7b8] sm:$0xff]  }
0x28a0   :  { %11175 = vmatprep.subr.bf16.mxu0 %v12377_v10  ;;  %11197 = vmatprep.subr.bf16.mxu1 %v12378_v59  ;;  %v12401_v59 = vld [vmem:[#allocation23 + $0x770] sm:$0xff]  }
0x28a3   :  { %11176 = vmatpush3.bf16.msra.mxu0 %v12379_v20  ;;  %11198 = vmatpush3.bf16.msra.mxu1 %v12380_v33  ;;  %v12402_v20 = vld [vmem:[#allocation23 + $0x7f0] sm:$0xff]  }
0x28a4   :  { %11177 = vmatprep.subr.bf16.mxu0 %v12381_v11  ;;  %11199 = vmatprep.subr.bf16.mxu1 %v12382_v35  ;;  %v12403_v33 = vld [vmem:[#allocation23 + $0x730] sm:$0xff]   ;;  %v12405_v35 = vld [vmem:[#allocation23 + $0x768] sm:$0xff]  }
0x28a5   :  { %v12404_v11 = vld [vmem:[#allocation23 + $0x7b0] sm:$0xff]  }
0x28a7   :  { %11178 = vmatpush3.bf16.msra.mxu0 %v12383_v22  ;;  %11200 = vmatpush3.bf16.msra.mxu1 %v12384_v13  ;;  %v12406_v22 = vld [vmem:[#allocation23 + $0x7e8] sm:$0xff]  }
0x28a8   :  { %11179 = vmatprep.subr.bf16.mxu0 %v12385_v25  ;;  %11201 = vmatprep.subr.bf16.mxu1 %v12386_v26  ;;  %v12407_v13 = vld [vmem:[#allocation23 + $0x728] sm:$0xff]   ;;  %v12409_v26 = vld [vmem:[#allocation23 + $0x760] sm:$0xff]  }
0x28a9   :  { %v12408_v25 = vld [vmem:[#allocation23 + $0x7a8] sm:$0xff]  }
0x28ab   :  { %11180 = vmatpush3.bf16.msra.mxu0 %v12387_v28  ;;  %11202 = vmatpush3.bf16.msra.mxu1 %v12388_v29  ;;  %v12410_v28 = vld [vmem:[#allocation23 + $0x7e0] sm:$0xff]  }
0x28ac   :  { %11181 = vmatprep.subr.bf16.mxu0 %v12389_v30  ;;  %11203 = vmatprep.subr.bf16.mxu1 %v12390_v0  ;;  %v12411_v29 = vld [vmem:[#allocation23 + $0x720] sm:$0xff]   ;;  %v12413_v0 = vld [vmem:[#allocation23 + $0x758] sm:$0xff]  }
0x28ad   :  { %v12412_v30 = vld [vmem:[#allocation23 + $0x7a0] sm:$0xff]  }
0x28af   :  { %11182 = vmatpush3.bf16.msra.mxu0 %v12391_v31  ;;  %11204 = vmatpush3.bf16.msra.mxu1 %v12392_v37  ;;  %v12414_v31 = vld [vmem:[#allocation23 + $0x7d8] sm:$0xff]  }
0x28b0   :  { %11183 = vmatprep.subr.bf16.mxu0 %v12393_v34  ;;  %11205 = vmatprep.subr.bf16.mxu1 %v12394_v39  ;;  %v12415_v37 = vld [vmem:[#allocation23 + $0x718] sm:$0xff]   ;;  %v12417_v39 = vld [vmem:[#allocation23 + $0x750] sm:$0xff]  }
0x28b1   :  { %v12416_v34 = vld [vmem:[#allocation23 + $0x798] sm:$0xff]  }
0x28b3   :  { %11184 = vmatpush3.bf16.msra.mxu0 %v12395_v38  ;;  %11206 = vmatpush3.bf16.msra.mxu1 %v12396_v19  ;;  %v12418_v38 = vld [vmem:[#allocation23 + $0x7d0] sm:$0xff]  }
0x28b4   :  { %11213 = vmatprep.subr.bf16.mxu0 %v12397_v50  ;;  %11235 = vmatprep.subr.bf16.mxu1 %v12398_v51  ;;  %v12419_v19 = vld [vmem:[#allocation23 + $0x710] sm:$0xff]  }
0x28b5   :  { %v12420_v50 = vld [vmem:[#allocation23 + $0x790] sm:$0xff]  }
0x2936   :  { %v8631_v53 = vpop.f32.mrf.mxu0  ;;  %v8674_v54 = vpop.f32.mrf.mxu1 }
0x2937   :  { %v8632_v14 = vadd.f32 %v8631_v53, %v8240_v41  ;;  %v8675_v47 = vadd.f32 %v8674_v54, %v8248_v58  ;;  %v12421_v54 = vld [vmem:[#allocation23 + $0x748] sm:$0xff]  }
0x2938   :  { %v8633_v21 = vpop.f32.mrf.mxu0  ;;  %v8676_v2 = vpop.f32.mrf.mxu1 }
0x2939   :  { %v8634_v8 = vadd.f32 %v8633_v21, %v8244_v55  ;;  %v8677_v17 = vadd.f32 %v8676_v2, %v8252_v57  ;;  %v8769_v61 = vmax.f32 %v8632_v14, 0.0  ;;  %v8771_v24 = vmax.f32 %v8675_v47, 0.0 }
0x293a   :  { %v8635_v18 = vpop.f32.mrf.mxu0  ;;  %v8678_v4 = vpop.f32.mrf.mxu1  ;;  %v8264_v21 = vrot.slane %v14180_v52, %v13657_v49 }
0x293b   :  { %v8636_v9 = vadd.f32 %v8635_v18, %v8240_v41  ;;  %v8679_v12 = vadd.f32 %v8678_v4, %v8248_v58  ;;  %v8770_v42 = vmax.f32 %v8634_v8, 0.0  ;;  %v8772_v16 = vmax.f32 %v8677_v17, 0.0  ;;  %v12423_v4 = vld [vmem:[#allocation23 + $0x708] sm:$0xff]  }
0x293c   :  { %v8637_v45 = vpop.f32.mrf.mxu0  ;;  %v8680_v27 = vpop.f32.mrf.mxu1  ;;  %v8268_v41 = vrot.slane %v14180_v52, %v13651_v43  ;;  %v8256_v58 = vrot.slane %v14180_v52, %v13654_v48  ;;  %v12424_v8 = vld [vmem:[#allocation23 + $0x788] sm:$0xff]  }
0x293d   :  { %v8638_v56 = vadd.f32 %v8637_v45, %v8244_v55  ;;  %v8681_v46 = vadd.f32 %v8680_v27, %v8252_v57  ;;  %v8777_v36 = vmax.f32 %v8636_v9, 0.0  ;;  %v8779_v5 = vmax.f32 %v8679_v12, 0.0  ;;  %v12422_v55 = vld [vmem:[#allocation23 + $0x7c8] sm:$0xff]   ;;  %v12426_v12 = vld [vmem:[#allocation23 + $0x7c0] sm:$0xff]  }
0x293e   :  { %v8260_v57 = vrot.slane %v14180_v52, %v13648_v40  ;;  %v12425_v40 = vld [vmem:[#allocation23 + $0x740] sm:$0xff]  }
0x293f   :  { %v8778_v7 = vmax.f32 %v8638_v56, 0.0  ;;  %v8780_v44 = vmax.f32 %v8681_v46, 0.0  ;;  %v8914_v23 = vpack.c.bf16 %v8777_v36, %v8769_v61  ;;  %v8916_v10 = vpack.c.bf16 %v8779_v5, %v8771_v24  ;;  %v12427_v36 = vld [vmem:[#allocation23 + $0x700] sm:$0xff]  }
0x2940   :  { %v12428_v5 = vld [vmem:[#allocation23 + $0x780] sm:$0xff]  }
0x2941   :  { %v8915_v6 = vpack.c.bf16 %v8778_v7, %v8770_v42  ;;  %v8917_v62 = vpack.c.bf16 %v8780_v44, %v8772_v16 }
0x2943   :  { %9346 = vmatprep.mubr.bf16.mxu0 %v8915_v6  ;;  %9387 = vmatprep.mubr.bf16.mxu1 %v8917_v62 }
0x2944   :  { %9347 = vmatmul.mubr.bf16.vlgmr.msra.gmra.mxu0 %v8914_v23  ;;  %9388 = vmatmul.mubr.bf16.vlgmr.msra.gmra.mxu1 %v8916_v10  ;;  %v12429_v23 = vld [vmem:[%s14291_s26 + $0x8] sm:$0xff]  }
0x2945   :  { %11214 = vmatpush3.bf16.msra.mxu0 %v12399_v63  ;;  %11236 = vmatpush3.bf16.msra.mxu1 %v12400_v60 }
0x2946   :  { %11215 = vmatprep.subr.bf16.mxu0 %v12401_v59  ;;  %11237 = vmatprep.subr.bf16.mxu1 %v12402_v20  ;;  %v12430_v20 = vld [vmem:[%s14291_s26] sm:$0xff]  }
0x2949   :  { %11216 = vmatpush3.bf16.msra.mxu0 %v12403_v33  ;;  %11238 = vmatpush3.bf16.msra.mxu1 %v12404_v11  ;;  %v9691_v33 = vpack.c.b16 %v13874_v32, %v13874_v32 }
0x294a   :  { %11217 = vmatprep.subr.bf16.mxu0 %v12405_v35  ;;  %11239 = vmatprep.subr.bf16.mxu1 %v12406_v22 }
0x294d   :  { %11218 = vmatpush3.bf16.msra.mxu0 %v12407_v13  ;;  %11240 = vmatpush3.bf16.msra.mxu1 %v12408_v25 }
0x294e   :  { %11219 = vmatprep.subr.bf16.mxu0 %v12409_v26  ;;  %11241 = vmatprep.subr.bf16.mxu1 %v12410_v28 }
0x2951   :  { %11220 = vmatpush3.bf16.msra.mxu0 %v12411_v29  ;;  %11242 = vmatpush3.bf16.msra.mxu1 %v12412_v30  ;;  %v10640_v29 = vld [vmem:[#allocation25 + $0x3] ss:$0 sm:$0xff] }
0x2952   :  { %11221 = vmatprep.subr.bf16.mxu0 %v12413_v0  ;;  %11243 = vmatprep.subr.bf16.mxu1 %v12414_v31 }
0x2955   :  { %11222 = vmatpush3.bf16.msra.mxu0 %v12415_v37  ;;  %11244 = vmatpush3.bf16.msra.mxu1 %v12416_v34 }
0x2956   :  { %v8717_v51 = vpop.f32.mrf.mxu0  ;;  %v8760_v53 = vpop.f32.mrf.mxu1  ;;  %11223 = vmatprep.subr.bf16.mxu0 %v12417_v39  ;;  %11245 = vmatprep.subr.bf16.mxu1 %v12418_v38 }
0x2957   :  { %v8718_v48 = vadd.f32 %v8717_v51, %v8256_v58  ;;  %v8761_v27 = vadd.f32 %v8760_v53, %v8264_v21 }
0x2958   :  { %v8719_v2 = vpop.f32.mrf.mxu0  ;;  %v8762_v18 = vpop.f32.mrf.mxu1 }
0x2959   :  { %11224 = vmatpush3.bf16.msra.mxu0 %v12419_v19  ;;  %11246 = vmatpush3.bf16.msra.mxu1 %v12420_v50  ;;  %v8720_v14 = vadd.f32 %v8719_v2, %v8260_v57  ;;  %v8763_v43 = vadd.f32 %v8762_v18, %v8268_v41  ;;  %v8773_v6 = vmax.f32 %v8718_v48, 0.0  ;;  %v8775_v62 = vmax.f32 %v8761_v27, 0.0 }
0x295a   :  { %v8721_v17 = vpop.f32.mrf.mxu0  ;;  %v8764_v9 = vpop.f32.mrf.mxu1  ;;  %11225 = vmatprep.subr.bf16.mxu0 %v12421_v54  ;;  %11247 = vmatprep.subr.bf16.mxu1 %v12422_v55 }
0x295b   :  { %v8722_v47 = vadd.f32 %v8721_v17, %v8256_v58  ;;  %v8765_v45 = vadd.f32 %v8764_v9, %v8264_v21  ;;  %v8774_v7 = vmax.f32 %v8720_v14, 0.0  ;;  %v8776_v44 = vmax.f32 %v8763_v43, 0.0  ;;  %v10716_v17 = vld [vmem:[#allocation35] ss:$0 sm:$0xff] }
0x295c   :  { %v8723_v56 = vpop.f32.mrf.mxu0  ;;  %v8766_v49 = vpop.f32.mrf.mxu1 }
0x295d   :  { %v8724_v52 = vadd.f32 %v8723_v56, %v8260_v57  ;;  %v8767_v46 = vadd.f32 %v8766_v49, %v8268_v41  ;;  %11226 = vmatpush3.bf16.msra.mxu0 %v12423_v4  ;;  %11248 = vmatpush3.bf16.msra.mxu1 %v12424_v8  ;;  %v8781_v42 = vmax.f32 %v8722_v47, 0.0  ;;  %v8783_v16 = vmax.f32 %v8765_v45, 0.0 }
0x295e   :  { %11227 = vmatprep.subr.bf16.mxu0 %v12425_v40  ;;  %11249 = vmatprep.subr.bf16.mxu1 %v12426_v12 }
0x295f   :  { %v8782_v61 = vmax.f32 %v8724_v52, 0.0  ;;  %v8784_v24 = vmax.f32 %v8767_v46, 0.0  ;;  %v8918_v10 = vpack.c.bf16 %v8781_v42, %v8773_v6  ;;  %v8920_v59 = vpack.c.bf16 %v8783_v16, %v8775_v62  ;;  %v12431_v62 = vld [vmem:[%s14292_s20 + $0x38] sm:$0xff]  }
0x2961   :  { %v8919_v63 = vpack.c.bf16 %v8782_v61, %v8774_v7  ;;  %v8921_v60 = vpack.c.bf16 %v8784_v24, %v8776_v44  ;;  %11228 = vmatpush3.bf16.msra.mxu0 %v12427_v36  ;;  %11250 = vmatpush3.bf16.msra.mxu1 %v12428_v5 }
0x2962   :  { %11628 = vmatprep.subr.bf16.mxu1 %v13207_v1  ;;  %11608 = vmatprep.subr.bf16.mxu0 %v13207_v1 }
0x2963   :  { %9428 = vmatprep.mubr.bf16.mxu0 %v8919_v63  ;;  %9469 = vmatprep.mubr.bf16.mxu1 %v8921_v60  ;;  %v12432_v63 = vld [vmem:[%s14292_s20 + $0x30] sm:$0xff]   ;;  %v12433_v60 = vld [vmem:[%s14292_s20 + $0x28] sm:$0xff]  }
0x2964   :  { %9429 = vmatmul.mubr.bf16.vlgmr.msra.gmra.mxu0 %v8918_v10  ;;  %9470 = vmatmul.mubr.bf16.vlgmr.msra.gmra.mxu1 %v8920_v59  ;;  %v12435_v10 = vld [vmem:[%s14292_s20 + $0x18] sm:$0xff]   ;;  %v12436_v59 = vld [vmem:[%s14292_s20 + $0x10] sm:$0xff]  }
0x2965   :  { %11629 = vmatpush3.bf16.msra.mxu1 %v12429_v23  ;;  %11632 = vmatprep.mubr.msk.bf16.mxu1 %vm13208_vm0, %v13207_v1  ;;  %v12434_v23 = vld [vmem:[%s14292_s20 + $0x20] sm:$0xff]  }
0x2966   :  { %11630 = vmatprep.subr.bf16.mxu1 %v13207_v1  ;;  %11624 = vmatprep.mubr.msk.bf16.mxu0 %vm13208_vm0, %v13207_v1 }
0x2967   :  { %11609 = vmatpush3.bf16.msra.mxu0 %v12431_v62 }
0x2968   :  { %11610 = vmatprep.subr.bf16.mxu0 %v13207_v1 }
0x2969   :  { %11631 = vmatpush3.bf16.msra.mxu1 %v12430_v20  ;;  %v12437_v20 = vld [vmem:[%s14292_s20 + $0x8] sm:$0xff]  }
0x296b   :  { %11611 = vmatpush3.bf16.msra.mxu0 %v12432_v63 }
0x296c   :  { %11633 = vmatmul.mubr.msk.bf16.vlgmr.msra.gmra.mxu1 %vm1131_vm1, %v9691_v33  ;;  %11612 = vmatprep.subr.bf16.mxu0 %v13207_v1  ;;  %v12438_v33 = vld [vmem:[%s14292_s20] sm:$0xff]  }
0x296f   :  { %11613 = vmatpush3.bf16.msra.mxu0 %v12433_v60 }
0x2970   :  { %11614 = vmatprep.subr.bf16.mxu0 %v13207_v1 }
0x2973   :  { %11615 = vmatpush3.bf16.msra.mxu0 %v12434_v23 }
0x2974   :  { %11616 = vmatprep.subr.bf16.mxu0 %v13207_v1 }
0x2977   :  { %11617 = vmatpush3.bf16.msra.mxu0 %v12435_v10 }
0x2978   :  { %11618 = vmatprep.subr.bf16.mxu0 %v13207_v1 }
0x297b   :  { %11619 = vmatpush3.bf16.msra.mxu0 %v12436_v59 }
0x297c   :  { %11620 = vmatprep.subr.bf16.mxu0 %v13207_v1 }
0x297f   :  { %11621 = vmatpush3.bf16.msra.mxu0 %v12437_v20 }
0x2980   :  { %11622 = vmatprep.subr.bf16.mxu0 %v13207_v1 }
0x2983   :  { %11623 = vmatpush3.bf16.msra.mxu0 %v12438_v33 }
0x2984   :  { %11636 = vmatprep.subr.bf16.mxu0 %v13207_v1 }
0x2a04   :  { %v11185_v11 = vpop.f32.mrf.mxu0  ;;  %v11207_v35 = vpop.f32.mrf.mxu1 }
0x2a06   :  { %v11186_v22 = vpop.f32.mrf.mxu0  ;;  %v11208_v13 = vpop.f32.mrf.mxu1 }
0x2a07   :  { %v11187_v28 = vadd.f32 %v11186_v22, %v11185_v11  ;;  %v11209_v38 = vadd.f32 %v11208_v13, %v11207_v35 }
0x2a08   :  { %v11188_v25 = vpop.f32.mrf.mxu0  ;;  %v11210_v26 = vpop.f32.mrf.mxu1 }
0x2a09   :  { %v9349_v31 = vadd.f32 %v11187_v28, %v10640_v29 }
0x2a0a   :  { %v11189_v30 = vpop.f32.mrf.mxu0  ;;  %v11211_v0 = vpop.f32.mrf.mxu1 }
0x2a0b   :  { %v11190_v37 = vadd.f32 %v11189_v30, %v11188_v25  ;;  %v9390_v32 = vadd.f32 %v11209_v38, %v9349_v31  ;;  %v11212_v57 = vadd.f32 %v11211_v0, %v11210_v26  ;;  %v10705_v0 = vld [vmem:[#allocation26 + $0x3] ss:$0 sm:$0xff] }
0x2a0d   :  { %v9352_v51 = vadd.f32 %v11190_v37, %v10640_v29  ;;  %v10706_v37 = vld [vmem:[#allocation28 + $0x3] ss:$0 sm:$0xff] }
0x2a0f   :  { %v9393_v18 = vadd.f32 %v11212_v57, %v9352_v51 }
0x2a24   :  { %v11229_v34 = vpop.f32.mrf.mxu0  ;;  %v11251_v39 = vpop.f32.mrf.mxu1 }
0x2a26   :  { %v11230_v19 = vpop.f32.mrf.mxu0  ;;  %v11252_v50 = vpop.f32.mrf.mxu1 }
0x2a27   :  { %v11231_v53 = vadd.f32 %v11230_v19, %v11229_v34  ;;  %v11253_v58 = vadd.f32 %v11252_v50, %v11251_v39 }
0x2a28   :  { %v11232_v54 = vpop.f32.mrf.mxu0  ;;  %v11254_v55 = vpop.f32.mrf.mxu1 }
0x2a29   :  { %v9431_v41 = vadd.f32 %v11231_v53, %v9390_v32 }
0x2a2a   :  { %v11233_v21 = vpop.f32.mrf.mxu0  ;;  %v11255_v2 = vpop.f32.mrf.mxu1 }
0x2a2b   :  { %v9472_v4 = vadd.f32 %v11253_v58, %v9431_v41  ;;  %v11234_v8 = vadd.f32 %v11233_v21, %v11232_v54  ;;  %v11256_v12 = vadd.f32 %v11255_v2, %v11254_v55 }
0x2a2c   :  { %v9741_v9 = vpop.f32.mrf.mxu1 }
0x2a2d   :  { %v9434_v40 = vadd.f32 %v11234_v8, %v9393_v18  ;;  %v9478_v14 = vadd.f32 %v9472_v4, %v14166_v15  ;;  %v9742_v43 = vadd.f32 %v10716_v17, %v9741_v9 }
0x2a2e   :  { %v11634_v47 = vpop.f32.mrf.mxu1 }
0x2a2f   :  { %v9475_v45 = vadd.f32 %v11256_v12, %v9434_v40  ;;  %9484 = vadd.xlane.f32.xlu1 %v9478_v14  ;;  %v9750_v49 = vsel %vm9749_vm5, %v9742_v43, 0.0 }
0x2a30   :  { %v9744_v48 = vpop.f32.mrf.mxu1 }
0x2a31   :  { %v9479_v27 = vadd.f32 %v9475_v45, %v14168_v3 }
0x2a32   :  { %v11635_v56 = vpop.f32.mrf.mxu1 }
0x2a33   :  { %9486 = vadd.xlane.f32.xlu0 %v9479_v27  ;;  %9751 = vadd.xlane.f32.xlu1 %v9750_v49  ;;  %v10721_v49 = vld [vmem:[%s14294_s17] ss:$0 sm:$0xff] }
0x2ab8   :  { %v9485_v52 = vpop.xlane.xlu1 %9484 }
0x2ab9   :  { %v9488_v46 = vmul.f32 0.0078125, %v9485_v52 }
0x2abb   :  { %v9490_v36 = vsub.f32 %v9478_v14, %v9488_v46  ;;  %v10720_v14 = vld [vmem:[%s14293_s5] ss:$0 sm:$0xff]  ;;  %v12439_v46 = vld [vmem:[%s13385_s6 + $0x8] sm:$0xff]  }
0x2abc   :  { %v9487_v5 = vpop.xlane.xlu0 %9486  ;;  %v9752_v15 = vpop.xlane.xlu1 %9751 }
0x2abd   :  { %v9489_v42 = vmul.f32 0.0078125, %v9487_v5  ;;  %v9754_v16 = vmul.f32 0.03125, %v9752_v15  ;;  %v9492_v7 = vmul.f32 %v9490_v36, %v9490_v36  ;;  %v12440_v15 = vld [vmem:[%s13385_s6] sm:$0xff]   ;;  %s13067_s6 = scalar_lea.vmem %s9855_s13, 32 }
0x2abe   :  { %p13068_p12 = scmp.ne.s32.totalorder %s9855_s13, %s13067_s6  ;;  %p13073_p0 = scmp.lt.s32.totalorder %s13067_s6, %s13067_s6 }
0x2abf   :  { %v9491_v44 = vsub.f32 %v9479_v27, %v9489_v42  ;;  %v14213_v61 = vsub.f32 %v9742_v43, %v9754_v16  ;;  %9494 = vadd.xlane.f32.xlu0 %v9492_v7  ;;  %v10707_v7 = vld [vmem:[#allocation34] ss:$0 sm:$0xff] }
0x2ac0   :  { %p13074_p1 = por %p13073_p0, %p13072_p13 }
0x2ac1   :  { %v9493_v3 = vmul.f32 %v9491_v44, %v9491_v44  ;;  %v9756_v24 = vmul.f32 %v14213_v61, %v14213_v61 }
0x2ac2   :  { %p13075_p2 = pnand %p13074_p1, %p13068_p12 }
0x2ac3   :  { %9496 = vadd.xlane.f32.xlu1 %v9493_v3  ;;  %v9757_v6 = vsel %vm9749_vm5, %v9756_v24, 0.0 }
0x2ac4   :  { %9758 = vadd.xlane.f32.xlu0 %v9757_v6 }
0x2b48   :  { %v9495_v11 = vpop.xlane.xlu0 %9494 }
0x2b49   :  { %v9498_v35 = vmul.f32 0.0078125, %v9495_v11 }
0x2b4b   :  { %v9500_v22 = vadd.f32 1e-05, %v9498_v35 }
0x2b4c   :  { %v9497_v13 = vpop.xlane.xlu1 %9496 }
0x2b4d   :  { %12597 = vrsqrt.f32 %v9500_v22  ;;  %v9499_v25 = vmul.f32 0.0078125, %v9497_v13  ;;  %v9759_v28 = vpop.xlane.xlu0 %9758 }
0x2b4e   :  { %v9760_v29 = vmul.f32 0.03125, %v9759_v28 }
0x2b4f   :  { %v9501_v26 = vadd.f32 1e-05, %v9499_v25 }
0x2b50   :  { %v9761_v34 = vadd.f32 1e-05, %v9760_v29 }
0x2b51   :  { %12599 = vrsqrt.f32 %v9501_v26 }
0x2b52   :  { %12601 = vrsqrt.f32 %v9761_v34 }
0x2b5a   :  { %v12598_v30 = vpop.eup %12597 }
0x2b5b   :  { %v9504_v31 = vmul.f32 %v12598_v30, %v9490_v36 }
0x2b5d   :  { %v9512_v39 = vmul.f32 %v10705_v0, %v9504_v31 }
0x2b5e   :  { %v12600_v38 = vpop.eup %12599 }
0x2b5f   :  { %v9520_v19 = vadd.f32 %v10706_v37, %v9512_v39  ;;  %v9505_v50 = vmul.f32 %v12600_v38, %v9491_v44  ;;  %v12602_v8 = vpop.eup %12601 }
0x2b60   :  { %v9763_v12 = vmul.f32 %v12602_v8, %v14213_v61 }
0x2b61   :  { %v9522_v32 = vrot.slane %v9520_v19, 4  ;;  %v9513_v51 = vmul.f32 %v10705_v0, %v9505_v50 }
0x2b62   :  { %v9770_v48 = vmul.f32 %v10720_v14, %v9763_v12 }
0x2b63   :  { %v9523_v53 = vadd.f32 %v9522_v32, %v9520_v19  ;;  %v9521_v54 = vadd.f32 %v10706_v37, %v9513_v51 }
0x2b64   :  { %v9777_v5 = vadd.f32 %v10721_v49, %v9770_v48 }
0x2b65   :  { %v9528_v55 = vrot.slane %v9521_v54, 4  ;;  %v9524_v57 = vrot.slane %v9523_v53, 2 }
0x2b66   :  { %v9778_v42 = vmax.f32 %v9777_v5, 0.0 }
0x2b67   :  { %v9529_v41 = vadd.f32 %v9528_v55, %v9521_v54  ;;  %v9525_v58 = vadd.f32 %v9524_v57, %v9523_v53 }
0x2b68   :  { %v9783_v16 = vpack.c.bf16 %v9778_v42, %v9778_v42 }
0x2b69   :  { %v9526_v21 = vrot.slane %v9525_v58, 1  ;;  %v9530_v2 = vrot.slane %v9529_v41, 2 }
0x2b6b   :  { %v9527_v18 = vadd.f32 %v9526_v21, %v9525_v58  ;;  %v9531_v4 = vadd.f32 %v9530_v2, %v9529_v41 }
0x2b6d   :  { %v9532_v17 = vrot.slane %v9531_v4, 1  ;;  %v9535_v9 = vmul.f32 0.125, %v9527_v18 }
0x2b6f   :  { %v9533_v40 = vadd.f32 %v9532_v17, %v9531_v4  ;;  %v9553_v47 = vpack.c.bf16 %v9535_v9, %v9535_v9 }
0x2b71   :  { %v9536_v43 = vmul.f32 0.125, %v9533_v40  ;;  %v9564_v27 = vunpack.c.l.b16 %v9553_v47 }
0x2b73   :  { %v9554_v45 = vpack.c.bf16 %v9536_v43, %v9536_v43 }
0x2b75   :  { %v9565_v56 = vunpack.c.l.b16 %v9554_v45 }
0x2b77   :  { %v9567_v52 = vsel %vm9566_vm4, %v9565_v56, %v9564_v27 }
0x2b78   :  { %v9568_v36 = vpack.c.b16 %v9567_v52, %v9567_v52 }
0x2b7a   :  { %11625 = vmatmul.mubr.bf16.vlgmr.msra.gmra.mxu0 %v9568_v36 }
0x2b7b   :  { %11637 = vmatpush3.bf16.msra.mxu0 %v12439_v46  ;;  %11640 = vmatprep.mubr.msk.bf16.mxu0 %vm13208_vm0, %v13207_v1 }
0x2b7c   :  { %11638 = vmatprep.subr.bf16.mxu0 %v13207_v1 }
0x2b7f   :  { %11639 = vmatpush3.bf16.msra.mxu0 %v12440_v15 }
0x2b82   :  { %11641 = vmatmul.mubr.msk.bf16.vlgmr.msra.gmra.mxu0 %vm1131_vm1, %v9783_v16 }
0x2c3a   :  { %v9652_v44 = vpop.f32.mrf.mxu0 }
0x2c3b   :  { %v9653_v61 = vadd.f32 %v10707_v7, %v9652_v44 }
0x2c3c   :  { %v11626_v3 = vpop.f32.mrf.mxu0 }
0x2c3d   :  { %9658 = vst [vmem:[#allocation37] sm:$0x3] %v9653_v61 }
0x2c3e   :  { %v9655_v24 = vpop.f32.mrf.mxu0 }
0x2c3f   :  { %13078 = shalt.err (!%p13075_p2)
}
0x2c40   :  { %9857 = dma.vmem_to_hbm [thread:$0]  %s9855_s13, 32, %s13395_s25, [#allocation4]   ;;  %v11627_v1 = vpop.f32.mrf.mxu0  ;;  %v10722_v6 = vld [vmem:[%s13390_s12] ss:$0 sm:$0xff]  ;;  %vm9846_vm6 = vcmask 25600  }
0x2c41   :  { %s13211_s0 = smov [#allocation38]  }
0x2c42   :  { %s9864_s7 = sshll.u32 %s13211_s0, 4  ;;  %v9840_v62 = vpop.f32.mrf.mxu0  ;;  %s9865_s7 = int_to_ptr.vmem [resolvable:$true] %s9864_s7 }
0x2c43   :  { %v9841_v63 = vadd.f32 %v10722_v6, %v9840_v62  ;;  %s13087_s23 = scalar_lea.vmem %s9865_s7, 32  ;;  %p13092_p4 = scmp.lt.s32.totalorder %s9865_s7, %s9865_s7 }
0x2c44   :  { %v11642_v60 = vpop.f32.mrf.mxu0  ;;  %p13088_p3 = scmp.ne.s32.totalorder %s9865_s7, %s13087_s23  ;;  %p13093_p5 = scmp.lt.s32.totalorder %s13087_s23, %s13087_s23 }
0x2c45   :  { %9847 = vst.msk [vmem:[#allocation38] sm:$0x3] %vm9846_vm6, %v9841_v63 }
0x2c46   :  { %v9843_v23 = vpop.f32.mrf.mxu0  ;;  %p13094_p6 = por %p13093_p5, %p13092_p4 }
0x2c48   :  { %p13095_p7 = pnand %p13094_p6, %p13088_p3 }
0x2c4a   :  { %13098 = shalt.err (!%p13095_p7)
}
0x2c4b   :  { %9867 = dma.vmem_to_hbm [thread:$0]  %s9865_s7, 32, %s13400_s27, [#allocation39]   ;;  %v11643_v10 = vpop.f32.mrf.mxu0 }
0x2c4c   :  { %13131 = dma.done.wait [#allocation4], 32  }
0x2c4d   :  { %13132 = vsyncadd [#allocation4], 4294967264 }
0x2c4e   :  { %13133 = dma.done.wait [#allocation39], 32  }
0x2c4f   :  { %13134 = vsyncadd [#allocation39], 4294967264 }
0x2c50   :  { %9874 = vsyncpa [#allocation3], 1 }
0x2c51   :  { %9875 = vsyncpa [#allocation6], 1 }
0x2c52   :  { %9876 = vsyncpa [#allocation9], 1 }
0x2c53   :  { %9877 = vsyncpa [#allocation12], 1 }
0x2c54   :  { %9878 = vsyncpa [#allocation15], 1 }
0x2c55   :  { %9879 = vsyncpa [#allocation18], 1 }
0x2c56   :  { %9880 = vsyncpa [#allocation21], 1 }
0x2c57   :  { %9881 = vsyncpa [#allocation24], 1 }
0x2c58   :  { %9882 = vsyncpa [#allocation27], 1 }
0x2c59   :  { %9883 = vsyncpa [#allocation30], 1 }
0x2c5a   :  { %9884 = vsyncpa [#allocation33], 1 }
0x2c5b   :  { %9885 = vsyncpa [#allocation36], 1 }
0x2c5c   :  { %9886 = vsyncpa [#allocation4], 1 }
0x2c5d   :  { %9887 = vsyncpa [#allocation39], 1 }

</bundles_post_ra>
